<compile_context>
chip_gen: v6e
topology: v6e:2x2x1
jax: 0.10.0
libtpu: 0.0.40
codegen_flags: <defaults>
</compile_context>

<pallas_src>
import jax
import jax.numpy as jnp
from jax import lax
from jax.experimental import pallas as pl
from jax.experimental.pallas import tpu as pltpu

WORD_DIM = 300
CHAR_DIM = 64
CHAR_OUT = 64
CHAR_OUT_PAD = 128                 # lane-dense char feature width (cols 64..127 == 0)
HW_DIM = WORD_DIM + CHAR_OUT       # 364 (logical highway width)
D_PAD = 384                        # 364 padded to 3*128 lanes
OUT_DIM = 64
OUT_PAD = 128                      # lane-dense final output, sliced to 64 in the wrapper
VOCAB = 500                        # synthetic (real model uses 231172)
CHAR_VOCAB = 70
CHAR_LEN = 16


def _round_up(x, m):
    return (x + m - 1) // m * m


def _vmem_budget():
    """(vmem_limit_bytes, per-block input byte budget), tuned to this chip's VMEM.
    v7x reports 64 MiB -> 48 MiB scoped / ~6 MiB blocks; v5e/v6e report 128 MiB ->
    96 MiB scoped / 12 MiB blocks (v5e's 16 MiB scoped default must be raised)."""
    cap = 64 << 20
    try:
        cap = int(getattr(pltpu.get_tpu_info(), "vmem_capacity_bytes", cap))
    except Exception:
        pass
    vmem_limit = int(min(cap * 3 // 4, 100 << 20))
    block_bytes = int(max(2 << 20, min(cap // 10, 12 << 20)))
    return vmem_limit, block_bytes


VMEM_LIMIT, BLOCK_BYTES = _vmem_budget()


def _choose_tile(m, row_bytes, cap_rows):
    """Largest multiple-of-8 tile that (a) exactly divides round_up(m, 8) (avoids big
    jnp.pad copies), (b) fits the per-block byte budget, (c) leaves >= 2 grid steps
    when possible (v7x has 2 TensorCores sharing the 'parallel' grid axis)."""
    mp = _round_up(max(m, 1), 8)
    by_bytes = max(8, (BLOCK_BYTES // max(row_bytes, 1)) // 8 * 8)
    limit = min(cap_rows, by_bytes, mp)
    if mp >= 16:
        limit = min(limit, max(8, (mp // 2) // 8 * 8))
    limit = max(8, limit // 8 * 8)
    tile = 8
    for cand in range(limit, 7, -8):
        if mp % cand == 0:
            tile = cand
            break
    return mp, tile


# ----------------------------------------------------------------------------
# Kernel 1: character CNN  (conv k=3 pad=1 -> ReLU -> max over char positions)
# ----------------------------------------------------------------------------
def char_cnn_kernel(x_ref, w_ref, b_ref, widen_ref, o_ref):
    TM, L, Cin = x_ref.shape
    x2 = x_ref[...].reshape(TM * L, Cin)                                # bf16, char-major

    mid = jnp.dot(x2, w_ref[1], preferred_element_type=jnp.float32)     # x[p]   @ W1
    lo = jnp.dot(x2, w_ref[0], preferred_element_type=jnp.float32)      # x[p]   @ W0
    hi = jnp.dot(x2, w_ref[2], preferred_element_type=jnp.float32)      # x[p]   @ W2

    # padding=1 handled in-register: out[p] = x[p-1]@W0 + x[p]@W1 + x[p+1]@W2
    lo = pltpu.roll(lo, 1, axis=0).reshape(TM, L, CHAR_OUT)              # row p: x[p-1]@W0
    hi = pltpu.roll(hi, TM * L - 1, axis=0).reshape(TM, L, CHAR_OUT)     # row p: x[p+1]@W2
    mid = mid.reshape(TM, L, CHAR_OUT)

    pos = lax.broadcasted_iota(jnp.int32, (TM, L, CHAR_OUT), 1)
    acc = mid + jnp.where(pos == 0, 0.0, lo) + jnp.where(pos == L - 1, 0.0, hi)

    pooled = jnp.max(acc, axis=1)                                        # (TM, 64) f32
    # widen 64 -> 128 lanes with a tiny zero-padded identity matmul so the store
    # (and the downstream read) is lane-dense; bias/ReLU commute with the max.
    wide = jnp.dot(pooled.astype(jnp.bfloat16), widen_ref[...],
                   preferred_element_type=jnp.float32)
    o_ref[...] = jnp.maximum(wide + b_ref[...], 0.0).astype(o_ref.dtype)


def char_cnn_pallas(emb, conv_w, conv_b, widen):
    # emb: (M, 16, 64) bf16   conv_w: (3, 64, 64) bf16
    # conv_b: (1, 128) f32    widen: (64, 128) bf16    ->  (M, 128) bf16
    M, L, Cin = emb.shape
    Mp, tm = _choose_tile(M, L * Cin * 2 + CHAR_OUT_PAD * 2, 512)
    if Mp != M:  # at most 7 pad rows
        emb = jnp.pad(emb, ((0, Mp - M), (0, 0), (0, 0)))
    out = pl.pallas_call(
        char_cnn_kernel,
        out_shape=jax.ShapeDtypeStruct((Mp, CHAR_OUT_PAD), jnp.bfloat16),
        grid=(Mp // tm,),
        in_specs=[
            pl.BlockSpec((tm, L, Cin), lambda i: (i, 0, 0)),
            pl.BlockSpec((3, Cin, CHAR_OUT), lambda i: (0, 0, 0)),
            pl.BlockSpec((1, CHAR_OUT_PAD), lambda i: (0, 0)),
            pl.BlockSpec((CHAR_OUT, CHAR_OUT_PAD), lambda i: (0, 0)),
        ],
        out_specs=pl.BlockSpec((tm, CHAR_OUT_PAD), lambda i: (i, 0)),
        compiler_params=pltpu.CompilerParams(
            dimension_semantics=("parallel",),
            vmem_limit_bytes=VMEM_LIMIT),
    )(emb, conv_w, conv_b, widen)
    return out[:M]


# ----------------------------------------------------------------------------
# Kernel 2: mean over sequence positions + fused concat + 2-layer highway
# ----------------------------------------------------------------------------
def pool_highway_kernel(w_ref, c_ref, pw_ref, pc_ref,
                        w1_ref, b1_ref, w2_ref, b2_ref, o_ref):
    # mean pool over positions (includes padding positions, like the reference)
    xw = jnp.mean(w_ref[...].astype(jnp.float32), axis=1).astype(jnp.bfloat16)   # (TM, 300)
    xc = jnp.mean(c_ref[...].astype(jnp.float32), axis=1).astype(jnp.bfloat16)   # (TM, 128)

    # fused "concat": word -> cols [0,300), char -> cols [300,364) of the 384 frame via
    # two lane-aligned placement matmuls (kernel is DMA-bound; MXU slack makes this free).
    x = (jnp.dot(xw, pw_ref[...], preferred_element_type=jnp.float32) +
         jnp.dot(xc, pc_ref[...], preferred_element_type=jnp.float32))           # (TM, 384)

    # two highway layers; gate + nonlinear weights fused into one (384, 768) matmul
    for w_r, b_r in ((w1_ref, b1_ref), (w2_ref, b2_ref)):
        z = jnp.dot(x.astype(jnp.bfloat16), w_r[...],
                    preferred_element_type=jnp.float32) + b_r[...]               # (TM, 768)
        zg = z[:, :D_PAD]
        zh = z[:, D_PAD:]
        g = 1.0 / (1.0 + jnp.exp(-zg))                                            # sigmoid
        x = g * jnp.maximum(zh, 0.0) + (1.0 - g) * x
    o_ref[...] = x.astype(o_ref.dtype)


def pool_highway_pallas(word_e, char_e, kp):
    # word_e: (M, L, 300) bf16   char_e: (M, L, 128) bf16  ->  (M, 384) bf16
    M, L, Dw = word_e.shape
    Dc = char_e.shape[2]
    row_bytes = L * (Dw + Dc) * 2 + D_PAD * 2
    Mp, tm = _choose_tile(M, row_bytes, 512)
    if Mp != M:  # at most 7 pad rows
        word_e = jnp.pad(word_e, ((0, Mp - M), (0, 0), (0, 0)))
        char_e = jnp.pad(char_e, ((0, Mp - M), (0, 0), (0, 0)))
    out = pl.pallas_call(
        pool_highway_kernel,
        out_shape=jax.ShapeDtypeStruct((Mp, D_PAD), jnp.bfloat16),
        grid=(Mp // tm,),
        in_specs=[
            pl.BlockSpec((tm, L, Dw), lambda i: (i, 0, 0)),
            pl.BlockSpec((tm, L, Dc), lambda i: (i, 0, 0)),
            pl.BlockSpec((Dw, D_PAD), lambda i: (0, 0)),         # word placement matrix
            pl.BlockSpec((Dc, D_PAD), lambda i: (0, 0)),         # char placement matrix
            pl.BlockSpec((D_PAD, 2 * D_PAD), lambda i: (0, 0)),   # layer-1 [Wg | Wn]
            pl.BlockSpec((1, 2 * D_PAD), lambda i: (0, 0)),       # layer-1 [bg | bn]
            pl.BlockSpec((D_PAD, 2 * D_PAD), lambda i: (0, 0)),   # layer-2 [Wg | Wn]
            pl.BlockSpec((1, 2 * D_PAD), lambda i: (0, 0)),       # layer-2 [bg | bn]
        ],
        out_specs=pl.BlockSpec((tm, D_PAD), lambda i: (i, 0)),
        compiler_params=pltpu.CompilerParams(
            dimension_semantics=("parallel",),
            vmem_limit_bytes=VMEM_LIMIT),
    )(word_e, char_e, kp["place_w"], kp["place_c"],
      kp["hw_w1"], kp["hw_b1"], kp["hw_w2"], kp["hw_b2"])
    return out[:M]


# ----------------------------------------------------------------------------
# Kernel 3: cosine-similarity attention + weighted mean + gate + Linear + ReLU
# ----------------------------------------------------------------------------
def attn_linear_kernel(tw_ref, url_ref, wl_ref, bl_ref, o_ref):
    eps = 1e-6
    tw = tw_ref[...].astype(jnp.float32)                     # (TN, T, D) bf16 -> f32
    url = url_ref[...].astype(jnp.float32)                   # (TN, D)

    dot = jnp.sum(tw * url[:, None, :], axis=2)              # (TN, T)
    inv_t = lax.rsqrt(jnp.maximum(jnp.sum(tw * tw, axis=2), eps * eps))
    inv_u = lax.rsqrt(jnp.maximum(jnp.sum(url * url, axis=1, keepdims=True), eps * eps))
    cos = dot * inv_t * inv_u                                 # per-norm eps clamp (torch)

    m = jnp.max(cos, axis=1, keepdims=True)
    e = jnp.exp(cos - m)
    w = e / jnp.sum(e, axis=1, keepdims=True)                 # softmax over tweets

    weighted = jnp.mean(tw * w[:, :, None], axis=1)           # torch.mean after weighting
    feat = (weighted * url).astype(jnp.bfloat16)              # gate with url embedding
    out = jnp.dot(feat, wl_ref[...], preferred_element_type=jnp.float32) + bl_ref[...]
    o_ref[...] = jnp.maximum(out, 0.0)


def attn_linear_pallas(tw, url, lin_w, lin_b):
    # tw: (N, T, 384) bf16   url: (N, 384) bf16   lin_w: (384, 128) bf16   lin_b: (1, 128)
    N, T, D = tw.shape
    Co = lin_w.shape[1]
    row_bytes = (T + 1) * D * 2 + Co * 4
    Np, tn = _choose_tile(N, row_bytes, 128)
    if Np != N:
        tw = jnp.pad(tw, ((0, Np - N), (0, 0), (0, 0)))
        url = jnp.pad(url, ((0, Np - N), (0, 0)))
    out = pl.pallas_call(
        attn_linear_kernel,
        out_shape=jax.ShapeDtypeStruct((Np, Co), jnp.float32),
        grid=(Np // tn,),
        in_specs=[
            pl.BlockSpec((tn, T, D), lambda i: (i, 0, 0)),
            pl.BlockSpec((tn, D), lambda i: (i, 0)),
            pl.BlockSpec((D, Co), lambda i: (0, 0)),
            pl.BlockSpec((1, Co), lambda i: (0, 0)),
        ],
        out_specs=pl.BlockSpec((tn, Co), lambda i: (i, 0)),
        compiler_params=pltpu.CompilerParams(
            dimension_semantics=("parallel",),
            vmem_limit_bytes=VMEM_LIMIT),
    )(tw, url, lin_w, lin_b)
    return out[:N]


# ----------------------------------------------------------------------------
# Parameters: logical (torch-layout) init + packed/padded kernel-ready form
# ----------------------------------------------------------------------------
def init_params(key):
    ks = jax.random.split(key, 16)
    word_tab = 0.1 * jax.random.normal(ks[0], (VOCAB, WORD_DIM), jnp.float32)
    word_tab = word_tab.at[0].set(0.0)  # FixedEmbedding(padding_idx=0)
    char_tab = 0.1 * jax.random.normal(ks[1], (CHAR_VOCAB, CHAR_DIM), jnp.float32)
    conv_w = 0.1 * jax.random.normal(ks[2], (3, CHAR_DIM, CHAR_OUT), jnp.float32)
    conv_b = 0.1 * jax.random.normal(ks[3], (1, CHAR_OUT), jnp.float32)
    hw = []
    for i in range(2):  # 2 highway layers: gate + nonlinear Linear(364,364) each
        hw.append(0.05 * jax.random.normal(ks[4 + 4 * i], (HW_DIM, HW_DIM), jnp.float32))
        hw.append(0.05 * jax.random.normal(ks[5 + 4 * i], (1, HW_DIM), jnp.float32))
        hw.append(0.05 * jax.random.normal(ks[6 + 4 * i], (HW_DIM, HW_DIM), jnp.float32))
        hw.append(0.05 * jax.random.normal(ks[7 + 4 * i], (1, HW_DIM), jnp.float32))
    lin_w = 0.05 * jax.random.normal(ks[12], (HW_DIM, OUT_DIM), jnp.float32)
    lin_b = 0.05 * jax.random.normal(ks[13], (1, OUT_DIM), jnp.float32)
    return {"word_tab": word_tab, "char_tab": char_tab, "conv_w": conv_w,
            "conv_b": conv_b, "hw": tuple(hw), "lin_w": lin_w, "lin_b": lin_b}


def pack_params(p):
    # placement matrices: word -> cols [0,300), char lanes [0,64) -> cols [300,364)
    place_w = jnp.zeros((WORD_DIM, D_PAD), jnp.float32).at[:, :WORD_DIM].set(jnp.eye(WORD_DIM))
    place_c = jnp.zeros((CHAR_OUT_PAD, D_PAD), jnp.float32).at[
        :CHAR_OUT, WORD_DIM:HW_DIM].set(jnp.eye(CHAR_OUT))
    # char-CNN output widening (64 -> 128 lanes) + lane-dense padded bias
    widen_c = jnp.zeros((CHAR_OUT, CHAR_OUT_PAD), jnp.float32).at[:, :CHAR_OUT].set(jnp.eye(CHAR_OUT))
    conv_b = jnp.zeros((1, CHAR_OUT_PAD), jnp.float32).at[:, :CHAR_OUT].set(p["conv_b"])

    def pack_layer(wg, bg, wn, bn):
        W = jnp.zeros((D_PAD, 2 * D_PAD), jnp.float32)
        W = W.at[:HW_DIM, :HW_DIM].set(wg)
        W = W.at[:HW_DIM, D_PAD:D_PAD + HW_DIM].set(wn)
        b = jnp.zeros((1, 2 * D_PAD), jnp.float32)
        b = b.at[:, :HW_DIM].set(bg)
        b = b.at[:, D_PAD:D_PAD + HW_DIM].set(bn)
        return W.astype(jnp.bfloat16), b   # zero bias in padded cols keeps them exactly 0

    hw = p["hw"]
    hw_w1, hw_b1 = pack_layer(hw[0], hw[1], hw[2], hw[3])
    hw_w2, hw_b2 = pack_layer(hw[4], hw[5], hw[6], hw[7])
    lin_w = jnp.zeros((D_PAD, OUT_PAD), jnp.float32).at[:HW_DIM, :OUT_DIM].set(p["lin_w"])
    lin_b = jnp.zeros((1, OUT_PAD), jnp.float32).at[:, :OUT_DIM].set(p["lin_b"])
    return {
        # bf16 embedding tables: the gathers are the dominant HBM traffic at real vocab
        "word_tab": p["word_tab"].astype(jnp.bfloat16),
        "char_tab": p["char_tab"].astype(jnp.bfloat16),
        "conv_w": p["conv_w"].astype(jnp.bfloat16), "conv_b": conv_b,
        "widen_c": widen_c.astype(jnp.bfloat16),
        "place_w": place_w.astype(jnp.bfloat16), "place_c": place_c.astype(jnp.bfloat16),
        "hw_w1": hw_w1, "hw_b1": hw_b1, "hw_w2": hw_w2, "hw_b2": hw_b2,
        "lin_w": lin_w.astype(jnp.bfloat16), "lin_b": lin_b,
    }


# ----------------------------------------------------------------------------
# Glue: embedding lookups + forward pass
# ----------------------------------------------------------------------------
def char_embed_merged(kp, url_char_idxs, tweets_char_idxs):
    """One char-CNN launch for both branches (URL + tweet words merged along M)."""
    N, Lu = url_char_idxs.shape[:2]
    Nt, T, Lt = tweets_char_idxs.shape[:3]
    idx = jnp.concatenate([url_char_idxs.reshape(N * Lu, CHAR_LEN),
                           tweets_char_idxs.reshape(Nt * T * Lt, CHAR_LEN)], axis=0)
    emb = jnp.take(kp["char_tab"], idx, axis=0)                      # (Mtot, 16, 64) bf16
    feat = char_cnn_pallas(emb, kp["conv_w"], kp["conv_b"], kp["widen_c"])   # (Mtot, 128)
    url_feat = feat[:N * Lu].reshape(N, Lu, CHAR_OUT_PAD)
    tw_feat = feat[N * Lu:].reshape(Nt * T, Lt, CHAR_OUT_PAD)
    return url_feat, tw_feat


def text_model_forward(kp, url_word_idxs, url_char_idxs,
                       tweets_word_idxs, tweets_char_idxs):
    if url_word_idxs.ndim == 3:
        url_word_idxs = url_word_idxs.reshape(url_word_idxs.shape[0], -1)
        url_char_idxs = url_char_idxs.reshape(url_char_idxs.shape[0], -1, CHAR_LEN)

    N, T, Lt = tweets_word_idxs.shape

    # one char-CNN call for both branches
    url_char_e, tw_char_e = char_embed_merged(kp, url_char_idxs, tweets_char_idxs)

    # ---- URL branch ----
    url_word_e = jnp.take(kp["word_tab"], url_word_idxs, axis=0)              # bf16
    url_content = pool_highway_pallas(url_word_e, url_char_e, kp)             # (N, 384) bf16

    # ---- Tweets branch ----  (different seq length than URL -> separate pool call)
    tw_word_e = jnp.take(kp["word_tab"], tweets_word_idxs.reshape(N * T, Lt), axis=0)
    tw_content = pool_highway_pallas(tw_word_e, tw_char_e, kp)                # (N*T, 384)
    tw_content = tw_content.reshape(N, T, D_PAD)

    # ---- cosine attention + fusion + linear + relu ----
    out = attn_linear_pallas(tw_content, url_content, kp["lin_w"], kp["lin_b"])  # (N, 128)
    return out[:, :OUT_DIM]


# TODO(synk): NormalEmbedding dropout (p=0.1) path is inference-irrelevant and omitted.

if __name__ == "__main__":
    key = jax.random.PRNGKey(0)
    kparam, k1, k2, k3, k4 = jax.random.split(key, 5)
    kp = pack_params(init_params(kparam))

    N, Lu, T, Lt = 2, 8, 4, 6
    url_word_idxs = jax.random.randint(k1, (N, Lu), 0, VOCAB, dtype=jnp.int32)
    url_char_idxs = jax.random.randint(k2, (N, Lu, CHAR_LEN), 0, CHAR_VOCAB, dtype=jnp.int32)
    tweets_word_idxs = jax.random.randint(k3, (N, T, Lt), 0, VOCAB, dtype=jnp.int32)
    tweets_char_idxs = jax.random.randint(k4, (N, T, Lt, CHAR_LEN), 0, CHAR_VOCAB,
                                          dtype=jnp.int32)

    fwd = jax.jit(text_model_forward)
    out = jax.block_until_ready(fwd(kp, url_word_idxs, url_char_idxs,
                                    tweets_word_idxs, tweets_char_idxs))
    assert out.shape == (N, OUT_DIM) and out.dtype == jnp.float32
    assert bool(jnp.all(jnp.isfinite(out))) and bool(jnp.all(out >= 0.0))
    print("KERNEL_OK")
</pallas_src>

<mosaic_0001>
module attributes {stable_mosaic.version = 11 : i64} {
  func.func @char_cnn_kernel(%arg0: i32, %arg1: memref<32x16x64xbf16, #tpu.memory_space<vmem>>, %arg2: memref<3x64x64xbf16, #tpu.memory_space<vmem>>, %arg3: memref<1x128xf32, #tpu.memory_space<vmem>>, %arg4: memref<64x128xbf16, #tpu.memory_space<vmem>>, %arg5: memref<32x128xbf16, #tpu.memory_space<vmem>>) attributes {dimension_semantics = [#tpu.dimension_semantics<parallel>], iteration_bounds = array<i64: 2>, scalar_prefetch = 0 : i64, scratch_operands = 0 : i64, tpu.core_type = #tpu.core_type<tc>, window_params = [{transform_indices = @transform_0, window_bounds = array<i64: 32, 16, 64>}, {pipeline_mode = #tpu.pipeline_mode<synchronous>, transform_indices = @transform_1, window_bounds = array<i64: 3, 64, 64>}, {pipeline_mode = #tpu.pipeline_mode<synchronous>, transform_indices = @transform_2, window_bounds = array<i64: 1, 128>}, {pipeline_mode = #tpu.pipeline_mode<synchronous>, transform_indices = @transform_3, window_bounds = array<i64: 64, 128>}, {transform_indices = @transform_4, window_bounds = array<i64: 32, 128>}]} {
    %c0 = arith.constant 0 : index
    %c0_0 = arith.constant 0 : index
    %c0_1 = arith.constant 0 : index
    %0 = vector.load %arg1[%c0, %c0_0, %c0_1] : memref<32x16x64xbf16, #tpu.memory_space<vmem>>, vector<32x16x64xbf16>
    %1 = vector.shape_cast %0 : vector<32x16x64xbf16> to vector<512x64xbf16>
    %c1 = arith.constant 1 : index
    %c0_2 = arith.constant 0 : index
    %c0_3 = arith.constant 0 : index
    %2 = vector.load %arg2[%c1, %c0_2, %c0_3] : memref<3x64x64xbf16, #tpu.memory_space<vmem>>, vector<1x64x64xbf16>
    %3 = vector.shape_cast %2 : vector<1x64x64xbf16> to vector<64x64xbf16>
    %cst = arith.constant dense<0.000000e+00> : vector<512x64xf32>
    %4 = tpu.matmul %1, %3, %cst {dimension_numbers = #tpu.dot_dimension_numbers<[1], [0], [0], [1], [0, 0, 1, 1], [], []>} : vector<512x64xbf16>, vector<64x64xbf16>, vector<512x64xf32> -> vector<512x64xf32>
    %c0_4 = arith.constant 0 : index
    %c0_5 = arith.constant 0 : index
    %c0_6 = arith.constant 0 : index
    %5 = vector.load %arg2[%c0_4, %c0_5, %c0_6] : memref<3x64x64xbf16, #tpu.memory_space<vmem>>, vector<1x64x64xbf16>
    %6 = vector.shape_cast %5 : vector<1x64x64xbf16> to vector<64x64xbf16>
    %cst_7 = arith.constant dense<0.000000e+00> : vector<512x64xf32>
    %7 = tpu.matmul %1, %6, %cst_7 {dimension_numbers = #tpu.dot_dimension_numbers<[1], [0], [0], [1], [0, 0, 1, 1], [], []>} : vector<512x64xbf16>, vector<64x64xbf16>, vector<512x64xf32> -> vector<512x64xf32>
    %c2 = arith.constant 2 : index
    %c0_8 = arith.constant 0 : index
    %c0_9 = arith.constant 0 : index
    %8 = vector.load %arg2[%c2, %c0_8, %c0_9] : memref<3x64x64xbf16, #tpu.memory_space<vmem>>, vector<1x64x64xbf16>
    %9 = vector.shape_cast %8 : vector<1x64x64xbf16> to vector<64x64xbf16>
    %cst_10 = arith.constant dense<0.000000e+00> : vector<512x64xf32>
    %10 = tpu.matmul %1, %9, %cst_10 {dimension_numbers = #tpu.dot_dimension_numbers<[1], [0], [0], [1], [0, 0, 1, 1], [], []>} : vector<512x64xbf16>, vector<64x64xbf16>, vector<512x64xf32> -> vector<512x64xf32>
    %c1_i32 = arith.constant 1 : i32
    %11 = tpu.dynamic_rotate %7 by %c1_i32 dim 0 : vector<512x64xf32>, i32 -> vector<512x64xf32>
    %12 = vector.shape_cast %11 : vector<512x64xf32> to vector<32x16x64xf32>
    %c511_i32 = arith.constant 511 : i32
    %13 = tpu.dynamic_rotate %10 by %c511_i32 dim 0 : vector<512x64xf32>, i32 -> vector<512x64xf32>
    %14 = vector.shape_cast %13 : vector<512x64xf32> to vector<32x16x64xf32>
    %15 = vector.shape_cast %4 : vector<512x64xf32> to vector<32x16x64xf32>
    %16 = tpu.iota {dimensions = array<i32: 1>} : vector<32x16x64xi32>
    %c0_i32 = arith.constant 0 : i32
    %17 = vector.broadcast %c0_i32 : i32 to vector<32x16x64xi32>
    %18 = arith.cmpi eq, %16, %17 : vector<32x16x64xi32>
    %cst_11 = arith.constant 0.000000e+00 : f32
    %19 = vector.broadcast %cst_11 : f32 to vector<32x16x64xf32>
    %20 = arith.select %18, %19, %12 : vector<32x16x64xi1>, vector<32x16x64xf32>
    %21 = arith.addf %15, %20 : vector<32x16x64xf32>
    %c15_i32 = arith.constant 15 : i32
    %22 = vector.broadcast %c15_i32 : i32 to vector<32x16x64xi32>
    %23 = arith.cmpi eq, %16, %22 : vector<32x16x64xi32>
    %cst_12 = arith.constant 0.000000e+00 : f32
    %24 = vector.broadcast %cst_12 : f32 to vector<32x16x64xf32>
    %25 = arith.select %23, %24, %14 : vector<32x16x64xi1>, vector<32x16x64xf32>
    %26 = arith.addf %21, %25 : vector<32x16x64xf32>
    %cst_13 = arith.constant dense<0xFF800000> : vector<32x64xf32>
    %27 = vector.multi_reduction <maximumf>, %26, %cst_13 [1] : vector<32x16x64xf32> to vector<32x64xf32>
    %28 = arith.truncf %27 : vector<32x64xf32> to vector<32x64xbf16>
    %c0_14 = arith.constant 0 : index
    %c0_15 = arith.constant 0 : index
    %29 = vector.load %arg4[%c0_14, %c0_15] : memref<64x128xbf16, #tpu.memory_space<vmem>>, vector<64x128xbf16>
    %cst_16 = arith.constant dense<0.000000e+00> : vector<32x128xf32>
    %30 = tpu.matmul %28, %29, %cst_16 {dimension_numbers = #tpu.dot_dimension_numbers<[1], [0], [0], [1], [0, 0, 1, 1], [], []>} : vector<32x64xbf16>, vector<64x128xbf16>, vector<32x128xf32> -> vector<32x128xf32>
    %c0_17 = arith.constant 0 : index
    %c0_18 = arith.constant 0 : index
    %31 = vector.load %arg3[%c0_17, %c0_18] : memref<1x128xf32, #tpu.memory_space<vmem>>, vector<1x128xf32>
    %32 = vector.broadcast %31 : vector<1x128xf32> to vector<32x128xf32>
    %33 = arith.addf %30, %32 : vector<32x128xf32>
    %cst_19 = arith.constant 0.000000e+00 : f32
    %34 = vector.broadcast %cst_19 : f32 to vector<32x128xf32>
    %35 = arith.maximumf %33, %34 : vector<32x128xf32>
    %36 = arith.truncf %35 : vector<32x128xf32> to vector<32x128xbf16>
    %c0_20 = arith.constant 0 : index
    %c0_21 = arith.constant 0 : index
    %37 = vector.load %arg5[%c0_20, %c0_21] : memref<32x128xbf16, #tpu.memory_space<vmem>>, vector<32x128xbf16>
    tpu.vector_store %arg5[%c0_20, %c0_21], %36 {strides = array<i32>} : memref<32x128xbf16, #tpu.memory_space<vmem>>, vector<32x128xbf16>,
    return
  }
  func.func @transform_0(%arg0: i32) -> (i32, i32, i32) {
    %c0_i32 = arith.constant 0 : i32
    %c0_i32_0 = arith.constant 0 : i32
    %c0_i32_1 = arith.constant 0 : i32
    return %arg0, %c0_i32, %c0_i32_0 : i32, i32, i32
  }
  func.func @transform_1(%arg0: i32) -> (i32, i32, i32) {
    %c0_i32 = arith.constant 0 : i32
    %c0_i32_0 = arith.constant 0 : i32
    %c0_i32_1 = arith.constant 0 : i32
    %c0_i32_2 = arith.constant 0 : i32
    return %c0_i32, %c0_i32_0, %c0_i32_1 : i32, i32, i32
  }
  func.func @transform_2(%arg0: i32) -> (i32, i32) {
    %c0_i32 = arith.constant 0 : i32
    %c0_i32_0 = arith.constant 0 : i32
    %c0_i32_1 = arith.constant 0 : i32
    return %c0_i32, %c0_i32_0 : i32, i32
  }
  func.func @transform_3(%arg0: i32) -> (i32, i32) {
    %c0_i32 = arith.constant 0 : i32
    %c0_i32_0 = arith.constant 0 : i32
    %c0_i32_1 = arith.constant 0 : i32
    return %c0_i32, %c0_i32_0 : i32, i32
  }
  func.func @transform_4(%arg0: i32) -> (i32, i32) {
    %c0_i32 = arith.constant 0 : i32
    %c0_i32_0 = arith.constant 0 : i32
    return %arg0, %c0_i32 : i32, i32
  }
}

module attributes {stable_mosaic.version = 11 : i64} {
  func.func @pool_highway_kernel(%arg0: i32, %arg1: memref<8x6x300xbf16, #tpu.memory_space<vmem>>, %arg2: memref<8x6x128xbf16, #tpu.memory_space<vmem>>, %arg3: memref<300x384xbf16, #tpu.memory_space<vmem>>, %arg4: memref<128x384xbf16, #tpu.memory_space<vmem>>, %arg5: memref<384x768xbf16, #tpu.memory_space<vmem>>, %arg6: memref<1x768xf32, #tpu.memory_space<vmem>>, %arg7: memref<384x768xbf16, #tpu.memory_space<vmem>>, %arg8: memref<1x768xf32, #tpu.memory_space<vmem>>, %arg9: memref<8x384xbf16, #tpu.memory_space<vmem>>) attributes {dimension_semantics = [#tpu.dimension_semantics<parallel>], iteration_bounds = array<i64: 1>, scalar_prefetch = 0 : i64, scratch_operands = 0 : i64, tpu.core_type = #tpu.core_type<tc>, window_params = [{transform_indices = @transform_0, window_bounds = array<i64: 8, 6, 300>}, {transform_indices = @transform_1, window_bounds = array<i64: 8, 6, 128>}, {pipeline_mode = #tpu.pipeline_mode<synchronous>, transform_indices = @transform_2, window_bounds = array<i64: 300, 384>}, {pipeline_mode = #tpu.pipeline_mode<synchronous>, transform_indices = @transform_3, window_bounds = array<i64: 128, 384>}, {pipeline_mode = #tpu.pipeline_mode<synchronous>, transform_indices = @transform_4, window_bounds = array<i64: 384, 768>}, {pipeline_mode = #tpu.pipeline_mode<synchronous>, transform_indices = @transform_5, window_bounds = array<i64: 1, 768>}, {pipeline_mode = #tpu.pipeline_mode<synchronous>, transform_indices = @transform_6, window_bounds = array<i64: 384, 768>}, {pipeline_mode = #tpu.pipeline_mode<synchronous>, transform_indices = @transform_7, window_bounds = array<i64: 1, 768>}, {transform_indices = @transform_8, window_bounds = array<i64: 8, 384>}]} {
    %c0 = arith.constant 0 : index
    %c0_0 = arith.constant 0 : index
    %c0_1 = arith.constant 0 : index
    %0 = vector.load %arg1[%c0, %c0_0, %c0_1] : memref<8x6x300xbf16, #tpu.memory_space<vmem>>, vector<8x6x300xbf16>
    %1 = arith.extf %0 : vector<8x6x300xbf16> to vector<8x6x300xf32>
    %cst = arith.constant dense<0.000000e+00> : vector<8x300xf32>
    %2 = vector.multi_reduction <add>, %1, %cst [1] : vector<8x6x300xf32> to vector<8x300xf32>
    %cst_2 = arith.constant 6.000000e+00 : f32
    %3 = vector.broadcast %cst_2 : f32 to vector<8x300xf32>
    %4 = arith.divf %2, %3 : vector<8x300xf32>
    %5 = arith.truncf %4 : vector<8x300xf32> to vector<8x300xbf16>
    %c0_3 = arith.constant 0 : index
    %c0_4 = arith.constant 0 : index
    %c0_5 = arith.constant 0 : index
    %6 = vector.load %arg2[%c0_3, %c0_4, %c0_5] : memref<8x6x128xbf16, #tpu.memory_space<vmem>>, vector<8x6x128xbf16>
    %7 = arith.extf %6 : vector<8x6x128xbf16> to vector<8x6x128xf32>
    %cst_6 = arith.constant dense<0.000000e+00> : vector<8x128xf32>
    %8 = vector.multi_reduction <add>, %7, %cst_6 [1] : vector<8x6x128xf32> to vector<8x128xf32>
    %cst_7 = arith.constant 6.000000e+00 : f32
    %9 = vector.broadcast %cst_7 : f32 to vector<8x128xf32>
    %10 = arith.divf %8, %9 : vector<8x128xf32>
    %11 = arith.truncf %10 : vector<8x128xf32> to vector<8x128xbf16>
    %c0_8 = arith.constant 0 : index
    %c0_9 = arith.constant 0 : index
    %12 = vector.load %arg3[%c0_8, %c0_9] : memref<300x384xbf16, #tpu.memory_space<vmem>>, vector<300x384xbf16>
    %cst_10 = arith.constant dense<0.000000e+00> : vector<8x384xf32>
    %13 = tpu.matmul %5, %12, %cst_10 {dimension_numbers = #tpu.dot_dimension_numbers<[1], [0], [0], [1], [0, 0, 1, 1], [], []>} : vector<8x300xbf16>, vector<300x384xbf16>, vector<8x384xf32> -> vector<8x384xf32>
    %c0_11 = arith.constant 0 : index
    %c0_12 = arith.constant 0 : index
    %14 = vector.load %arg4[%c0_11, %c0_12] : memref<128x384xbf16, #tpu.memory_space<vmem>>, vector<128x384xbf16>
    %cst_13 = arith.constant dense<0.000000e+00> : vector<8x384xf32>
    %15 = tpu.matmul %11, %14, %cst_13 {dimension_numbers = #tpu.dot_dimension_numbers<[1], [0], [0], [1], [0, 0, 1, 1], [], []>} : vector<8x128xbf16>, vector<128x384xbf16>, vector<8x384xf32> -> vector<8x384xf32>
    %16 = arith.addf %13, %15 : vector<8x384xf32>
    %17 = arith.truncf %16 : vector<8x384xf32> to vector<8x384xbf16>
    %c0_14 = arith.constant 0 : index
    %c0_15 = arith.constant 0 : index
    %18 = vector.load %arg5[%c0_14, %c0_15] : memref<384x768xbf16, #tpu.memory_space<vmem>>, vector<384x768xbf16>
    %cst_16 = arith.constant dense<0.000000e+00> : vector<8x768xf32>
    %19 = tpu.matmul %17, %18, %cst_16 {dimension_numbers = #tpu.dot_dimension_numbers<[1], [0], [0], [1], [0, 0, 1, 1], [], []>} : vector<8x384xbf16>, vector<384x768xbf16>, vector<8x768xf32> -> vector<8x768xf32>
    %c0_17 = arith.constant 0 : index
    %c0_18 = arith.constant 0 : index
    %20 = vector.load %arg6[%c0_17, %c0_18] : memref<1x768xf32, #tpu.memory_space<vmem>>, vector<1x768xf32>
    %21 = vector.broadcast %20 : vector<1x768xf32> to vector<8x768xf32>
    %22 = arith.addf %19, %21 : vector<8x768xf32>
    %23 = vector.extract_strided_slice %22 {offsets = [0, 0], sizes = [8, 384], strides = [1, 1]} : vector<8x768xf32> to vector<8x384xf32>
    %24 = vector.extract_strided_slice %22 {offsets = [0, 384], sizes = [8, 384], strides = [1, 1]} : vector<8x768xf32> to vector<8x384xf32>
    %cst_19 = arith.constant 0.000000e+00 : f32
    %25 = vector.broadcast %cst_19 : f32 to vector<8x384xf32>
    %26 = arith.subf %25, %23 : vector<8x384xf32>
    %27 = math.exp %26 : vector<8x384xf32>
    %cst_20 = arith.constant 1.000000e+00 : f32
    %28 = vector.broadcast %cst_20 : f32 to vector<8x384xf32>
    %29 = arith.addf %28, %27 : vector<8x384xf32>
    %cst_21 = arith.constant 1.000000e+00 : f32
    %30 = vector.broadcast %cst_21 : f32 to vector<8x384xf32>
    %31 = arith.divf %30, %29 : vector<8x384xf32>
    %cst_22 = arith.constant 0.000000e+00 : f32
    %32 = vector.broadcast %cst_22 : f32 to vector<8x384xf32>
    %33 = arith.maximumf %24, %32 : vector<8x384xf32>
    %34 = arith.mulf %31, %33 : vector<8x384xf32>
    %cst_23 = arith.constant 1.000000e+00 : f32
    %35 = vector.broadcast %cst_23 : f32 to vector<8x384xf32>
    %36 = arith.subf %35, %31 : vector<8x384xf32>
    %37 = arith.mulf %36, %16 : vector<8x384xf32>
    %38 = arith.addf %34, %37 : vector<8x384xf32>
    %39 = arith.truncf %38 : vector<8x384xf32> to vector<8x384xbf16>
    %c0_24 = arith.constant 0 : index
    %c0_25 = arith.constant 0 : index
    %40 = vector.load %arg7[%c0_24, %c0_25] : memref<384x768xbf16, #tpu.memory_space<vmem>>, vector<384x768xbf16>
    %cst_26 = arith.constant dense<0.000000e+00> : vector<8x768xf32>
    %41 = tpu.matmul %39, %40, %cst_26 {dimension_numbers = #tpu.dot_dimension_numbers<[1], [0], [0], [1], [0, 0, 1, 1], [], []>} : vector<8x384xbf16>, vector<384x768xbf16>, vector<8x768xf32> -> vector<8x768xf32>
    %c0_27 = arith.constant 0 : index
    %c0_28 = arith.constant 0 : index
    %42 = vector.load %arg8[%c0_27, %c0_28] : memref<1x768xf32, #tpu.memory_space<vmem>>, vector<1x768xf32>
    %43 = vector.broadcast %42 : vector<1x768xf32> to vector<8x768xf32>
    %44 = arith.addf %41, %43 : vector<8x768xf32>
    %45 = vector.extract_strided_slice %44 {offsets = [0, 0], sizes = [8, 384], strides = [1, 1]} : vector<8x768xf32> to vector<8x384xf32>
    %46 = vector.extract_strided_slice %44 {offsets = [0, 384], sizes = [8, 384], strides = [1, 1]} : vector<8x768xf32> to vector<8x384xf32>
    %cst_29 = arith.constant 0.000000e+00 : f32
    %47 = vector.broadcast %cst_29 : f32 to vector<8x384xf32>
    %48 = arith.subf %47, %45 : vector<8x384xf32>
    %49 = math.exp %48 : vector<8x384xf32>
    %cst_30 = arith.constant 1.000000e+00 : f32
    %50 = vector.broadcast %cst_30 : f32 to vector<8x384xf32>
    %51 = arith.addf %50, %49 : vector<8x384xf32>
    %cst_31 = arith.constant 1.000000e+00 : f32
    %52 = vector.broadcast %cst_31 : f32 to vector<8x384xf32>
    %53 = arith.divf %52, %51 : vector<8x384xf32>
    %cst_32 = arith.constant 0.000000e+00 : f32
    %54 = vector.broadcast %cst_32 : f32 to vector<8x384xf32>
    %55 = arith.maximumf %46, %54 : vector<8x384xf32>
    %56 = arith.mulf %53, %55 : vector<8x384xf32>
    %cst_33 = arith.constant 1.000000e+00 : f32
    %57 = vector.broadcast %cst_33 : f32 to vector<8x384xf32>
    %58 = arith.subf %57, %53 : vector<8x384xf32>
    %59 = arith.mulf %58, %38 : vector<8x384xf32>
    %60 = arith.addf %56, %59 : vector<8x384xf32>
    %61 = arith.truncf %60 : vector<8x384xf32> to vector<8x384xbf16>
    %c0_34 = arith.constant 0 : index
    %c0_35 = arith.constant 0 : index
    %62 = vector.load %arg9[%c0_34, %c0_35] : memref<8x384xbf16, #tpu.memory_space<vmem>>, vector<8x384xbf16>
    tpu.vector_store %arg9[%c0_34, %c0_35], %61 {strides = array<i32>} : memref<8x384xbf16, #tpu.memory_space<vmem>>, vector<8x384xbf16>,
    return
  }
  func.func @transform_0(%arg0: i32) -> (i32, i32, i32) {
    %c0_i32 = arith.constant 0 : i32
    %c0_i32_0 = arith.constant 0 : i32
    %c0_i32_1 = arith.constant 0 : i32
    return %arg0, %c0_i32, %c0_i32_0 : i32, i32, i32
  }
  func.func @transform_1(%arg0: i32) -> (i32, i32, i32) {
    %c0_i32 = arith.constant 0 : i32
    %c0_i32_0 = arith.constant 0 : i32
    %c0_i32_1 = arith.constant 0 : i32
    return %arg0, %c0_i32, %c0_i32_0 : i32, i32, i32
  }
  func.func @transform_2(%arg0: i32) -> (i32, i32) {
    %c0_i32 = arith.constant 0 : i32
    %c0_i32_0 = arith.constant 0 : i32
    %c0_i32_1 = arith.constant 0 : i32
    return %c0_i32, %c0_i32_0 : i32, i32
  }
  func.func @transform_3(%arg0: i32) -> (i32, i32) {
    %c0_i32 = arith.constant 0 : i32
    %c0_i32_0 = arith.constant 0 : i32
    %c0_i32_1 = arith.constant 0 : i32
    return %c0_i32, %c0_i32_0 : i32, i32
  }
  func.func @transform_4(%arg0: i32) -> (i32, i32) {
    %c0_i32 = arith.constant 0 : i32
    %c0_i32_0 = arith.constant 0 : i32
    %c0_i32_1 = arith.constant 0 : i32
    return %c0_i32, %c0_i32_0 : i32, i32
  }
  func.func @transform_5(%arg0: i32) -> (i32, i32) {
    %c0_i32 = arith.constant 0 : i32
    %c0_i32_0 = arith.constant 0 : i32
    %c0_i32_1 = arith.constant 0 : i32
    return %c0_i32, %c0_i32_0 : i32, i32
  }
  func.func @transform_6(%arg0: i32) -> (i32, i32) {
    %c0_i32 = arith.constant 0 : i32
    %c0_i32_0 = arith.constant 0 : i32
    %c0_i32_1 = arith.constant 0 : i32
    return %c0_i32, %c0_i32_0 : i32, i32
  }
  func.func @transform_7(%arg0: i32) -> (i32, i32) {
    %c0_i32 = arith.constant 0 : i32
    %c0_i32_0 = arith.constant 0 : i32
    %c0_i32_1 = arith.constant 0 : i32
    return %c0_i32, %c0_i32_0 : i32, i32
  }
  func.func @transform_8(%arg0: i32) -> (i32, i32) {
    %c0_i32 = arith.constant 0 : i32
    %c0_i32_0 = arith.constant 0 : i32
    return %arg0, %c0_i32 : i32, i32
  }
}

module attributes {stable_mosaic.version = 11 : i64} {
  func.func @attn_linear_kernel(%arg0: i32, %arg1: memref<8x4x384xbf16, #tpu.memory_space<vmem>>, %arg2: memref<8x384xbf16, #tpu.memory_space<vmem>>, %arg3: memref<384x128xbf16, #tpu.memory_space<vmem>>, %arg4: memref<1x128xf32, #tpu.memory_space<vmem>>, %arg5: memref<8x128xf32, #tpu.memory_space<vmem>>) attributes {dimension_semantics = [#tpu.dimension_semantics<parallel>], iteration_bounds = array<i64: 1>, scalar_prefetch = 0 : i64, scratch_operands = 0 : i64, tpu.core_type = #tpu.core_type<tc>, window_params = [{transform_indices = @transform_0, window_bounds = array<i64: 8, 4, 384>}, {transform_indices = @transform_1, window_bounds = array<i64: 8, 384>}, {pipeline_mode = #tpu.pipeline_mode<synchronous>, transform_indices = @transform_2, window_bounds = array<i64: 384, 128>}, {pipeline_mode = #tpu.pipeline_mode<synchronous>, transform_indices = @transform_3, window_bounds = array<i64: 1, 128>}, {transform_indices = @transform_4, window_bounds = array<i64: 8, 128>}]} {
    %c0 = arith.constant 0 : index
    %c0_0 = arith.constant 0 : index
    %c0_1 = arith.constant 0 : index
    %0 = vector.load %arg1[%c0, %c0_0, %c0_1] : memref<8x4x384xbf16, #tpu.memory_space<vmem>>, vector<8x4x384xbf16>
    %1 = arith.extf %0 : vector<8x4x384xbf16> to vector<8x4x384xf32>
    %c0_2 = arith.constant 0 : index
    %c0_3 = arith.constant 0 : index
    %2 = vector.load %arg2[%c0_2, %c0_3] : memref<8x384xbf16, #tpu.memory_space<vmem>>, vector<8x384xbf16>
    %3 = arith.extf %2 : vector<8x384xbf16> to vector<8x384xf32>
    %4 = vector.shape_cast %3 : vector<8x384xf32> to vector<8x1x384xf32>
    %5 = vector.broadcast %4 : vector<8x1x384xf32> to vector<8x4x384xf32>
    %6 = arith.mulf %1, %5 : vector<8x4x384xf32>
    %cst = arith.constant dense<0.000000e+00> : vector<8x4xf32>
    %7 = vector.multi_reduction <add>, %6, %cst [2] : vector<8x4x384xf32> to vector<8x4xf32>
    %8 = arith.mulf %1, %1 : vector<8x4x384xf32>
    %cst_4 = arith.constant dense<0.000000e+00> : vector<8x4xf32>
    %9 = vector.multi_reduction <add>, %8, %cst_4 [2] : vector<8x4x384xf32> to vector<8x4xf32>
    %cst_5 = arith.constant 9.99999996E-13 : f32
    %10 = vector.broadcast %cst_5 : f32 to vector<8x4xf32>
    %11 = arith.maximumf %9, %10 : vector<8x4xf32>
    %12 = math.rsqrt %11 : vector<8x4xf32>
    %13 = arith.mulf %3, %3 : vector<8x384xf32>
    %cst_6 = arith.constant dense<0.000000e+00> : vector<8xf32>
    %14 = vector.multi_reduction <add>, %13, %cst_6 [1] : vector<8x384xf32> to vector<8xf32>
    %15 = vector.shape_cast %14 : vector<8xf32> to vector<8x1xf32>
    %cst_7 = arith.constant 9.99999996E-13 : f32
    %16 = vector.broadcast %cst_7 : f32 to vector<8x1xf32>
    %17 = arith.maximumf %15, %16 : vector<8x1xf32>
    %18 = math.rsqrt %17 : vector<8x1xf32>
    %19 = arith.mulf %7, %12 : vector<8x4xf32>
    %20 = vector.broadcast %18 : vector<8x1xf32> to vector<8x4xf32>
    %21 = arith.mulf %19, %20 : vector<8x4xf32>
    %cst_8 = arith.constant dense<0xFF800000> : vector<8xf32>
    %22 = vector.multi_reduction <maximumf>, %21, %cst_8 [1] : vector<8x4xf32> to vector<8xf32>
    %23 = vector.shape_cast %22 : vector<8xf32> to vector<8x1xf32>
    %24 = vector.broadcast %23 : vector<8x1xf32> to vector<8x4xf32>
    %25 = arith.subf %21, %24 : vector<8x4xf32>
    %26 = math.exp %25 : vector<8x4xf32>
    %cst_9 = arith.constant dense<0.000000e+00> : vector<8xf32>
    %27 = vector.multi_reduction <add>, %26, %cst_9 [1] : vector<8x4xf32> to vector<8xf32>
    %28 = vector.shape_cast %27 : vector<8xf32> to vector<8x1xf32>
    %29 = vector.broadcast %28 : vector<8x1xf32> to vector<8x4xf32>
    %30 = arith.divf %26, %29 : vector<8x4xf32>
    %31 = vector.shape_cast %30 : vector<8x4xf32> to vector<8x4x1xf32>
    %32 = vector.broadcast %31 : vector<8x4x1xf32> to vector<8x4x384xf32>
    %33 = arith.mulf %1, %32 : vector<8x4x384xf32>
    %cst_10 = arith.constant dense<0.000000e+00> : vector<8x384xf32>
    %34 = vector.multi_reduction <add>, %33, %cst_10 [1] : vector<8x4x384xf32> to vector<8x384xf32>
    %cst_11 = arith.constant 4.000000e+00 : f32
    %35 = vector.broadcast %cst_11 : f32 to vector<8x384xf32>
    %36 = arith.divf %34, %35 : vector<8x384xf32>
    %37 = arith.mulf %36, %3 : vector<8x384xf32>
    %38 = arith.truncf %37 : vector<8x384xf32> to vector<8x384xbf16>
    %c0_12 = arith.constant 0 : index
    %c0_13 = arith.constant 0 : index
    %39 = vector.load %arg3[%c0_12, %c0_13] : memref<384x128xbf16, #tpu.memory_space<vmem>>, vector<384x128xbf16>
    %cst_14 = arith.constant dense<0.000000e+00> : vector<8x128xf32>
    %40 = tpu.matmul %38, %39, %cst_14 {dimension_numbers = #tpu.dot_dimension_numbers<[1], [0], [0], [1], [0, 0, 1, 1], [], []>} : vector<8x384xbf16>, vector<384x128xbf16>, vector<8x128xf32> -> vector<8x128xf32>
    %c0_15 = arith.constant 0 : index
    %c0_16 = arith.constant 0 : index
    %41 = vector.load %arg4[%c0_15, %c0_16] : memref<1x128xf32, #tpu.memory_space<vmem>>, vector<1x128xf32>
    %42 = vector.broadcast %41 : vector<1x128xf32> to vector<8x128xf32>
    %43 = arith.addf %40, %42 : vector<8x128xf32>
    %cst_17 = arith.constant 0.000000e+00 : f32
    %44 = vector.broadcast %cst_17 : f32 to vector<8x128xf32>
    %45 = arith.maximumf %43, %44 : vector<8x128xf32>
    %c0_18 = arith.constant 0 : index
    %c0_19 = arith.constant 0 : index
    %46 = vector.load %arg5[%c0_18, %c0_19] : memref<8x128xf32, #tpu.memory_space<vmem>>, vector<8x128xf32>
    tpu.vector_store %arg5[%c0_18, %c0_19], %45 {strides = array<i32>} : memref<8x128xf32, #tpu.memory_space<vmem>>, vector<8x128xf32>,
    return
  }
  func.func @transform_0(%arg0: i32) -> (i32, i32, i32) {
    %c0_i32 = arith.constant 0 : i32
    %c0_i32_0 = arith.constant 0 : i32
    %c0_i32_1 = arith.constant 0 : i32
    return %arg0, %c0_i32, %c0_i32_0 : i32, i32, i32
  }
  func.func @transform_1(%arg0: i32) -> (i32, i32) {
    %c0_i32 = arith.constant 0 : i32
    %c0_i32_0 = arith.constant 0 : i32
    return %arg0, %c0_i32 : i32, i32
  }
  func.func @transform_2(%arg0: i32) -> (i32, i32) {
    %c0_i32 = arith.constant 0 : i32
    %c0_i32_0 = arith.constant 0 : i32
    %c0_i32_1 = arith.constant 0 : i32
    return %c0_i32, %c0_i32_0 : i32, i32
  }
  func.func @transform_3(%arg0: i32) -> (i32, i32) {
    %c0_i32 = arith.constant 0 : i32
    %c0_i32_0 = arith.constant 0 : i32
    %c0_i32_1 = arith.constant 0 : i32
    return %c0_i32, %c0_i32_0 : i32, i32
  }
  func.func @transform_4(%arg0: i32) -> (i32, i32) {
    %c0_i32 = arith.constant 0 : i32
    %c0_i32_0 = arith.constant 0 : i32
    return %arg0, %c0_i32 : i32, i32
  }
}

module attributes {stable_mosaic.version = 11 : i64} {
  func.func @pool_highway_kernel(%arg0: i32, %arg1: memref<8x8x300xbf16, #tpu.memory_space<vmem>>, %arg2: memref<8x8x128xbf16, #tpu.memory_space<vmem>>, %arg3: memref<300x384xbf16, #tpu.memory_space<vmem>>, %arg4: memref<128x384xbf16, #tpu.memory_space<vmem>>, %arg5: memref<384x768xbf16, #tpu.memory_space<vmem>>, %arg6: memref<1x768xf32, #tpu.memory_space<vmem>>, %arg7: memref<384x768xbf16, #tpu.memory_space<vmem>>, %arg8: memref<1x768xf32, #tpu.memory_space<vmem>>, %arg9: memref<8x384xbf16, #tpu.memory_space<vmem>>) attributes {dimension_semantics = [#tpu.dimension_semantics<parallel>], iteration_bounds = array<i64: 1>, scalar_prefetch = 0 : i64, scratch_operands = 0 : i64, tpu.core_type = #tpu.core_type<tc>, window_params = [{transform_indices = @transform_0, window_bounds = array<i64: 8, 8, 300>}, {transform_indices = @transform_1, window_bounds = array<i64: 8, 8, 128>}, {pipeline_mode = #tpu.pipeline_mode<synchronous>, transform_indices = @transform_2, window_bounds = array<i64: 300, 384>}, {pipeline_mode = #tpu.pipeline_mode<synchronous>, transform_indices = @transform_3, window_bounds = array<i64: 128, 384>}, {pipeline_mode = #tpu.pipeline_mode<synchronous>, transform_indices = @transform_4, window_bounds = array<i64: 384, 768>}, {pipeline_mode = #tpu.pipeline_mode<synchronous>, transform_indices = @transform_5, window_bounds = array<i64: 1, 768>}, {pipeline_mode = #tpu.pipeline_mode<synchronous>, transform_indices = @transform_6, window_bounds = array<i64: 384, 768>}, {pipeline_mode = #tpu.pipeline_mode<synchronous>, transform_indices = @transform_7, window_bounds = array<i64: 1, 768>}, {transform_indices = @transform_8, window_bounds = array<i64: 8, 384>}]} {
    %c0 = arith.constant 0 : index
    %c0_0 = arith.constant 0 : index
    %c0_1 = arith.constant 0 : index
    %0 = vector.load %arg1[%c0, %c0_0, %c0_1] : memref<8x8x300xbf16, #tpu.memory_space<vmem>>, vector<8x8x300xbf16>
    %1 = arith.extf %0 : vector<8x8x300xbf16> to vector<8x8x300xf32>
    %cst = arith.constant dense<0.000000e+00> : vector<8x300xf32>
    %2 = vector.multi_reduction <add>, %1, %cst [1] : vector<8x8x300xf32> to vector<8x300xf32>
    %cst_2 = arith.constant 8.000000e+00 : f32
    %3 = vector.broadcast %cst_2 : f32 to vector<8x300xf32>
    %4 = arith.divf %2, %3 : vector<8x300xf32>
    %5 = arith.truncf %4 : vector<8x300xf32> to vector<8x300xbf16>
    %c0_3 = arith.constant 0 : index
    %c0_4 = arith.constant 0 : index
    %c0_5 = arith.constant 0 : index
    %6 = vector.load %arg2[%c0_3, %c0_4, %c0_5] : memref<8x8x128xbf16, #tpu.memory_space<vmem>>, vector<8x8x128xbf16>
    %7 = arith.extf %6 : vector<8x8x128xbf16> to vector<8x8x128xf32>
    %cst_6 = arith.constant dense<0.000000e+00> : vector<8x128xf32>
    %8 = vector.multi_reduction <add>, %7, %cst_6 [1] : vector<8x8x128xf32> to vector<8x128xf32>
    %cst_7 = arith.constant 8.000000e+00 : f32
    %9 = vector.broadcast %cst_7 : f32 to vector<8x128xf32>
    %10 = arith.divf %8, %9 : vector<8x128xf32>
    %11 = arith.truncf %10 : vector<8x128xf32> to vector<8x128xbf16>
    %c0_8 = arith.constant 0 : index
    %c0_9 = arith.constant 0 : index
    %12 = vector.load %arg3[%c0_8, %c0_9] : memref<300x384xbf16, #tpu.memory_space<vmem>>, vector<300x384xbf16>
    %cst_10 = arith.constant dense<0.000000e+00> : vector<8x384xf32>
    %13 = tpu.matmul %5, %12, %cst_10 {dimension_numbers = #tpu.dot_dimension_numbers<[1], [0], [0], [1], [0, 0, 1, 1], [], []>} : vector<8x300xbf16>, vector<300x384xbf16>, vector<8x384xf32> -> vector<8x384xf32>
    %c0_11 = arith.constant 0 : index
    %c0_12 = arith.constant 0 : index
    %14 = vector.load %arg4[%c0_11, %c0_12] : memref<128x384xbf16, #tpu.memory_space<vmem>>, vector<128x384xbf16>
    %cst_13 = arith.constant dense<0.000000e+00> : vector<8x384xf32>
    %15 = tpu.matmul %11, %14, %cst_13 {dimension_numbers = #tpu.dot_dimension_numbers<[1], [0], [0], [1], [0, 0, 1, 1], [], []>} : vector<8x128xbf16>, vector<128x384xbf16>, vector<8x384xf32> -> vector<8x384xf32>
    %16 = arith.addf %13, %15 : vector<8x384xf32>
    %17 = arith.truncf %16 : vector<8x384xf32> to vector<8x384xbf16>
    %c0_14 = arith.constant 0 : index
    %c0_15 = arith.constant 0 : index
    %18 = vector.load %arg5[%c0_14, %c0_15] : memref<384x768xbf16, #tpu.memory_space<vmem>>, vector<384x768xbf16>
    %cst_16 = arith.constant dense<0.000000e+00> : vector<8x768xf32>
    %19 = tpu.matmul %17, %18, %cst_16 {dimension_numbers = #tpu.dot_dimension_numbers<[1], [0], [0], [1], [0, 0, 1, 1], [], []>} : vector<8x384xbf16>, vector<384x768xbf16>, vector<8x768xf32> -> vector<8x768xf32>
    %c0_17 = arith.constant 0 : index
    %c0_18 = arith.constant 0 : index
    %20 = vector.load %arg6[%c0_17, %c0_18] : memref<1x768xf32, #tpu.memory_space<vmem>>, vector<1x768xf32>
    %21 = vector.broadcast %20 : vector<1x768xf32> to vector<8x768xf32>
    %22 = arith.addf %19, %21 : vector<8x768xf32>
    %23 = vector.extract_strided_slice %22 {offsets = [0, 0], sizes = [8, 384], strides = [1, 1]} : vector<8x768xf32> to vector<8x384xf32>
    %24 = vector.extract_strided_slice %22 {offsets = [0, 384], sizes = [8, 384], strides = [1, 1]} : vector<8x768xf32> to vector<8x384xf32>
    %cst_19 = arith.constant 0.000000e+00 : f32
    %25 = vector.broadcast %cst_19 : f32 to vector<8x384xf32>
    %26 = arith.subf %25, %23 : vector<8x384xf32>
    %27 = math.exp %26 : vector<8x384xf32>
    %cst_20 = arith.constant 1.000000e+00 : f32
    %28 = vector.broadcast %cst_20 : f32 to vector<8x384xf32>
    %29 = arith.addf %28, %27 : vector<8x384xf32>
    %cst_21 = arith.constant 1.000000e+00 : f32
    %30 = vector.broadcast %cst_21 : f32 to vector<8x384xf32>
    %31 = arith.divf %30, %29 : vector<8x384xf32>
    %cst_22 = arith.constant 0.000000e+00 : f32
    %32 = vector.broadcast %cst_22 : f32 to vector<8x384xf32>
    %33 = arith.maximumf %24, %32 : vector<8x384xf32>
    %34 = arith.mulf %31, %33 : vector<8x384xf32>
    %cst_23 = arith.constant 1.000000e+00 : f32
    %35 = vector.broadcast %cst_23 : f32 to vector<8x384xf32>
    %36 = arith.subf %35, %31 : vector<8x384xf32>
    %37 = arith.mulf %36, %16 : vector<8x384xf32>
    %38 = arith.addf %34, %37 : vector<8x384xf32>
    %39 = arith.truncf %38 : vector<8x384xf32> to vector<8x384xbf16>
    %c0_24 = arith.constant 0 : index
    %c0_25 = arith.constant 0 : index
    %40 = vector.load %arg7[%c0_24, %c0_25] : memref<384x768xbf16, #tpu.memory_space<vmem>>, vector<384x768xbf16>
    %cst_26 = arith.constant dense<0.000000e+00> : vector<8x768xf32>
    %41 = tpu.matmul %39, %40, %cst_26 {dimension_numbers = #tpu.dot_dimension_numbers<[1], [0], [0], [1], [0, 0, 1, 1], [], []>} : vector<8x384xbf16>, vector<384x768xbf16>, vector<8x768xf32> -> vector<8x768xf32>
    %c0_27 = arith.constant 0 : index
    %c0_28 = arith.constant 0 : index
    %42 = vector.load %arg8[%c0_27, %c0_28] : memref<1x768xf32, #tpu.memory_space<vmem>>, vector<1x768xf32>
    %43 = vector.broadcast %42 : vector<1x768xf32> to vector<8x768xf32>
    %44 = arith.addf %41, %43 : vector<8x768xf32>
    %45 = vector.extract_strided_slice %44 {offsets = [0, 0], sizes = [8, 384], strides = [1, 1]} : vector<8x768xf32> to vector<8x384xf32>
    %46 = vector.extract_strided_slice %44 {offsets = [0, 384], sizes = [8, 384], strides = [1, 1]} : vector<8x768xf32> to vector<8x384xf32>
    %cst_29 = arith.constant 0.000000e+00 : f32
    %47 = vector.broadcast %cst_29 : f32 to vector<8x384xf32>
    %48 = arith.subf %47, %45 : vector<8x384xf32>
    %49 = math.exp %48 : vector<8x384xf32>
    %cst_30 = arith.constant 1.000000e+00 : f32
    %50 = vector.broadcast %cst_30 : f32 to vector<8x384xf32>
    %51 = arith.addf %50, %49 : vector<8x384xf32>
    %cst_31 = arith.constant 1.000000e+00 : f32
    %52 = vector.broadcast %cst_31 : f32 to vector<8x384xf32>
    %53 = arith.divf %52, %51 : vector<8x384xf32>
    %cst_32 = arith.constant 0.000000e+00 : f32
    %54 = vector.broadcast %cst_32 : f32 to vector<8x384xf32>
    %55 = arith.maximumf %46, %54 : vector<8x384xf32>
    %56 = arith.mulf %53, %55 : vector<8x384xf32>
    %cst_33 = arith.constant 1.000000e+00 : f32
    %57 = vector.broadcast %cst_33 : f32 to vector<8x384xf32>
    %58 = arith.subf %57, %53 : vector<8x384xf32>
    %59 = arith.mulf %58, %38 : vector<8x384xf32>
    %60 = arith.addf %56, %59 : vector<8x384xf32>
    %61 = arith.truncf %60 : vector<8x384xf32> to vector<8x384xbf16>
    %c0_34 = arith.constant 0 : index
    %c0_35 = arith.constant 0 : index
    %62 = vector.load %arg9[%c0_34, %c0_35] : memref<8x384xbf16, #tpu.memory_space<vmem>>, vector<8x384xbf16>
    tpu.vector_store %arg9[%c0_34, %c0_35], %61 {strides = array<i32>} : memref<8x384xbf16, #tpu.memory_space<vmem>>, vector<8x384xbf16>,
    return
  }
  func.func @transform_0(%arg0: i32) -> (i32, i32, i32) {
    %c0_i32 = arith.constant 0 : i32
    %c0_i32_0 = arith.constant 0 : i32
    %c0_i32_1 = arith.constant 0 : i32
    return %arg0, %c0_i32, %c0_i32_0 : i32, i32, i32
  }
  func.func @transform_1(%arg0: i32) -> (i32, i32, i32) {
    %c0_i32 = arith.constant 0 : i32
    %c0_i32_0 = arith.constant 0 : i32
    %c0_i32_1 = arith.constant 0 : i32
    return %arg0, %c0_i32, %c0_i32_0 : i32, i32, i32
  }
  func.func @transform_2(%arg0: i32) -> (i32, i32) {
    %c0_i32 = arith.constant 0 : i32
    %c0_i32_0 = arith.constant 0 : i32
    %c0_i32_1 = arith.constant 0 : i32
    return %c0_i32, %c0_i32_0 : i32, i32
  }
  func.func @transform_3(%arg0: i32) -> (i32, i32) {
    %c0_i32 = arith.constant 0 : i32
    %c0_i32_0 = arith.constant 0 : i32
    %c0_i32_1 = arith.constant 0 : i32
    return %c0_i32, %c0_i32_0 : i32, i32
  }
  func.func @transform_4(%arg0: i32) -> (i32, i32) {
    %c0_i32 = arith.constant 0 : i32
    %c0_i32_0 = arith.constant 0 : i32
    %c0_i32_1 = arith.constant 0 : i32
    return %c0_i32, %c0_i32_0 : i32, i32
  }
  func.func @transform_5(%arg0: i32) -> (i32, i32) {
    %c0_i32 = arith.constant 0 : i32
    %c0_i32_0 = arith.constant 0 : i32
    %c0_i32_1 = arith.constant 0 : i32
    return %c0_i32, %c0_i32_0 : i32, i32
  }
  func.func @transform_6(%arg0: i32) -> (i32, i32) {
    %c0_i32 = arith.constant 0 : i32
    %c0_i32_0 = arith.constant 0 : i32
    %c0_i32_1 = arith.constant 0 : i32
    return %c0_i32, %c0_i32_0 : i32, i32
  }
  func.func @transform_7(%arg0: i32) -> (i32, i32) {
    %c0_i32 = arith.constant 0 : i32
    %c0_i32_0 = arith.constant 0 : i32
    %c0_i32_1 = arith.constant 0 : i32
    return %c0_i32, %c0_i32_0 : i32, i32
  }
  func.func @transform_8(%arg0: i32) -> (i32, i32) {
    %c0_i32 = arith.constant 0 : i32
    %c0_i32_0 = arith.constant 0 : i32
    return %arg0, %c0_i32 : i32, i32
  }
}

</mosaic_0001>

<bundles_post_ra>
// kernel: text_model_forward.4
= control target key start
LH: loop header
LB: loop body
LE: loop exit
PB: predicated region body
PF: predicated region fallthrough
CT: control target
= control target key end

     0   :  { %s3241_s15 = smov 0   ;;  %s4815_s0 = inlined_call_operand.vmem [shape: bf16[64,16,64], index: 0, kind: input, shape index: {}]   ;;  %s4816_s1 = inlined_call_operand.vmem [shape: bf16[3,64,64], index: 1, kind: input, shape index: {}]   ;;  %s4817_s2 = inlined_call_operand.vmem [shape: f32[1,128], index: 2, kind: input, shape index: {}]   ;;  %s4818_s3 = inlined_call_operand.vmem [shape: bf16[64,128], index: 3, kind: input, shape index: {}]   ;;  %s4819_s4 = inlined_call_operand.vmem [shape: bf16[64,128], index: 4, kind: output, shape index: {}]  }
   0x1 LB: > { %s2607_s16 = sadd.s32 4294967295, %s3214_s15   ;;  %p2611_p0 = scmp.ge.s32.totalorder %s3214_s15, 1  ;;  %s3214_s15 = sphi %s3241_s15, %s14_s15  }
   0x2   : > { %p164_p1 = scmp.lt.s32.totalorder %s3214_s15, 3 }
   0x4   : > { %p165_p2 = pnand %p2611_p0, %p164_p1 }
   0x6   : > { %168 = sbr.rel (%p165_p2) target bundleno = 712 (0x2c8), region = 36 }
   0xb   : > { %v3160_v0 = vld [vmem:[%s4816_s1 + $0x38] sm:$0xff]   ;;  %s2612_s19 = sshll.u32 %s2607_s16, 5  ;;  %v3161_v1 = vld [vmem:[%s4816_s1 + $0x30] sm:$0xff]   ;;  %v3162_v2 = vld [vmem:[%s4816_s1 + $0x28] sm:$0xff]   ;;  %vm462_vm0 = vcmask 523264   ;;  %vm2411_vm5 = vcmask 1041409  }
   0xc   : > { %p192_p3 = scmp.lt.s32.totalorder %s2612_s19, 63  ;;  %2916 = vmatprep.subr.bf16.mxu0 %v3160_v0  ;;  %3144 = vmatprep.subr.bf16.mxu1 %v3160_v0  ;;  %v3163_v3 = vld [vmem:[%s4816_s1 + $0x20] sm:$0xff]   ;;  %v3168_v6 = vld [vmem:[%s4816_s1 + $0x58] sm:$0xff]   ;;  %v3178_v12 = vld [vmem:[%s4816_s1 + $0x50] sm:$0xff]   ;;  %vm2413_vm6 = vcmask 1042434   ;;  %vm2415_vm7 = vcmask 1043459  }
   0xd   : > { %2917 = vmatpush3.bf16.msra.mxu0 %v3160_v0  ;;  %3148 = vmatpush3.bf16.msra.mxu1 %v3160_v0  ;;  %v3173_v7 = vld [vmem:[%s4816_s1 + $0x18] sm:$0xff]   ;;  %v3183_v17 = vld [vmem:[%s4816_s1 + $0x10] sm:$0xff]   ;;  %v3188_v20 = vld [vmem:[%s4816_s1 + $0x48] sm:$0xff]   ;;  %vm2417_vm8 = vcmask 1044484   ;;  %vm2419_vm9 = vcmask 1045509   ;;  %vm2421_vm10 = vcmask 1046534  }
   0xe   : > { %s4917_s19 = smov (!%p192_p3, %s2612_s19), 63  ;;  %2918 = vmatprep.subr.bf16.mxu0 %v3161_v1  ;;  %3145 = vmatprep.subr.bf16.mxu1 %v3161_v1  ;;  %v3189_v21 = vld [vmem:[%s4816_s1 + $0x8] sm:$0xff]   ;;  %v3198_v28 = vld [vmem:[%s4816_s1] sm:$0xff]   ;;  %v3204_v46 = vld [vmem:[%s4818_s3 + $0x18] sm:$0xff]   ;;  %vm2423_vm11 = vcmask 1047559   ;;  %s2615_s30 = sshll.u32 %s2607_s16, 2 }
   0xf   : > { %s2786_s24 = sshll.u32 %s4917_s19, 3  ;;  %v3199_v29 = vld [vmem:[%s4816_s1 + $0x40] sm:$0xff]   ;;  %p199_p4 = scmp.lt.s32.totalorder %s2615_s30, 7 }
  0x10   : > { %s3266_s29 = scalar_lea.vmem %s4815_s0, %s2786_s24 }
  0x11   : > { %2919 = vmatpush3.bf16.msra.mxu0 %v3161_v1  ;;  %3149 = vmatpush3.bf16.msra.mxu1 %v3161_v1  ;;  %v3269_v4 = vld [vmem:[%s3266_s29] sm:$0xff]   ;;  %v3272_v5 = vld [vmem:[%s3266_s29 + $0x90] sm:$0xff]   ;;  %v3285_v8 = vld [vmem:[%s3266_s29 + $0x8] sm:$0xff]   ;;  %s4919_s30 = smov (!%p199_p4, %s2615_s30), 7 }
  0x12   : > { %2920 = vmatprep.subr.bf16.mxu0 %v3162_v2  ;;  %3146 = vmatprep.subr.bf16.mxu1 %v3162_v2  ;;  %v3288_v9 = vld [vmem:[%s3266_s29 + $0x98] sm:$0xff]   ;;  %v3291_v10 = vld [vmem:[%s3266_s29 + $0x10] sm:$0xff]   ;;  %v3294_v11 = vld [vmem:[%s3266_s29 + $0xa0] sm:$0xff]   ;;  %s2616_s7 = sshll.u32 %s4919_s30, 2 }
  0x13   : > { %2924 = vmatprep.mubr.msk.bf16.mxu0 %vm462_vm0, %v3269_v4  ;;  %2960 = vmatprep.mubr.msk.bf16.mxu1 %vm462_vm0, %v3272_v5  ;;  %v3308_v13 = vld [vmem:[%s3266_s29 + $0x18] sm:$0xff]   ;;  %v3311_v14 = vld [vmem:[%s3266_s29 + $0xa8] sm:$0xff]   ;;  %v3314_v15 = vld [vmem:[%s3266_s29 + $0x20] sm:$0xff]   ;;  %s202_s9 = scalar_lea.vmem %s4819_s4, %s2616_s7 }
  0x14   : > { %v3317_v16 = vld [vmem:[%s3266_s29 + $0xb0] sm:$0xff]   ;;  %v3331_v18 = vld [vmem:[%s3266_s29 + $0x28] sm:$0xff]   ;;  %v3334_v19 = vld [vmem:[%s3266_s29 + $0xb8] sm:$0xff]  }
  0x15   : > { %2921 = vmatpush3.bf16.msra.mxu0 %v3162_v2  ;;  %3150 = vmatpush3.bf16.msra.mxu1 %v3162_v2  ;;  %v3343_v22 = vld [vmem:[%s3266_s29 + $0x30] sm:$0xff]   ;;  %v3346_v23 = vld [vmem:[%s3266_s29 + $0xc0] sm:$0xff]   ;;  %v3181_v24 = vld [vmem:[%s3266_s29 + $0x38] sm:$0xff]  }
  0x16   : > { %2922 = vmatprep.subr.bf16.mxu0 %v3163_v3  ;;  %3147 = vmatprep.subr.bf16.mxu1 %v3163_v3  ;;  %v3358_v25 = vld [vmem:[%s3266_s29 + $0xc8] sm:$0xff]   ;;  %v3184_v26 = vld [vmem:[%s3266_s29 + $0x40] sm:$0xff]   ;;  %v3362_v27 = vld [vmem:[%s3266_s29 + $0xd0] sm:$0xff]  }
  0x17   : > { %v3186_v30 = vld [vmem:[%s3266_s29 + $0x48] sm:$0xff]   ;;  %v3378_v31 = vld [vmem:[%s3266_s29 + $0xd8] sm:$0xff]   ;;  %v3190_v32 = vld [vmem:[%s3266_s29 + $0x50] sm:$0xff]  }
  0x18   : > { %v3382_v33 = vld [vmem:[%s3266_s29 + $0xe0] sm:$0xff]   ;;  %v3192_v34 = vld [vmem:[%s3266_s29 + $0x58] sm:$0xff]   ;;  %v3392_v35 = vld [vmem:[%s3266_s29 + $0xe8] sm:$0xff]  }
  0x19   : > { %2923 = vmatpush3.bf16.msra.mxu0 %v3163_v3  ;;  %3151 = vmatpush3.bf16.msra.mxu1 %v3163_v3  ;;  %v3194_v36 = vld [vmem:[%s3266_s29 + $0x60] sm:$0xff]   ;;  %v3396_v37 = vld [vmem:[%s3266_s29 + $0xf0] sm:$0xff]   ;;  %v3196_v38 = vld [vmem:[%s3266_s29 + $0x68] sm:$0xff]  }
  0x1a   : > { %3060 = vmatprep.subr.bf16.mxu0 %v3168_v6  ;;  %2988 = vmatprep.subr.bf16.mxu1 %v3173_v7  ;;  %v3406_v39 = vld [vmem:[%s3266_s29 + $0xf8] sm:$0xff]   ;;  %v3200_v40 = vld [vmem:[%s3266_s29 + $0x70] sm:$0xff]   ;;  %v3202_v42 = vld [vmem:[%s3266_s29 + $0x80] sm:$0xff]  }
  0x1b   : > { %v3201_v41 = vld [vmem:[%s3266_s29 + $0x78] sm:$0xff]   ;;  %v3203_v43 = vld [vmem:[%s3266_s29 + $0x88] sm:$0xff]  }
  0x1c   : > { %2925 = vmatmul.mubr.msk.bf16.vlgmr.msra.gmra.mxu0 %vm462_vm0, %v3285_v8  ;;  %2961 = vmatmul.mubr.msk.bf16.vlgmr.msra.gmra.mxu1 %vm462_vm0, %v3288_v9 }
  0x1d   : > { %3061 = vmatpush3.bf16.msra.mxu0 %v3168_v6  ;;  %2928 = vmatprep.mubr.msk.bf16.mxu0 %vm462_vm0, %v3291_v10 }
  0x1e   : > { %2964 = vmatprep.mubr.msk.bf16.mxu1 %vm462_vm0, %v3294_v11  ;;  %2989 = vmatpush3.bf16.msra.mxu1 %v3173_v7 }
  0x1f   : > { %3062 = vmatprep.subr.bf16.mxu0 %v3178_v12  ;;  %2990 = vmatprep.subr.bf16.mxu1 %v3183_v17 }
  0x21   : > { %3063 = vmatpush3.bf16.msra.mxu0 %v3178_v12 }
  0x22   : > { %2991 = vmatpush3.bf16.msra.mxu1 %v3183_v17  ;;  %3064 = vmatprep.subr.bf16.mxu0 %v3188_v20 }
  0x23   : > { %2992 = vmatprep.subr.bf16.mxu1 %v3189_v21 }
  0x24   : > { %2929 = vmatmul.mubr.msk.bf16.gmra.mxu0 %vm462_vm0, %v3308_v13  ;;  %2965 = vmatmul.mubr.msk.bf16.gmra.mxu1 %vm462_vm0, %v3311_v14 }
  0x25   : > { %2932 = vmatprep.mubr.msk.bf16.mxu0 %vm462_vm0, %v3314_v15  ;;  %2968 = vmatprep.mubr.msk.bf16.mxu1 %vm462_vm0, %v3317_v16 }
  0x26   : > { %3065 = vmatpush3.bf16.msra.mxu0 %v3188_v20  ;;  %2993 = vmatpush3.bf16.msra.mxu1 %v3189_v21 }
  0x27   : > { %2994 = vmatprep.subr.bf16.mxu1 %v3198_v28  ;;  %3066 = vmatprep.subr.bf16.mxu0 %v3199_v29 }
  0x2a   : > { %2995 = vmatpush3.bf16.msra.mxu1 %v3198_v28  ;;  %3067 = vmatpush3.bf16.msra.mxu0 %v3199_v29 }
  0x2b   : > { %3132 = vmatprep.subr.bf16.mxu1 %v3204_v46 }
  0x2c   : > { %2933 = vmatmul.mubr.msk.bf16.gmra.mxu0 %vm462_vm0, %v3331_v18  ;;  %2969 = vmatmul.mubr.msk.bf16.gmra.mxu1 %vm462_vm0, %v3334_v19 }
  0x2d   : > { %2936 = vmatprep.mubr.msk.bf16.mxu0 %vm462_vm0, %v3343_v22  ;;  %2972 = vmatprep.mubr.msk.bf16.mxu1 %vm462_vm0, %v3346_v23 }
  0x34   : > { %2937 = vmatmul.mubr.msk.bf16.gmra.mxu0 %vm462_vm0, %v3181_v24  ;;  %2973 = vmatmul.mubr.msk.bf16.gmra.mxu1 %vm462_vm0, %v3358_v25 }
  0x35   : > { %2940 = vmatprep.mubr.msk.bf16.mxu0 %vm462_vm0, %v3184_v26  ;;  %2976 = vmatprep.mubr.msk.bf16.mxu1 %vm462_vm0, %v3362_v27 }
  0x3c   : > { %2941 = vmatmul.mubr.msk.bf16.gmra.mxu0 %vm462_vm0, %v3186_v30  ;;  %2977 = vmatmul.mubr.msk.bf16.gmra.mxu1 %vm462_vm0, %v3378_v31 }
  0x3d   : > { %2944 = vmatprep.mubr.msk.bf16.mxu0 %vm462_vm0, %v3190_v32  ;;  %2980 = vmatprep.mubr.msk.bf16.mxu1 %vm462_vm0, %v3382_v33 }
  0x44   : > { %2945 = vmatmul.mubr.msk.bf16.gmra.mxu0 %vm462_vm0, %v3192_v34  ;;  %2981 = vmatmul.mubr.msk.bf16.gmra.mxu1 %vm462_vm0, %v3392_v35 }
  0x45   : > { %2948 = vmatprep.mubr.msk.bf16.mxu0 %vm462_vm0, %v3194_v36  ;;  %2984 = vmatprep.mubr.msk.bf16.mxu1 %vm462_vm0, %v3396_v37 }
  0x4c   : > { %2949 = vmatmul.mubr.msk.bf16.gmra.mxu0 %vm462_vm0, %v3196_v38  ;;  %2985 = vmatmul.mubr.msk.bf16.gmra.mxu1 %vm462_vm0, %v3406_v39 }
  0x4d   : > { %2952 = vmatprep.mubr.msk.bf16.mxu0 %vm462_vm0, %v3200_v40  ;;  %2996 = vmatprep.mubr.msk.bf16.mxu1 %vm462_vm0, %v3269_v4 }
  0x54   : > { %2953 = vmatmul.mubr.msk.bf16.gmra.mxu0 %vm462_vm0, %v3201_v41  ;;  %2997 = vmatmul.mubr.msk.bf16.vlgmr.msra.gmra.mxu1 %vm462_vm0, %v3285_v8 }
  0x55   : > { %2956 = vmatprep.mubr.msk.bf16.mxu0 %vm462_vm0, %v3202_v42  ;;  %3000 = vmatprep.mubr.msk.bf16.mxu1 %vm462_vm0, %v3291_v10 }
  0x56   : > { %3133 = vmatpush3.bf16.msra.mxu1 %v3204_v46 }
  0x5c   : > { %2957 = vmatmul.mubr.msk.bf16.gmra.mxu0 %vm462_vm0, %v3203_v43  ;;  %3001 = vmatmul.mubr.msk.bf16.gmra.mxu1 %vm462_vm0, %v3308_v13 }
  0x5d   : > { %3004 = vmatprep.mubr.msk.bf16.mxu1 %vm462_vm0, %v3314_v15  ;;  %3068 = vmatprep.mubr.msk.bf16.mxu0 %vm462_vm0, %v3269_v4 }
  0x64   : > { %3005 = vmatmul.mubr.msk.bf16.gmra.mxu1 %vm462_vm0, %v3331_v18  ;;  %3069 = vmatmul.mubr.msk.bf16.vlgmr.msra.gmra.mxu0 %vm462_vm0, %v3285_v8 }
  0x65   : > { %3008 = vmatprep.mubr.msk.bf16.mxu1 %vm462_vm0, %v3343_v22  ;;  %3072 = vmatprep.mubr.msk.bf16.mxu0 %vm462_vm0, %v3291_v10 }
  0x6c   : > { %3009 = vmatmul.mubr.msk.bf16.gmra.mxu1 %vm462_vm0, %v3181_v24  ;;  %3073 = vmatmul.mubr.msk.bf16.gmra.mxu0 %vm462_vm0, %v3308_v13 }
  0x6d   : > { %3012 = vmatprep.mubr.msk.bf16.mxu1 %vm462_vm0, %v3184_v26  ;;  %3076 = vmatprep.mubr.msk.bf16.mxu0 %vm462_vm0, %v3314_v15 }
  0x74   : > { %3013 = vmatmul.mubr.msk.bf16.gmra.mxu1 %vm462_vm0, %v3186_v30  ;;  %3077 = vmatmul.mubr.msk.bf16.gmra.mxu0 %vm462_vm0, %v3331_v18 }
  0x75   : > { %3016 = vmatprep.mubr.msk.bf16.mxu1 %vm462_vm0, %v3190_v32  ;;  %3080 = vmatprep.mubr.msk.bf16.mxu0 %vm462_vm0, %v3343_v22 }
  0x7c   : > { %3017 = vmatmul.mubr.msk.bf16.gmra.mxu1 %vm462_vm0, %v3192_v34  ;;  %3081 = vmatmul.mubr.msk.bf16.gmra.mxu0 %vm462_vm0, %v3181_v24 }
  0x7d   : > { %3020 = vmatprep.mubr.msk.bf16.mxu1 %vm462_vm0, %v3194_v36  ;;  %3084 = vmatprep.mubr.msk.bf16.mxu0 %vm462_vm0, %v3184_v26 }
  0x84   : > { %3021 = vmatmul.mubr.msk.bf16.gmra.mxu1 %vm462_vm0, %v3196_v38  ;;  %3085 = vmatmul.mubr.msk.bf16.gmra.mxu0 %vm462_vm0, %v3186_v30 }
  0x85   : > { %3024 = vmatprep.mubr.msk.bf16.mxu1 %vm462_vm0, %v3200_v40  ;;  %3088 = vmatprep.mubr.msk.bf16.mxu0 %vm462_vm0, %v3190_v32 }
  0x8c   : > { %3025 = vmatmul.mubr.msk.bf16.gmra.mxu1 %vm462_vm0, %v3201_v41  ;;  %3089 = vmatmul.mubr.msk.bf16.gmra.mxu0 %vm462_vm0, %v3192_v34 }
  0x8d   : > { %3028 = vmatprep.mubr.msk.bf16.mxu1 %vm462_vm0, %v3202_v42  ;;  %3092 = vmatprep.mubr.msk.bf16.mxu0 %vm462_vm0, %v3194_v36  ;;  %v1555_v36 = vlaneseq }
  0x94   : > { %3029 = vmatmul.mubr.msk.bf16.gmra.mxu1 %vm462_vm0, %v3203_v43  ;;  %3093 = vmatmul.mubr.msk.bf16.gmra.mxu0 %vm462_vm0, %v3196_v38 }
  0x95   : > { %3032 = vmatprep.mubr.msk.bf16.mxu1 %vm462_vm0, %v3272_v5  ;;  %3096 = vmatprep.mubr.msk.bf16.mxu0 %vm462_vm0, %v3200_v40 }
  0x9c   : > { %3033 = vmatmul.mubr.msk.bf16.gmra.mxu1 %vm462_vm0, %v3288_v9  ;;  %3097 = vmatmul.mubr.msk.bf16.gmra.mxu0 %vm462_vm0, %v3201_v41  ;;  %v3645_v41 = vshrl.u32 %v1555_v36, 7 }
  0x9d   : > { %3036 = vmatprep.mubr.msk.bf16.mxu1 %vm462_vm0, %v3294_v11  ;;  %3100 = vmatprep.mubr.msk.bf16.mxu0 %vm462_vm0, %v3202_v42 }
  0x9e   : > { %vm1557_vm1 = vcmp.lt.s32.totalorder %v3645_v41, 1  ;;  %vm1752_vm2 = vcmp.eq.s32.totalorder %v3645_v41, 0  ;;  %vm1686_vm3 = vcmp.lt.s32.totalorder %v3645_v41, 7 }
  0xa4   : > { %3037 = vmatmul.mubr.msk.bf16.gmra.mxu1 %vm462_vm0, %v3311_v14  ;;  %3101 = vmatmul.mubr.msk.bf16.gmra.mxu0 %vm462_vm0, %v3203_v43 }
  0xa5   : > { %3040 = vmatprep.mubr.msk.bf16.mxu1 %vm462_vm0, %v3317_v16  ;;  %3104 = vmatprep.mubr.msk.bf16.mxu0 %vm462_vm0, %v3272_v5 }
  0xac   : > { %3041 = vmatmul.mubr.msk.bf16.gmra.mxu1 %vm462_vm0, %v3334_v19  ;;  %3105 = vmatmul.mubr.msk.bf16.gmra.mxu0 %vm462_vm0, %v3288_v9 }
  0xad   : > { %3044 = vmatprep.mubr.msk.bf16.mxu1 %vm462_vm0, %v3346_v23  ;;  %3108 = vmatprep.mubr.msk.bf16.mxu0 %vm462_vm0, %v3294_v11 }
  0xb4   : > { %3045 = vmatmul.mubr.msk.bf16.gmra.mxu1 %vm462_vm0, %v3358_v25  ;;  %3109 = vmatmul.mubr.msk.bf16.gmra.mxu0 %vm462_vm0, %v3311_v14 }
  0xb5   : > { %3048 = vmatprep.mubr.msk.bf16.mxu1 %vm462_vm0, %v3362_v27  ;;  %3112 = vmatprep.mubr.msk.bf16.mxu0 %vm462_vm0, %v3317_v16 }
  0xbc   : > { %3049 = vmatmul.mubr.msk.bf16.gmra.mxu1 %vm462_vm0, %v3378_v31  ;;  %3113 = vmatmul.mubr.msk.bf16.gmra.mxu0 %vm462_vm0, %v3334_v19 }
  0xbd   : > { %3052 = vmatprep.mubr.msk.bf16.mxu1 %vm462_vm0, %v3382_v33  ;;  %3116 = vmatprep.mubr.msk.bf16.mxu0 %vm462_vm0, %v3346_v23 }
  0xc4   : > { %3053 = vmatmul.mubr.msk.bf16.gmra.mxu1 %vm462_vm0, %v3392_v35  ;;  %3117 = vmatmul.mubr.msk.bf16.gmra.mxu0 %vm462_vm0, %v3358_v25 }
  0xc5   : > { %3056 = vmatprep.mubr.msk.bf16.mxu1 %vm462_vm0, %v3396_v37  ;;  %3120 = vmatprep.mubr.msk.bf16.mxu0 %vm462_vm0, %v3362_v27 }
  0xcc   : > { %3057 = vmatmul.mubr.msk.bf16.gmra.mxu1 %vm462_vm0, %v3406_v39  ;;  %3121 = vmatmul.mubr.msk.bf16.gmra.mxu0 %vm462_vm0, %v3378_v31 }
  0xcd   : > { %3124 = vmatprep.mubr.msk.bf16.mxu0 %vm462_vm0, %v3382_v33  ;;  %v3205_v33 = vld [vmem:[%s4818_s3 + $0x10] sm:$0xff]  }
  0xce   : > { %3134 = vmatprep.subr.bf16.mxu1 %v3205_v33 }
  0xcf   : > { %3135 = vmatpush3.bf16.msra.mxu1 %v3205_v33 }
  0xd4   : > { %3125 = vmatmul.mubr.msk.bf16.gmra.mxu0 %vm462_vm0, %v3392_v35 }
  0xd5   : > { %3128 = vmatprep.mubr.msk.bf16.mxu0 %vm462_vm0, %v3396_v37 }
  0xdc   : > { %v3523_v44 = vpop.f32.mrf.mxu0  ;;  %v3525_v45 = vpop.f32.mrf.mxu1  ;;  %3129 = vmatmul.mubr.msk.bf16.gmra.mxu0 %vm462_vm0, %v3406_v39 }
  0xdd   : > { %4828 = vst [vmem:[#allocation2_spill] sm:$0xff] %v3525_v45 }
  0xde   : > { %v3532_v47 = vpop.f32.mrf.mxu0  ;;  %v3534_v48 = vpop.f32.mrf.mxu1 }
  0xdf   : > { %4829 = vst [vmem:[#allocation3_spill] sm:$0xff] %v3532_v47  ;;  %4830 = vst [vmem:[#allocation4_spill] sm:$0xff] %v3534_v48 }
  0xe0   : > { %v3536_v49 = vpop.f32.mrf.mxu0  ;;  %v3538_v50 = vpop.f32.mrf.mxu1 }
  0xe1   : > { %4831 = vst [vmem:[#allocation5_spill] sm:$0xff] %v3538_v50 }
  0xe2   : > { %v3540_v51 = vpop.f32.mrf.mxu0  ;;  %v3542_v52 = vpop.f32.mrf.mxu1 }
  0xe3   : > { %4832 = vst [vmem:[#allocation6_spill] sm:$0xff] %v3542_v52 }
  0xe4   : > { %v3544_v53 = vpop.f32.mrf.mxu0  ;;  %v3546_v54 = vpop.f32.mrf.mxu1 }
  0xe5   : > { %4833 = vst [vmem:[#allocation7_spill] sm:$0xff] %v3546_v54 }
  0xe6   : > { %v3548_v55 = vpop.f32.mrf.mxu0  ;;  %v3550_v56 = vpop.f32.mrf.mxu1 }
  0xe7   : > { %4834 = vst [vmem:[#allocation8_spill] sm:$0xff] %v3550_v56 }
  0xe8   : > { %v3552_v57 = vpop.f32.mrf.mxu0  ;;  %v3554_v58 = vpop.f32.mrf.mxu1 }
  0xe9   : > { %4835 = vst [vmem:[#allocation9_spill] sm:$0xff] %v3554_v58 }
  0xea   : > { %v3556_v59 = vpop.f32.mrf.mxu0  ;;  %v3558_v60 = vpop.f32.mrf.mxu1 }
  0xeb   : > { %4836 = vst [vmem:[#allocation10_spill] sm:$0xff] %v3558_v60 }
  0xec   : > { %v3560_v61 = vpop.f32.mrf.mxu0  ;;  %v3562_v62 = vpop.f32.mrf.mxu1 }
  0xed   : > { %4837 = vst [vmem:[#allocation11_spill] sm:$0xff] %v3562_v62 }
  0xee   : > { %v3564_v63 = vpop.f32.mrf.mxu0  ;;  %v3566_v0 = vpop.f32.mrf.mxu1 }
  0xef   : > { %4838 = vst [vmem:[#allocation12_spill] sm:$0xff] %v3566_v0 }
  0xf0   : > { %v3568_v1 = vpop.f32.mrf.mxu0  ;;  %v3570_v2 = vpop.f32.mrf.mxu1 }
  0xf1   : > { %4839 = vst [vmem:[#allocation13_spill] sm:$0xff] %v3570_v2 }
  0xf2   : > { %v3572_v3 = vpop.f32.mrf.mxu0  ;;  %v3574_v4 = vpop.f32.mrf.mxu1 }
  0xf3   : > { %4840 = vst [vmem:[#allocation14_spill] sm:$0xff] %v3574_v4 }
  0xf4   : > { %v3576_v5 = vpop.f32.mrf.mxu0  ;;  %v3578_v6 = vpop.f32.mrf.mxu1 }
  0xf5   : > { %4841 = vst [vmem:[#allocation15_spill] sm:$0xff] %v3578_v6 }
  0xf6   : > { %v3580_v7 = vpop.f32.mrf.mxu0  ;;  %v3582_v8 = vpop.f32.mrf.mxu1 }
  0xf7   : > { %4842 = vst [vmem:[#allocation16_spill] sm:$0xff] %v3582_v8 }
  0xf8   : > { %v3584_v9 = vpop.f32.mrf.mxu0  ;;  %v3586_v10 = vpop.f32.mrf.mxu1 }
  0xf9   : > { %4843 = vst [vmem:[#allocation17_spill] sm:$0xff] %v3586_v10 }
  0xfa   : > { %v3588_v11 = vpop.f32.mrf.mxu0  ;;  %v3590_v12 = vpop.f32.mrf.mxu1 }
  0xfb   : > { %4844 = vst [vmem:[#allocation18_spill] sm:$0xff] %v3590_v12 }
  0xfc   : > { %v3592_v13 = vpop.f32.mrf.mxu0  ;;  %v3594_v14 = vpop.f32.mrf.mxu1 }
  0xfd   : > { %4845 = vst [vmem:[#allocation19_spill] sm:$0xff] %v3594_v14 }
  0xfe   : > { %v3596_v15 = vpop.f32.mrf.mxu0  ;;  %v3598_v16 = vpop.f32.mrf.mxu1 }
  0xff   : > { %4846 = vst [vmem:[#allocation20_spill] sm:$0xff] %v3598_v16 }
 0x100   : > { %v3600_v17 = vpop.f32.mrf.mxu0  ;;  %v3602_v18 = vpop.f32.mrf.mxu1 }
 0x101   : > { %4847 = vst [vmem:[#allocation21_spill] sm:$0xff] %v3602_v18 }
 0x102   : > { %v3604_v19 = vpop.f32.mrf.mxu0  ;;  %v3606_v20 = vpop.f32.mrf.mxu1 }
 0x103   : > { %4848 = vst [vmem:[#allocation22_spill] sm:$0xff] %v3606_v20 }
 0x104   : > { %v3608_v21 = vpop.f32.mrf.mxu0  ;;  %v3610_v22 = vpop.f32.mrf.mxu1 }
 0x105   : > { %4849 = vst [vmem:[#allocation23_spill] sm:$0xff] %v3610_v22 }
 0x106   : > { %v3612_v23 = vpop.f32.mrf.mxu0  ;;  %v3614_v24 = vpop.f32.mrf.mxu1 }
 0x107   : > { %4850 = vst [vmem:[#allocation24_spill] sm:$0xff] %v3614_v24 }
 0x108   : > { %v3616_v25 = vpop.f32.mrf.mxu0  ;;  %v3618_v26 = vpop.f32.mrf.mxu1 }
 0x109   : > { %4851 = vst [vmem:[#allocation25_spill] sm:$0xff] %v3618_v26 }
 0x10a   : > { %v3620_v27 = vpop.f32.mrf.mxu0  ;;  %v3622_v28 = vpop.f32.mrf.mxu1 }
 0x10b   : > { %4852 = vst [vmem:[#allocation26_spill] sm:$0xff] %v3622_v28 }
 0x10c   : > { %v3624_v29 = vpop.f32.mrf.mxu0  ;;  %v3626_v30 = vpop.f32.mrf.mxu1 }
 0x10d   : > { %4853 = vst [vmem:[#allocation27_spill] sm:$0xff] %v3626_v30 }
 0x10e   : > { %v3628_v31 = vpop.f32.mrf.mxu0  ;;  %v3630_v32 = vpop.f32.mrf.mxu1 }
 0x10f   : > { %4854 = vst [vmem:[#allocation28_spill] sm:$0xff] %v3630_v32 }
 0x110   : > { %v3635_v34 = vpop.f32.mrf.mxu0  ;;  %v3637_v35 = vpop.f32.mrf.mxu1 }
 0x111   : > { %4855 = vst [vmem:[#allocation29_spill] sm:$0xff] %v3637_v35 }
 0x112   : > { %v3639_v37 = vpop.f32.mrf.mxu0  ;;  %v3641_v38 = vpop.f32.mrf.mxu1 }
 0x113   : > { %4856 = vst [vmem:[#allocation30_spill] sm:$0xff] %v3641_v38 }
 0x114   : > { %v3643_v39 = vpop.f32.mrf.mxu0  ;;  %v2998_v40 = vpop.f32.mrf.mxu1 }
 0x115   : > { %v1493_v46 = vrot.slane %v2998_v40, 7 }
 0x116   : > { %v3647_v42 = vpop.f32.mrf.mxu0  ;;  %v3649_v43 = vpop.f32.mrf.mxu1 }
 0x117   : > { %4857 = vst [vmem:[#allocation31_spill] sm:$0xff] %v3649_v43  ;;  %v4821_v33 = vrot.slane %v3649_v43, 7 }
 0x118   : > { %v3651_v30 = vpop.f32.mrf.mxu0  ;;  %v2999_v35 = vpop.f32.mrf.mxu1 }
 0x119   : > { %v1494_v32 = vrot.slane %v2999_v35, 7 }
 0x11a   : > { %v3655_v22 = vpop.f32.mrf.mxu0  ;;  %v917_v38 = vpop.f32.mrf.mxu1 }
 0x11b   : > { %v1618_v36 = vsel %vm1557_vm1, %v1493_v46, %v1494_v32  ;;  %v1492_v28 = vrot.slane %v917_v38, 7 }
 0x11c   : > { %v3660_v47 = vadd.f32 %v3536_v49, %v1618_v36  ;;  %v3662_v26 = vpop.f32.mrf.mxu0  ;;  %v3002_v40 = vpop.f32.mrf.mxu1 }
 0x11d   : > { %4858 = vst [vmem:[#allocation32_spill] sm:$0xff] %v3662_v26  ;;  %v1619_v24 = vsel %vm1557_vm1, %v1492_v28, %v1493_v46  ;;  %v1620_v35 = vsel %vm1557_vm1, %v4821_v33, %v1492_v28  ;;  %v1497_v38 = vrot.slane %v3002_v40, 7 }
 0x11e   : > { %v1819_v14 = vadd.f32 %v1620_v35, %v3540_v51  ;;  %v3671_v20 = vpop.f32.mrf.mxu0  ;;  %v930_v18 = vpop.f32.mrf.mxu1 }
 0x11f   : > { %4859 = vst [vmem:[#allocation33_spill] sm:$0xff] %v3671_v20  ;;  %v1495_v16 = vrot.slane %v930_v18, 7 }
 0x120   : > { %v3673_v49 = vpop.f32.mrf.mxu0  ;;  %v3003_v36 = vpop.f32.mrf.mxu1 }
 0x121   : > { %4860 = vst [vmem:[#allocation34_spill] sm:$0xff] %v3673_v49  ;;  %v1617_v46 = vsel %vm1557_vm1, %v1494_v32, %v1495_v16  ;;  %v1498_v6 = vrot.slane %v3003_v36, 7 }
 0x122   : > { %v1758_v43 = vsel %vm1752_vm2, 0.0, %v1617_v46  ;;  %v3680_v28 = vpop.f32.mrf.mxu0  ;;  %v933_v51 = vpop.f32.mrf.mxu1 }
 0x123   : > { %4861 = vst [vmem:[#allocation35_spill] sm:$0xff] %v3680_v28  ;;  %v3683_v35 = vadd.f32 %v1758_v43, %v3548_v55  ;;  %v1614_v18 = vsel %vm1557_vm1, %v1497_v38, %v1498_v6  ;;  %v1496_v40 = vrot.slane %v933_v51, 7  ;;  %v1756_v51 = vsel %vm1752_vm2, 0.0, %v1619_v24 }
 0x124   : > { %v3688_v33 = vadd.f32 %v3552_v57, %v1614_v18  ;;  %v3006_v12 = vpop.f32.mrf.mxu1  ;;  %v3070_v10 = vpop.f32.mrf.mxu0 }
 0x125   : > { %v1615_v32 = vsel %vm1557_vm1, %v1496_v40, %v1497_v38  ;;  %v1616_v36 = vsel %vm1557_vm1, %v1495_v16, %v1496_v40  ;;  %v1501_v8 = vrot.slane %v3006_v12, 7  ;;  %v3703_v38 = vadd.s32 8, %v3645_v41 }
 0x126   : > { %v3695_v46 = vadd.f32 %v1616_v36, %v3556_v59  ;;  %v946_v55 = vpop.f32.mrf.mxu1  ;;  %v3697_v43 = vpop.f32.mrf.mxu0  ;;  %v1624_v4 = vrot.slane %v3070_v10, 1  ;;  %v1820_v36 = vadd.f32 %v3523_v44, %v1756_v51 }
 0x127   : > { %4862 = vst [vmem:[#allocation36_spill] sm:$0xff] %v3697_v43  ;;  %v1499_v57 = vrot.slane %v946_v55, 7  ;;  %vm1883_vm4 = vcmp.eq.s32.totalorder %v3703_v38, 15 }
 0x128   : > { %v3007_v18 = vpop.f32.mrf.mxu1  ;;  %v3071_v62 = vpop.f32.mrf.mxu0 }
 0x129   : > { %v1613_v59 = vsel %vm1557_vm1, %v1498_v6, %v1499_v57  ;;  %v1502_v16 = vrot.slane %v3007_v18, 7  ;;  %v1625_v40 = vrot.slane %v3071_v62, 1 }
 0x12a   : > { %v1762_v24 = vsel %vm1752_vm2, 0.0, %v1613_v59  ;;  %v949_v12 = vpop.f32.mrf.mxu1  ;;  %v1239_v55 = vpop.f32.mrf.mxu0  ;;  %v4823_v59 = vrot.slane %v3697_v43, 1 }
 0x12b   : > { %v3711_v2 = vadd.f32 %v1762_v24, %v3564_v63  ;;  %v1610_v0 = vsel %vm1557_vm1, %v1501_v8, %v1502_v16  ;;  %v1747_v10 = vsel %vm1686_vm3, %v1624_v4, %v1625_v40  ;;  %v1500_v54 = vrot.slane %v949_v12, 7 }
 0x12c   : > { %v3718_v6 = vadd.f32 %v3568_v1, %v1610_v0  ;;  %v1950_v62 = vadd.f32 %v1820_v36, %v1747_v10  ;;  %v1623_v44 = vrot.slane %v1239_v55, 1  ;;  %v3010_v51 = vpop.f32.mrf.mxu1  ;;  %v3074_v18 = vpop.f32.mrf.mxu0  ;;  %v1760_v12 = vsel %vm1752_vm2, 0.0, %v1615_v32 }
 0x12d   : > { %v1611_v63 = vsel %vm1557_vm1, %v1500_v54, %v1501_v8  ;;  %v1612_v24 = vsel %vm1557_vm1, %v1499_v57, %v1500_v54  ;;  %v1505_v8 = vrot.slane %v3010_v51, 7  ;;  %v1628_v58 = vrot.slane %v3074_v18, 1 }
 0x12e   : > { %v3729_v0 = vadd.f32 %v1612_v24, %v3572_v3  ;;  %v1748_v1 = vsel %vm1686_vm3, %v1623_v44, %v1624_v4  ;;  %v962_v36 = vpop.f32.mrf.mxu1  ;;  %v1252_v55 = vpop.f32.mrf.mxu0  ;;  %v3737_v10 = vsel %vm1686_vm3, %v4823_v59, %v1623_v44  ;;  %v1824_v45 = vadd.f32 %v3544_v53, %v1760_v12 }
 0x12f   : > { %4863 = vst [vmem:[#allocation37_spill] sm:$0xff] %v3737_v10  ;;  %v1885_v54 = vsel %vm1883_vm4, 0.0, %v1748_v1  ;;  %v1503_v57 = vrot.slane %v962_v36, 7  ;;  %v1626_v3 = vrot.slane %v1252_v55, 1 }
 0x130   : > { %v3741_v32 = vadd.f32 %v1885_v54, %v1819_v14  ;;  %v3011_v24 = vpop.f32.mrf.mxu1  ;;  %v3075_v60 = vpop.f32.mrf.mxu0 }
 0x131   : > { %v1609_v4 = vsel %vm1557_vm1, %v1502_v16, %v1503_v57  ;;  %v1506_v56 = vrot.slane %v3011_v24, 7  ;;  %v1629_v43 = vrot.slane %v3075_v60, 1  ;;  %v1746_v51 = vsel %vm1686_vm3, %v1625_v40, %v1626_v3 }
 0x132   : > { %v1766_v44 = vsel %vm1752_vm2, 0.0, %v1609_v4  ;;  %v965_v1 = vpop.f32.mrf.mxu1  ;;  %v1255_v14 = vpop.f32.mrf.mxu0  ;;  %v1887_v18 = vsel %vm1883_vm4, 0.0, %v1746_v51  ;;  %v2021_v4 = vsel %vm462_vm0, %v1950_v62, -inf }
 0x133   : > { %v3751_v36 = vadd.f32 %v1766_v44, %v3580_v7  ;;  %v1606_v16 = vsel %vm1557_vm1, %v1505_v8, %v1506_v56  ;;  %v1743_v53 = vsel %vm1686_vm3, %v1628_v58, %v1629_v43  ;;  %v1951_v60 = vadd.f32 %v1887_v18, %v3660_v47 }
 0x134   : > { %v3761_v12 = vadd.f32 %v3584_v9, %v1606_v16  ;;  %v1954_v40 = vadd.f32 %v1824_v45, %v1743_v53  ;;  %v1504_v55 = vrot.slane %v965_v1, 7  ;;  %v3014_v54 = vpop.f32.mrf.mxu1  ;;  %v3078_v24 = vpop.f32.mrf.mxu0  ;;  %v1627_v7 = vrot.slane %v1255_v14, 1 }
 0x135   : > { %v2022_v44 = vsel %vm462_vm0, %v1951_v60, -inf  ;;  %v1764_v9 = vsel %vm1752_vm2, 0.0, %v1611_v63  ;;  %v1509_v18 = vrot.slane %v3014_v54, 7 }
 0x136   : > { %v1607_v51 = vsel %vm1557_vm1, %v1504_v55, %v1505_v8  ;;  %v1608_v59 = vsel %vm1557_vm1, %v1503_v57, %v1504_v55  ;;  %v978_v10 = vpop.f32.mrf.mxu1  ;;  %v1268_v47 = vpop.f32.mrf.mxu0  ;;  %v2023_v45 = vmax.f32 %v2021_v4, %v2022_v44  ;;  %v1744_v62 = vsel %vm1686_vm3, %v1627_v7, %v1628_v58 }
 0x137   : > { %v3772_v1 = vadd.f32 %v1608_v59, %v3588_v11  ;;  %v1745_v14 = vsel %vm1686_vm3, %v1626_v3, %v1627_v7  ;;  %v1889_v8 = vsel %vm1883_vm4, 0.0, %v1744_v62  ;;  %v1507_v57 = vrot.slane %v978_v10, 7 }
 0x138   : > { %v3780_v16 = vpop.f32.mrf.mxu1  ;;  %v3782_v53 = vpop.f32.mrf.mxu0  ;;  %v1952_v63 = vadd.f32 %v3683_v35, %v1745_v14  ;;  %v1953_v11 = vadd.f32 %v1889_v8, %v3695_v46  ;;  %v1630_v59 = vrot.slane %v1268_v47, 1  ;;  %v1828_v60 = vadd.f32 %v3560_v61, %v1764_v9 }
 0x139   : > { %v1605_v58 = vsel %vm1557_vm1, %v1506_v56, %v1507_v57  ;;  %v1510_v3 = vrot.slane %v3780_v16, 7  ;;  %v4824_v55 = vrot.slane %v3782_v53, 1  ;;  %v1632_v44 = vrot.slane %v3078_v24, 1 }
 0x13a   : > { %v981_v54 = vpop.f32.mrf.mxu1  ;;  %v1271_v10 = vpop.f32.mrf.mxu0  ;;  %v2030_v7 = vsel %vm462_vm0, %v1952_v63, -inf  ;;  %v2031_v4 = vsel %vm462_vm0, %v1953_v11, -inf  ;;  %v1770_v35 = vsel %vm1752_vm2, 0.0, %v1605_v58  ;;  %v1742_v56 = vsel %vm1686_vm3, %v1629_v43, %v1630_v59 }
 0x13b   : > { %v2032_v46 = vmax.f32 %v2030_v7, %v2031_v4  ;;  %v3796_v61 = vadd.f32 %v1770_v35, %v3596_v15  ;;  %v1602_v47 = vsel %vm1557_vm1, %v1509_v18, %v1510_v3  ;;  %v2024_v14 = vrot.slane %v2023_v45, 4 }
 0x13c   : > { %v3802_v9 = vpop.f32.mrf.mxu1  ;;  %v3804_v62 = vpop.f32.mrf.mxu0  ;;  %v1891_v24 = vsel %vm1883_vm4, 0.0, %v1742_v56  ;;  %v3809_v8 = vadd.f32 %v3600_v17, %v1602_v47  ;;  %v1739_v15 = vsel %vm1686_vm3, %v1632_v44, %v4824_v55  ;;  %v1508_v63 = vrot.slane %v981_v54, 7  ;;  %v3206_v17 = vld [vmem:[%s4818_s3 + $0x8] sm:$0xff]  }
 0x13d   : > { %v1955_v43 = vadd.f32 %v1891_v24, %v3688_v33  ;;  %v3816_v16 = vadd.f32 %v1828_v60, %v1739_v15  ;;  %v2033_v7 = vrot.slane %v2032_v46, 4  ;;  %v1631_v4 = vrot.slane %v1271_v10, 1  ;;  %3136 = vmatprep.subr.bf16.mxu1 %v3206_v17 }
 0x13e   : > { %v3818_v11 = vpop.f32.mrf.mxu1  ;;  %v3820_v58 = vpop.f32.mrf.mxu0  ;;  %v2039_v35 = vsel %vm462_vm0, %v1954_v40, -inf  ;;  %v3829_v33 = vsel %vm1557_vm1, %v1508_v63, %v1509_v18  ;;  %v2025_v47 = vmax.f32 %v2023_v45, %v2024_v14  ;;  %v1604_v10 = vsel %vm1557_vm1, %v1507_v57, %v1508_v63  ;;  %3137 = vmatpush3.bf16.msra.mxu1 %v3206_v17 }
 0x13f   : > { %v2040_v56 = vsel %vm462_vm0, %v1955_v43, -inf  ;;  %v1768_v15 = vsel %vm1752_vm2, 0.0, %v1607_v51  ;;  %v3840_v40 = vadd.f32 %v1604_v10, %v3604_v19  ;;  %v1740_v18 = vsel %vm1686_vm3, %v1631_v4, %v1632_v44 }
 0x140   : > { %v3831_v60 = vpop.f32.mrf.mxu1  ;;  %v3833_v54 = vpop.f32.mrf.mxu0  ;;  %v2041_v24 = vmax.f32 %v2039_v35, %v2040_v56  ;;  %v2034_v52 = vmax.f32 %v2032_v46, %v2033_v7  ;;  %v1741_v45 = vsel %vm1686_vm3, %v1630_v59, %v1631_v4  ;;  %v1893_v57 = vsel %vm1883_vm4, 0.0, %v1740_v18 }
 0x141   : > { %v1956_v14 = vadd.f32 %v3711_v2, %v1741_v45  ;;  %v1957_v51 = vadd.f32 %v1893_v57, %v3729_v0  ;;  %v1513_v19 = vrot.slane %v3802_v9, 7  ;;  %v1511_v63 = vrot.slane %v3818_v11, 7 }
 0x142   : > { %v997_v43 = vpop.f32.mrf.mxu1  ;;  %v1287_v55 = vpop.f32.mrf.mxu0  ;;  %v2042_v50 = vrot.slane %v2041_v24, 4  ;;  %v2026_v46 = vrot.slane %v2025_v47, 2  ;;  %v1634_v17 = vrot.slane %v3820_v58, 1  ;;  %v4825_v59 = vrot.slane %v3831_v60, 7 }
 0x143   : > { %v2048_v4 = vsel %vm462_vm0, %v1956_v14, -inf  ;;  %v2049_v2 = vsel %vm462_vm0, %v1957_v51, -inf  ;;  %v1601_v0 = vsel %vm1557_vm1, %v1510_v3, %v1511_v63  ;;  %v2035_v56 = vrot.slane %v2034_v52, 2 }
 0x144   : > { %v3852_v44 = vpop.f32.mrf.mxu1  ;;  %v3854_v35 = vpop.f32.mrf.mxu0  ;;  %v2043_v7 = vmax.f32 %v2041_v24, %v2042_v50  ;;  %v2050_v18 = vmax.f32 %v2048_v4, %v2049_v2  ;;  %v1774_v50 = vsel %vm1752_vm2, 0.0, %v1601_v0  ;;  %v1832_v58 = vadd.f32 %v3576_v5, %v1768_v15 }
 0x145   : > { %v3870_v24 = vadd.f32 %v1774_v50, %v3612_v23  ;;  %v4864_v45 = vrot.slane %v3782_v53, 1  ;;  %v1598_v57 = vsel %vm1557_vm1, %v1513_v19, %v4825_v59  ;;  %v2027_v4 = vmax.f32 %v2025_v47, %v2026_v46 }
 0x146   : > { %v3862_v9 = vpop.f32.mrf.mxu1  ;;  %v3864_v11 = vpop.f32.mrf.mxu0  ;;  %v2044_v10 = vrot.slane %v2043_v7, 2  ;;  %v2051_v2 = vrot.slane %v2050_v18, 4  ;;  %v3887_v23 = vadd.f32 %v3616_v25, %v1598_v57  ;;  %v1636_v53 = vrot.slane %v3804_v62, 1 }
 0x147   : > { %v1738_v3 = vsel %vm1686_vm3, %v4864_v45, %v1634_v17  ;;  %v1637_v0 = vrot.slane %v3833_v54, 1  ;;  %v1512_v50 = vrot.slane %v997_v43, 7  ;;  %v2036_v48 = vmax.f32 %v2034_v52, %v2035_v56 }
 0x148   : > { %v3880_v14 = vpop.f32.mrf.mxu1  ;;  %v3882_v51 = vpop.f32.mrf.mxu0  ;;  %v1895_v5 = vsel %vm1883_vm4, 0.0, %v1738_v3  ;;  %v2045_v47 = vmax.f32 %v2043_v7, %v2044_v10  ;;  %v2052_v46 = vmax.f32 %v2050_v18, %v2051_v2  ;;  %v1635_v26 = vrot.slane %v1287_v55, 1 }
 0x149   : > { %v1959_v15 = vadd.f32 %v1895_v5, %v3718_v6  ;;  %v2057_v3 = vsel %vm462_vm0, %v3816_v16, -inf  ;;  %v1735_v62 = vsel %vm1686_vm3, %v1636_v53, %v1637_v0  ;;  %v3903_v6 = vsel %vm1557_vm1, %v1512_v50, %v1513_v19 }
 0x14a   : > { %v3892_v45 = vpop.f32.mrf.mxu1  ;;  %v3894_v59 = vpop.f32.mrf.mxu0  ;;  %v2028_v52 = vrot.slane %v2027_v4, 1  ;;  %v2053_v7 = vrot.slane %v2052_v46, 2  ;;  %v1962_v55 = vadd.f32 %v1832_v58, %v1735_v62  ;;  %v3911_v16 = vsel %vm1557_vm1, %v1511_v63, %v1512_v50 }
 0x14b   : > { %v2058_v25 = vsel %vm462_vm0, %v1959_v15, -inf  ;;  %v1736_v10 = vsel %vm1686_vm3, %v1635_v26, %v1636_v53  ;;  %v1737_v18 = vsel %vm1686_vm3, %v1634_v17, %v1635_v26  ;;  %v2037_v2 = vrot.slane %v2036_v48, 1 }
 0x14c   : > { %v3905_v54 = vpop.f32.mrf.mxu1  ;;  %v3907_v43 = vpop.f32.mrf.mxu0  ;;  %v2059_v56 = vmax.f32 %v2057_v3, %v2058_v25  ;;  %v2046_v5 = vrot.slane %v2045_v47, 1  ;;  %v2054_v15 = vmax.f32 %v2052_v46, %v2053_v7  ;;  %v3923_v58 = vsel %vm462_vm0, %v3741_v32, -inf }
 0x14d   : > { %4865 = vst [vmem:[#allocation38_spill] sm:$0xff] %v3923_v58  ;;  %v1772_v63 = vsel %vm1752_vm2, 0.0, %v3829_v33  ;;  %v1897_v53 = vsel %vm1883_vm4, 0.0, %v1736_v10  ;;  %v1960_v26 = vadd.f32 %v3751_v36, %v1737_v18  ;;  %v2029_v3 = vmax.f32 %v2027_v4, %v2028_v52 }
 0x14e   : > { %v3917_v19 = vpop.f32.mrf.mxu1  ;;  %v3919_v57 = vpop.f32.mrf.mxu0  ;;  %v2060_v28 = vrot.slane %v2059_v56, 4  ;;  %v1961_v25 = vadd.f32 %v1897_v53, %v3772_v1  ;;  %v1517_v32 = vrot.slane %v3852_v44, 7  ;;  %v2055_v62 = vrot.slane %v2054_v15, 1 }
 0x14f   : > { %v2066_v7 = vsel %vm462_vm0, %v1960_v26, -inf  ;;  %v1515_v33 = vrot.slane %v3862_v9, 7  ;;  %v1638_v58 = vrot.slane %v3864_v11, 1  ;;  %v2038_v18 = vmax.f32 %v2036_v48, %v2037_v2 }
 0x150   : > { %v3931_v17 = vpop.f32.mrf.mxu1  ;;  %v3933_v50 = vpop.f32.mrf.mxu0  ;;  %v2061_v46 = vmax.f32 %v2059_v56, %v2060_v28  ;;  %v2047_v49 = vmax.f32 %v2045_v47, %v2046_v5  ;;  %v2067_v4 = vsel %vm462_vm0, %v1961_v25, -inf  ;;  %v4826_v28 = vrot.slane %v3880_v14, 7 }
 0x151   : > { %v2068_v1 = vmax.f32 %v2066_v7, %v2067_v4  ;;  %v4866_v44 = vrot.slane %v3831_v60, 7  ;;  %v1734_v9 = vsel %vm1686_vm3, %v1637_v0, %v1638_v58  ;;  %v4827_v11 = vrot.slane %v3882_v51, 1 }
 0x152   : > { %v3940_v10 = vpop.f32.mrf.mxu1  ;;  %v3942_v36 = vpop.f32.mrf.mxu0  ;;  %v1836_v48 = vadd.f32 %v3592_v13, %v1772_v63  ;;  %v2062_v47 = vrot.slane %v2061_v46, 2  ;;  %v1640_v2 = vrot.slane %v3854_v35, 1  ;;  %v1899_v60 = vsel %vm1883_vm4, 0.0, %v1734_v9 }
 0x153   : > { %v1597_v52 = vsel %vm1557_vm1, %v4866_v44, %v1515_v33  ;;  %v2301_v5 = vpack.c.bf16 %v2029_v3, %v2029_v3  ;;  %v2056_v26 = vmax.f32 %v2054_v15, %v2055_v62  ;;  %v1963_v25 = vadd.f32 %v1899_v60, %v3761_v12 }
 0x154   : > { %v3953_v56 = vpop.f32.mrf.mxu1  ;;  %v3955_v53 = vpop.f32.mrf.mxu0  ;;  %v1594_v0 = vsel %vm1557_vm1, %v1517_v32, %v4826_v28  ;;  %v2302_v13 = vpack.c.bf16 %v2038_v18, %v2038_v18  ;;  %v2303_v63 = vpack.c.bf16 %v2047_v49, %v2047_v49  ;;  %v2069_v44 = vrot.slane %v2068_v1, 4 }
 0x155   : > { %v1731_v35 = vsel %vm1686_vm3, %v1640_v2, %v4827_v11  ;;  %v2075_v15 = vsel %vm462_vm0, %v1962_v55, -inf  ;;  %v2076_v12 = vsel %vm462_vm0, %v1963_v25, -inf  ;;  %v1516_v62 = vrot.slane %v3892_v45, 7 }
 0x156   : > { %v3966_v7 = vpop.f32.mrf.mxu1  ;;  %v3968_v4 = vpop.f32.mrf.mxu0  ;;  %v1966_v3 = vadd.f32 %v1836_v48, %v1731_v35  ;;  %v2063_v28 = vmax.f32 %v2061_v46, %v2062_v47  ;;  %v1776_v49 = vsel %vm1752_vm2, 0.0, %v3903_v6  ;;  %v2077_v18 = vmax.f32 %v2075_v15, %v2076_v12 }
 0x157   : > { %v1639_v20 = vrot.slane %v3894_v59, 1  ;;  %v2304_v11 = vpack.c.bf16 %v2056_v26, %v2056_v26  ;;  %v1778_v55 = vsel %vm1752_vm2, 0.0, %v1597_v52  ;;  %v1595_v48 = vsel %vm1557_vm1, %v1516_v62, %v1517_v32 }
 0x158   : > { %v3977_v9 = vpop.f32.mrf.mxu1  ;;  %v3979_v60 = vpop.f32.mrf.mxu0  ;;  %v3991_v45 = vsel %vm1557_vm1, %v1515_v33, %v1516_v62  ;;  %v3997_v47 = vunpack.c.l.b16 %v2301_v5  ;;  %v3999_v6 = vunpack.c.l.b16 %v2302_v13  ;;  %v4003_v59 = vadd.f32 %v3911_v16, %v3620_v27 }
 0x159   : > { %v2070_v52 = vmax.f32 %v2068_v1, %v2069_v44  ;;  %v4005_v26 = vunpack.c.l.b16 %v2303_v63  ;;  %v1840_v32 = vadd.f32 %v3608_v21, %v1776_v49  ;;  %v1732_v33 = vsel %vm1686_vm3, %v1639_v20, %v1640_v2 }
 0x15a   : > { %v3993_v25 = vpop.f32.mrf.mxu1  ;;  %v3995_v46 = vpop.f32.mrf.mxu0  ;;  %4867 = vst [vmem:[#allocation39_spill] sm:$0xff] %v3999_v6  ;;  %v1733_v35 = vsel %vm1686_vm3, %v1638_v58, %v1639_v20  ;;  %v2064_v13 = vrot.slane %v2063_v28, 1  ;;  %v4017_v12 = vadd.f32 %v1778_v55, %v3628_v31  ;;  %v1901_v27 = vsel %vm1883_vm4, 0.0, %v1732_v33 }
 0x15b   : > { %4868 = vst [vmem:[#allocation40_spill] sm:$0xff] %v4005_v26  ;;  %v1964_v16 = vadd.f32 %v3796_v61, %v1733_v35  ;;  %v4022_v21 = vunpack.c.l.b16 %v2304_v11  ;;  %v1965_v1 = vadd.f32 %v1901_v27, %v3840_v40  ;;  %v1521_v2 = vrot.slane %v3905_v54, 7 }
 0x15c   : > { %v4012_v15 = vpop.f32.mrf.mxu1  ;;  %v4014_v5 = vpop.f32.mrf.mxu0  ;;  %v1519_v20 = vrot.slane %v3917_v19, 7  ;;  %v2071_v44 = vrot.slane %v2070_v52, 2  ;;  %v1642_v62 = vrot.slane %v3919_v57, 1  ;;  %v1522_v49 = vrot.slane %v3931_v17, 7 }
 0x15d   : > { %4869 = vst [vmem:[#allocation41_spill] sm:$0xff] %v4022_v21  ;;  %v2084_v31 = vsel %vm462_vm0, %v1964_v16, -inf  ;;  %v2078_v61 = vrot.slane %v2077_v18, 4  ;;  %v2085_v11 = vsel %vm462_vm0, %v1965_v1, -inf  ;;  %v4870_v40 = vrot.slane %v3880_v14, 7 }
 0x15e   : > { %v4027_v58 = vpop.f32.mrf.mxu1  ;;  %v4029_v63 = vpop.f32.mrf.mxu0  ;;  %v1645_v19 = vrot.slane %v3933_v50, 1  ;;  %v2065_v35 = vmax.f32 %v2063_v28, %v2064_v13  ;;  %v2086_v27 = vmax.f32 %v2084_v31, %v2085_v11  ;;  %v1644_v57 = vrot.slane %v3907_v43, 1 }
 0x15f   : > { %v1593_v54 = vsel %vm1557_vm1, %v4870_v40, %v1519_v20  ;;  %v4871_v17 = vrot.slane %v3882_v51, 1  ;;  %v4050_v14 = vadd.f32 %v3635_v34, %v1594_v0  ;;  %v2093_v1 = vsel %vm462_vm0, %v1966_v3, -inf }
 0x160   : > { %v4040_v55 = vpop.f32.mrf.mxu1  ;;  %v4042_v33 = vpop.f32.mrf.mxu0  ;;  %v4057_v40 = vsel %vm1557_vm1, %v1521_v2, %v1522_v49  ;;  %v2072_v51 = vmax.f32 %v2070_v52, %v2071_v44  ;;  %v2087_v13 = vrot.slane %v2086_v27, 4  ;;  %v1727_v34 = vsel %vm1686_vm3, %v1644_v57, %v1645_v19 }
 0x161   : > { %v1730_v16 = vsel %vm1686_vm3, %v4871_v17, %v1642_v62  ;;  %v2079_v0 = vmax.f32 %v2077_v18, %v2078_v61  ;;  %v1970_v3 = vadd.f32 %v1840_v32, %v1727_v34  ;;  %v1520_v11 = vrot.slane %v3940_v10, 7 }
 0x162   : > { %v1903_v50 = vsel %vm1883_vm4, 0.0, %v1730_v16  ;;  %v4059_v28 = vpop.f32.mrf.mxu1  ;;  %v4061_v43 = vpop.f32.mrf.mxu0  ;;  %v1643_v17 = vrot.slane %v3942_v36, 1  ;;  %v2305_v21 = vpack.c.bf16 %v2065_v35, %v2065_v35  ;;  %v2088_v26 = vmax.f32 %v2086_v27, %v2087_v13 }
 0x163   : > { %v1967_v31 = vadd.f32 %v1903_v50, %v3809_v8  ;;  %v1523_v52 = vrot.slane %v3966_v7, 7  ;;  %v1780_v8 = vsel %vm1752_vm2, 0.0, %v1595_v48  ;;  %v1591_v18 = vsel %vm1557_vm1, %v1520_v11, %v1521_v2 }
 0x164   : > { %v4068_v16 = vpop.f32.mrf.mxu0  ;;  %v1592_v10 = vsel %vm1557_vm1, %v1519_v20, %v1520_v11  ;;  %v4078_v32 = vpop.f32.mrf.mxu1  ;;  %v2073_v61 = vrot.slane %v2072_v51, 1  ;;  %v4084_v35 = vadd.f32 %v3991_v45, %v3639_v37  ;;  %v2089_v27 = vrot.slane %v2088_v26, 2 }
 0x165   : > { %v2094_v6 = vsel %vm462_vm0, %v1967_v31, -inf  ;;  %v1728_v48 = vsel %vm1686_vm3, %v1643_v17, %v1644_v57  ;;  %v1729_v2 = vsel %vm1686_vm3, %v1642_v62, %v1643_v17  ;;  %v1589_v45 = vsel %vm1557_vm1, %v1522_v49, %v1523_v52 }
 0x166   : > { %v2095_v44 = vmax.f32 %v2093_v1, %v2094_v6  ;;  %v4080_v36 = vpop.f32.mrf.mxu0  ;;  %v2080_v6 = vrot.slane %v2079_v0, 2  ;;  %v1905_v20 = vsel %vm1883_vm4, 0.0, %v1728_v48  ;;  %v2090_v13 = vmax.f32 %v2088_v26, %v2089_v27  ;;  %v4104_v17 = vpop.f32.mrf.mxu1 }
 0x167   : > { %v1968_v31 = vadd.f32 %v3870_v24, %v1729_v2  ;;  %v1969_v37 = vadd.f32 %v1905_v20, %v4003_v59  ;;  %v4100_v57 = vunpack.c.l.b16 %v2305_v21  ;;  %v1844_v34 = vadd.f32 %v3624_v29, %v1780_v8 }
 0x168   : > { %v2096_v1 = vrot.slane %v2095_v44, 4  ;;  %v4092_v50 = vpop.f32.mrf.mxu0  ;;  %v1646_v11 = vrot.slane %v3968_v4, 1  ;;  %v4108_v26 = vmax.f32 %v2072_v51, %v2073_v61  ;;  %v2091_v24 = vrot.slane %v2090_v13, 1  ;;  %v4123_v20 = vpop.f32.mrf.mxu1 }
 0x169   : > { %v2102_v59 = vsel %vm462_vm0, %v1968_v31, -inf  ;;  %v2103_v27 = vsel %vm462_vm0, %v1969_v37, -inf  ;;  %v4112_v2 = vmax.f32 %v2079_v0, %v2080_v6  ;;  %v1782_v4 = vsel %vm1752_vm2, 0.0, %v1593_v54 }
 0x16a   : > { %v2097_v62 = vmax.f32 %v2095_v44, %v2096_v1  ;;  %v4106_v48 = vpop.f32.mrf.mxu0  ;;  %v2104_v49 = vmax.f32 %v2102_v59, %v2103_v27  ;;  %v1726_v29 = vsel %vm1686_vm3, %v1645_v19, %v1646_v11  ;;  %v1648_v8 = vrot.slane %v3955_v53, 1 }
 0x16b   : > { %v1907_v51 = vsel %vm1883_vm4, 0.0, %v1726_v29  ;;  %v1649_v44 = vrot.slane %v3979_v60, 1  ;;  %v2092_v61 = vmax.f32 %v2090_v13, %v2091_v24  ;;  %v2306_v54 = vpack.c.bf16 %v4108_v26, %v4108_v26 }
 0x16c   : > { %v2098_v21 = vrot.slane %v2097_v62, 2  ;;  %v2105_v0 = vrot.slane %v2104_v49, 4  ;;  %v1971_v6 = vadd.f32 %v1907_v51, %v3887_v23  ;;  %v4125_v31 = vpop.f32.mrf.mxu0  ;;  %v2111_v19 = vsel %vm462_vm0, %v1970_v3, -inf }
 0x16d   : > { %v1723_v53 = vsel %vm1686_vm3, %v1648_v8, %v1649_v44  ;;  %v1647_v37 = vrot.slane %v3995_v46, 1  ;;  %v4135_v23 = vadd.f32 %v1782_v4, %v3647_v42  ;;  %v4139_v59 = vadd.f32 %v3651_v30, %v4057_v40 }
 0x16e   : > { %v2099_v1 = vmax.f32 %v2097_v62, %v2098_v21  ;;  %v2106_v13 = vmax.f32 %v2104_v49, %v2105_v0  ;;  %v2112_v62 = vsel %vm462_vm0, %v1971_v6, -inf  ;;  %v1974_v24 = vadd.f32 %v1844_v34, %v1723_v53  ;;  %v4144_v49 = vpop.f32.mrf.mxu1  ;;  %v4146_v0 = vpop.f32.mrf.mxu0  ;;  %v3207_v34 = vld [vmem:[%s4818_s3] sm:$0xff]  }
 0x16f   : > { %v1525_v27 = vrot.slane %v3953_v56, 7  ;;  %v2113_v3 = vmax.f32 %v2111_v19, %v2112_v62  ;;  %v2308_v21 = vpack.c.bf16 %v2092_v61, %v2092_v61  ;;  %v1784_v46 = vsel %vm1752_vm2, 0.0, %v1591_v18  ;;  %3138 = vmatprep.subr.bf16.mxu1 %v3207_v34 }
 0x170   : > { %v2100_v60 = vrot.slane %v2099_v1, 1  ;;  %v2107_v51 = vrot.slane %v2106_v13, 2  ;;  %v4149_v42 = vadd.f32 %v1592_v10, %v3655_v22  ;;  %v1786_v30 = vsel %vm1752_vm2, 0.0, %v1589_v45  ;;  %v4169_v62 = vpop.f32.mrf.mxu0  ;;  %3139 = vmatpush3.bf16.msra.mxu1 %v3207_v34 }
 0x171   : > { %v2114_v40 = vrot.slane %v2113_v3, 4  ;;  %v1724_v56 = vsel %vm1686_vm3, %v1647_v37, %v1648_v8  ;;  %v1526_v4 = vrot.slane %v3977_v9, 7  ;;  %v1725_v61 = vsel %vm1686_vm3, %v1646_v11, %v1647_v37  ;;  %v4167_v9 = vpop.f32.mrf.mxu1 }
 0x172   : > { %v2101_v29 = vmax.f32 %v2099_v1, %v2100_v60  ;;  %v1909_v22 = vsel %vm1883_vm4, 0.0, %v1724_v56  ;;  %v1524_v45 = vrot.slane %v3993_v25, 7  ;;  %v1972_v1 = vadd.f32 %v4017_v12, %v1725_v61 }
 0x173   : > { %v2115_v10 = vmax.f32 %v2113_v3, %v2114_v40  ;;  %v1973_v8 = vadd.f32 %v1909_v22, %v4084_v35  ;;  %v2387_v6 = vunpack.c.l.b16 %v2308_v21  ;;  %v2108_v53 = vmax.f32 %v2106_v13, %v2107_v51  ;;  %v4872_v3 = vld [vmem:[#allocation33_spill] sm:$0xff] }
 0x174   : > { %v2309_v18 = vpack.c.bf16 %v2101_v29, %v2101_v29  ;;  %v1650_v60 = vrot.slane %v4029_v63, 1  ;;  %v1848_v11 = vadd.f32 %v3643_v39, %v1784_v46  ;;  %v2120_v25 = vsel %vm462_vm0, %v1972_v1, -inf }
 0x175   : > { %v2116_v37 = vrot.slane %v2115_v10, 2  ;;  %v2121_v12 = vsel %vm462_vm0, %v1973_v8, -inf  ;;  %v4178_v21 = vadd.f32 %v1786_v30, %v4872_v3  ;;  %v1586_v63 = vsel %vm1557_vm1, %v1525_v27, %v1526_v4  ;;  %v4874_v3 = vld [vmem:[#allocation35_spill] sm:$0xff] }
 0x176   : > { %v2388_v19 = vunpack.c.l.b16 %v2309_v18  ;;  %v2122_v13 = vmax.f32 %v2120_v25, %v2121_v12  ;;  %v1587_v29 = vsel %vm1557_vm1, %v1524_v45, %v1525_v27  ;;  %v1529_v39 = vrot.slane %v4012_v15, 7  ;;  %v4194_v18 = vpop.f32.mrf.mxu1  ;;  %v4196_v27 = vpop.f32.mrf.mxu0  ;;  %v4873_v25 = vld [vmem:[#allocation34_spill] sm:$0xff] }
 0x177   : > { %v1527_v46 = vrot.slane %v4027_v58, 7  ;;  %v1722_v51 = vsel %vm1686_vm3, %v1649_v44, %v1650_v60  ;;  %v2109_v40 = vrot.slane %v2108_v53, 1  ;;  %v1588_v30 = vsel %vm1557_vm1, %v1523_v52, %v1524_v45 }
 0x178   : > { %v4175_v35 = vsel %vm2411_vm5, %v2388_v19, %v2387_v6  ;;  %v2123_v56 = vrot.slane %v2122_v13, 4  ;;  %v1911_v34 = vsel %vm1883_vm4, 0.0, %v1722_v51  ;;  %v2117_v15 = vmax.f32 %v2115_v10, %v2116_v37 }
 0x179   : > { %v1652_v61 = vrot.slane %v4014_v5, 1  ;;  %v1975_v22 = vadd.f32 %v1911_v34, %v4050_v14  ;;  %v1653_v44 = vrot.slane %v4042_v33, 1  ;;  %v2129_v7 = vsel %vm462_vm0, %v1974_v24, -inf }
 0x17a   : > { %v2124_v1 = vmax.f32 %v2122_v13, %v2123_v56  ;;  %v1530_v52 = vrot.slane %v4040_v55, 7  ;;  %v1651_v45 = vrot.slane %v4061_v43, 1  ;;  %v1788_v8 = vsel %vm1752_vm2, 0.0, %v1587_v29  ;;  %v4213_v55 = vpop.f32.mrf.mxu1  ;;  %v4215_v43 = vpop.f32.mrf.mxu0  ;;  %v4875_v29 = vld [vmem:[#allocation32_spill] sm:$0xff] }
 0x17b   : > { %v1585_v10 = vsel %vm1557_vm1, %v1526_v4, %v1527_v46  ;;  %v2130_v5 = vsel %vm462_vm0, %v1975_v22, -inf  ;;  %v1719_v33 = vsel %vm1686_vm3, %v1652_v61, %v1653_v44  ;;  %v2110_v14 = vmax.f32 %v2108_v53, %v2109_v40 }
 0x17c   : > { %v2125_v24 = vrot.slane %v2124_v1, 2  ;;  %v2131_v6 = vmax.f32 %v2129_v7, %v2130_v5  ;;  %v1978_v19 = vadd.f32 %v1848_v11, %v1719_v33  ;;  %v2118_v37 = vrot.slane %v2117_v15, 1  ;;  %v4241_v5 = vpop.f32.mrf.mxu0 }
 0x17d   : > { %v4218_v12 = vadd.f32 %v4873_v25, %v1586_v63  ;;  %v4221_v13 = vadd.f32 %v1588_v30, %v4874_v3  ;;  %v1720_v4 = vsel %vm1686_vm3, %v1651_v45, %v1652_v61  ;;  %v4226_v51 = vadd.f32 %v4875_v29, %v1788_v8 }
 0x17e   : > { %v1790_v53 = vsel %vm1752_vm2, 0.0, %v1585_v10  ;;  %v2132_v11 = vrot.slane %v2131_v6, 4  ;;  %v1582_v40 = vsel %vm1557_vm1, %v1529_v39, %v1530_v52  ;;  %v2126_v56 = vmax.f32 %v2124_v1, %v2125_v24  ;;  %v4239_v10 = vpop.f32.mrf.mxu1  ;;  %v4876_v1 = vld [vmem:[#allocation4_spill] sm:$0xff] }
 0x17f   : > { %v1528_v63 = vrot.slane %v4059_v28, 7  ;;  %v1721_v30 = vsel %vm1686_vm3, %v1650_v60, %v1651_v45  ;;  %v1913_v34 = vsel %vm1883_vm4, 0.0, %v1720_v4  ;;  %v2310_v61 = vpack.c.bf16 %v2110_v14, %v2110_v14  ;;  %v4877_v28 = vld [vmem:[#allocation5_spill] sm:$0xff] }
 0x180   : > { %v2133_v22 = vmax.f32 %v2131_v6, %v2132_v11  ;;  %v1976_v7 = vadd.f32 %v4135_v23, %v1721_v30  ;;  %v1977_v8 = vadd.f32 %v1913_v34, %v4149_v42  ;;  %v2119_v33 = vmax.f32 %v2117_v15, %v2118_v37  ;;  %v4262_v11 = vpop.f32.mrf.mxu1 }
 0x181   : > { %v4244_v24 = vadd.f32 %v1790_v53, %v4876_v1  ;;  %v4247_v25 = vadd.f32 %v4877_v28, %v1582_v40  ;;  %v1654_v60 = vrot.slane %v4080_v36, 1  ;;  %v1531_v42 = vrot.slane %v4104_v17, 7  ;;  %v4264_v40 = vpop.f32.mrf.mxu0 }
 0x182   : > { %v2134_v45 = vrot.slane %v2133_v22, 2  ;;  %v2138_v14 = vsel %vm462_vm0, %v1976_v7, -inf  ;;  %v2139_v23 = vsel %vm462_vm0, %v1977_v8, -inf  ;;  %v2127_v6 = vrot.slane %v2126_v56, 1  ;;  %v4283_v28 = vpop.f32.mrf.mxu1 }
 0x183   : > { %v1583_v3 = vsel %vm1557_vm1, %v1528_v63, %v1529_v39  ;;  %v2140_v15 = vmax.f32 %v2138_v14, %v2139_v23  ;;  %v1718_v37 = vsel %vm1686_vm3, %v1653_v44, %v1654_v60  ;;  %v4257_v4 = vunpack.c.l.b16 %v2310_v61  ;;  %v4879_v23 = vld [vmem:[#allocation2_spill] sm:$0xff] }
 0x184   : > { %v2135_v29 = vmax.f32 %v2133_v22, %v2134_v45  ;;  %v1533_v36 = vrot.slane %v4078_v32, 7  ;;  %v1915_v53 = vsel %vm1883_vm4, 0.0, %v1718_v37  ;;  %v2311_v17 = vpack.c.bf16 %v2119_v33, %v2119_v33  ;;  %v4285_v45 = vpop.f32.mrf.mxu0 }
 0x185   : > { %v1584_v39 = vsel %vm1557_vm1, %v1527_v46, %v1528_v63  ;;  %v2141_v30 = vrot.slane %v2140_v15, 4  ;;  %v1979_v44 = vadd.f32 %v1915_v53, %v4139_v59  ;;  %v2147_v34 = vsel %vm462_vm0, %v1978_v19, -inf  ;;  %v4878_v63 = vld [vmem:[#allocation6_spill] sm:$0xff] }
 0x186   : > { %v1792_v32 = vsel %vm1752_vm2, 0.0, %v1583_v3  ;;  %v1581_v61 = vsel %vm1557_vm1, %v1530_v52, %v1531_v42  ;;  %v1534_v22 = vrot.slane %v4123_v20, 7  ;;  %v2128_v7 = vmax.f32 %v2126_v56, %v2127_v6 }
 0x187   : > { %v2142_v8 = vmax.f32 %v2140_v15, %v2141_v30  ;;  %v2148_v58 = vsel %vm462_vm0, %v1979_v44, -inf  ;;  %v1655_v33 = vrot.slane %v4106_v48, 1  ;;  %v2136_v46 = vrot.slane %v2135_v29, 1  ;;  %v4880_v30 = vld [vmem:[#allocation8_spill] sm:$0xff] }
 0x188   : > { %v4280_v1 = vadd.f32 %v1584_v39, %v4878_v63  ;;  %v1656_v59 = vrot.slane %v4068_v16, 1  ;;  %v2149_v19 = vmax.f32 %v2147_v34, %v2148_v58  ;;  %v1794_v20 = vsel %vm1752_vm2, 0.0, %v1581_v61  ;;  %v4308_v34 = vpop.f32.mrf.mxu1  ;;  %v4881_v58 = vld [vmem:[#allocation9_spill] sm:$0xff] }
 0x189   : > { %v2143_v52 = vrot.slane %v2142_v8, 2  ;;  %v1657_v56 = vrot.slane %v4092_v50, 1  ;;  %v1532_v14 = vrot.slane %v4144_v49, 7  ;;  %v4291_v48 = vunpack.c.l.b16 %v2311_v17 }
 0x18a   : > { %v4294_v6 = vadd.f32 %v4879_v23, %v1792_v32  ;;  %v2150_v3 = vrot.slane %v2149_v19, 4  ;;  %v1578_v16 = vsel %vm1557_vm1, %v1533_v36, %v1534_v22  ;;  %v2312_v15 = vpack.c.bf16 %v2128_v7, %v2128_v7  ;;  %v4310_v32 = vpop.f32.mrf.mxu0 }
 0x18b   : > { %v2144_v37 = vmax.f32 %v2142_v8, %v2143_v52  ;;  %v1716_v53 = vsel %vm1686_vm3, %v1655_v33, %v1656_v59  ;;  %v1717_v39 = vsel %vm1686_vm3, %v1654_v60, %v1655_v33  ;;  %v2137_v50 = vmax.f32 %v2135_v29, %v2136_v46 }
 0x18c   : > { %v4303_v49 = vadd.f32 %v1794_v20, %v4880_v30  ;;  %v1917_v17 = vsel %vm1883_vm4, 0.0, %v1716_v53  ;;  %v1980_v44 = vadd.f32 %v4178_v21, %v1717_v39  ;;  %v2151_v61 = vmax.f32 %v2149_v19, %v2150_v3  ;;  %v4333_v3 = vpop.f32.mrf.mxu1 }
 0x18d   : > { %v1715_v7 = vsel %vm1686_vm3, %v1656_v59, %v1657_v56  ;;  %v1579_v60 = vsel %vm1557_vm1, %v1532_v14, %v1533_v36  ;;  %v1981_v29 = vadd.f32 %v1917_v17, %v4221_v13  ;;  %v2145_v8 = vrot.slane %v2144_v37, 1 }
 0x18e   : > { %v4318_v33 = vadd.f32 %v4881_v58, %v1578_v16  ;;  %v2156_v46 = vsel %vm462_vm0, %v1980_v44, -inf  ;;  %v1658_v21 = vrot.slane %v4146_v0, 1  ;;  %v4322_v63 = vunpack.c.l.b16 %v2312_v15  ;;  %v4335_v0 = vpop.f32.mrf.mxu0 }
 0x18f   : > { %v1580_v19 = vsel %vm1557_vm1, %v1531_v42, %v1532_v14  ;;  %v2157_v59 = vsel %vm462_vm0, %v1981_v29, -inf  ;;  %v1535_v52 = vrot.slane %v4194_v18, 7  ;;  %v1982_v36 = vadd.f32 %v4226_v51, %v1715_v7  ;;  %v4882_v51 = vld [vmem:[#allocation10_spill] sm:$0xff] }
 0x190   : > { %v1796_v13 = vsel %vm1752_vm2, 0.0, %v1579_v60  ;;  %v2158_v20 = vmax.f32 %v2156_v46, %v2157_v59  ;;  %v1714_v23 = vsel %vm1686_vm3, %v1657_v56, %v1658_v21  ;;  %v2313_v16 = vpack.c.bf16 %v2137_v50, %v2137_v50  ;;  %v4883_v56 = vld [vmem:[#allocation7_spill] sm:$0xff] }
 0x191   : > { %v2152_v15 = vrot.slane %v2151_v61, 2  ;;  %v1537_v42 = vrot.slane %v4167_v9, 7  ;;  %v1919_v18 = vsel %vm1883_vm4, 0.0, %v1714_v23  ;;  %v4340_v14 = vmax.f32 %v2144_v37, %v2145_v8  ;;  %v4356_v8 = vpop.f32.mrf.mxu1 }
 0x192   : > { %v4343_v53 = vadd.f32 %v1580_v19, %v4882_v51  ;;  %v2159_v39 = vrot.slane %v2158_v20, 4  ;;  %v1983_v30 = vadd.f32 %v1919_v18, %v4218_v12  ;;  %v4347_v17 = vadd.f32 %v4883_v56, %v1796_v13  ;;  %v4358_v12 = vpop.f32.mrf.mxu0 }
 0x193   : > { %v1577_v50 = vsel %vm1557_vm1, %v1534_v22, %v1535_v52  ;;  %v1661_v44 = vrot.slane %v4169_v62, 1  ;;  %v1659_v9 = vrot.slane %v4196_v27, 1  ;;  %v2165_v7 = vsel %vm462_vm0, %v1982_v36, -inf  ;;  %v4380_v18 = vpop.f32.mrf.mxu1 }
 0x194   : > { %v2160_v37 = vmax.f32 %v2158_v20, %v2159_v39  ;;  %v1660_v60 = vrot.slane %v4125_v31, 1  ;;  %v2166_v29 = vsel %vm462_vm0, %v1983_v30, -inf  ;;  %v4360_v58 = vunpack.c.l.b16 %v2313_v16  ;;  %v4382_v51 = vpop.f32.mrf.mxu0  ;;  %v4884_v39 = vld [vmem:[#allocation12_spill] sm:$0xff] }
 0x195   : > { %v4362_v46 = vmax.f32 %v2151_v61, %v2152_v15  ;;  %v2167_v22 = vmax.f32 %v2165_v7, %v2166_v29  ;;  %v1538_v62 = vrot.slane %v4213_v55, 7  ;;  %v1798_v31 = vsel %vm1752_vm2, 0.0, %v1577_v50 }
 0x196   : > { %v2161_v19 = vrot.slane %v2160_v37, 2  ;;  %v1712_v59 = vsel %vm1686_vm3, %v1659_v9, %v1660_v60  ;;  %v1711_v13 = vsel %vm1686_vm3, %v1660_v60, %v1661_v44  ;;  %v1713_v61 = vsel %vm1686_vm3, %v1658_v21, %v1659_v9 }
 0x197   : > { %v2168_v36 = vrot.slane %v2167_v22, 4  ;;  %v1921_v55 = vsel %vm1883_vm4, 0.0, %v1712_v59  ;;  %v1536_v23 = vrot.slane %v4239_v10, 7  ;;  %v1984_v16 = vadd.f32 %v4244_v24, %v1713_v61  ;;  %v4407_v61 = vpop.f32.mrf.mxu0 }
 0x198   : > { %v2162_v20 = vmax.f32 %v2160_v37, %v2161_v19  ;;  %v1985_v15 = vadd.f32 %v1921_v55, %v4280_v1  ;;  %v4385_v30 = vadd.f32 %v1798_v31, %v4884_v39  ;;  %v1574_v21 = vsel %vm1557_vm1, %v1537_v42, %v1538_v62 }
 0x199   : > { %v2169_v56 = vmax.f32 %v2167_v22, %v2168_v36  ;;  %v1662_v50 = vrot.slane %v4241_v5, 1  ;;  %v2174_v10 = vsel %vm462_vm0, %v1984_v16, -inf  ;;  %v1539_v1 = vrot.slane %v4283_v28, 7  ;;  %v4885_v22 = vld [vmem:[#allocation13_spill] sm:$0xff]  ;;  %v4405_v36 = vpop.f32.mrf.mxu1 }
 0x19a   : > { %v2163_v9 = vrot.slane %v2162_v20, 1  ;;  %v2175_v24 = vsel %vm462_vm0, %v1985_v15, -inf  ;;  %v1986_v37 = vadd.f32 %v4294_v6, %v1711_v13  ;;  %v4397_v19 = vadd.f32 %v4885_v22, %v1574_v21 }
 0x19b   : > { %v2170_v7 = vrot.slane %v2169_v56, 2  ;;  %v2176_v60 = vmax.f32 %v2174_v10, %v2175_v24  ;;  %v1710_v29 = vsel %vm1686_vm3, %v1661_v44, %v1662_v50  ;;  %v1575_v5 = vsel %vm1557_vm1, %v1536_v23, %v1537_v42  ;;  %v4425_v10 = vpop.f32.mrf.mxu1 }
 0x19c   : > { %v1576_v31 = vsel %vm1557_vm1, %v1535_v52, %v1536_v23  ;;  %v1923_v59 = vsel %vm1883_vm4, 0.0, %v1710_v29  ;;  %v2164_v6 = vmax.f32 %v2162_v20, %v2163_v9  ;;  %v1541_v16 = vrot.slane %v4262_v11, 7 }
 0x19d   : > { %v2171_v13 = vmax.f32 %v2169_v56, %v2170_v7  ;;  %v2177_v55 = vrot.slane %v2176_v60, 4  ;;  %v1987_v44 = vadd.f32 %v1923_v59, %v4247_v25  ;;  %v1664_v15 = vrot.slane %v4215_v43, 1  ;;  %v4886_v56 = vld [vmem:[#allocation14_spill] sm:$0xff] }
 0x19e   : > { %v1573_v52 = vsel %vm1557_vm1, %v1538_v62, %v1539_v1  ;;  %v1663_v42 = vrot.slane %v4285_v45, 1  ;;  %v2183_v39 = vsel %vm462_vm0, %v1986_v37, -inf  ;;  %v1800_v25 = vsel %vm1752_vm2, 0.0, %v1575_v5  ;;  %v4427_v62 = vpop.f32.mrf.mxu0 }
 0x19f   : > { %v2172_v23 = vrot.slane %v2171_v13, 1  ;;  %v2178_v21 = vmax.f32 %v2176_v60, %v2177_v55  ;;  %v2184_v20 = vsel %vm462_vm0, %v1987_v44, -inf  ;;  %v4422_v11 = vadd.f32 %v1576_v31, %v4886_v56 }
 0x1a0   : > { %v2185_v43 = vmax.f32 %v2183_v39, %v2184_v20  ;;  %v1665_v9 = vrot.slane %v4264_v40, 1  ;;  %v2316_v45 = vpack.c.bf16 %v2164_v6, %v2164_v6  ;;  %v1802_v37 = vsel %vm1752_vm2, 0.0, %v1573_v52  ;;  %v4445_v52 = vpop.f32.mrf.mxu0 }
 0x1a1   : > { %v2173_v24 = vmax.f32 %v2171_v13, %v2172_v23  ;;  %v2179_v7 = vrot.slane %v2178_v21, 2  ;;  %v1542_v29 = vrot.slane %v4308_v34, 7  ;;  %v1540_v22 = vrot.slane %v4333_v3, 7  ;;  %v4443_v3 = vpop.f32.mrf.mxu1 }
 0x1a2   : > { %v2186_v60 = vrot.slane %v2185_v43, 4  ;;  %v1708_v5 = vsel %vm1686_vm3, %v1663_v42, %v1664_v15  ;;  %v1709_v59 = vsel %vm1686_vm3, %v1662_v50, %v1663_v42  ;;  %v1707_v55 = vsel %vm1686_vm3, %v1664_v15, %v1665_v9 }
 0x1a3   : > { %v2317_v31 = vpack.c.bf16 %v2173_v24, %v2173_v24  ;;  %v2180_v40 = vmax.f32 %v2178_v21, %v2179_v7  ;;  %v1925_v6 = vsel %vm1883_vm4, 0.0, %v1708_v5  ;;  %v1988_v44 = vadd.f32 %v4303_v49, %v1709_v59  ;;  %v4888_v7 = vld [vmem:[#allocation16_spill] sm:$0xff]  ;;  %v4465_v59 = vpop.f32.mrf.mxu1 }
 0x1a4   : > { %v2187_v13 = vmax.f32 %v2185_v43, %v2186_v60  ;;  %v1989_v34 = vadd.f32 %v1925_v6, %v4343_v53  ;;  %v2395_v23 = vunpack.c.l.b16 %v2316_v45  ;;  %v1666_v50 = vrot.slane %v4335_v0, 1  ;;  %v4887_v53 = vld [vmem:[#allocation11_spill] sm:$0xff]  ;;  %v4467_v6 = vpop.f32.mrf.mxu0 }
 0x1a5   : > { %v2396_v39 = vunpack.c.l.b16 %v2317_v31  ;;  %v2181_v21 = vrot.slane %v2180_v40, 1  ;;  %v2192_v20 = vsel %vm462_vm0, %v1988_v44, -inf  ;;  %v1543_v15 = vrot.slane %v4380_v18, 7 }
 0x1a6   : > { %v2188_v42 = vrot.slane %v2187_v13, 2  ;;  %v2193_v56 = vsel %vm462_vm0, %v1989_v34, -inf  ;;  %v4455_v43 = vadd.f32 %v4887_v53, %v1800_v25  ;;  %v1990_v24 = vadd.f32 %v4347_v17, %v1707_v55  ;;  %v4890_v53 = vld [vmem:[#allocation18_spill] sm:$0xff] }
 0x1a7   : > { %v4452_v49 = vsel %vm2411_vm5, %v2396_v39, %v2395_v23  ;;  %v2194_v45 = vmax.f32 %v2192_v20, %v2193_v56  ;;  %v4459_v60 = vadd.f32 %v1802_v37, %v4888_v7  ;;  %v1570_v5 = vsel %vm1557_vm1, %v1541_v16, %v1542_v29  ;;  %v4891_v7 = vld [vmem:[#allocation15_spill] sm:$0xff] }
 0x1a8   : > { %v2189_v0 = vmax.f32 %v2187_v13, %v2188_v42  ;;  %v1706_v31 = vsel %vm1686_vm3, %v1665_v9, %v1666_v50  ;;  %v1571_v25 = vsel %vm1557_vm1, %v1540_v22, %v1541_v16  ;;  %v1545_v17 = vrot.slane %v4356_v8, 7 }
 0x1a9   : > { %v2195_v44 = vrot.slane %v2194_v45, 4  ;;  %v1927_v37 = vsel %vm1883_vm4, 0.0, %v1706_v31  ;;  %v2182_v13 = vmax.f32 %v2180_v40, %v2181_v21  ;;  %v1572_v55 = vsel %vm1557_vm1, %v1539_v1, %v1540_v22  ;;  %v4490_v21 = vpop.f32.mrf.mxu1 }
 0x1aa   : > { %v1569_v9 = vsel %vm1557_vm1, %v1542_v29, %v1543_v15  ;;  %v1991_v34 = vadd.f32 %v1927_v37, %v4318_v33  ;;  %v2201_v16 = vsel %vm462_vm0, %v1990_v24, -inf  ;;  %v1546_v8 = vrot.slane %v4405_v36, 7  ;;  %v4492_v29 = vpop.f32.mrf.mxu0  ;;  %v4889_v33 = vld [vmem:[#allocation17_spill] sm:$0xff] }
 0x1ab   : > { %v2196_v23 = vmax.f32 %v2194_v45, %v2195_v44  ;;  %v1667_v39 = vrot.slane %v4382_v51, 1  ;;  %v2190_v40 = vrot.slane %v2189_v0, 1  ;;  %v1804_v28 = vsel %vm1752_vm2, 0.0, %v1571_v25 }
 0x1ac   : > { %v1668_v1 = vrot.slane %v4310_v32, 1  ;;  %v2202_v22 = vsel %vm462_vm0, %v1991_v34, -inf  ;;  %v4495_v42 = vadd.f32 %v4889_v33, %v1570_v5  ;;  %v1806_v51 = vsel %vm1752_vm2, 0.0, %v1569_v9  ;;  %v4892_v9 = vld [vmem:[#allocation20_spill] sm:$0xff] }
 0x1ad   : > { %v2197_v20 = vrot.slane %v2196_v23, 2  ;;  %v2203_v36 = vmax.f32 %v2201_v16, %v2202_v22  ;;  %v2318_v56 = vpack.c.bf16 %v2182_v13, %v2182_v13  ;;  %v4500_v24 = vadd.f32 %v1572_v55, %v4890_v53  ;;  %v4516_v55 = vpop.f32.mrf.mxu1  ;;  %v4518_v16 = vpop.f32.mrf.mxu0 }
 0x1ae   : > { %v1669_v32 = vrot.slane %v4358_v12, 1  ;;  %v1704_v45 = vsel %vm1686_vm3, %v1667_v39, %v1668_v1  ;;  %v4506_v31 = vadd.f32 %v4891_v7, %v1804_v28  ;;  %v1566_v44 = vsel %vm1557_vm1, %v1545_v17, %v1546_v8 }
 0x1af   : > { %v2198_v25 = vmax.f32 %v2196_v23, %v2197_v20  ;;  %v2204_v5 = vrot.slane %v2203_v36, 4  ;;  %v2191_v37 = vmax.f32 %v2189_v0, %v2190_v40  ;;  %v4511_v34 = vadd.f32 %v1806_v51, %v4892_v9 }
 0x1b0   : > { %v1544_v13 = vrot.slane %v4425_v10, 7  ;;  %v1705_v12 = vsel %vm1686_vm3, %v1666_v50, %v1667_v39  ;;  %v1929_v23 = vsel %vm1883_vm4, 0.0, %v1704_v45  ;;  %v2397_v0 = vunpack.c.l.b16 %v2318_v56  ;;  %v4893_v50 = vld [vmem:[#allocation21_spill] sm:$0xff]  ;;  %v4536_v56 = vpop.f32.mrf.mxu1 }
 0x1b1   : > { %v2199_v28 = vrot.slane %v2198_v25, 1  ;;  %v2205_v22 = vmax.f32 %v2203_v36, %v2204_v5  ;;  %v1992_v33 = vadd.f32 %v4385_v30, %v1705_v12  ;;  %v1703_v40 = vsel %vm1686_vm3, %v1668_v1, %v1669_v32 }
 0x1b2   : > { %v1993_v10 = vadd.f32 %v1929_v23, %v4422_v11  ;;  %v1547_v20 = vrot.slane %v4465_v59, 7  ;;  %v4528_v39 = vadd.f32 %v4893_v50, %v1566_v44  ;;  %v1549_v36 = vrot.slane %v4443_v3, 7  ;;  %v4538_v11 = vpop.f32.mrf.mxu0 }
 0x1b3   : > { %v2210_v51 = vsel %vm462_vm0, %v1992_v33, -inf  ;;  %v1670_v53 = vrot.slane %v4427_v62, 1  ;;  %v2200_v45 = vmax.f32 %v2198_v25, %v2199_v28  ;;  %v2206_v7 = vrot.slane %v2205_v22, 2 }
 0x1b4   : > { %v1567_v30 = vsel %vm1557_vm1, %v1544_v13, %v1545_v17  ;;  %v2211_v1 = vsel %vm462_vm0, %v1993_v10, -inf  ;;  %v2319_v5 = vpack.c.bf16 %v2191_v37, %v2191_v37  ;;  %v1994_v44 = vadd.f32 %v4455_v43, %v1703_v40 }
 0x1b5   : > { %v2212_v9 = vmax.f32 %v2210_v51, %v2211_v1  ;;  %v1565_v62 = vsel %vm1557_vm1, %v1546_v8, %v1547_v20  ;;  %v4547_v25 = vsel %vm2413_vm6, %v2397_v0, %v4452_v49  ;;  %v1568_v17 = vsel %vm1557_vm1, %v1543_v15, %v1544_v13  ;;  %v4564_v13 = vpop.f32.mrf.mxu1 }
 0x1b6   : > { %v1702_v37 = vsel %vm1686_vm3, %v1669_v32, %v1670_v53  ;;  %v1550_v43 = vrot.slane %v4490_v21, 7  ;;  %v1808_v12 = vsel %vm1752_vm2, 0.0, %v1567_v30  ;;  %v1673_v49 = vrot.slane %v4445_v52, 1  ;;  %v4566_v32 = vpop.f32.mrf.mxu0  ;;  %v4894_v52 = vld [vmem:[#allocation22_spill] sm:$0xff]  ;;  %v4896_v30 = vld [vmem:[#allocation24_spill] sm:$0xff] }
 0x1b7   : > { %v2213_v28 = vrot.slane %v2212_v9, 4  ;;  %v1931_v8 = vsel %vm1883_vm4, 0.0, %v1702_v37  ;;  %v2320_v23 = vpack.c.bf16 %v2200_v45, %v2200_v45  ;;  %v2207_v33 = vmax.f32 %v2205_v22, %v2206_v7  ;;  %v4895_v45 = vld [vmem:[#allocation19_spill] sm:$0xff] }
 0x1b8   : > { %v1810_v18 = vsel %vm1752_vm2, 0.0, %v1565_v62  ;;  %v1995_v15 = vadd.f32 %v1931_v8, %v4397_v19  ;;  %v4568_v21 = vunpack.c.l.b16 %v2319_v5  ;;  %v2219_v0 = vsel %vm462_vm0, %v1994_v44, -inf  ;;  %v4593_v37 = vpop.f32.mrf.mxu0 }
 0x1b9   : > { %v1672_v40 = vrot.slane %v4407_v61, 1  ;;  %v1671_v10 = vrot.slane %v4467_v6, 1  ;;  %v4574_v50 = vadd.f32 %v1568_v17, %v4894_v52  ;;  %v2214_v22 = vmax.f32 %v2212_v9, %v2213_v28  ;;  %v3059_v17 = vpop.f32.mrf.mxu1  ;;  %v4897_v28 = vld [vmem:[#allocation25_spill] sm:$0xff] }
 0x1ba   : > { %v2220_v51 = vsel %vm462_vm0, %v1995_v15, -inf  ;;  %v1562_v19 = vsel %vm1557_vm1, %v1549_v36, %v1550_v43  ;;  %v1872_v7 = vadd.f32 %v4895_v45, %v1808_v12  ;;  %v4583_v1 = vadd.f32 %v1810_v18, %v4896_v30 }
 0x1bb   : > { %v2221_v5 = vmax.f32 %v2219_v0, %v2220_v51  ;;  %v1699_v61 = vsel %vm1686_vm3, %v1672_v40, %v1673_v49  ;;  %v4587_v6 = vunpack.c.l.b16 %v2320_v23  ;;  %v2208_v44 = vrot.slane %v2207_v33, 1 }
 0x1bc   : > { %v1700_v9 = vsel %vm1686_vm3, %v1671_v10, %v1672_v40  ;;  %v1701_v62 = vsel %vm1686_vm3, %v1670_v53, %v1671_v10  ;;  %v4596_v8 = vadd.f32 %v4897_v28, %v1562_v19  ;;  %v1548_v18 = vrot.slane %v4516_v55, 7  ;;  %v4611_v28 = vpop.f32.mrf.mxu0 }
 0x1bd   : > { %v2222_v12 = vrot.slane %v2221_v5, 4  ;;  %v1933_v23 = vsel %vm1883_vm4, 0.0, %v1700_v9  ;;  %v2215_v15 = vrot.slane %v2214_v22, 2  ;;  %v1998_v0 = vadd.f32 %v4506_v31, %v1699_v61 }
 0x1be   : > { %v1996_v40 = vadd.f32 %v4459_v60, %v1701_v62  ;;  %v1997_v52 = vadd.f32 %v1933_v23, %v4500_v24  ;;  %v1551_v10 = vrot.slane %v4564_v13, 7  ;;  %v1674_v51 = vrot.slane %v4518_v16, 1  ;;  %v4639_v23 = vpop.f32.mrf.mxu0 }
 0x1bf   : > { %v2223_v53 = vmax.f32 %v2221_v5, %v2222_v12  ;;  %v1554_v45 = vrot.slane %v3059_v17, 7  ;;  %v4606_v19 = vmax.f32 %v2207_v33, %v2208_v44  ;;  %v1553_v9 = vrot.slane %v4536_v56, 7  ;;  %v4898_v44 = vld [vmem:[#allocation31_spill] sm:$0xff] }
 0x1c0   : > { %v2228_v55 = vsel %vm462_vm0, %v1996_v40, -inf  ;;  %v2229_v30 = vsel %vm462_vm0, %v1997_v52, -inf  ;;  %v1563_v60 = vsel %vm1557_vm1, %v1548_v18, %v1549_v36  ;;  %v1677_v16 = vrot.slane %v4538_v11, 1  ;;  %v4900_v40 = vld [vmem:[#allocation3_spill] sm:$0xff] }
 0x1c1   : > { %v2224_v31 = vrot.slane %v2223_v53, 2  ;;  %v2230_v24 = vmax.f32 %v2228_v55, %v2229_v30  ;;  %v2216_v5 = vmax.f32 %v2214_v22, %v2215_v15  ;;  %v1676_v33 = vrot.slane %v4492_v29, 1 }
 0x1c2   : > { %v1698_v61 = vsel %vm1686_vm3, %v1673_v49, %v1674_v51  ;;  %v4899_v62 = vrot.slane %v4898_v44, 7  ;;  %v1561_v3 = vsel %vm1557_vm1, %v1550_v43, %v1551_v10  ;;  %v2237_v29 = vsel %vm462_vm0, %v1998_v0, -inf  ;;  %v1463_v43 = vpop.f32.mrf.mxu0 }
 0x1c3   : > { %v2225_v17 = vmax.f32 %v2223_v53, %v2224_v31  ;;  %v2231_v12 = vrot.slane %v2230_v24, 4  ;;  %v1935_v36 = vsel %vm1883_vm4, 0.0, %v1698_v61  ;;  %v1564_v11 = vsel %vm1557_vm1, %v1547_v20, %v1548_v18  ;;  %v1157_v18 = vpop.f32.mrf.mxu1  ;;  %v4901_v61 = vld [vmem:[#allocation37_spill] sm:$0xff] }
 0x1c4   : > { %v1621_v56 = vsel %vm1557_vm1, %v1554_v45, %v4899_v62  ;;  %v1999_v49 = vadd.f32 %v1935_v36, %v4495_v42  ;;  %v1812_v15 = vsel %vm1752_vm2, 0.0, %v1563_v60  ;;  %v1695_v59 = vsel %vm1686_vm3, %v1676_v33, %v1677_v16  ;;  %v4902_v60 = vld [vmem:[#allocation26_spill] sm:$0xff] }
 0x1c5   : > { %v1754_v22 = vsel %vm1752_vm2, 0.0, %v1621_v56  ;;  %v2217_v52 = vrot.slane %v2216_v5, 1  ;;  %v1814_v42 = vsel %vm1752_vm2, 0.0, %v1561_v3  ;;  %v1675_v53 = vrot.slane %v4566_v32, 1  ;;  %v4903_v56 = vld [vmem:[#allocation23_spill] sm:$0xff] }
 0x1c6   : > { %v1818_v0 = vadd.f32 %v1754_v22, %v4900_v40  ;;  %v2238_v20 = vsel %vm462_vm0, %v1999_v49, -inf  ;;  %v2226_v55 = vrot.slane %v2225_v17, 1  ;;  %v2232_v30 = vmax.f32 %v2230_v24, %v2231_v12  ;;  %v4904_v12 = vld [vmem:[#allocation28_spill] sm:$0xff] }
 0x1c7   : > { %v2239_v31 = vmax.f32 %v2237_v29, %v2238_v20  ;;  %v1875_v62 = vadd.f32 %v1564_v11, %v4902_v60  ;;  %v1876_v36 = vadd.f32 %v4903_v56, %v1812_v15  ;;  %v1558_v22 = vsel %vm1557_vm1, %v1553_v9, %v1554_v45  ;;  %v4905_v11 = vld [vmem:[#allocation38_spill] sm:$0xff]  ;;  %v4906_v20 = vld [vmem:[#allocation29_spill] sm:$0xff] }
 0x1c8   : > { %v1948_v44 = vadd.f32 %v1818_v0, %v4901_v61  ;;  %v2002_v40 = vadd.f32 %v1872_v7, %v1695_v59  ;;  %v1552_v27 = vrot.slane %v1157_v18, 7  ;;  %v1696_v32 = vsel %vm1686_vm3, %v1675_v53, %v1676_v33 }
 0x1c9   : > { %v2240_v3 = vrot.slane %v2239_v31, 4  ;;  %v4660_v24 = vmax.f32 %v2216_v5, %v2217_v52  ;;  %v4663_v29 = vadd.f32 %v1814_v42, %v4904_v12  ;;  %v1697_v15 = vsel %vm1686_vm3, %v1674_v51, %v1675_v53  ;;  %v4677_v42 = vpop.f32.mrf.mxu0 }
 0x1ca   : > { %v2012_v49 = vsel %vm462_vm0, %v1948_v44, -inf  ;;  %v4668_v45 = vmax.f32 %v2225_v17, %v2226_v55  ;;  %v2233_v7 = vrot.slane %v2232_v30, 2  ;;  %v4671_v61 = vadd.f32 %v4906_v20, %v1558_v22 }
 0x1cb   : > { %v2014_v0 = vmax.f32 %v2012_v49, %v4905_v11  ;;  %v2241_v59 = vmax.f32 %v2239_v31, %v2240_v3  ;;  %v2255_v33 = vsel %vm462_vm0, %v2002_v40, -inf  ;;  %v1937_v5 = vsel %vm1883_vm4, 0.0, %v1696_v32  ;;  %v1476_v49 = vpop.f32.mrf.mxu0 }
 0x1cc   : > { %v2000_v52 = vadd.f32 %v4511_v34, %v1697_v15  ;;  %v1559_v51 = vsel %vm1557_vm1, %v1552_v27, %v1553_v9  ;;  %v2001_v17 = vadd.f32 %v1937_v5, %v4574_v50  ;;  %v1678_v53 = vrot.slane %v4611_v28, 1 }
 0x1cd   : > { %v2015_v18 = vrot.slane %v2014_v0, 4  ;;  %v2242_v44 = vrot.slane %v2241_v59, 2  ;;  %v1560_v31 = vsel %vm1557_vm1, %v1551_v10, %v1552_v27  ;;  %v1679_v56 = vrot.slane %v1463_v43, 1  ;;  %v4907_v43 = vld [vmem:[#allocation30_spill] sm:$0xff] }
 0x1ce   : > { %v2246_v60 = vsel %vm462_vm0, %v2000_v52, -inf  ;;  %v2234_v34 = vmax.f32 %v2232_v30, %v2233_v7  ;;  %v2247_v22 = vsel %vm462_vm0, %v2001_v17, -inf  ;;  %v1694_v40 = vsel %vm1686_vm3, %v1677_v16, %v1678_v53  ;;  %v3131_v52 = vpop.f32.mrf.mxu0 }
 0x1cf   : > { %v2016_v55 = vmax.f32 %v2014_v0, %v2015_v18  ;;  %v1681_v9 = vrot.slane %v4639_v23, 1  ;;  %v2248_v3 = vmax.f32 %v2246_v60, %v2247_v22  ;;  %v1680_v28 = vrot.slane %v4593_v37, 1 }
 0x1d0   : > { %v1939_v13 = vsel %vm1883_vm4, 0.0, %v1694_v40  ;;  %v2243_v27 = vmax.f32 %v2241_v59, %v2242_v44  ;;  %v1816_v10 = vsel %vm1752_vm2, 0.0, %v1559_v51  ;;  %v4698_v30 = vadd.f32 %v1560_v31, %v4907_v43  ;;  %v4908_v59 = vld [vmem:[#allocation27_spill] sm:$0xff]  ;;  %v4909_v43 = vld [vmem:[#allocation36_spill] sm:$0xff] }
 0x1d1   : > { %v2017_v50 = vrot.slane %v2016_v55, 2  ;;  %v2003_v32 = vadd.f32 %v1939_v13, %v4528_v39  ;;  %v2249_v12 = vrot.slane %v2248_v3, 4  ;;  %v1692_v23 = vsel %vm1686_vm3, %v1679_v56, %v1680_v28 }
 0x1d2   : > { %v1693_v37 = vsel %vm1686_vm3, %v1678_v53, %v1679_v56  ;;  %v2235_v11 = vrot.slane %v2234_v34, 1  ;;  %v1691_v15 = vsel %vm1686_vm3, %v1680_v28, %v1681_v9  ;;  %v1941_v7 = vsel %vm1883_vm4, 0.0, %v1692_v23 }
 0x1d3   : > { %v2018_v16 = vmax.f32 %v2016_v55, %v2017_v50  ;;  %v2256_v0 = vsel %vm462_vm0, %v2003_v32, -inf  ;;  %v1880_v20 = vadd.f32 %v4908_v59, %v1816_v10  ;;  %v2250_v39 = vmax.f32 %v2248_v3, %v2249_v12 }
 0x1d4   : > { %v2257_v18 = vmax.f32 %v2255_v33, %v2256_v0  ;;  %v2004_v5 = vadd.f32 %v4583_v1, %v1693_v37  ;;  %v2244_v44 = vrot.slane %v2243_v27, 1  ;;  %v2005_v17 = vadd.f32 %v1941_v7, %v1875_v62  ;;  %v1479_v62 = vpop.f32.mrf.mxu0 }
 0x1d5   : > { %v2019_v51 = vrot.slane %v2018_v16, 1  ;;  %v1682_v53 = vrot.slane %v1476_v49, 1  ;;  %v2251_v55 = vrot.slane %v2250_v39, 2  ;;  %v2006_v60 = vadd.f32 %v1876_v36, %v1691_v15 }
 0x1d6   : > { %v2258_v31 = vrot.slane %v2257_v18, 4  ;;  %v2264_v56 = vsel %vm462_vm0, %v2004_v5, -inf  ;;  %v2265_v22 = vsel %vm462_vm0, %v2005_v17, -inf  ;;  %v1684_v40 = vrot.slane %v4677_v42, 1 }
 0x1d7   : > { %v1690_v50 = vsel %vm1686_vm3, %v1681_v9, %v1682_v53  ;;  %v1685_v33 = vrot.slane %v3131_v52, 1  ;;  %v4717_v3 = vmax.f32 %v2234_v34, %v2235_v11  ;;  %v2252_v1 = vmax.f32 %v2250_v39, %v2251_v55 }
 0x1d8   : > { %v2259_v28 = vmax.f32 %v2257_v18, %v2258_v31  ;;  %v2266_v13 = vmax.f32 %v2264_v56, %v2265_v22  ;;  %v2020_v49 = vmax.f32 %v2018_v16, %v2019_v51  ;;  %v1943_v36 = vsel %vm1883_vm4, 0.0, %v1690_v50 }
 0x1d9   : > { %v1687_v10 = vsel %vm1686_vm3, %v1684_v40, %v1685_v33  ;;  %v4910_v32 = vrot.slane %v4909_v43, 1  ;;  %v2245_v9 = vmax.f32 %v2243_v27, %v2244_v44  ;;  %v2273_v34 = vsel %vm462_vm0, %v2006_v60, -inf }
 0x1da   : > { %v2260_v12 = vrot.slane %v2259_v28, 2  ;;  %v2267_v23 = vrot.slane %v2266_v13, 4  ;;  %v2007_v37 = vadd.f32 %v1943_v36, %v4596_v8  ;;  %v2010_v11 = vadd.f32 %v1880_v20, %v1687_v10 }
 0x1db   : > { %v1750_v42 = vsel %vm1686_vm3, %v1685_v33, %v4910_v32  ;;  %v1683_v0 = vrot.slane %v1479_v62, 1  ;;  %v2253_v15 = vrot.slane %v2252_v1, 1  ;;  %v2300_v18 = vpack.c.bf16 %v2020_v49, %v2020_v49 }
 0x1dc   : > { %v1947_v16 = vsel %vm1883_vm4, 0.0, %v1750_v42  ;;  %v2261_v7 = vmax.f32 %v2259_v28, %v2260_v12  ;;  %v2268_v59 = vmax.f32 %v2266_v13, %v2267_v23  ;;  %v2274_v5 = vsel %vm462_vm0, %v2007_v37, -inf }
 0x1dd   : > { %v2011_v39 = vadd.f32 %v1947_v16, %v4671_v61  ;;  %v1688_v27 = vsel %vm1686_vm3, %v1683_v0, %v1684_v40  ;;  %v1689_v52 = vsel %vm1686_vm3, %v1682_v53, %v1683_v0  ;;  %v2275_v51 = vmax.f32 %v2273_v34, %v2274_v5 }
 0x1de   : > { %v2262_v8 = vrot.slane %v2261_v7, 1  ;;  %v2269_v44 = vrot.slane %v2268_v59, 2  ;;  %v2291_v20 = vsel %vm462_vm0, %v2010_v11, -inf  ;;  %v1945_v55 = vsel %vm1883_vm4, 0.0, %v1688_v27 }
 0x1df   : > { %v2292_v17 = vsel %vm462_vm0, %v2011_v39, -inf  ;;  %v2008_v61 = vadd.f32 %v4663_v29, %v1689_v52  ;;  %v2082_v31 = vrot.slane %v4112_v2, 1  ;;  %v2325_v60 = vpack.c.bf16 %v2245_v9, %v2245_v9 }
 0x1e0   : > { %v2254_v56 = vmax.f32 %v2252_v1, %v2253_v15  ;;  %v2270_v22 = vmax.f32 %v2268_v59, %v2269_v44  ;;  %v2276_v41 = vrot.slane %v2275_v51, 4  ;;  %v2293_v53 = vmax.f32 %v2291_v20, %v2292_v17 }
 0x1e1   : > { %v2009_v40 = vadd.f32 %v1945_v55, %v4698_v30  ;;  %v2282_v50 = vsel %vm462_vm0, %v2008_v61, -inf  ;;  %v2083_v33 = vmax.f32 %v4112_v2, %v2082_v31  ;;  %v2379_v28 = vunpack.c.l.b16 %v2300_v18  ;;  %v4911_v18 = vld [vmem:[#allocation39_spill] sm:$0xff] }
 0x1e2   : > { %v2263_v13 = vmax.f32 %v2261_v7, %v2262_v8  ;;  %v2271_v38 = vrot.slane %v2270_v22, 1  ;;  %v2277_v62 = vmax.f32 %v2275_v51, %v2276_v41  ;;  %v2294_v49 = vrot.slane %v2293_v53, 4  ;;  %v4913_v8 = vld [vmem:[#allocation40_spill] sm:$0xff]  ;;  %v4914_v51 = vld [vmem:[#allocation41_spill] sm:$0xff] }
 0x1e3   : > { %v2283_v29 = vsel %vm462_vm0, %v2009_v40, -inf  ;;  %v2154_v36 = vrot.slane %v4362_v46, 1  ;;  %v2307_v10 = vpack.c.bf16 %v2083_v33, %v2083_v33  ;;  %v2324_v1 = vpack.c.bf16 %v4717_v3, %v4717_v3 }
 0x1e4   : > { %v2272_v43 = vmax.f32 %v2270_v22, %v2271_v38  ;;  %v2278_v32 = vrot.slane %v2277_v62, 2  ;;  %v2284_v30 = vmax.f32 %v2282_v50, %v2283_v29  ;;  %v2404_v42 = vunpack.c.l.b16 %v2325_v60 }
 0x1e5   : > { %v2326_v9 = vpack.c.bf16 %v2254_v56, %v2254_v56  ;;  %v2295_v12 = vmax.f32 %v2293_v53, %v2294_v49  ;;  %v2155_v2 = vmax.f32 %v4362_v46, %v2154_v36  ;;  %v2327_v34 = vpack.c.bf16 %v2263_v13, %v2263_v13 }
 0x1e6   : > { %v2279_v23 = vmax.f32 %v2277_v62, %v2278_v32  ;;  %v2285_v37 = vrot.slane %v2284_v30, 4  ;;  %v2385_v16 = vunpack.c.l.b16 %v2306_v54  ;;  %v2386_v15 = vunpack.c.l.b16 %v2307_v10 }
 0x1e7   : > { %v2296_v11 = vrot.slane %v2295_v12, 2  ;;  %v2315_v0 = vpack.c.bf16 %v2155_v2, %v2155_v2  ;;  %v2412_v3 = vsel %vm2411_vm5, %v3997_v47, %v2379_v28  ;;  %v2328_v7 = vpack.c.bf16 %v2272_v43, %v2272_v43 }
 0x1e8   : > { %v2280_v59 = vrot.slane %v2279_v23, 1  ;;  %v2286_v39 = vmax.f32 %v2284_v30, %v2285_v37  ;;  %v2414_v5 = vsel %vm2413_vm6, %v4911_v18, %v2412_v3  ;;  %v4912_v27 = vpack.c.bf16 %v4340_v14, %v4340_v14 }
 0x1e9   : > { %v2297_v46 = vmax.f32 %v2295_v12, %v2296_v11  ;;  %v2416_v26 = vsel %vm2415_vm7, %v4913_v8, %v2414_v5  ;;  %v2394_v17 = vunpack.c.l.b16 %v2315_v0  ;;  %v2426_v31 = vsel %vm2413_vm6, %v4257_v4, %v4175_v35  ;;  %v2773_v0 = vld [vmem:[%s4817_s2] ss:$0 sm:$0xff] }
 0x1ea   : > { %v2393_v52 = vunpack.c.l.b16 %v4912_v27  ;;  %v2281_v54 = vmax.f32 %v2279_v23, %v2280_v59  ;;  %v2287_v44 = vrot.slane %v2286_v39, 2  ;;  %v2418_v47 = vsel %vm2417_vm8, %v4914_v51, %v2416_v26 }
 0x1eb   : > { %v2298_v20 = vrot.slane %v2297_v46, 1  ;;  %v2420_v55 = vsel %vm2419_vm9, %v4100_v57, %v2418_v47  ;;  %v2427_v41 = vsel %vm2415_vm7, %v4291_v48, %v2426_v31  ;;  %v2322_v53 = vpack.c.bf16 %v4660_v24, %v4660_v24 }
 0x1ec   : > { %v2288_v61 = vmax.f32 %v2286_v39, %v2287_v44  ;;  %v2422_v14 = vsel %vm2421_vm10, %v2385_v16, %v2420_v55  ;;  %v2329_v60 = vpack.c.bf16 %v2281_v54, %v2281_v54  ;;  %v2405_v57 = vunpack.c.l.b16 %v2326_v9 }
 0x1ed   : > { %v2299_v56 = vmax.f32 %v2297_v46, %v2298_v20  ;;  %v2424_v22 = vsel %vm2423_vm11, %v2386_v15, %v2422_v14  ;;  %v2428_v50 = vsel %vm2417_vm8, %v4322_v63, %v2427_v41  ;;  %v2323_v33 = vpack.c.bf16 %v4668_v45, %v4668_v45 }
 0x1ee   : > { %v2289_v40 = vrot.slane %v2288_v61, 1  ;;  %v2403_v28 = vunpack.c.l.b16 %v2324_v1  ;;  %v2406_v35 = vunpack.c.l.b16 %v2327_v34  ;;  %v2429_v4 = vsel %vm2419_vm9, %v4360_v58, %v2428_v50 }
 0x1ef   : > { %v4915_v13 = vpack.c.bf16 %v4606_v19, %v4606_v19  ;;  %v2407_v38 = vunpack.c.l.b16 %v2328_v7  ;;  %v2430_v24 = vsel %vm2421_vm10, %v2393_v52, %v2429_v4  ;;  %v2408_v29 = vunpack.c.l.b16 %v2329_v60 }
 0x1f0   : > { %v2290_v62 = vmax.f32 %v2288_v61, %v2289_v40  ;;  %v2439_v49 = vsel %vm2411_vm5, %v2404_v42, %v2403_v28  ;;  %v2331_v63 = vpack.c.bf16 %v2299_v56, %v2299_v56  ;;  %v2431_v36 = vsel %vm2423_vm11, %v2394_v17, %v2430_v24 }
 0x1f1   : > { %v2400_v48 = vunpack.c.l.b16 %v4915_v13  ;;  %v2401_v45 = vunpack.c.l.b16 %v2322_v53  ;;  %v2440_v10 = vsel %vm2413_vm6, %v2405_v57, %v2439_v49  ;;  %v2446_v43 = vpack.c.b16 %v2431_v36, %v2424_v22 }
 0x1f2   : > { %v2330_v1 = vpack.c.bf16 %v2290_v62, %v2290_v62  ;;  %v2434_v58 = vsel %vm2415_vm7, %v4568_v21, %v4547_v25  ;;  %v2402_v19 = vunpack.c.l.b16 %v2323_v33  ;;  %v2441_v32 = vsel %vm2415_vm7, %v2406_v35, %v2440_v10 }
 0x1f3   : > { %v2435_v42 = vsel %vm2417_vm8, %v4587_v6, %v2434_v58  ;;  %v2442_v9 = vsel %vm2417_vm8, %v2407_v38, %v2441_v32  ;;  %3140 = vmatprep.mubr.msk.bf16.mxu1 %vm462_vm0, %v2446_v43  ;;  %v2410_v12 = vunpack.c.l.b16 %v2331_v63 }
 0x1f4   : > { %v2409_v30 = vunpack.c.l.b16 %v2330_v1  ;;  %v2436_v2 = vsel %vm2419_vm9, %v2400_v48, %v2435_v42  ;;  %v2443_v34 = vsel %vm2419_vm9, %v2408_v29, %v2442_v9 }
 0x1f5   : > { %v2437_v23 = vsel %vm2421_vm10, %v2401_v45, %v2436_v2 }
 0x1f6   : > { %v2444_v25 = vsel %vm2421_vm10, %v2409_v30, %v2443_v34  ;;  %v2438_v21 = vsel %vm2423_vm11, %v2402_v19, %v2437_v23 }
 0x1f7   : > { %v2445_v37 = vsel %vm2423_vm11, %v2410_v12, %v2444_v25 }
 0x1f8   : > { %v2447_v16 = vpack.c.b16 %v2445_v37, %v2438_v21 }
 0x1fa   : > { %3141 = vmatmul.mubr.msk.bf16.vlgmr.msra.gmra.mxu1 %vm462_vm0, %v2447_v16 }
 0x2ba   : > { %v3142_v6 = vpop.f32.mrf.mxu1 }
 0x2bb   : > { %v2521_v59 = vadd.f32 %v3142_v6, %v2773_v0 }
 0x2bc   : > { %v2512_v11 = vpop.f32.mrf.mxu1 }
 0x2bd   : > { %v2513_v3 = vadd.f32 %v2773_v0, %v2512_v11  ;;  %v2529_v52 = vmax.f32 %v2521_v59, 0.0 }
 0x2be   : > { %v3143_v15 = vpop.f32.mrf.mxu1 }
 0x2bf   : > { %v2524_v7 = vadd.f32 %v3143_v15, %v2773_v0  ;;  %v2527_v46 = vmax.f32 %v2513_v3, 0.0 }
 0x2c0   : > { %v2515_v39 = vpop.f32.mrf.mxu1 }
 0x2c1   : > { %v2516_v18 = vadd.f32 %v2773_v0, %v2515_v39  ;;  %v2530_v5 = vmax.f32 %v2524_v7, 0.0 }
 0x2c3   : > { %v2528_v27 = vmax.f32 %v2516_v18, 0.0  ;;  %v2799_v26 = vpack.c.bf16 %v2530_v5, %v2529_v52 }
 0x2c5   : > { %v2794_v8 = vpack.c.bf16 %v2528_v27, %v2527_v46  ;;  %2801 = vst [vmem:[%s202_s9 + $0x8] sm:$0xff] %v2799_v26  }
 0x2c7   : > { %2795 = vst [vmem:[%s202_s9] sm:$0xff] %v2794_v8  }
 0x2c8 PF: > { %s14_s15 = sadd.s32 1, %s3214_s15  }
 0x2c9   : > { %p11_p5 = scmp.ge.s32.totalorder %s14_s15, 4  }
 0x2cb   :  { %13 = sbr.rel (!%p11_p5) target bundleno = 1 (0x1), region = 68 }

// kernel: text_model_forward.7
= control target key start
LH: loop header
LB: loop body
LE: loop exit
PB: predicated region body
PF: predicated region fallthrough
CT: control target
= control target key end

     0   :  { %vm277_vm0 = vcmask 1043456   ;;  %v1754_v3 = vmov 1966171168   ;;  %v56_v5 = vlaneseq  ;;  %vm578_vm1 = vcmask 1041409   ;;  %s2437_s1 = inlined_call_operand.vmem [shape: bf16[8,384], index: 1, kind: input, shape index: {}]   ;;  %s2438_s0 = inlined_call_operand.vmem [shape: bf16[8,4,384], index: 0, kind: input, shape index: {}]   ;;  %s2439_s2 = inlined_call_operand.vmem [shape: bf16[384,128], index: 2, kind: input, shape index: {}]   ;;  %s2440_s3 = inlined_call_operand.vmem [shape: f32[1,128], index: 3, kind: input, shape index: {}]   ;;  %s2441_s4 = inlined_call_operand.vmem [shape: f32[8,128], index: 4, kind: output, shape index: {}]  }
   0x1   :  { %v42_v0 = vld [vmem:[%s2437_s1] sm:$0xff]  ;;  %v43_v1 = vld [vmem:[%s2437_s1 + $0x8] sm:$0xf]  ;;  %v1793_v4 = vunpack.c.l.s4 %v1754_v3  ;;  %v20_v10 = vld [vmem:[%s2438_s0 + $0xc] sm:$0x3f]  ;;  %vm580_vm2 = vcmask 1042434  }
   0x2   :  { %v18_v2 = vld [vmem:[%s2438_s0] sm:$0x3f]  ;;  %v1795_v6 = vunpack.c.l.bf16 %v42_v0  ;;  %v1797_v7 = vunpack.c.h.bf16 %v42_v0  ;;  %v1799_v8 = vunpack.c.l.bf16 %v43_v1  ;;  %v19_v11 = vld [vmem:[%s2438_s0 + $0x6] sm:$0x3f]  ;;  %v1811_v13 = vunpack.c.l.bf16 %v20_v10  ;;  %v22_v28 = vld [vmem:[%s2438_s0 + $0x18] sm:$0x3f] }
   0x3   :  { %v1801_v9 = vunpack.c.l.bf16 %v18_v2  ;;  %v1809_v12 = vunpack.c.h.bf16 %v18_v2  ;;  %v1813_v14 = vunpack.c.h.bf16 %v20_v10  ;;  %v1815_v15 = vunpack.c.l.bf16 %v19_v11  ;;  %v21_v37 = vld [vmem:[%s2438_s0 + $0x12] sm:$0x3f]  ;;  %v24_v42 = vld [vmem:[%s2438_s0 + $0x24] sm:$0x3f]  ;;  %v23_v55 = vld [vmem:[%s2438_s0 + $0x1e] sm:$0x3f] }
   0x4   :  { %v446_v16 = vmul.f32 %v1795_v6, %v1795_v6  ;;  %v447_v17 = vmul.f32 %v1797_v7, %v1797_v7  ;;  %v448_v18 = vmul.f32 %v1799_v8, %v1799_v8  ;;  %v338_v21 = vmul.f32 %v1811_v13, %v1811_v13 }
   0x5   :  { %v334_v19 = vmul.f32 %v1801_v9, %v1801_v9  ;;  %v335_v20 = vmul.f32 %v1809_v12, %v1809_v12  ;;  %v339_v22 = vmul.f32 %v1813_v14, %v1813_v14  ;;  %v1831_v23 = vunpack.c.h.bf16 %v19_v11 }
   0x6   :  { %v449_v24 = vadd.f32 %v447_v17, %v446_v16  ;;  %v336_v27 = vmul.f32 %v1815_v15, %v1815_v15  ;;  %v360_v30 = vcombine.high %v338_v21, %v338_v21  ;;  %v388_v31 = vsel %vm277_vm0, %v338_v21, 0.0 }
   0x7   :  { %v358_v25 = vcombine.high %v334_v19, %v334_v19  ;;  %v374_v26 = vsel %vm277_vm0, %v334_v19, 0.0  ;;  %v377_v29 = vsel %vm277_vm0, %v335_v20, 0.0  ;;  %v391_v32 = vsel %vm277_vm0, %v339_v22, 0.0 }
   0x8   :  { %v450_v33 = vadd.f32 %v449_v24, %v448_v18  ;;  %v337_v35 = vmul.f32 %v1831_v23, %v1831_v23  ;;  %v359_v36 = vcombine.high %v336_v27, %v336_v27  ;;  %v389_v39 = vsel %vm277_vm0, %v360_v30, 0.0 }
   0x9   :  { %v375_v34 = vsel %vm277_vm0, %v358_v25, 0.0  ;;  %v381_v40 = vsel %vm277_vm0, %v336_v27, 0.0  ;;  %v1850_v41 = vunpack.c.l.bf16 %v22_v28  ;;  %v390_v43 = vadd.f32 %v389_v39, %v388_v31 }
   0xa   :  { %v376_v38 = vadd.f32 %v375_v34, %v374_v26  ;;  %451 = vadd.xlane.f32.xlu1 %v450_v33  ;;  %v382_v44 = vsel %vm277_vm0, %v359_v36, 0.0  ;;  %v384_v45 = vsel %vm277_vm0, %v337_v35, 0.0  ;;  %v1857_v46 = vunpack.c.h.bf16 %v22_v28  ;;  %v25_v35 = vld [vmem:[%s2438_s0 + $0x2a] sm:$0x3f] }
   0xb   :  { %v383_v48 = vadd.f32 %v382_v44, %v381_v40  ;;  %v342_v49 = vmul.f32 %v1850_v41, %v1850_v41  ;;  %v1861_v50 = vunpack.c.l.bf16 %v21_v37  ;;  %v392_v51 = vadd.f32 %v391_v32, %v390_v43 }
   0xc   :  { %v378_v47 = vadd.f32 %v377_v29, %v376_v38  ;;  %v343_v52 = vmul.f32 %v1857_v46, %v1857_v46  ;;  %v1865_v53 = vunpack.c.h.bf16 %v21_v37  ;;  %v1867_v54 = vunpack.c.l.bf16 %v24_v42 }
   0xd   :  { %v385_v56 = vadd.f32 %v384_v45, %v383_v48  ;;  %v362_v57 = vcombine.high %v342_v49, %v342_v49  ;;  %v402_v58 = vsel %vm277_vm0, %v342_v49, 0.0  ;;  %v340_v59 = vmul.f32 %v1861_v50, %v1861_v50 }
   0xe   :  { %379 = vadd.xlane.f32.xlu0 %v378_v47  ;;  %393 = vadd.xlane.f32.xlu1 %v392_v51  ;;  %v405_v60 = vsel %vm277_vm0, %v343_v52, 0.0  ;;  %v341_v61 = vmul.f32 %v1865_v53, %v1865_v53  ;;  %v1878_v62 = vunpack.c.h.bf16 %v24_v42  ;;  %v346_v63 = vmul.f32 %v1867_v54, %v1867_v54 }
   0xf   :  { %v403_v0 = vsel %vm277_vm0, %v362_v57, 0.0  ;;  %v361_v1 = vcombine.high %v340_v59, %v340_v59  ;;  %v395_v2 = vsel %vm277_vm0, %v340_v59, 0.0  ;;  %v1884_v3 = vunpack.c.l.bf16 %v23_v55 }
  0x10   :  { %v404_v10 = vadd.f32 %v403_v0, %v402_v58  ;;  %v398_v11 = vsel %vm277_vm0, %v341_v61, 0.0  ;;  %v347_v16 = vmul.f32 %v1878_v62, %v1878_v62  ;;  %v364_v17 = vcombine.high %v346_v63, %v346_v63 }
  0x11   :  { %v396_v18 = vsel %vm277_vm0, %v361_v1, 0.0  ;;  %v416_v19 = vsel %vm277_vm0, %v346_v63, 0.0  ;;  %v1891_v20 = vunpack.c.h.bf16 %v23_v55  ;;  %v344_v21 = vmul.f32 %v1884_v3, %v1884_v3 }
  0x12   :  { %386 = vadd.xlane.f32.xlu0 %v385_v56  ;;  %v406_v22 = vadd.f32 %v405_v60, %v404_v10  ;;  %v397_v24 = vadd.f32 %v396_v18, %v395_v2  ;;  %v417_v25 = vsel %vm277_vm0, %v364_v17, 0.0  ;;  %v419_v26 = vsel %vm277_vm0, %v347_v16, 0.0 }
  0x13   :  { %v418_v27 = vadd.f32 %v417_v25, %v416_v19  ;;  %v345_v28 = vmul.f32 %v1891_v20, %v1891_v20  ;;  %v363_v29 = vcombine.high %v344_v21, %v344_v21  ;;  %v409_v30 = vsel %vm277_vm0, %v344_v21, 0.0 }
  0x14   :  { %407 = vadd.xlane.f32.xlu1 %v406_v22  ;;  %v399_v31 = vadd.f32 %v398_v11, %v397_v24  ;;  %v50_v32 = vcombine.low %v1795_v6, %v1797_v7  ;;  %v55_v33 = vunpack.c.0.s8 %v1793_v4  ;;  %v1904_v34 = vshrl.u32 %v56_v5, 7 }
  0x15   :  { %v420_v36 = vadd.f32 %v419_v26, %v418_v27  ;;  %v410_v37 = vsel %vm277_vm0, %v363_v29, 0.0  ;;  %v412_v38 = vsel %vm277_vm0, %v345_v28, 0.0  ;;  %v1915_v4 = vunpack.c.l.bf16 %v25_v35 }
  0x16   :  { %400 = vadd.xlane.f32.xlu0 %v399_v31  ;;  %v411_v39 = vadd.f32 %v410_v37, %v409_v30  ;;  %v58_v40 = vsub.s32 %v55_v33, %v1904_v34  ;;  %v1913_v42 = vsub.s32 0, %v1904_v34  ;;  %v1917_v43 = vunpack.c.h.bf16 %v25_v35 }
  0x17   :  { %v51_v48 = vcombine.high %v1795_v6, %v1797_v7  ;;  %v1923_v49 = vsub.s32 1, %v1904_v34  ;;  %v348_v51 = vmul.f32 %v1915_v4, %v1915_v4  ;;  %v52_v55 = vcombine.high %v1799_v8, %v1799_v8 }
  0x18   :  { %421 = vadd.xlane.f32.xlu1 %v420_v36  ;;  %v413_v44 = vadd.f32 %v412_v38, %v411_v39  ;;  %v59_v45 = vrot.slane %v50_v32, %v58_v40  ;;  %v73_v47 = vrot.slane %v1799_v8, %v58_v40  ;;  %v349_v52 = vmul.f32 %v1917_v43, %v1917_v43 }
  0x19   :  { %v1932_v57 = vsub.s32 2, %v1904_v34  ;;  %v66_v58 = vrot.slane %v51_v48, %v58_v40  ;;  %v365_v60 = vcombine.high %v348_v51, %v348_v51  ;;  %v423_v61 = vsel %vm277_vm0, %v348_v51, 0.0 }
  0x1a   :  { %414 = vadd.xlane.f32.xlu0 %v413_v44  ;;  %v81_v56 = vcombine.low %v59_v45, %v73_v47  ;;  %v82_v59 = vcombine.high %v59_v45, %v73_v47  ;;  %v80_v63 = vrot.slane %v52_v55, %v58_v40  ;;  %v426_v10 = vsel %vm277_vm0, %v349_v52, 0.0 }
  0x1b   :  { %v424_v2 = vsel %vm277_vm0, %v365_v60, 0.0  ;;  %vm582_vm3 = vcmask 1043459   ;;  %vm584_vm4 = vcmask 1044484   ;;  %vm586_vm5 = vcmask 1045509  }
  0x1c   :  { %v91_v0 = vrot.slane %v81_v56, %v58_v40  ;;  %v105_v1 = vrot.slane %v82_v59, %v58_v40  ;;  %v83_v11 = vcombine.low %v66_v58, %v80_v63  ;;  %v425_v19 = vadd.f32 %v424_v2, %v423_v61 }
  0x1d   :  { %v84_v38 = vcombine.high %v66_v58, %v80_v63  ;;  %vm588_vm6 = vcmask 1046534   ;;  %vm590_vm7 = vcmask 1047559   ;;  %vm593_vm8 = vcmask 31744  }
  0x1e   :  { %v120_v16 = vrot.slane %v91_v0, %v1913_v42  ;;  %v124_v17 = vrot.slane %v91_v0, %v1923_v49  ;;  %v128_v18 = vrot.slane %v91_v0, %v1932_v57  ;;  %v98_v21 = vrot.slane %v83_v11, %v58_v40 }
  0x1f   :  { %v132_v22 = vrot.slane %v105_v1, %v1913_v42  ;;  %v136_v24 = vrot.slane %v105_v1, %v1923_v49  ;;  %v140_v25 = vrot.slane %v105_v1, %v1932_v57  ;;  %v427_v28 = vadd.f32 %v426_v10, %v425_v19 }
  0x20   :  { %v221_v26 = vcombine.low %v120_v16, %v124_v17  ;;  %v238_v27 = vmul.f32 %v128_v18, %v1809_v12  ;;  %v113_v29 = vcombine.high %v91_v0, %v91_v0  ;;  %v168_v30 = vrot.slane %v98_v21, %v1913_v42 }
  0x21   :  { %v172_v31 = vrot.slane %v98_v21, %v1923_v49  ;;  %v176_v32 = vrot.slane %v98_v21, %v1932_v57  ;;  %v222_v33 = vcombine.low %v132_v22, %v136_v24  ;;  %428 = vadd.xlane.f32.xlu0 %v427_v28  ;;  %v240_v36 = vmul.f32 %v140_v25, %v1831_v23 }
  0x22   :  { %v237_v35 = vmul.f32 %v221_v26, %v1801_v9  ;;  %v144_v37 = vrot.slane %v113_v29, %v1913_v42  ;;  %v281_v39 = vsel %vm277_vm0, %v238_v27, 0.0  ;;  %v148_v47 = vrot.slane %v113_v29, %v1923_v49 }
  0x23   :  { %v225_v44 = vcombine.low %v168_v30, %v172_v31  ;;  %v239_v45 = vmul.f32 %v222_v33, %v1815_v15  ;;  %v246_v52 = vmul.f32 %v176_v32, %v1857_v46  ;;  %v152_v55 = vrot.slane %v113_v29, %v1932_v57 }
  0x24   :  { %v261_v48 = vcombine.high %v237_v35, %v237_v35  ;;  %v278_v51 = vsel %vm277_vm0, %v237_v35, 0.0  ;;  %v288_v58 = vsel %vm277_vm0, %v240_v36, 0.0  ;;  %v223_v63 = vcombine.low %v144_v37, %v148_v47 }
  0x25   :  { %v245_v56 = vmul.f32 %v225_v44, %v1850_v41  ;;  %v262_v59 = vcombine.high %v239_v45, %v239_v45  ;;  %v285_v60 = vsel %vm277_vm0, %v239_v45, 0.0  ;;  %v242_v0 = vmul.f32 %v152_v55, %v1813_v14 }
  0x26   :  { %v279_v61 = vsel %vm277_vm0, %v261_v48, 0.0  ;;  %v112_v2 = vrot.slane %v84_v38, %v58_v40  ;;  %v309_v18 = vsel %vm277_vm0, %v246_v52, 0.0  ;;  %v241_v22 = vmul.f32 %v223_v63, %v1811_v13 }
  0x27   :  { %v280_v10 = vadd.f32 %v279_v61, %v278_v51  ;;  %v265_v11 = vcombine.high %v245_v56, %v245_v56  ;;  %v306_v16 = vsel %vm277_vm0, %v245_v56, 0.0  ;;  %v286_v17 = vsel %vm277_vm0, %v262_v59, 0.0 }
  0x28   :  { %v287_v19 = vadd.f32 %v286_v17, %v285_v60  ;;  %v180_v24 = vrot.slane %v112_v2, %v1913_v42  ;;  %v184_v27 = vrot.slane %v112_v2, %v1923_v49  ;;  %v188_v40 = vrot.slane %v112_v2, %v1932_v57 }
  0x29   :  { %v282_v25 = vadd.f32 %v281_v39, %v280_v10  ;;  %v307_v26 = vsel %vm277_vm0, %v265_v11, 0.0  ;;  %v263_v30 = vcombine.high %v241_v22, %v241_v22  ;;  %v292_v31 = vsel %vm277_vm0, %v241_v22, 0.0 }
  0x2a   :  { %v308_v28 = vadd.f32 %v307_v26, %v306_v16  ;;  %v289_v29 = vadd.f32 %v288_v58, %v287_v19  ;;  %v295_v32 = vsel %vm277_vm0, %v242_v0, 0.0  ;;  %v226_v33 = vcombine.low %v180_v24, %v184_v27 }
  0x2b   :  { %283 = vadd.xlane.f32.xlu1 %v282_v25  ;;  %v114_v35 = vcombine.high %v98_v21, %v98_v21  ;;  %v115_v36 = vcombine.high %v105_v1, %v105_v1  ;;  %v293_v38 = vsel %vm277_vm0, %v263_v30, 0.0  ;;  %v248_v39 = vmul.f32 %v188_v40, %v1891_v20 }
  0x2c   :  { %v310_v37 = vadd.f32 %v309_v18, %v308_v28  ;;  %290 = vadd.xlane.f32.xlu0 %v289_v29  ;;  %v116_v44 = vcombine.high %v112_v2, %v112_v2  ;;  %v294_v45 = vadd.f32 %v293_v38, %v292_v31  ;;  %v247_v47 = vmul.f32 %v226_v33, %v1884_v3 }
  0x2d   :  { %v192_v48 = vrot.slane %v114_v35, %v1913_v42  ;;  %v196_v51 = vrot.slane %v114_v35, %v1923_v49  ;;  %v200_v52 = vrot.slane %v114_v35, %v1932_v57  ;;  %v156_v55 = vrot.slane %v115_v36, %v1913_v42 }
  0x2e   :  { %v160_v1 = vrot.slane %v115_v36, %v1923_v49  ;;  %v296_v21 = vadd.f32 %v295_v32, %v294_v45  ;;  %v266_v56 = vcombine.high %v247_v47, %v247_v47  ;;  %v313_v59 = vsel %vm277_vm0, %v247_v47, 0.0 }
  0x2f   :  { %311 = vadd.xlane.f32.xlu1 %v310_v37  ;;  %v164_v60 = vrot.slane %v115_v36, %v1932_v57  ;;  %v316_v58 = vsel %vm277_vm0, %v248_v39, 0.0  ;;  %v227_v61 = vcombine.low %v192_v48, %v196_v51  ;;  %v204_v0 = vrot.slane %v116_v44, %v1913_v42 }
  0x30   :  { %v224_v63 = vcombine.low %v156_v55, %v160_v1  ;;  %v314_v2 = vsel %vm277_vm0, %v266_v56, 0.0  ;;  %v250_v10 = vmul.f32 %v200_v52, %v1878_v62  ;;  %v208_v11 = vrot.slane %v116_v44, %v1923_v49 }
  0x31   :  { %v212_v16 = vrot.slane %v116_v44, %v1932_v57  ;;  %v315_v17 = vadd.f32 %v314_v2, %v313_v59  ;;  %v249_v18 = vmul.f32 %v227_v61, %v1867_v54  ;;  %v244_v22 = vmul.f32 %v164_v60, %v1865_v53 }
  0x32   :  { %v243_v19 = vmul.f32 %v224_v63, %v1861_v50  ;;  %v228_v24 = vcombine.low %v204_v0, %v208_v11  ;;  %v323_v32 = vsel %vm277_vm0, %v250_v10, 0.0  ;;  %v1755_v55 = vmov 0  }
  0x33   :  { %297 = vadd.xlane.f32.xlu1 %v296_v21  ;;  %v317_v25 = vadd.f32 %v316_v58, %v315_v17  ;;  %v267_v26 = vcombine.high %v249_v18, %v249_v18  ;;  %v320_v27 = vsel %vm277_vm0, %v249_v18, 0.0  ;;  %v252_v30 = vmul.f32 %v212_v16, %v1917_v43  ;;  %1679 = vset.pattern.permute.xlu0 %v1755_v55 }
  0x34   :  { %v264_v40 = vcombine.high %v243_v19, %v243_v19  ;;  %v299_v28 = vsel %vm277_vm0, %v243_v19, 0.0  ;;  %v251_v29 = vmul.f32 %v228_v24, %v1915_v4  ;;  %v302_v35 = vsel %vm277_vm0, %v244_v22, 0.0  ;;  %1678 = vset.pattern.permute.xlu1 %v1755_v55 }
  0x35   :  { %318 = vadd.xlane.f32.xlu0 %v317_v25  ;;  %v321_v31 = vsel %vm277_vm0, %v267_v26, 0.0  ;;  %v330_v48 = vsel %vm277_vm0, %v252_v30, 0.0  ;;  %vm1757_vm9 = vmmov 0  }
  0x36   :  { %v300_v33 = vsel %vm277_vm0, %v264_v40, 0.0  ;;  %v322_v36 = vadd.f32 %v321_v31, %v320_v27  ;;  %v268_v38 = vcombine.high %v251_v29, %v251_v29  ;;  %v327_v39 = vsel %vm277_vm0, %v251_v29, 0.0 }
  0x37   :  { %v301_v37 = vadd.f32 %v300_v33, %v299_v28 }
  0x38   :  { %v324_v44 = vadd.f32 %v323_v32, %v322_v36  ;;  %v328_v47 = vsel %vm277_vm0, %v268_v38, 0.0 }
  0x39   :  { %v303_v45 = vadd.f32 %v302_v35, %v301_v37  ;;  %v329_v51 = vadd.f32 %v328_v47, %v327_v39 }
  0x3a   :  { %325 = vadd.xlane.f32.xlu1 %v324_v44 }
  0x3b   :  { %304 = vadd.xlane.f32.xlu0 %v303_v45  ;;  %v331_v52 = vadd.f32 %v330_v48, %v329_v51  ;;  %v2019_v48 = vsub.s32 3, %v1904_v34 }
  0x3f   :  { %332 = vadd.xlane.f32.xlu0 %v331_v52 }
  0x93   :  { %v452_v21 = vpop.xlane.xlu1 %451 }
  0x94   :  { %v453_v59 = vmax.f32 %v452_v21, 1e-12 }
  0x96   :  { %1704 = vrsqrt.f32 %v453_v59 }
  0x97   :  { %v380_v1 = vpop.xlane.xlu0 %379  ;;  %v394_v58 = vpop.xlane.xlu1 %393 }
  0x98   :  { %v430_v60 = vmax.f32 %v380_v1, 1e-12  ;;  %v432_v2 = vmax.f32 %v394_v58, 1e-12  ;;  %v2022_v1 = vsub.s32 4, %v1904_v34 }
  0x9a   :  { %1706 = vrsqrt.f32 %v430_v60 }
  0x9b   :  { %v387_v56 = vpop.xlane.xlu0 %386 }
  0x9c   :  { %v431_v61 = vmax.f32 %v387_v56, 1e-12 }
  0x9d   :  { %v408_v0 = vpop.xlane.xlu1 %407 }
  0x9e   :  { %1708 = vrsqrt.f32 %v431_v61  ;;  %v434_v19 = vmax.f32 %v408_v0, 1e-12 }
  0x9f   :  { %v401_v63 = vpop.xlane.xlu0 %400  ;;  %1710 = vrsqrt.f32 %v432_v2 }
  0xa0   :  { %v433_v24 = vmax.f32 %v401_v63, 1e-12  ;;  %1712 = vrsqrt.f32 %v434_v19  ;;  %v2031_v63 = vsub.s32 5, %v1904_v34 }
  0xa1   :  { %v422_v11 = vpop.xlane.xlu1 %421 }
  0xa2   :  { %1714 = vrsqrt.f32 %v433_v24  ;;  %v436_v36 = vmax.f32 %v422_v11, 1e-12 }
  0xa3   :  { %v415_v10 = vpop.xlane.xlu0 %414  ;;  %v2001_v17 = vpop.eup %1704 }
  0xa4   :  { %v467_v25 = vrot.slane %v2001_v17, %v1913_v42  ;;  %v471_v28 = vrot.slane %v2001_v17, %v1923_v49  ;;  %v435_v30 = vmax.f32 %v415_v10, 1e-12  ;;  %v475_v38 = vrot.slane %v2001_v17, %v1932_v57 }
  0xa5   :  { %v479_v21 = vrot.slane %v2001_v17, %v2019_v48  ;;  %v483_v61 = vrot.slane %v2001_v17, %v2022_v1 }
  0xa6   :  { %1716 = vrsqrt.f32 %v435_v30 }
  0xa7   :  { %v1707_v18 = vpop.eup %1706  ;;  %1718 = vrsqrt.f32 %v436_v36 }
  0xaa   :  { %v429_v16 = vpop.xlane.xlu0 %428 }
  0xab   :  { %v1709_v22 = vpop.eup %1708  ;;  %v437_v44 = vmax.f32 %v429_v16, 1e-12  ;;  %v487_v16 = vrot.slane %v2001_v17, %v2031_v63 }
  0xac   :  { %v1711_v35 = vpop.eup %1710 }
  0xad   :  { %v1713_v51 = vpop.eup %1712  ;;  %1720 = vrsqrt.f32 %v437_v44 }
  0xaf   :  { %v1715_v52 = vpop.eup %1714 }
  0xb3   :  { %v1717_v58 = vpop.eup %1716 }
  0xb4   :  { %v284_v26 = vpop.xlane.xlu1 %283  ;;  %v1719_v10 = vpop.eup %1718 }
  0xb5   :  { %v455_v27 = vmul.f32 %v1707_v18, %v284_v26  ;;  %v291_v40 = vpop.xlane.xlu0 %290  ;;  %v2039_v18 = vsub.s32 6, %v1904_v34 }
  0xb6   :  { %v456_v29 = vmul.f32 %v1709_v22, %v291_v40 }
  0xb7   :  { %v2007_v31 = vmul.f32 %v467_v25, %v455_v27  ;;  %v491_v26 = vrot.slane %v2001_v17, %v2039_v18  ;;  %v2047_v27 = vsub.s32 7, %v1904_v34 }
  0xb8   :  { %v312_v32 = vpop.xlane.xlu1 %311  ;;  %v2009_v33 = vmul.f32 %v471_v28, %v456_v29 }
  0xb9   :  { %521 = vperm.xlu1 %1678, %v2007_v31   ;;  %v459_v59 = vmul.f32 %v1713_v51, %v312_v32  ;;  %v495_v29 = vrot.slane %v2001_v17, %v2047_v27 }
  0xba   :  { %524 = vperm.xlu0 %1679, %v2009_v33   ;;  %v1721_v24 = vpop.eup %1720 }
  0xbb   :  { %v2034_v0 = vmul.f32 %v483_v61, %v459_v59 }
  0xbc   :  { %v298_v37 = vpop.xlane.xlu1 %297 }
  0xbd   :  { %v457_v39 = vmul.f32 %v1711_v35, %v298_v37  ;;  %v545_v37 = vand.u32 127, %v56_v5 }
  0xbe   :  { %v319_v47 = vpop.xlane.xlu0 %318 }
  0xbf   :  { %v2015_v45 = vmul.f32 %v475_v38, %v457_v39  ;;  %v460_v2 = vmul.f32 %v1717_v58, %v319_v47  ;;  %v2060_v44 = vsub.s32 %v545_v37, %v1904_v34 }
  0xc1   :  { %527 = vperm.xlu1 %1678, %v2015_v45   ;;  %v2042_v19 = vmul.f32 %v487_v16, %v460_v2 }
  0xc3   :  { %v326_v11 = vpop.xlane.xlu1 %325 }
  0xc4   :  { %v305_v55 = vpop.xlane.xlu0 %304  ;;  %v461_v22 = vmul.f32 %v1719_v10, %v326_v11 }
  0xc5   :  { %v458_v56 = vmul.f32 %v1715_v52, %v305_v55 }
  0xc6   :  { %v2050_v40 = vmul.f32 %v491_v26, %v461_v22 }
  0xc7   :  { %v2026_v60 = vmul.f32 %v479_v21, %v458_v56 }
  0xc8   :  { %v333_v25 = vpop.xlane.xlu0 %332 }
  0xc9   :  { %530 = vperm.xlu1 %1678, %v2026_v60   ;;  %v462_v28 = vmul.f32 %v1721_v24, %v333_v25 }
  0xcb   :  { %v2055_v30 = vmul.f32 %v495_v29, %v462_v28 }
  0xcd   :  { %533 = vperm.xlu1 %1678, %v2034_v0  }
  0xd1   :  { %536 = vperm.xlu1 %1678, %v2042_v19  }
  0xd5   :  { %539 = vperm.xlu1 %1678, %v2050_v40  }
  0xd9   :  { %542 = vperm.xlu1 %1678, %v2055_v30  }
 0x134   :  { %v522_v32 = vpop.permute.xlu1 %521 }
 0x135   :  { %v525_v38 = vpop.permute.xlu0 %524  ;;  %v549_v51 = vrot.slane %v522_v32, %v2060_v44 }
 0x136   :  { %v553_v47 = vrot.slane %v525_v38, %v2060_v44 }
 0x138   :  { %v579_v55 = vsel %vm578_vm1, %v553_v47, %v549_v51 }
 0x13c   :  { %v528_v35 = vpop.permute.xlu1 %527 }
 0x13d   :  { %v557_v52 = vrot.slane %v528_v35, %v2060_v44 }
 0x13f   :  { %v581_v58 = vsel %vm580_vm2, %v557_v52, %v579_v55 }
 0x144   :  { %v531_v36 = vpop.permute.xlu1 %530 }
 0x145   :  { %v561_v21 = vrot.slane %v531_v36, %v2060_v44 }
 0x147   :  { %v583_v2 = vsel %vm582_vm3, %v561_v21, %v581_v58 }
 0x148   :  { %v534_v39 = vpop.permute.xlu1 %533 }
 0x149   :  { %v565_v5 = vrot.slane %v534_v39, %v2060_v44 }
 0x14b   :  { %v585_v10 = vsel %vm584_vm4, %v565_v5, %v583_v2 }
 0x14c   :  { %v537_v17 = vpop.permute.xlu1 %536 }
 0x14d   :  { %v569_v59 = vrot.slane %v537_v17, %v2060_v44 }
 0x14f   :  { %v587_v16 = vsel %vm586_vm5, %v569_v59, %v585_v10 }
 0x150   :  { %v540_v56 = vpop.permute.xlu1 %539 }
 0x151   :  { %v573_v61 = vrot.slane %v540_v56, %v2060_v44 }
 0x153   :  { %v589_v24 = vsel %vm588_vm6, %v573_v61, %v587_v16 }
 0x154   :  { %v543_v11 = vpop.permute.xlu1 %542 }
 0x155   :  { %v577_v22 = vrot.slane %v543_v11, %v2060_v44 }
 0x157   :  { %v591_v25 = vsel %vm590_vm7, %v577_v22, %v589_v24 }
 0x158   :  { %v594_v26 = vsel %vm593_vm8, %v591_v25, -inf }
 0x159   :  { %595 = vmax.xlane.f32.xlu1 %v594_v26 }
 0x1e2   :  { %v596_v28 = vpop.xlane.xlu1 %595 }
 0x1e3   :  { %v601_v29 = vrot.slane %v596_v28, %v1913_v42  ;;  %v605_v32 = vrot.slane %v596_v28, %v1923_v49  ;;  %v609_v35 = vrot.slane %v596_v28, %v1932_v57  ;;  %v613_v39 = vrot.slane %v596_v28, %v2019_v48 }
 0x1e4   :  { %v617_v51 = vrot.slane %v596_v28, %v2022_v1  ;;  %v621_v21 = vrot.slane %v596_v28, %v2031_v63 }
 0x1e5   :  { %v638_v36 = vsub.f32 %v2007_v31, %v601_v29  ;;  %v639_v37 = vsub.f32 %v2009_v33, %v605_v32  ;;  %v640_v47 = vsub.f32 %v2015_v45, %v609_v35  ;;  %v641_v52 = vsub.f32 %v2026_v60, %v613_v39 }
 0x1e6   :  { %v642_v5 = vsub.f32 %v2034_v0, %v617_v51  ;;  %v625_v33 = vrot.slane %v596_v28, %v2039_v18  ;;  %v643_v56 = vsub.f32 %v2042_v19, %v621_v21  ;;  %v629_v60 = vrot.slane %v596_v28, %v2047_v27 }
 0x1e7   :  { %v646_v38 = vmul.f32 1.442695, %v638_v36  ;;  %v648_v17 = vmul.f32 1.442695, %v639_v37  ;;  %v650_v55 = vmul.f32 1.442695, %v640_v47 }
 0x1e8   :  { %v652_v31 = vmul.f32 1.442695, %v641_v52  ;;  %v654_v45 = vmul.f32 1.442695, %v642_v5  ;;  %v644_v58 = vsub.f32 %v2050_v40, %v625_v33  ;;  %v656_v61 = vmul.f32 1.442695, %v643_v56 }
 0x1e9   :  { %1722 = vpow2.f32 %v646_v38  ;;  %v645_v0 = vsub.f32 %v2055_v30, %v629_v60 }
 0x1ea   :  { %1724 = vpow2.f32 %v648_v17  ;;  %v658_v19 = vmul.f32 1.442695, %v644_v58 }
 0x1eb   :  { %1726 = vpow2.f32 %v650_v55  ;;  %v660_v11 = vmul.f32 1.442695, %v645_v0 }
 0x1ec   :  { %1728 = vpow2.f32 %v652_v31 }
 0x1ed   :  { %1730 = vpow2.f32 %v654_v45 }
 0x1ee   :  { %1732 = vpow2.f32 %v656_v61 }
 0x1ef   :  { %1734 = vpow2.f32 %v658_v19 }
 0x1f0   :  { %1736 = vpow2.f32 %v660_v11 }
 0x1f6   :  { %v2091_v59 = vpop.eup %1722 }
 0x1f7   :  { %671 = vperm.xlu0 %1679, %v2091_v59   ;;  %v2096_v2 = vpop.eup %1724 }
 0x1f8   :  { %v1727_v10 = vpop.eup %1726 }
 0x1f9   :  { %v2100_v16 = vpop.eup %1728 }
 0x1fa   :  { %v2103_v40 = vpop.eup %1730 }
 0x1fb   :  { %674 = vperm.xlu0 %1679, %v2096_v2   ;;  %v2106_v22 = vpop.eup %1732 }
 0x1fc   :  { %v1735_v30 = vpop.eup %1734 }
 0x1fd   :  { %v2109_v24 = vpop.eup %1736 }
 0x1ff   :  { %677 = vperm.xlu0 %1679, %v1727_v10  }
 0x203   :  { %680 = vperm.xlu0 %1679, %v2100_v16  }
 0x207   :  { %683 = vperm.xlu0 %1679, %v2103_v40  }
 0x20b   :  { %686 = vperm.xlu0 %1679, %v2106_v22  }
 0x20f   :  { %689 = vperm.xlu0 %1679, %v1735_v30  }
 0x213   :  { %692 = vperm.xlu0 %1679, %v2109_v24  }
 0x272   :  { %v672_v25 = vpop.permute.xlu0 %671 }
 0x273   :  { %v697_v38 = vrot.slane %v672_v25, %v2060_v44 }
 0x276   :  { %v675_v26 = vpop.permute.xlu0 %674 }
 0x277   :  { %v701_v36 = vrot.slane %v675_v26, %v2060_v44 }
 0x279   :  { %v726_v51 = vsel %vm578_vm1, %v701_v36, %v697_v38 }
 0x27a   :  { %v678_v28 = vpop.permute.xlu0 %677 }
 0x27b   :  { %v705_v37 = vrot.slane %v678_v28, %v2060_v44 }
 0x27d   :  { %v727_v55 = vsel %vm580_vm2, %v705_v37, %v726_v51  ;;  %v1686_v51 = vld [vmem:[%s2439_s2 + $0xa8] sm:$0xff]  }
 0x27e   :  { %v681_v29 = vpop.permute.xlu0 %680 }
 0x27f   :  { %v709_v39 = vrot.slane %v681_v29, %v2060_v44 }
 0x281   :  { %v728_v5 = vsel %vm582_vm3, %v709_v39, %v727_v55  ;;  %v1688_v55 = vld [vmem:[%s2439_s2 + $0x28] sm:$0xff]  }
 0x282   :  { %v684_v32 = vpop.permute.xlu0 %683 }
 0x283   :  { %v713_v47 = vrot.slane %v684_v32, %v2060_v44 }
 0x285   :  { %v729_v31 = vsel %vm584_vm4, %v713_v47, %v728_v5  ;;  %v1756_v47 = vmov 0.0   ;;  %v1690_v5 = vld [vmem:[%s2439_s2 + $0x60] sm:$0xff]  }
 0x286   :  { %v687_v35 = vpop.permute.xlu0 %686  ;;  %1653 = vmatprep.subr.bf16.mxu1 %v1756_v47  ;;  %1669 = vmatprep.mubr.msk.bf16.mxu1 %vm1757_vm9, %v1756_v47 }
 0x287   :  { %v717_v52 = vrot.slane %v687_v35, %v2060_v44 }
 0x289   :  { %v730_v56 = vsel %vm586_vm5, %v717_v52, %v729_v31  ;;  %v1687_v52 = vld [vmem:[%s2439_s2 + $0x68] sm:$0xff]   ;;  %v1691_v31 = vld [vmem:[%s2439_s2 + $0x20] sm:$0xff]  }
 0x28a   :  { %v690_v17 = vpop.permute.xlu0 %689 }
 0x28b   :  { %v721_v21 = vrot.slane %v690_v17, %v2060_v44  ;;  %v1685_v17 = vld [vmem:[%s2439_s2 + $0x30] sm:$0xff]  }
 0x28d   :  { %v731_v60 = vsel %vm588_vm6, %v721_v21, %v730_v56  ;;  %v1689_v21 = vld [vmem:[%s2439_s2 + $0xa0] sm:$0xff]   ;;  %v1693_v56 = vld [vmem:[%s2439_s2 + $0x58] sm:$0xff]  }
 0x28e   :  { %v693_v33 = vpop.permute.xlu0 %692 }
 0x28f   :  { %v725_v45 = vrot.slane %v693_v33, %v2060_v44  ;;  %v1692_v33 = vld [vmem:[%s2439_s2 + $0x98] sm:$0xff]  }
 0x291   :  { %v732_v58 = vsel %vm590_vm7, %v725_v45, %v731_v60  ;;  %v1694_v45 = vld [vmem:[%s2439_s2 + $0x18] sm:$0xff]   ;;  %v1695_v60 = vld [vmem:[%s2439_s2 + $0x90] sm:$0xff]  }
 0x292   :  { %v734_v61 = vsel %vm593_vm8, %v732_v58, 0.0  ;;  %v1696_v58 = vld [vmem:[%s2439_s2 + $0x50] sm:$0xff]  }
 0x293   :  { %735 = vadd.xlane.f32.xlu1 %v734_v61  ;;  %v1697_v61 = vld [vmem:[%s2439_s2 + $0x10] sm:$0xff]  }
 0x31c   :  { %v736_v0 = vpop.xlane.xlu1 %735 }
 0x31d   :  { %v749_v19 = vrot.slane %v736_v0, %v1932_v57  ;;  %v745_v11 = vrot.slane %v736_v0, %v1923_v49  ;;  %v765_v25 = vrot.slane %v736_v0, %v2039_v18  ;;  %v741_v26 = vrot.slane %v736_v0, %v1913_v42 }
 0x31e   :  { %v753_v44 = vrot.slane %v736_v0, %v2019_v48  ;;  %v757_v28 = vrot.slane %v736_v0, %v2022_v1  ;;  %v761_v29 = vrot.slane %v736_v0, %v2031_v63  ;;  %v769_v42 = vrot.slane %v736_v0, %v2047_v27  ;;  %v1698_v0 = vld [vmem:[%s2439_s2 + $0x88] sm:$0xff]  }
 0x31f   :  { %1738 = vrcp.f32 %v749_v19  ;;  %v1699_v19 = vld [vmem:[%s2439_s2 + $0x48] sm:$0xff]  }
 0x320   :  { %1740 = vrcp.f32 %v745_v11  ;;  %v1700_v11 = vld [vmem:[%s2439_s2 + $0x8] sm:$0xff]  }
 0x321   :  { %1742 = vrcp.f32 %v765_v25  ;;  %v1701_v25 = vld [vmem:[%s2439_s2 + $0x80] sm:$0xff]  }
 0x322   :  { %1744 = vrcp.f32 %v741_v26  ;;  %v1702_v26 = vld [vmem:[%s2439_s2 + $0x40] sm:$0xff]  }
 0x323   :  { %1746 = vrcp.f32 %v753_v44  ;;  %v1703_v44 = vld [vmem:[%s2439_s2] sm:$0xff]  }
 0x324   :  { %1748 = vrcp.f32 %v757_v28  ;;  %v1758_v28 = vmov 839922192  }
 0x325   :  { %1750 = vrcp.f32 %v761_v29  ;;  %v827_v29 = vunpack.c.l.s4 %v1758_v28 }
 0x326   :  { %1752 = vrcp.f32 %v769_v42  ;;  %v1123_v42 = vrot.slane %v1795_v6, 1 }
 0x32c   :  { %v1739_v32 = vpop.eup %1738 }
 0x32d   :  { %v1741_v57 = vpop.eup %1740  ;;  %v783_v35 = vmul.f32 %v1739_v32, %v1727_v10  ;;  %v828_v32 = vunpack.c.0.s8 %v827_v29 }
 0x32e   :  { %v1743_v49 = vpop.eup %1742  ;;  %v781_v18 = vmul.f32 %v1741_v57, %v2096_v2 }
 0x32f   :  { %v1745_v36 = vpop.eup %1744  ;;  %804 = vperm.xlu1 %1678, %v783_v35   ;;  %v791_v37 = vmul.f32 %v1743_v49, %v1735_v30  ;;  %v2215_v57 = vsub.s32 %v828_v32, %v1904_v34  ;;  %v1126_v35 = vrot.slane %v1795_v6, 2  ;;  %v1127_v49 = vrot.slane %v1797_v7, 2 }
 0x330   :  { %800 = vperm.xlu0 %1679, %v781_v18   ;;  %v779_v48 = vmul.f32 %v1745_v36, %v2091_v59  ;;  %v1747_v1 = vpop.eup %1746  ;;  %v1680_v59 = vld [vmem:[%s2439_s2 + $0xb8] sm:$0xff]   ;;  %v1128_v18 = vrot.slane %v1799_v8, 2  ;;  %v1124_v36 = vrot.slane %v1797_v7, 1  ;;  %v1129_v34 = vrot.slane %v1795_v6, 3 }
 0x331   :  { %v785_v63 = vmul.f32 %v1747_v1, %v2100_v16  ;;  %v1749_v38 = vpop.eup %1748  ;;  %1654 = vmatpush3.bf16.msra.mxu1 %v1680_v59  ;;  %v1681_v16 = vld [vmem:[%s2439_s2 + $0x78] sm:$0xff]   ;;  %v1138_v1 = vrot.slane %v1795_v6, 6 }
 0x332   :  { %v787_v10 = vmul.f32 %v1749_v38, %v2103_v40  ;;  %v1751_v2 = vpop.eup %1750  ;;  %v1682_v40 = vld [vmem:[%s2439_s2 + $0x38] sm:$0xff]   ;;  %1655 = vmatprep.subr.bf16.mxu1 %v1756_v47  ;;  %1622 = vmatprep.subr.bf16.mxu0 %v1681_v16  ;;  %v1131_v38 = vrot.slane %v1799_v8, 3 }
 0x333   :  { %820 = vperm.xlu1 %1678, %v791_v37   ;;  %v789_v27 = vmul.f32 %v1751_v2, %v2106_v22  ;;  %v1753_v39 = vpop.eup %1752  ;;  %v1683_v22 = vld [vmem:[%s2439_s2 + $0xb0] sm:$0xff]   ;;  %1623 = vmatpush3.bf16.msra.mxu0 %v1682_v40  ;;  %v1125_v37 = vrot.slane %v1799_v8, 1 }
 0x334   :  { %796 = vperm.xlu0 %1679, %v779_v48   ;;  %v793_v30 = vmul.f32 %v1753_v39, %v2109_v24  ;;  %v1684_v24 = vld [vmem:[%s2439_s2 + $0x70] sm:$0xff]   ;;  %v1132_v39 = vrot.slane %v1795_v6, 4 }
 0x335   :  { %1656 = vmatpush3.bf16.msra.mxu1 %v1683_v22  ;;  %1624 = vmatprep.subr.bf16.mxu0 %v1684_v24 }
 0x336   :  { %1657 = vmatprep.subr.bf16.mxu1 %v1756_v47 }
 0x337   :  { %1625 = vmatpush3.bf16.msra.mxu0 %v1685_v17 }
 0x338   :  { %808 = vperm.xlu0 %1679, %v785_v63   ;;  %1626 = vmatprep.subr.bf16.mxu0 %v1687_v52  ;;  %v1140_v63 = vrot.slane %v1799_v8, 6 }
 0x339   :  { %1658 = vmatpush3.bf16.msra.mxu1 %v1686_v51 }
 0x33a   :  { %1659 = vmatprep.subr.bf16.mxu1 %v1756_v47 }
 0x33b   :  { %1627 = vmatpush3.bf16.msra.mxu0 %v1688_v55 }
 0x33c   :  { %812 = vperm.xlu0 %1679, %v787_v10   ;;  %1628 = vmatprep.subr.bf16.mxu0 %v1690_v5 }
 0x33d   :  { %1660 = vmatpush3.bf16.msra.mxu1 %v1689_v21 }
 0x33e   :  { %1661 = vmatprep.subr.bf16.mxu1 %v1756_v47 }
 0x33f   :  { %1629 = vmatpush3.bf16.msra.mxu0 %v1691_v31 }
 0x340   :  { %816 = vperm.xlu0 %1679, %v789_v27   ;;  %1630 = vmatprep.subr.bf16.mxu0 %v1693_v56  ;;  %v1130_v27 = vrot.slane %v1797_v7, 3 }
 0x341   :  { %1662 = vmatpush3.bf16.msra.mxu1 %v1692_v33 }
 0x342   :  { %1663 = vmatprep.subr.bf16.mxu1 %v1756_v47 }
 0x343   :  { %1631 = vmatpush3.bf16.msra.mxu0 %v1694_v45 }
 0x344   :  { %824 = vperm.xlu0 %1679, %v793_v30   ;;  %1632 = vmatprep.subr.bf16.mxu0 %v1696_v58  ;;  %v1134_v30 = vrot.slane %v1799_v8, 4 }
 0x345   :  { %1664 = vmatpush3.bf16.msra.mxu1 %v1695_v60 }
 0x346   :  { %1665 = vmatprep.subr.bf16.mxu1 %v1756_v47 }
 0x347   :  { %1633 = vmatpush3.bf16.msra.mxu0 %v1697_v61 }
 0x348   :  { %1634 = vmatprep.subr.bf16.mxu0 %v1699_v19 }
 0x349   :  { %1666 = vmatpush3.bf16.msra.mxu1 %v1698_v0 }
 0x34a   :  { %1667 = vmatprep.subr.bf16.mxu1 %v1756_v47  ;;  %v1135_v47 = vrot.slane %v1795_v6, 5 }
 0x34b   :  { %1635 = vmatpush3.bf16.msra.mxu0 %v1700_v11 }
 0x34c   :  { %1636 = vmatprep.subr.bf16.mxu0 %v1702_v26 }
 0x34d   :  { %1668 = vmatpush3.bf16.msra.mxu1 %v1701_v25 }
 0x34f   :  { %1637 = vmatpush3.bf16.msra.mxu0 %v1703_v44 }
 0x3aa   :  { %v805_v48 = vpop.permute.xlu1 %804 }
 0x3ab   :  { %v846_v10 = vrot.slane %v805_v48, %v2215_v57  ;;  %v801_v2 = vpop.permute.xlu0 %800 }
 0x3ac   :  { %v839_v59 = vrot.slane %v801_v2, %v2215_v57 }
 0x3ad   :  { %v894_v22 = vmul.f32 %v846_v10, %v1811_v13  ;;  %v895_v24 = vmul.f32 %v846_v10, %v1813_v14 }
 0x3ae   :  { %v892_v52 = vmul.f32 %v839_v59, %v1815_v15  ;;  %v893_v55 = vmul.f32 %v839_v59, %v1831_v23  ;;  %v821_v21 = vpop.permute.xlu1 %820 }
 0x3af   :  { %v916_v33 = vcombine.high %v894_v22, %v894_v22  ;;  %v972_v56 = vsel %vm277_vm0, %v894_v22, 0.0  ;;  %v986_v13 = vsel %vm277_vm0, %v895_v24, 0.0  ;;  %v874_v14 = vrot.slane %v821_v21, %v2215_v57 }
 0x3b0   :  { %v973_v45 = vrot.slane %v972_v56, 4  ;;  %v987_v60 = vrot.slane %v986_v13, 4  ;;  %v915_v58 = vcombine.high %v892_v52, %v892_v52  ;;  %v951_v61 = vsel %vm277_vm0, %v892_v52, 0.0 }
 0x3b1   :  { %v979_v15 = vsel %vm277_vm0, %v916_v33, 0.0  ;;  %v952_v23 = vrot.slane %v951_v61, 4  ;;  %v965_v0 = vsel %vm277_vm0, %v893_v55, 0.0  ;;  %v902_v19 = vmul.f32 %v874_v14, %v1867_v54 }
 0x3b2   :  { %v974_v11 = vadd.f32 %v973_v45, %v972_v56  ;;  %v980_v25 = vrot.slane %v979_v15, 4  ;;  %v988_v26 = vadd.f32 %v987_v60, %v986_v13  ;;  %v958_v44 = vsel %vm277_vm0, %v915_v58, 0.0 }
 0x3b3   :  { %v953_v28 = vadd.f32 %v952_v23, %v951_v61  ;;  %v959_v29 = vrot.slane %v958_v44, 4  ;;  %v966_v32 = vrot.slane %v965_v0, 4  ;;  %v903_v48 = vmul.f32 %v874_v14, %v1878_v62 }
 0x3b4   :  { %v975_v10 = vrot.slane %v974_v11, 2  ;;  %v981_v2 = vadd.f32 %v980_v25, %v979_v15  ;;  %v989_v59 = vrot.slane %v988_v26, 2  ;;  %v920_v22 = vcombine.high %v902_v19, %v902_v19  ;;  %v797_v25 = vpop.permute.xlu0 %796 }
 0x3b5   :  { %v954_v24 = vrot.slane %v953_v28, 2  ;;  %v960_v52 = vadd.f32 %v959_v29, %v958_v44  ;;  %v967_v21 = vadd.f32 %v966_v32, %v965_v0  ;;  %v1056_v55 = vsel %vm277_vm0, %v902_v19, 0.0 }
 0x3b6   :  { %v976_v54 = vadd.f32 %v975_v10, %v974_v11  ;;  %v982_v33 = vrot.slane %v981_v2, 2  ;;  %v990_v56 = vadd.f32 %v989_v59, %v988_v26  ;;  %v1057_v13 = vrot.slane %v1056_v55, 4 }
 0x3b7   :  { %v955_v45 = vadd.f32 %v954_v24, %v953_v28  ;;  %v961_v60 = vrot.slane %v960_v52, 2  ;;  %v968_v58 = vrot.slane %v967_v21, 2  ;;  %v1063_v61 = vsel %vm277_vm0, %v920_v22, 0.0 }
 0x3b8   :  { %v977_v23 = vrot.slane %v976_v54, 1  ;;  %v983_v62 = vadd.f32 %v982_v33, %v981_v2  ;;  %v991_v14 = vrot.slane %v990_v56, 1  ;;  %v1058_v15 = vadd.f32 %v1057_v13, %v1056_v55 }
 0x3b9   :  { %v956_v31 = vrot.slane %v955_v45, 1  ;;  %v962_v17 = vadd.f32 %v961_v60, %v960_v52  ;;  %v969_v44 = vadd.f32 %v968_v58, %v967_v21  ;;  %v1064_v0 = vrot.slane %v1063_v61, 4 }
 0x3ba   :  { %v978_v29 = vadd.f32 %v977_v23, %v976_v54  ;;  %v984_v19 = vrot.slane %v983_v62, 1  ;;  %v992_v11 = vadd.f32 %v991_v14, %v990_v56  ;;  %v1059_v32 = vrot.slane %v1058_v15, 2 }
 0x3bb   :  { %v957_v26 = vadd.f32 %v956_v31, %v955_v45  ;;  %v963_v10 = vrot.slane %v962_v17, 1  ;;  %v970_v28 = vrot.slane %v969_v44, 1  ;;  %v1065_v59 = vadd.f32 %v1064_v0, %v1063_v61  ;;  %v809_v31 = vpop.permute.xlu0 %808 }
 0x3bc   :  { %v985_v24 = vadd.f32 %v984_v19, %v983_v62  ;;  %v1105_v40 = vmul.f32 0.25, %v978_v29  ;;  %v1107_v22 = vmul.f32 0.25, %v992_v11  ;;  %v1060_v5 = vadd.f32 %v1059_v32, %v1058_v15 }
 0x3bd   :  { %v964_v2 = vadd.f32 %v963_v10, %v962_v17  ;;  %v971_v33 = vadd.f32 %v970_v28, %v969_v44  ;;  %v1102_v55 = vmul.f32 0.25, %v957_v26  ;;  %v1066_v13 = vrot.slane %v1065_v59, 2 }
 0x3be   :  { %v1106_v51 = vmul.f32 0.25, %v985_v24  ;;  %v1174_v52 = vmul.f32 %v1126_v35, %v1105_v40  ;;  %v1176_v21 = vmul.f32 %v1128_v18, %v1107_v22  ;;  %v1061_v54 = vrot.slane %v1060_v5, 1 }
 0x3bf   :  { %v1103_v56 = vmul.f32 0.25, %v964_v2  ;;  %v1104_v45 = vmul.f32 0.25, %v971_v33  ;;  %v1171_v60 = vmul.f32 %v1123_v42, %v1102_v55  ;;  %v2260_v58 = vadd.f32 %v1066_v13, %v1065_v59  ;;  %v813_v32 = vpop.permute.xlu0 %812 }
 0x3c0   :  { %v1175_v17 = vmul.f32 %v1127_v49, %v1106_v51  ;;  %v1198_v61 = vpack.c.bf16 %v1174_v52, %v1174_v52  ;;  %v1200_v23 = vpack.c.bf16 %v1176_v21, %v1176_v21  ;;  %v1062_v62 = vadd.f32 %v1061_v54, %v1060_v5 }
 0x3c1   :  { %v1172_v35 = vmul.f32 %v1124_v36, %v1103_v56  ;;  %v1173_v18 = vmul.f32 %v1125_v37, %v1104_v45  ;;  %v1195_v40 = vpack.c.bf16 %v1171_v60, %v1171_v60  ;;  %v1070_v0 = vsel %vm277_vm0, %v903_v48, 0.0 }
 0x3c2   :  { %v1199_v15 = vpack.c.bf16 %v1175_v17, %v1175_v17  ;;  %v2269_v44 = vunpack.c.l.b16 %v1198_v61  ;;  %v2271_v42 = vunpack.c.l.b16 %v1200_v23  ;;  %v1071_v5 = vrot.slane %v1070_v0, 4 }
 0x3c3   :  { %v1196_v49 = vpack.c.bf16 %v1172_v35, %v1172_v35  ;;  %v1197_v51 = vpack.c.bf16 %v1173_v18, %v1173_v18  ;;  %v2274_v29 = vunpack.c.l.b16 %v1195_v40  ;;  %v1068_v37 = vrot.slane %v2260_v58, 1 }
 0x3c4   :  { %v2276_v19 = vunpack.c.l.b16 %v1199_v15  ;;  %v1117_v11 = vmul.f32 0.25, %v1062_v62  ;;  %v1349_v26 = vrot.slane %v2271_v42, 6  ;;  %v1072_v48 = vadd.f32 %v1071_v5, %v1070_v0 }
 0x3c5   :  { %v2281_v10 = vunpack.c.l.b16 %v1196_v49  ;;  %v2283_v28 = vunpack.c.l.b16 %v1197_v51  ;;  %v1319_v24 = vrot.slane %v2274_v29, 7  ;;  %v832_v22 = vrot.slane %v797_v25, %v2215_v57 }
 0x3c6   :  { %v853_v2 = vrot.slane %v809_v31, %v2215_v57  ;;  %v1073_v55 = vrot.slane %v1072_v48, 2  ;;  %v2292_v13 = vmul.f32 %v1138_v1, %v1117_v11  ;;  %v860_v52 = vrot.slane %v813_v32, %v2215_v57 }
 0x3c7   :  { %v890_v21 = vmul.f32 %v832_v22, %v1801_v9  ;;  %v891_v54 = vmul.f32 %v832_v22, %v1809_v12  ;;  %v1347_v25 = vrot.slane %v2283_v28, 7 }
 0x3c8   :  { %v896_v56 = vmul.f32 %v853_v2, %v1861_v50  ;;  %v897_v45 = vmul.f32 %v853_v2, %v1865_v53  ;;  %v1074_v31 = vadd.f32 %v1073_v55, %v1072_v48  ;;  %v898_v60 = vmul.f32 %v860_v52, %v1850_v41  ;;  %v817_v53 = vpop.permute.xlu0 %816 }
 0x3c9   :  { %v2302_v17 = vmul.f32 %v860_v52, %v1857_v46  ;;  %v914_v1 = vcombine.high %v890_v21, %v890_v21  ;;  %v930_v61 = vsel %vm277_vm0, %v890_v21, 0.0  ;;  %v944_v23 = vsel %vm277_vm0, %v891_v54, 0.0 }
 0x3ca   :  { %v917_v9 = vcombine.high %v896_v56, %v896_v56  ;;  %v1075_v62 = vrot.slane %v1074_v31, 1  ;;  %v931_v12 = vrot.slane %v930_v61, 4  ;;  %v945_v35 = vrot.slane %v944_v23, 4 }
 0x3cb   :  { %v993_v50 = vsel %vm277_vm0, %v896_v56, 0.0  ;;  %v937_v18 = vsel %vm277_vm0, %v914_v1, 0.0  ;;  %v1007_v46 = vsel %vm277_vm0, %v897_v45, 0.0  ;;  %v2311_v48 = vrot.slane %v817_v53, %v2215_v57 }
 0x3cc   :  { %v994_v40 = vrot.slane %v993_v50, 4  ;;  %v1000_v41 = vsel %vm277_vm0, %v917_v9, 0.0  ;;  %v1076_v15 = vadd.f32 %v1075_v62, %v1074_v31  ;;  %v932_v0 = vadd.f32 %v931_v12, %v930_v61 }
 0x3cd   :  { %v938_v49 = vrot.slane %v937_v18, 4  ;;  %v946_v51 = vadd.f32 %v945_v35, %v944_v23  ;;  %v1001_v11 = vrot.slane %v1000_v41, 4  ;;  %v1008_v32 = vrot.slane %v1007_v46, 4 }
 0x3ce   :  { %v995_v5 = vadd.f32 %v994_v40, %v993_v50  ;;  %v933_v22 = vrot.slane %v932_v0, 2  ;;  %v918_v52 = vcombine.high %v898_v60, %v898_v60  ;;  %v1014_v1 = vsel %vm277_vm0, %v898_v60, 0.0 }
 0x3cf   :  { %v939_v2 = vadd.f32 %v938_v49, %v937_v18  ;;  %v947_v55 = vrot.slane %v946_v51, 2  ;;  %v1002_v54 = vadd.f32 %v1001_v11, %v1000_v41  ;;  %v1009_v56 = vadd.f32 %v1008_v32, %v1007_v46 }
 0x3d0   :  { %v996_v21 = vrot.slane %v995_v5, 2  ;;  %v1119_v45 = vmul.f32 0.25, %v1076_v15  ;;  %v934_v31 = vadd.f32 %v933_v22, %v932_v0  ;;  %v1015_v35 = vrot.slane %v1014_v1, 4 }
 0x3d1   :  { %v940_v61 = vrot.slane %v939_v2, 2  ;;  %v948_v9 = vadd.f32 %v947_v55, %v946_v51  ;;  %v1003_v62 = vrot.slane %v1002_v54, 2  ;;  %v1010_v12 = vrot.slane %v1009_v56, 2 }
 0x3d2   :  { %v997_v23 = vadd.f32 %v996_v21, %v995_v5  ;;  %v935_v50 = vrot.slane %v934_v31, 1  ;;  %v1021_v18 = vsel %vm277_vm0, %v918_v52, 0.0  ;;  %v1016_v41 = vadd.f32 %v1015_v35, %v1014_v1 }
 0x3d3   :  { %v941_v53 = vadd.f32 %v940_v61, %v939_v2  ;;  %v949_v40 = vrot.slane %v948_v9, 1  ;;  %v1004_v36 = vadd.f32 %v1003_v62, %v1002_v54  ;;  %v1011_v59 = vadd.f32 %v1010_v12, %v1009_v56 }
 0x3d4   :  { %v998_v49 = vrot.slane %v997_v23, 1  ;;  %v936_v46 = vadd.f32 %v935_v50, %v934_v31  ;;  %v1022_v15 = vrot.slane %v1021_v18, 4  ;;  %v1017_v5 = vrot.slane %v1016_v41, 2 }
 0x3d5   :  { %v942_v11 = vrot.slane %v941_v53, 1  ;;  %v950_v60 = vadd.f32 %v949_v40, %v948_v9  ;;  %v1005_v32 = vrot.slane %v1004_v36, 1  ;;  %v1012_v51 = vrot.slane %v1011_v59, 1 }
 0x3d6   :  { %v999_v0 = vadd.f32 %v998_v49, %v997_v23  ;;  %v1099_v55 = vmul.f32 0.25, %v936_v46  ;;  %v1023_v33 = vadd.f32 %v1022_v15, %v1021_v18  ;;  %v1018_v52 = vadd.f32 %v1017_v5, %v1016_v41 }
 0x3d7   :  { %v943_v22 = vadd.f32 %v942_v11, %v941_v53  ;;  %v1101_v21 = vmul.f32 0.25, %v950_v60  ;;  %v1006_v2 = vadd.f32 %v1005_v32, %v1004_v36  ;;  %v1013_v61 = vadd.f32 %v1012_v51, %v1011_v59 }
 0x3d8   :  { %v1108_v14 = vmul.f32 0.25, %v999_v0  ;;  %v1168_v54 = vmul.f32 %v1099_v55, %v1795_v6  ;;  %v1024_v1 = vrot.slane %v1023_v33, 2  ;;  %v1019_v62 = vrot.slane %v1018_v52, 1 }
 0x3d9   :  { %v1100_v16 = vmul.f32 0.25, %v943_v22  ;;  %v1170_v56 = vmul.f32 %v1101_v21, %v1799_v8  ;;  %v1109_v31 = vmul.f32 0.25, %v1006_v2  ;;  %v1110_v9 = vmul.f32 0.25, %v1013_v61 }
 0x3da   :  { %v1177_v23 = vmul.f32 %v1129_v34, %v1108_v14  ;;  %v1192_v35 = vpack.c.bf16 %v1168_v54, %v1168_v54  ;;  %v1025_v36 = vadd.f32 %v1024_v1, %v1023_v33  ;;  %v1020_v18 = vadd.f32 %v1019_v62, %v1018_v52 }
 0x3db   :  { %v1169_v12 = vmul.f32 %v1100_v16, %v1797_v7  ;;  %v1194_v50 = vpack.c.bf16 %v1170_v56, %v1170_v56  ;;  %v2322_v59 = vmul.f32 %v1130_v27, %v1109_v31  ;;  %v1179_v53 = vmul.f32 %v1131_v38, %v1110_v9  ;;  %v825_v27 = vpop.permute.xlu0 %824 }
 0x3dc   :  { %v1201_v40 = vpack.c.bf16 %v1177_v23, %v1177_v23  ;;  %v1295_v41 = vunpack.c.l.b16 %v1192_v35  ;;  %v1026_v11 = vrot.slane %v1025_v36, 1  ;;  %v1188_v34 = vmul.f32 %v1140_v63, %v1119_v45 }
 0x3dd   :  { %v1193_v49 = vpack.c.bf16 %v1169_v12, %v1169_v12  ;;  %v1297_v46 = vunpack.c.l.b16 %v1194_v50  ;;  %v1203_v16 = vpack.c.bf16 %v1179_v53, %v1179_v53  ;;  %v1028_v33 = vsel %vm277_vm0, %v2302_v17, 0.0 }
 0x3de   :  { %v2328_v14 = vunpack.c.l.b16 %v1201_v40  ;;  %v2337_v38 = vsel %vm578_vm1, %v1319_v24, %v1295_v41  ;;  %v1202_v15 = vpack.c.bf16 %v2322_v59, %v2322_v59  ;;  %v1027_v0 = vadd.f32 %v1026_v11, %v1025_v36 }
 0x3df   :  { %v2332_v60 = vunpack.c.l.b16 %v1193_v49  ;;  %v1348_v63 = vsel %vm578_vm1, %v1347_v25, %v1297_v46  ;;  %v2344_v45 = vunpack.c.l.b16 %v1203_v16  ;;  %v1029_v32 = vrot.slane %v1028_v33, 4 }
 0x3e0   :  { %v1111_v17 = vmul.f32 0.25, %v1020_v18  ;;  %v1323_v51 = vrot.slane %v2328_v14, 5  ;;  %v900_v29 = vmul.f32 %v2311_v48, %v1884_v3  ;;  %v901_v24 = vmul.f32 %v2311_v48, %v1891_v20 }
 0x3e1   :  { %v881_v5 = vrot.slane %v825_v27, %v2215_v57  ;;  %v1351_v22 = vrot.slane %v2344_v45, 5  ;;  %v1030_v55 = vadd.f32 %v1029_v32, %v1028_v33  ;;  %v2353_v28 = vmul.f32 0.25, %v1027_v0 }
 0x3e2   :  { %v1180_v25 = vmul.f32 %v1132_v39, %v1111_v17  ;;  %v919_v21 = vcombine.high %v900_v29, %v900_v29  ;;  %v1035_v2 = vsel %vm277_vm0, %v900_v29, 0.0  ;;  %v1049_v61 = vsel %vm277_vm0, %v901_v24, 0.0 }
 0x3e3   :  { %v904_v3 = vmul.f32 %v881_v5, %v1915_v4  ;;  %v1031_v52 = vrot.slane %v1030_v55, 2  ;;  %v1036_v20 = vrot.slane %v1035_v2, 4  ;;  %v1050_v48 = vrot.slane %v1049_v61, 4 }
 0x3e4   :  { %v1204_v54 = vpack.c.bf16 %v1180_v25, %v1180_v25  ;;  %v1042_v57 = vsel %vm277_vm0, %v919_v21, 0.0  ;;  %v905_v56 = vmul.f32 %v881_v5, %v1917_v43  ;;  %v1212_v18 = vpack.c.bf16 %v1188_v34, %v1188_v34 }
 0x3e5   :  { %v921_v1 = vcombine.high %v904_v3, %v904_v3  ;;  %v1077_v31 = vsel %vm277_vm0, %v904_v3, 0.0  ;;  %v1032_v9 = vadd.f32 %v1031_v52, %v1030_v55  ;;  %v1037_v23 = vadd.f32 %v1036_v20, %v1035_v2 }
 0x3e6   :  { %v2363_v39 = vunpack.c.l.b16 %v1204_v54  ;;  %v1043_v62 = vrot.slane %v1042_v57, 4  ;;  %v1051_v12 = vadd.f32 %v1050_v48, %v1049_v61  ;;  %v1078_v35 = vrot.slane %v1077_v31, 4 }
 0x3e7   :  { %v1084_v4 = vsel %vm277_vm0, %v921_v1, 0.0  ;;  %v1091_v50 = vsel %vm277_vm0, %v905_v56, 0.0  ;;  %v1033_v36 = vrot.slane %v1032_v9, 1  ;;  %v1038_v53 = vrot.slane %v1037_v23, 2 }
 0x3e8   :  { %v1044_v40 = vadd.f32 %v1043_v62, %v1042_v57  ;;  %v1052_v49 = vrot.slane %v1051_v12, 2  ;;  %v1079_v43 = vadd.f32 %v1078_v35, %v1077_v31  ;;  %v1085_v41 = vrot.slane %v1084_v4, 4 }
 0x3e9   :  { %v1092_v46 = vrot.slane %v1091_v50, 4  ;;  %v1034_v11 = vadd.f32 %v1033_v36, %v1032_v9  ;;  %v1325_v16 = vrot.slane %v2363_v39, 4  ;;  %v1039_v33 = vadd.f32 %v1038_v53, %v1037_v23  ;;  %v1597_v39 = vld [vmem:[%s2440_s3] ss:$0 sm:$0xff] }
 0x3ea   :  { %v1045_v27 = vrot.slane %v1044_v40, 2  ;;  %v1053_v0 = vadd.f32 %v1052_v49, %v1051_v12  ;;  %v1080_v45 = vrot.slane %v1079_v43, 2  ;;  %v1086_v32 = vadd.f32 %v1085_v41, %v1084_v4 }
 0x3eb   :  { %v1093_v17 = vadd.f32 %v1092_v46, %v1091_v50  ;;  %v1113_v29 = vmul.f32 0.25, %v1034_v11  ;;  %v1040_v24 = vrot.slane %v1039_v33, 1  ;;  %v2368_v55 = vunpack.c.l.b16 %v1212_v18 }
 0x3ec   :  { %v1046_v5 = vadd.f32 %v1045_v27, %v1044_v40  ;;  %v1054_v25 = vrot.slane %v1053_v0, 1  ;;  %v1081_v34 = vadd.f32 %v1080_v45, %v1079_v43  ;;  %v1087_v21 = vrot.slane %v1086_v32, 2 }
 0x3ed   :  { %v1094_v2 = vrot.slane %v1093_v17, 2  ;;  %v1182_v61 = vmul.f32 %v1134_v30, %v1113_v29  ;;  %v1041_v3 = vadd.f32 %v1040_v24, %v1039_v33  ;;  %v1350_v54 = vsel %vm580_vm2, %v1349_v26, %v1348_v63 }
 0x3ee   :  { %v1047_v52 = vrot.slane %v1046_v5, 1  ;;  %v1055_v20 = vadd.f32 %v1054_v25, %v1053_v0  ;;  %v1082_v48 = vrot.slane %v1081_v34, 1  ;;  %v1088_v57 = vadd.f32 %v1087_v21, %v1086_v32 }
 0x3ef   :  { %v1095_v56 = vadd.f32 %v1094_v2, %v1093_v17  ;;  %v1206_v1 = vpack.c.bf16 %v1182_v61, %v1182_v61  ;;  %v1114_v9 = vmul.f32 0.25, %v1041_v3  ;;  %v1352_v23 = vsel %vm582_vm3, %v1351_v22, %v1350_v54 }
 0x3f0   :  { %v1048_v31 = vadd.f32 %v1047_v52, %v1046_v5  ;;  %v1116_v62 = vmul.f32 0.25, %v1055_v20  ;;  %v1083_v12 = vadd.f32 %v1082_v48, %v1081_v34  ;;  %v1069_v30 = vadd.f32 %v1068_v37, %v2260_v58 }
 0x3f1   :  { %v1096_v35 = vrot.slane %v1095_v56, 1  ;;  %v1309_v4 = vunpack.c.l.b16 %v1206_v1  ;;  %v1183_v26 = vmul.f32 %v1135_v47, %v1114_v9  ;;  %v1089_v63 = vrot.slane %v1088_v57, 1 }
 0x3f2   :  { %v1115_v42 = vmul.f32 0.25, %v1048_v31  ;;  %v2442_v50 = vrot.slane %v1799_v8, 5  ;;  %v1357_v40 = vrot.slane %v2368_v55, 2  ;;  %v1118_v22 = vmul.f32 0.25, %v1069_v30 }
 0x3f3   :  { %v1097_v53 = vadd.f32 %v1096_v35, %v1095_v56  ;;  %v1207_v18 = vpack.c.bf16 %v1183_v26, %v1183_v26  ;;  %v1120_v49 = vmul.f32 0.25, %v1083_v12  ;;  %v1090_v43 = vadd.f32 %v1089_v63, %v1088_v57 }
 0x3f4   :  { %v1185_v36 = vmul.f32 %v2442_v50, %v1116_v62  ;;  %v2443_v41 = vrot.slane %v1797_v7, 4  ;;  %v2444_v11 = vrot.slane %v1797_v7, 5  ;;  %v2445_v33 = vrot.slane %v1797_v7, 6 }
 0x3f5   :  { %v1122_v46 = vmul.f32 0.25, %v1097_v53  ;;  %v1353_v0 = vrot.slane %v1309_v4, 4  ;;  %v1310_v45 = vunpack.c.l.b16 %v1207_v18  ;;  %v1121_v32 = vmul.f32 0.25, %v1090_v43 }
 0x3f6   :  { %v1181_v58 = vmul.f32 %v2443_v41, %v2353_v28  ;;  %v1209_v37 = vpack.c.bf16 %v1185_v36, %v1185_v36  ;;  %v1184_v47 = vmul.f32 %v2444_v11, %v1115_v42  ;;  %v1187_v27 = vmul.f32 %v2445_v33, %v1118_v22 }
 0x3f7   :  { %v2446_v24 = vrot.slane %v1799_v8, 7  ;;  %v2447_v28 = vrot.slane %v1797_v7, 7  ;;  %v1305_v21 = vunpack.c.l.b16 %v1202_v15  ;;  %v2448_v61 = vrot.slane %v2281_v10, 7 }
 0x3f8   :  { %v1205_v17 = vpack.c.bf16 %v1181_v58, %v1181_v58  ;;  %v1312_v29 = vunpack.c.l.b16 %v1209_v37  ;;  %v1208_v55 = vpack.c.bf16 %v1184_v47, %v1184_v47  ;;  %v1211_v25 = vpack.c.bf16 %v1187_v27, %v1187_v27 }
 0x3f9   :  { %v1191_v5 = vmul.f32 %v2446_v24, %v1122_v46  ;;  %v1190_v34 = vmul.f32 %v2447_v28, %v1121_v32  ;;  %v1334_v3 = vsel %vm578_vm1, %v2448_v61, %v2332_v60  ;;  %v1354_v48 = vsel %vm584_vm4, %v1353_v0, %v1352_v23 }
 0x3fa   :  { %v1308_v2 = vunpack.c.l.b16 %v1205_v17  ;;  %v1355_v54 = vrot.slane %v1312_v29, 3  ;;  %v1311_v20 = vunpack.c.l.b16 %v1208_v55  ;;  %v1314_v8 = vunpack.c.l.b16 %v1211_v25 }
 0x3fb   :  { %v1215_v52 = vpack.c.bf16 %v1191_v5, %v1191_v5  ;;  %v1214_v57 = vpack.c.bf16 %v1190_v34, %v1190_v34  ;;  %v1337_v56 = vrot.slane %v1305_v21, 5  ;;  %v2449_v59 = vrot.slane %v2276_v19, 6 }
 0x3fc   :  { %v1339_v7 = vrot.slane %v1308_v2, 4  ;;  %v1356_v31 = vsel %vm586_vm5, %v1355_v54, %v1354_v48  ;;  %v1341_v9 = vrot.slane %v1311_v20, 3  ;;  %v1343_v62 = vrot.slane %v1314_v8, 2 }
 0x3fd   :  { %v1318_v1 = vunpack.c.l.b16 %v1215_v52  ;;  %v1336_v15 = vsel %vm580_vm2, %v2449_v59, %v1334_v3  ;;  %v1317_v10 = vunpack.c.l.b16 %v1214_v57  ;;  %v2450_v12 = vrot.slane %v1795_v6, 7 }
 0x3fe   :  { %v1338_v60 = vsel %vm582_vm3, %v1337_v56, %v1336_v15  ;;  %v1358_v23 = vsel %vm588_vm6, %v1357_v40, %v1356_v31  ;;  %v1210_v42 = vpack.c.bf16 %v2292_v13, %v2292_v13  ;;  %v2451_v50 = vrot.slane %v2269_v44, 6 }
 0x3ff   :  { %v1189_v35 = vmul.f32 %v2450_v12, %v1120_v49  ;;  %v1359_v30 = vrot.slane %v1318_v1, 1  ;;  %v1340_v4 = vsel %vm584_vm4, %v1339_v7, %v1338_v60  ;;  %v1345_v26 = vrot.slane %v1317_v10, 1 }
 0x400   :  { %v1342_v19 = vsel %vm586_vm5, %v1341_v9, %v1340_v4  ;;  %v1322_v36 = vsel %vm580_vm2, %v2451_v50, %v2337_v38  ;;  %v1313_v40 = vunpack.c.l.b16 %v1210_v42  ;;  %v1327_v43 = vrot.slane %v1310_v45, 3 }
 0x401   :  { %v1213_v63 = vpack.c.bf16 %v1189_v35, %v1189_v35  ;;  %v1360_v6 = vsel %vm590_vm7, %v1359_v30, %v1358_v23  ;;  %v1344_v53 = vsel %vm588_vm6, %v1343_v62, %v1342_v19  ;;  %v1324_v22 = vsel %vm582_vm3, %v1323_v51, %v1322_v36 }
 0x402   :  { %v1363_v18 = vpack.c.b16 %v1360_v6, %v1360_v6  ;;  %v1346_v13 = vsel %vm590_vm7, %v1345_v26, %v1344_v53  ;;  %v1326_v44 = vsel %vm584_vm4, %v1325_v16, %v1324_v22  ;;  %v1329_v38 = vrot.slane %v1313_v40, 2 }
 0x403   :  { %v1316_v49 = vunpack.c.l.b16 %v1213_v63  ;;  %v1362_v41 = vpack.c.b16 %v1346_v13, %v1346_v13  ;;  %v1328_v58 = vsel %vm586_vm5, %v1327_v43, %v1326_v44 }
 0x404   :  { %1670 = vmatmul.mubr.bf16.vlgmr.msra.gmra.mxu1 %v1363_v18  ;;  %v1330_v14 = vsel %vm588_vm6, %v1329_v38, %v1328_v58 }
 0x405   :  { %v1331_v37 = vrot.slane %v1316_v49, 1  ;;  %1543 = vmatprep.mubr.bf16.mxu0 %v1362_v41 }
 0x407   :  { %v1332_v51 = vsel %vm590_vm7, %v1331_v37, %v1330_v14 }
 0x408   :  { %v1361_v46 = vpack.c.b16 %v1332_v51, %v1332_v51 }
 0x40a   :  { %1544 = vmatmul.mubr.bf16.vlgmr.msra.gmra.mxu0 %v1361_v46 }
 0x4c4   :  { %v1585_v11 = vpop.f32.mrf.mxu1 }
 0x4c6   :  { %v1671_v47 = vpop.f32.mrf.mxu1 }
 0x4c8   :  { %v1588_v33 = vpop.f32.mrf.mxu1 }
 0x4ca   :  { %v1638_v27 = vpop.f32.mrf.mxu0  ;;  %v1672_v0 = vpop.f32.mrf.mxu1 }
 0x4cc   :  { %v1639_v16 = vpop.f32.mrf.mxu0 }
 0x4cd   :  { %v1640_v45 = vadd.f32 %v1639_v16, %v1638_v27 }
 0x4ce   :  { %v1641_v32 = vpop.f32.mrf.mxu0 }
 0x4cf   :  { %v1546_v17 = vadd.f32 %v1640_v45, %v1597_v39 }
 0x4d0   :  { %v1642_v29 = vpop.f32.mrf.mxu0 }
 0x4d1   :  { %v1586_v24 = vadd.f32 %v1585_v11, %v1546_v17 }
 0x4d3   :  { %v1591_v5 = vmax.f32 %v1586_v24, 0.0 }
 0x4d5   :  { %1592 = vst [vmem:[%s2441_s4] sm:$0xff] %v1591_v5 }

// kernel: text_model_forward.6
= control target key start
LH: loop header
LB: loop body
LE: loop exit
PB: predicated region body
PF: predicated region fallthrough
CT: control target
= control target key end

     0   :  { %v4659_v0 = vmov 0.0   ;;  %v4660_v2 = vmov 0   ;;  %vm4661_vm0 = vmmov 0   ;;  %vm70_vm1 = vcmask 1045504   ;;  %s6134_s3 = inlined_call_operand.vmem [shape: bf16[128,384], index: 3, kind: input, shape index: {}]   ;;  %s6135_s2 = inlined_call_operand.vmem [shape: bf16[300,384], index: 2, kind: input, shape index: {}]   ;;  %s6136_s1 = inlined_call_operand.vmem [shape: bf16[8,6,128], index: 1, kind: input, shape index: {}]   ;;  %s6137_s0 = inlined_call_operand.vmem [shape: bf16[8,6,300], index: 0, kind: input, shape index: {}]   ;;  %s6138_s4 = inlined_call_operand.vmem [shape: bf16[384,768], index: 4, kind: input, shape index: {}]   ;;  %s6139_s6 = inlined_call_operand.vmem [shape: bf16[384,768], index: 6, kind: input, shape index: {}]   ;;  %s6140_s5 = inlined_call_operand.vmem [shape: f32[1,768], index: 5, kind: input, shape index: {}]   ;;  %s6141_s7 = inlined_call_operand.vmem [shape: f32[1,768], index: 7, kind: input, shape index: {}]   ;;  %s6142_s8 = inlined_call_operand.vmem [shape: bf16[8,384], index: 8, kind: output, shape index: {}]  }
   0x1   :  { %4062 = vmatprep.subr.bf16.mxu1 %v4659_v0  ;;  %v4095_v1 = vld [vmem:[%s6134_s3 + $0xac] ss:$12 sps:$4 sm:$0xff]   ;;  %677 = vmatprep.mubr.bf16.mxu0 %v4660_v2  ;;  %v4097_v3 = vld [vmem:[%s6134_s3 + $0xb0] ss:$12 sps:$4 sm:$0xff]   ;;  %v4098_v4 = vld [vmem:[%s6134_s3 + $0xa8] ss:$12 sps:$4 sm:$0xff]  }
   0x2   :  { %4078 = vmatprep.mubr.msk.bf16.mxu1 %vm4661_vm0, %v4659_v0  ;;  %645 = vmatprep.subr.bf16.mxu0 %v4095_v1  ;;  %v4099_v5 = vld [vmem:[%s6134_s3 + $0x94] ss:$12 sps:$4 sm:$0xff]   ;;  %v4101_v6 = vld [vmem:[%s6134_s3 + $0x98] ss:$12 sps:$4 sm:$0xff]   ;;  %v4102_v7 = vld [vmem:[%s6134_s3 + $0x90] ss:$12 sps:$4 sm:$0xff]  }
   0x3   :  { %4063 = vmatpush3.bf16.msra.mxu1 %v4097_v3  ;;  %646 = vmatpush1.bf16.msra.mxu0 %v4098_v4  ;;  %v4103_v8 = vld [vmem:[%s6134_s3 + $0x7c] ss:$12 sps:$4 sm:$0xff]   ;;  %v4105_v9 = vld [vmem:[%s6134_s3 + $0x80] ss:$12 sps:$4 sm:$0xff]   ;;  %v4106_v10 = vld [vmem:[%s6134_s3 + $0x78] ss:$12 sps:$4 sm:$0xff]  }
   0x4   :  { %4064 = vmatprep.subr.bf16.mxu1 %v4659_v0  ;;  %647 = vmatprep.subr.bf16.mxu0 %v4099_v5  ;;  %v4107_v11 = vld [vmem:[%s6134_s3 + $0x64] ss:$12 sps:$4 sm:$0xff]   ;;  %v4109_v12 = vld [vmem:[%s6134_s3 + $0x68] ss:$12 sps:$4 sm:$0xff]   ;;  %v4110_v13 = vld [vmem:[%s6134_s3 + $0x60] ss:$12 sps:$4 sm:$0xff]  }
   0x5   :  { %v4111_v14 = vld [vmem:[%s6134_s3 + $0x4c] ss:$12 sps:$4 sm:$0xff]   ;;  %v4113_v15 = vld [vmem:[%s6134_s3 + $0x50] ss:$12 sps:$4 sm:$0xff]   ;;  %v4114_v16 = vld [vmem:[%s6134_s3 + $0x48] ss:$12 sps:$4 sm:$0xff]  }
   0x6   :  { %v4115_v17 = vld [vmem:[%s6134_s3 + $0x34] ss:$12 sps:$4 sm:$0xff]   ;;  %v4117_v18 = vld [vmem:[%s6134_s3 + $0x38] ss:$12 sps:$4 sm:$0xff]   ;;  %v4118_v19 = vld [vmem:[%s6134_s3 + $0x30] ss:$12 sps:$4 sm:$0xff]  }
   0x7   :  { %4065 = vmatpush3.bf16.msra.mxu1 %v4101_v6  ;;  %648 = vmatpush1.bf16.msra.mxu0 %v4102_v7  ;;  %v4119_v20 = vld [vmem:[%s6134_s3 + $0x1c] ss:$12 sps:$4 sm:$0xff]   ;;  %v289_v21 = vld [vmem:[%s6136_s1] sm:$0x7]  ;;  %v290_v22 = vld [vmem:[%s6136_s1 + $0x4] sm:$0x7] }
   0x8   :  { %4066 = vmatprep.subr.bf16.mxu1 %v4659_v0  ;;  %649 = vmatprep.subr.bf16.mxu0 %v4103_v8  ;;  %v291_v23 = vld [vmem:[%s6136_s1 + $0x8] sm:$0x7]  ;;  %v292_v24 = vld [vmem:[%s6136_s1 + $0xc] sm:$0x7]  ;;  %v293_v25 = vld [vmem:[%s6136_s1 + $0x10] sm:$0x7]  ;;  %v297_v27 = vunpack.c.l.bf16 %v289_v21  ;;  %v298_v28 = vunpack.c.l.bf16 %v290_v22 }
   0x9   :  { %v294_v26 = vld [vmem:[%s6136_s1 + $0x14] sm:$0x7]  ;;  %v299_v29 = vunpack.c.l.bf16 %v291_v23  ;;  %v295_v30 = vld [vmem:[%s6136_s1 + $0x18] sm:$0x7]  ;;  %v296_v31 = vld [vmem:[%s6136_s1 + $0x1c] sm:$0x7]  ;;  %v300_v32 = vunpack.c.l.bf16 %v292_v24  ;;  %v301_v33 = vunpack.c.l.bf16 %v293_v25 }
   0xa   :  { %v302_v34 = vunpack.c.l.bf16 %v294_v26  ;;  %v4121_v35 = vld [vmem:[%s6134_s3 + $0x20] ss:$12 sps:$4 sm:$0xff]   ;;  %v4122_v36 = vld [vmem:[%s6134_s3 + $0x18] ss:$12 sps:$4 sm:$0xff]   ;;  %v303_v37 = vunpack.c.l.bf16 %v295_v30  ;;  %v304_v38 = vunpack.c.l.bf16 %v296_v31  ;;  %v305_v39 = vsel %vm70_vm1, %v297_v27, 0.0 }
   0xb   :  { %4067 = vmatpush3.bf16.msra.mxu1 %v4105_v9  ;;  %650 = vmatpush1.bf16.msra.mxu0 %v4106_v10  ;;  %v312_v40 = vsel %vm70_vm1, %v298_v28, 0.0  ;;  %v306_v41 = vrot.slane %v305_v39, 4  ;;  %v319_v43 = vsel %vm70_vm1, %v299_v29, 0.0  ;;  %v326_v44 = vsel %vm70_vm1, %v300_v32, 0.0  ;;  %v4123_v45 = vld [vmem:[%s6134_s3 + $0x4] ss:$12 sps:$4 sm:$0xff]  }
   0xc   :  { %4068 = vmatprep.subr.bf16.mxu1 %v4659_v0  ;;  %651 = vmatprep.subr.bf16.mxu0 %v4107_v11  ;;  %v313_v42 = vrot.slane %v312_v40, 4  ;;  %v320_v46 = vrot.slane %v319_v43, 4  ;;  %v327_v47 = vrot.slane %v326_v44, 4  ;;  %v333_v48 = vsel %vm70_vm1, %v301_v33, 0.0  ;;  %v4125_v55 = vld [vmem:[%s6134_s3 + $0x8] ss:$12 sps:$4 sm:$0xff]  }
   0xd   :  { %v340_v49 = vsel %vm70_vm1, %v302_v34, 0.0  ;;  %v4127_v50 = vld [vmem:[%s6135_s2 + $0x1b4] ss:$12 sps:$4 sm:$0x3f]   ;;  %v307_v51 = vadd.f32 %v306_v41, %v305_v39  ;;  %v334_v53 = vrot.slane %v333_v48, 4  ;;  %v347_v58 = vsel %vm70_vm1, %v303_v37, 0.0 }
   0xe   :  { %v314_v52 = vadd.f32 %v313_v42, %v312_v40  ;;  %v341_v54 = vrot.slane %v340_v49, 4  ;;  %v321_v56 = vadd.f32 %v320_v46, %v319_v43  ;;  %v328_v57 = vadd.f32 %v327_v47, %v326_v44  ;;  %v4126_v60 = vld [vmem:[%s6134_s3] ss:$12 sps:$4 sm:$0xff]  }
   0xf   :  { %4069 = vmatpush3.bf16.msra.mxu1 %v4109_v12  ;;  %652 = vmatpush1.bf16.msra.mxu0 %v4110_v13  ;;  %v354_v59 = vsel %vm70_vm1, %v304_v38, 0.0  ;;  %v308_v61 = vrot.slane %v307_v51, 2  ;;  %v335_v63 = vadd.f32 %v334_v53, %v333_v48  ;;  %v4131_v3 = vld [vmem:[%s6135_s2 + $0xac] ss:$12 sps:$4 sm:$0xff]   ;;  %v348_v6 = vrot.slane %v347_v58, 4 }
  0x10   :  { %4070 = vmatprep.subr.bf16.mxu1 %v4659_v0  ;;  %653 = vmatprep.subr.bf16.mxu0 %v4111_v14  ;;  %v315_v62 = vrot.slane %v314_v52, 2  ;;  %v342_v1 = vadd.f32 %v341_v54, %v340_v49  ;;  %v322_v4 = vrot.slane %v321_v56, 2  ;;  %v329_v5 = vrot.slane %v328_v57, 2 }
  0x11   :  { %v355_v7 = vrot.slane %v354_v59, 4  ;;  %v309_v8 = vadd.f32 %v308_v61, %v307_v51  ;;  %v336_v10 = vrot.slane %v335_v63, 2  ;;  %v349_v14 = vadd.f32 %v348_v6, %v347_v58  ;;  %v35_v51 = vld [vmem:[%s6137_s0 + $0x20] sm:$0x7] }
  0x12   :  { %v316_v9 = vadd.f32 %v315_v62, %v314_v52  ;;  %v343_v11 = vrot.slane %v342_v1, 2  ;;  %v323_v12 = vadd.f32 %v322_v4, %v321_v56  ;;  %v330_v13 = vadd.f32 %v329_v5, %v328_v57  ;;  %v37_v52 = vld [vmem:[%s6137_s0 + $0x2c] sm:$0x7]  ;;  %v39_v57 = vld [vmem:[%s6137_s0 + $0x38] sm:$0x7] }
  0x13   :  { %4071 = vmatpush3.bf16.msra.mxu1 %v4113_v15  ;;  %654 = vmatpush1.bf16.msra.mxu0 %v4114_v16  ;;  %v356_v15 = vadd.f32 %v355_v7, %v354_v59  ;;  %vm501_vm2 = vcmask 1041409   ;;  %v310_v16 = vrot.slane %v309_v8, 1  ;;  %vm503_vm3 = vcmask 1042434   ;;  %v41_v62 = vld [vmem:[%s6137_s0 + $0x44] sm:$0x7] }
  0x14   :  { %4072 = vmatprep.subr.bf16.mxu1 %v4659_v0  ;;  %655 = vmatprep.subr.bf16.mxu0 %v4115_v17  ;;  %v317_v17 = vrot.slane %v316_v9, 1  ;;  %v331_v21 = vrot.slane %v330_v13, 1  ;;  %v350_v22 = vrot.slane %v349_v14, 2  ;;  %vm505_vm4 = vcmask 1043459  }
  0x15   :  { %v357_v23 = vrot.slane %v356_v15, 2  ;;  %v311_v24 = vadd.f32 %v310_v16, %v309_v8  ;;  %vm507_vm5 = vcmask 1044484   ;;  %vm509_vm6 = vcmask 1045509   ;;  %v43_v8 = vld [vmem:[%s6137_s0 + $0x50] sm:$0x7] }
  0x16   :  { %v318_v25 = vadd.f32 %v317_v17, %v316_v9  ;;  %v332_v29 = vadd.f32 %v331_v21, %v330_v13  ;;  %v351_v30 = vadd.f32 %v350_v22, %v349_v14  ;;  %vm511_vm7 = vcmask 1046534   ;;  %v45_v9 = vld [vmem:[%s6137_s0 + $0x5c] sm:$0x7] }
  0x17   :  { %4073 = vmatpush3.bf16.msra.mxu1 %v4117_v18  ;;  %656 = vmatpush1.bf16.msra.mxu0 %v4118_v19  ;;  %v337_v18 = vadd.f32 %v336_v10, %v335_v63  ;;  %v344_v19 = vadd.f32 %v343_v11, %v342_v1  ;;  %v358_v31 = vadd.f32 %v357_v23, %v356_v15  ;;  %v361_v34 = vmul.f32 0.16666667, %v311_v24 }
  0x18   :  { %4074 = vmatprep.subr.bf16.mxu1 %v4659_v0  ;;  %657 = vmatprep.subr.bf16.mxu0 %v4119_v20  ;;  %v324_v20 = vrot.slane %v323_v12, 1  ;;  %vm85_vm8 = vcmask 357376   ;;  %v352_v37 = vrot.slane %v351_v30, 1  ;;  %v364_v40 = vmul.f32 0.16666667, %v332_v29 }
  0x19   :  { %v338_v26 = vrot.slane %v337_v18, 1  ;;  %v345_v27 = vrot.slane %v344_v19, 1  ;;  %v359_v38 = vrot.slane %v358_v31, 1  ;;  %vm513_vm9 = vcmask 1047559  }
  0x1a   :  { %v325_v28 = vadd.f32 %v324_v20, %v323_v12  ;;  %v369_v43 = vpack.c.bf16 %v361_v34, %v361_v34  ;;  %v353_v46 = vadd.f32 %v352_v37, %v351_v30  ;;  %v372_v49 = vpack.c.bf16 %v364_v40, %v364_v40  ;;  %v4129_v20 = vld [vmem:[%s6135_s2 + $0xa8] ss:$12 sps:$4 sm:$0xff]  }
  0x1b   :  { %4075 = vmatpush3.bf16.msra.mxu1 %v4121_v35  ;;  %658 = vmatpush1.bf16.msra.mxu0 %v4122_v36  ;;  %v339_v32 = vadd.f32 %v338_v26, %v337_v18  ;;  %v346_v33 = vadd.f32 %v345_v27, %v344_v19  ;;  %v362_v35 = vmul.f32 0.16666667, %v318_v25  ;;  %v4132_v36 = vld [vmem:[%s6135_s2 + $0x1b0] ss:$12 sps:$4 sm:$0x3f]   ;;  %v360_v47 = vadd.f32 %v359_v38, %v358_v31 }
  0x1c   :  { %4076 = vmatprep.subr.bf16.mxu1 %v4659_v0  ;;  %659 = vmatprep.subr.bf16.mxu0 %v4123_v45  ;;  %v363_v39 = vmul.f32 0.16666667, %v325_v28  ;;  %v31_v45 = vld [vmem:[%s6137_s0 + $0x8] sm:$0x7]  ;;  %v367_v58 = vmul.f32 0.16666667, %v353_v46  ;;  %v496_v61 = vunpack.c.l.b16 %v372_v49  ;;  %v54_v13 = vunpack.c.l.bf16 %v35_v51 }
  0x1d   :  { %v365_v41 = vmul.f32 0.16666667, %v339_v32  ;;  %v366_v42 = vmul.f32 0.16666667, %v346_v33  ;;  %v370_v44 = vpack.c.bf16 %v362_v35, %v362_v35  ;;  %v368_v59 = vmul.f32 0.16666667, %v360_v47 }
  0x1e   :  { %v371_v48 = vpack.c.bf16 %v363_v39, %v363_v39  ;;  %v1106_v4 = vsel %vm70_vm1, %v4132_v36, 0  ;;  %v375_v5 = vpack.c.bf16 %v367_v58, %v367_v58  ;;  %v48_v10 = vunpack.c.l.bf16 %v31_v45  ;;  %v4135_v25 = vld [vmem:[%s6135_s2 + $0x19c] ss:$12 sps:$4 sm:$0xff]   ;;  %v4138_v30 = vld [vmem:[%s6135_s2 + $0x94] ss:$12 sps:$4 sm:$0xff]  }
  0x1f   :  { %4077 = vmatpush3.bf16.msra.mxu1 %v4125_v55  ;;  %660 = vmatpush1.bf16.msra.mxu0 %v4126_v60  ;;  %v373_v53 = vpack.c.bf16 %v365_v41, %v365_v41  ;;  %v374_v54 = vpack.c.bf16 %v366_v42, %v366_v42  ;;  %v493_v55 = vunpack.c.l.b16 %v369_v43  ;;  %v494_v56 = vunpack.c.l.b16 %v370_v44  ;;  %v4133_v38 = vld [vmem:[%s6135_s2 + $0x198] ss:$12 sps:$4 sm:$0xff]   ;;  %v4136_v39 = vld [vmem:[%s6135_s2 + $0x90] ss:$12 sps:$4 sm:$0xff]   ;;  %v4139_v58 = vld [vmem:[%s6135_s2 + $0x180] ss:$12 sps:$4 sm:$0xff]  }
  0x20   :  { %3732 = vmatprep.subr.msk.bf16.mxu1 %vm70_vm1, %v4127_v50  ;;  %1114 = vmatprep.subr.bf16.mxu0 %v4131_v3  ;;  %v33_v50 = vld [vmem:[%s6137_s0 + $0x14] sm:$0x7]  ;;  %v495_v60 = vunpack.c.l.b16 %v371_v48  ;;  %v376_v6 = vpack.c.bf16 %v368_v59, %v368_v59  ;;  %v57_v14 = vunpack.c.l.bf16 %v37_v52  ;;  %v499_v15 = vunpack.c.l.b16 %v375_v5  ;;  %v4141_v52 = vld [vmem:[%s6135_s2 + $0x184] ss:$12 sps:$4 sm:$0xff]  }
  0x21   :  { %v497_v63 = vunpack.c.l.b16 %v373_v53  ;;  %v498_v1 = vunpack.c.l.b16 %v374_v54  ;;  %v502_v3 = vsel %vm501_vm2, %v494_v56, %v493_v55  ;;  %v51_v12 = vunpack.c.l.bf16 %v33_v50  ;;  %v4144_v53 = vld [vmem:[%s6135_s2 + $0x7c] ss:$12 sps:$4 sm:$0xff]   ;;  %v4142_v59 = vld [vmem:[%s6135_s2 + $0x78] ss:$12 sps:$4 sm:$0xff]  }
  0x22   :  { %v504_v7 = vsel %vm503_vm3, %v495_v60, %v502_v3  ;;  %v500_v16 = vunpack.c.l.b16 %v376_v6  ;;  %v60_v18 = vunpack.c.l.bf16 %v39_v57  ;;  %v63_v21 = vunpack.c.l.bf16 %v41_v62 }
  0x23   :  { %v506_v11 = vsel %vm505_vm4, %v496_v61, %v504_v7  ;;  %v66_v22 = vunpack.c.l.bf16 %v43_v8  ;;  %v69_v23 = vunpack.c.l.bf16 %v45_v9  ;;  %v86_v26 = vsel %vm85_vm8, %v48_v10, 0.0 }
  0x24   :  { %v508_v17 = vsel %vm507_vm5, %v497_v63, %v506_v11  ;;  %v107_v27 = vsel %vm85_vm8, %v51_v12, 0.0  ;;  %v128_v28 = vsel %vm85_vm8, %v54_v13, 0.0  ;;  %v87_v31 = vrot.slane %v86_v26, 4  ;;  %v4148_v11 = vld [vmem:[%s6135_s2 + $0x64] ss:$12 sps:$4 sm:$0xff]  }
  0x25   :  { %v510_v19 = vsel %vm509_vm6, %v498_v1, %v508_v17  ;;  %v108_v32 = vrot.slane %v107_v27, 4  ;;  %v129_v33 = vrot.slane %v128_v28, 4  ;;  %v149_v35 = vsel %vm85_vm8, %v57_v14, 0.0  ;;  %v4145_v1 = vld [vmem:[%s6135_s2 + $0x170] ss:$12 sps:$4 sm:$0xff]  }
  0x26   :  { %v512_v24 = vsel %vm511_vm7, %v499_v15, %v510_v19  ;;  %v170_v36 = vsel %vm85_vm8, %v60_v18, 0.0  ;;  %v191_v37 = vsel %vm85_vm8, %v63_v21, 0.0  ;;  %v88_v40 = vadd.f32 %v87_v31, %v86_v26 }
  0x27   :  { %v514_v29 = vsel %vm513_vm9, %v500_v16, %v512_v24  ;;  %v109_v41 = vadd.f32 %v108_v32, %v107_v27  ;;  %v130_v42 = vadd.f32 %v129_v33, %v128_v28  ;;  %v150_v43 = vrot.slane %v149_v35, 4  ;;  %v4146_v16 = vld [vmem:[%s6135_s2 + $0x60] ss:$12 sps:$4 sm:$0xff]  }
  0x28   :  { %v515_v34 = vpack.c.b16 %v514_v29, %v514_v29  ;;  %v171_v44 = vrot.slane %v170_v36, 4  ;;  %v192_v45 = vrot.slane %v191_v37, 4  ;;  %v212_v46 = vsel %vm85_vm8, %v66_v22, 0.0  ;;  %v4153_v33 = vld [vmem:[%s6135_s2 + $0x4c] ss:$12 sps:$4 sm:$0xff]  }
  0x29   :  { %v233_v47 = vsel %vm85_vm8, %v69_v23, 0.0  ;;  %v89_v48 = vrot.slane %v88_v40, 2  ;;  %v110_v49 = vrot.slane %v109_v41, 2  ;;  %v131_v50 = vrot.slane %v130_v42, 2 }
  0x2a   :  { %678 = vmatmul.mubr.bf16.vlgmr.msra.gmra.mxu0 %v515_v34  ;;  %4079 = vmatmul.mubr.bf16.vlgmr.msra.gmra.mxu1 %v515_v34  ;;  %v151_v51 = vadd.f32 %v150_v43, %v149_v35  ;;  %v172_v54 = vadd.f32 %v171_v44, %v170_v36  ;;  %v193_v55 = vadd.f32 %v192_v45, %v191_v37  ;;  %v213_v56 = vrot.slane %v212_v46, 4 }
  0x2b   :  { %1166 = vmatpush1.bf16.msra.mxu1 %v1106_v4  ;;  %1115 = vmatpush1.bf16.msra.mxu0 %v4129_v20  ;;  %v234_v57 = vrot.slane %v233_v47, 4  ;;  %v90_v60 = vadd.f32 %v89_v48, %v88_v40  ;;  %v111_v61 = vadd.f32 %v110_v49, %v109_v41  ;;  %v132_v62 = vadd.f32 %v131_v50, %v130_v42 }
  0x2c   :  { %1167 = vmatprep.subr.bf16.mxu1 %v4135_v25  ;;  %1116 = vmatprep.subr.bf16.mxu0 %v4138_v30  ;;  %v152_v63 = vrot.slane %v151_v51, 2  ;;  %v173_v3 = vrot.slane %v172_v54, 2  ;;  %v194_v4 = vrot.slane %v193_v55, 2  ;;  %v214_v5 = vadd.f32 %v213_v56, %v212_v46  ;;  %v4151_v46 = vld [vmem:[%s6135_s2 + $0x48] ss:$12 sps:$4 sm:$0xff]  }
  0x2d   :  { %1187 = vmatprep.mubr.bf16.mxu1 %v4660_v2  ;;  %v235_v6 = vadd.f32 %v234_v57, %v233_v47  ;;  %v91_v7 = vrot.slane %v90_v60, 1  ;;  %v112_v8 = vrot.slane %v111_v61, 1  ;;  %v133_v9 = vrot.slane %v132_v62, 1 }
  0x2e   :  { %v153_v10 = vadd.f32 %v152_v63, %v151_v51  ;;  %v174_v12 = vadd.f32 %v173_v3, %v172_v54  ;;  %v195_v13 = vadd.f32 %v194_v4, %v193_v55  ;;  %v215_v14 = vrot.slane %v214_v5, 2  ;;  %v4158_v51 = vld [vmem:[%s6135_s2 + $0x34] ss:$12 sps:$4 sm:$0xff]   ;;  %v4163_v63 = vld [vmem:[%s6135_s2 + $0x1c] ss:$12 sps:$4 sm:$0xff]  }
  0x2f   :  { %1168 = vmatpush1.bf16.msra.mxu1 %v4133_v38  ;;  %1117 = vmatpush1.bf16.msra.mxu0 %v4136_v39  ;;  %v236_v15 = vrot.slane %v235_v6, 2  ;;  %v92_v17 = vadd.f32 %v91_v7, %v90_v60  ;;  %v113_v18 = vadd.f32 %v112_v8, %v111_v61  ;;  %v134_v19 = vadd.f32 %v133_v9, %v132_v62  ;;  %v4161_v3 = vld [vmem:[%s6135_s2 + $0x18] ss:$12 sps:$4 sm:$0xff]  }
  0x30   :  { %1169 = vmatprep.subr.bf16.mxu1 %v4141_v52  ;;  %1118 = vmatprep.subr.bf16.mxu0 %v4144_v53  ;;  %v154_v20 = vrot.slane %v153_v10, 1  ;;  %v175_v21 = vrot.slane %v174_v12, 1  ;;  %v196_v22 = vrot.slane %v195_v13, 1  ;;  %v216_v23 = vadd.f32 %v215_v14, %v214_v5  ;;  %v4149_v5 = vld [vmem:[%s6135_s2 + $0xb0] ss:$12 sps:$4 sm:$0xff]  }
  0x31   :  { %v237_v24 = vadd.f32 %v236_v15, %v235_v6  ;;  %v243_v26 = vmul.f32 0.16666667, %v92_v17  ;;  %v246_v27 = vmul.f32 0.16666667, %v113_v18  ;;  %v249_v28 = vmul.f32 0.16666667, %v134_v19 }
  0x32   :  { %v155_v25 = vadd.f32 %v154_v20, %v153_v10  ;;  %v176_v29 = vadd.f32 %v175_v21, %v174_v12  ;;  %v197_v30 = vadd.f32 %v196_v22, %v195_v13  ;;  %v217_v31 = vrot.slane %v216_v23, 1  ;;  %v4168_v6 = vld [vmem:[%s6135_s2 + $0x4] ss:$12 sps:$4 sm:$0xff]   ;;  %v4971_v15 = vld [vmem:[%s6137_s0 + $0x3c] sm:$0x77] }
  0x33   :  { %1170 = vmatpush1.bf16.msra.mxu1 %v4139_v58  ;;  %1119 = vmatpush1.bf16.msra.mxu0 %v4142_v59  ;;  %v238_v32 = vrot.slane %v237_v24, 1  ;;  %v267_v35 = vpack.c.bf16 %v243_v26, %v243_v26  ;;  %v270_v36 = vpack.c.bf16 %v246_v27, %v246_v27  ;;  %v273_v37 = vpack.c.bf16 %v249_v28, %v249_v28  ;;  %v4156_v59 = vld [vmem:[%s6135_s2 + $0x30] ss:$12 sps:$4 sm:$0xff]   ;;  %v4150_v8 = vld [vmem:[%s6135_s2 + $0x158] ss:$12 sps:$4 sm:$0xff]  }
  0x34   :  { %4036 = vmatprep.subr.bf16.mxu1 %v4145_v1  ;;  %1120 = vmatprep.subr.bf16.mxu0 %v4148_v11  ;;  %v252_v34 = vmul.f32 0.16666667, %v155_v25  ;;  %v218_v38 = vadd.f32 %v217_v31, %v216_v23  ;;  %v255_v40 = vmul.f32 0.16666667, %v176_v29  ;;  %v258_v41 = vmul.f32 0.16666667, %v197_v30 }
  0x35   :  { %v239_v39 = vadd.f32 %v238_v32, %v237_v24  ;;  %v752_v43 = vunpack.c.l.b16 %v267_v35  ;;  %v755_v44 = vunpack.c.l.b16 %v270_v36  ;;  %v758_v45 = vunpack.c.l.b16 %v273_v37  ;;  %v4945_v9 = vld [vmem:[%s6137_s0] sm:$0x77]  ;;  %v4950_v10 = vld [vmem:[%s6137_s0 + $0xc] sm:$0x77]  ;;  %v4955_v11 = vld [vmem:[%s6137_s0 + $0x18] sm:$0x77] }
  0x36   :  { %v276_v42 = vpack.c.bf16 %v252_v34, %v252_v34  ;;  %v261_v47 = vmul.f32 0.16666667, %v218_v38  ;;  %v279_v49 = vpack.c.bf16 %v255_v40, %v255_v40  ;;  %v282_v50 = vpack.c.bf16 %v258_v41, %v258_v41  ;;  %v4961_v13 = vld [vmem:[%s6137_s0 + $0x24] sm:$0x77]  ;;  %v4966_v14 = vld [vmem:[%s6137_s0 + $0x30] sm:$0x77] }
  0x37   :  { %1121 = vmatpush1.bf16.msra.mxu0 %v4146_v16  ;;  %v264_v48 = vmul.f32 0.16666667, %v239_v39  ;;  %v788_v53 = vsel %vm501_vm2, %v755_v44, %v752_v43  ;;  %vm1101_vm10 = vcmask 359424   ;;  %v46_v16 = vunpack.c.l.bf16 %v4945_v9  ;;  %v4981_v20 = vld [vmem:[%s6137_s0 + $0x48] sm:$0x77] }
  0x38   :  { %1122 = vmatprep.subr.bf16.mxu0 %v4153_v33  ;;  %v761_v52 = vunpack.c.l.b16 %v276_v42  ;;  %v285_v54 = vpack.c.bf16 %v261_v47, %v261_v47  ;;  %v764_v56 = vunpack.c.l.b16 %v279_v49  ;;  %v767_v57 = vunpack.c.l.b16 %v282_v50  ;;  %v4986_v21 = vld [vmem:[%s6137_s0 + $0x54] sm:$0x77]  ;;  %v4166_v26 = vld [vmem:[%s6135_s2] ss:$12 sps:$4 sm:$0xff]  }
  0x39   :  { %v288_v55 = vpack.c.bf16 %v264_v48, %v264_v48  ;;  %v789_v58 = vsel %vm503_vm3, %v758_v45, %v788_v53  ;;  %v47_v17 = vunpack.c.h.bf16 %v4945_v9  ;;  %v49_v18 = vunpack.c.l.bf16 %v4950_v10  ;;  %v4154_v25 = vld [vmem:[%s6135_s2 + $0x98] ss:$12 sps:$4 sm:$0xff]   ;;  %v4155_v40 = vld [vmem:[%s6135_s2 + $0x140] ss:$12 sps:$4 sm:$0xff]  }
  0x3a   :  { %v770_v60 = vunpack.c.l.b16 %v285_v54  ;;  %v790_v62 = vsel %vm505_vm4, %v761_v52, %v789_v58  ;;  %v50_v22 = vunpack.c.h.bf16 %v4950_v10  ;;  %v52_v23 = vunpack.c.l.bf16 %v4955_v11  ;;  %v4173_v35 = vld [vmem:[%s6135_s2 + $0x16c] ss:$12 sps:$4 sm:$0xff]  }
  0x3b   :  { %1123 = vmatpush1.bf16.msra.mxu0 %v4151_v46  ;;  %v773_v61 = vunpack.c.l.b16 %v288_v55  ;;  %v791_v1 = vsel %vm507_vm5, %v764_v56, %v790_v62  ;;  %v53_v24 = vunpack.c.h.bf16 %v4955_v11  ;;  %v55_v27 = vunpack.c.l.bf16 %v4961_v13  ;;  %v4159_v45 = vld [vmem:[%s6135_s2 + $0x80] ss:$12 sps:$4 sm:$0xff]   ;;  %v4171_v46 = vld [vmem:[%s6135_s2 + $0x168] ss:$12 sps:$4 sm:$0xff]   ;;  %v4181_v9 = vld [vmem:[%s6135_s2 + $0x138] ss:$12 sps:$4 sm:$0xff]  }
  0x3c   :  { %1124 = vmatprep.subr.bf16.mxu0 %v4158_v51  ;;  %v792_v4 = vsel %vm509_vm6, %v767_v57, %v791_v1  ;;  %v56_v28 = vunpack.c.h.bf16 %v4961_v13  ;;  %v58_v29 = vunpack.c.l.bf16 %v4966_v14  ;;  %v59_v30 = vunpack.c.h.bf16 %v4966_v14  ;;  %v4178_v55 = vld [vmem:[%s6135_s2 + $0x154] ss:$12 sps:$4 sm:$0xff]   ;;  %v4193_v11 = vld [vmem:[%s6135_s2 + $0xf0] ss:$12 sps:$4 sm:$0xff]   ;;  %v4197_v14 = vld [vmem:[%s6135_s2 + $0xd8] ss:$12 sps:$4 sm:$0xff]  }
  0x3d   :  { %v793_v7 = vsel %vm511_vm7, %v770_v60, %v792_v4  ;;  %v61_v31 = vunpack.c.l.bf16 %v4971_v15  ;;  %v62_v32 = vunpack.c.h.bf16 %v4971_v15  ;;  %v64_v33 = vunpack.c.l.bf16 %v4981_v20  ;;  %v4160_v60 = vld [vmem:[%s6135_s2 + $0x128] ss:$12 sps:$4 sm:$0xff]  }
  0x3e   :  { %v794_v12 = vsel %vm513_vm9, %v773_v61, %v793_v7  ;;  %v65_v34 = vunpack.c.h.bf16 %v4981_v20  ;;  %v67_v36 = vunpack.c.l.bf16 %v4986_v21  ;;  %v68_v37 = vunpack.c.h.bf16 %v4986_v21  ;;  %v4199_v13 = vld [vmem:[%s6135_s2 + $0xdc] ss:$12 sps:$4 sm:$0xff]  }
  0x3f   :  { %1125 = vmatpush1.bf16.msra.mxu0 %v4156_v59  ;;  %v4976_v19 = vpack.c.b16 %v794_v12, %v794_v12  ;;  %v78_v38 = vsel %vm70_vm1, %v47_v17, 0.0  ;;  %v100_v39 = vsel %vm70_vm1, %v50_v22, 0.0  ;;  %v121_v43 = vsel %vm70_vm1, %v53_v24, 0.0 }
  0x40   :  { %1126 = vmatprep.subr.bf16.mxu0 %v4163_v63  ;;  %v79_v41 = vrot.slane %v78_v38, 4  ;;  %v101_v42 = vrot.slane %v100_v39, 4  ;;  %v142_v44 = vsel %vm70_vm1, %v56_v28, 0.0  ;;  %v122_v47 = vrot.slane %v121_v43, 4 }
  0x41   :  { %3733 = vmatmul.mubr.msk.bf16.vlgmr.msra.gmra.mxu1 %vm1101_vm10, %v4976_v19  ;;  %v143_v48 = vrot.slane %v142_v44, 4  ;;  %v163_v49 = vsel %vm70_vm1, %v59_v30, 0.0  ;;  %v184_v50 = vsel %vm70_vm1, %v62_v32, 0.0  ;;  %v205_v58 = vsel %vm70_vm1, %v65_v34, 0.0  ;;  %v4165_v34 = vld [vmem:[%s6135_s2 + $0x110] ss:$12 sps:$4 sm:$0xff]  }
  0x42   :  { %4037 = vmatpush3.bf16.msra.mxu1 %v4149_v5  ;;  %v80_v51 = vadd.f32 %v79_v41, %v78_v38  ;;  %v102_v52 = vadd.f32 %v101_v42, %v100_v39  ;;  %v164_v53 = vrot.slane %v163_v49, 4  ;;  %v185_v54 = vrot.slane %v184_v50, 4 }
  0x43   :  { %1127 = vmatpush1.bf16.msra.mxu0 %v4161_v3  ;;  %4038 = vmatprep.subr.bf16.mxu1 %v4150_v8  ;;  %v123_v56 = vadd.f32 %v122_v47, %v121_v43  ;;  %v144_v57 = vadd.f32 %v143_v48, %v142_v44  ;;  %v226_v59 = vsel %vm70_vm1, %v68_v37, 0.0  ;;  %v4164_v3 = vld [vmem:[%s6135_s2 + $0x68] ss:$12 sps:$4 sm:$0xff]   ;;  %v4176_v8 = vld [vmem:[%s6135_s2 + $0x150] ss:$12 sps:$4 sm:$0xff]   ;;  %v5047_v32 = vsel %vm70_vm1, %v46_v16, 0.0 }
  0x44   :  { %1128 = vmatprep.subr.bf16.mxu0 %v4168_v6  ;;  %v81_v61 = vrot.slane %v80_v51, 2  ;;  %v103_v62 = vrot.slane %v102_v52, 2  ;;  %v165_v63 = vadd.f32 %v164_v53, %v163_v49  ;;  %v186_v1 = vadd.f32 %v185_v54, %v184_v50  ;;  %v4169_v47 = vld [vmem:[%s6135_s2 + $0x50] ss:$12 sps:$4 sm:$0xff]   ;;  %v4170_v53 = vld [vmem:[%s6135_s2 + $0xf8] ss:$12 sps:$4 sm:$0xff]  }
  0x45   :  { %v124_v4 = vrot.slane %v123_v56, 2  ;;  %v145_v5 = vrot.slane %v144_v57, 2  ;;  %v206_v6 = vrot.slane %v205_v58, 4  ;;  %v227_v7 = vrot.slane %v226_v59, 4 }
  0x46   :  { %4039 = vmatpush3.bf16.msra.mxu1 %v4154_v25  ;;  %v82_v12 = vadd.f32 %v81_v61, %v80_v51  ;;  %v104_v17 = vadd.f32 %v103_v62, %v102_v52  ;;  %v166_v22 = vrot.slane %v165_v63, 2  ;;  %v187_v24 = vrot.slane %v186_v1, 2  ;;  %v4183_v25 = vld [vmem:[%s6135_s2 + $0x13c] ss:$12 sps:$4 sm:$0xff]   ;;  %v4187_v52 = vld [vmem:[%s6135_s2 + $0x124] ss:$12 sps:$4 sm:$0xff]  }
  0x47   :  { %1129 = vmatpush1.bf16.msra.mxu0 %v4166_v26  ;;  %4040 = vmatprep.subr.bf16.mxu1 %v4155_v40  ;;  %v125_v26 = vadd.f32 %v124_v4, %v123_v56  ;;  %v146_v28 = vadd.f32 %v145_v5, %v144_v57  ;;  %v207_v30 = vadd.f32 %v206_v6, %v205_v58  ;;  %v4185_v4 = vld [vmem:[%s6135_s2 + $0x120] ss:$12 sps:$4 sm:$0xff]   ;;  %v4174_v5 = vld [vmem:[%s6135_s2 + $0x38] ss:$12 sps:$4 sm:$0xff]   ;;  %v114_v10 = vsel %vm70_vm1, %v52_v23, 0.0 }
  0x48   :  { %1130 = vmatprep.subr.bf16.mxu0 %v4173_v35  ;;  %v83_v35 = vrot.slane %v82_v12, 1  ;;  %v105_v37 = vrot.slane %v104_v17, 1  ;;  %v167_v38 = vadd.f32 %v166_v22, %v165_v63  ;;  %v188_v39 = vadd.f32 %v187_v24, %v186_v1  ;;  %v4175_v22 = vld [vmem:[%s6135_s2 + $0xe0] ss:$12 sps:$4 sm:$0xff]   ;;  %v4184_v23 = vld [vmem:[%s6135_s2 + $0x8] ss:$12 sps:$4 sm:$0xff]  }
  0x49   :  { %v126_v40 = vrot.slane %v125_v26, 1  ;;  %v147_v41 = vrot.slane %v146_v28, 1  ;;  %v208_v42 = vrot.slane %v207_v30, 2  ;;  %v228_v43 = vadd.f32 %v227_v7, %v226_v59 }
  0x4a   :  { %4041 = vmatpush3.bf16.msra.mxu1 %v4159_v45  ;;  %v84_v16 = vadd.f32 %v83_v35, %v82_v12  ;;  %v106_v44 = vadd.f32 %v105_v37, %v104_v17  ;;  %v168_v45 = vrot.slane %v167_v38, 1  ;;  %v4191_v17 = vld [vmem:[%s6135_s2 + $0x10c] ss:$12 sps:$4 sm:$0xff]   ;;  %v219_v20 = vsel %vm70_vm1, %v67_v36, 0.0 }
  0x4b   :  { %1131 = vmatpush2.bf16.msra.mxu0 %v4171_v46  ;;  %4042 = vmatprep.subr.bf16.mxu1 %v4160_v60  ;;  %v189_v46 = vrot.slane %v188_v39, 1  ;;  %v127_v48 = vadd.f32 %v126_v40, %v125_v26  ;;  %v148_v49 = vadd.f32 %v147_v41, %v146_v28  ;;  %v209_v50 = vadd.f32 %v208_v42, %v207_v30 }
  0x4c   :  { %1132 = vmatprep.subr.bf16.mxu0 %v4178_v55  ;;  %v229_v51 = vrot.slane %v228_v43, 2  ;;  %v169_v54 = vadd.f32 %v168_v45, %v167_v38  ;;  %v242_v56 = vmul.f32 0.16666667, %v84_v16  ;;  %v245_v57 = vmul.f32 0.16666667, %v106_v44 }
  0x4d   :  { %v190_v55 = vadd.f32 %v189_v46, %v188_v39  ;;  %v210_v58 = vrot.slane %v209_v50, 1  ;;  %v248_v60 = vmul.f32 0.16666667, %v127_v48  ;;  %v251_v61 = vmul.f32 0.16666667, %v148_v49 }
  0x4e   :  { %4043 = vmatpush3.bf16.msra.mxu1 %v4164_v3  ;;  %v230_v59 = vadd.f32 %v229_v51, %v228_v43  ;;  %v254_v62 = vmul.f32 0.16666667, %v169_v54  ;;  %v266_v1 = vpack.c.bf16 %v242_v56, %v242_v56  ;;  %v269_v3 = vpack.c.bf16 %v245_v57, %v245_v57  ;;  %v4179_v38 = vld [vmem:[%s6135_s2 + $0x20] ss:$12 sps:$4 sm:$0xff]   ;;  %v4189_v43 = vld [vmem:[%s6135_s2 + $0x108] ss:$12 sps:$4 sm:$0xff]  }
  0x4f   :  { %1133 = vmatpush2.bf16.msra.mxu0 %v4176_v8  ;;  %4044 = vmatprep.subr.bf16.mxu1 %v4165_v34  ;;  %v257_v63 = vmul.f32 0.16666667, %v190_v55  ;;  %v211_v6 = vadd.f32 %v210_v58, %v209_v50  ;;  %v272_v8 = vpack.c.bf16 %v248_v60, %v248_v60  ;;  %v275_v12 = vpack.c.bf16 %v251_v61, %v251_v61  ;;  %v4195_v46 = vld [vmem:[%s6135_s2 + $0xf4] ss:$12 sps:$4 sm:$0xff]  }
  0x50   :  { %1134 = vmatprep.subr.bf16.mxu0 %v4183_v25  ;;  %v231_v7 = vrot.slane %v230_v59, 1  ;;  %v278_v24 = vpack.c.bf16 %v254_v62, %v254_v62  ;;  %v751_v26 = vunpack.c.l.b16 %v266_v1  ;;  %v754_v28 = vunpack.c.l.b16 %v269_v3 }
  0x51   :  { %v281_v25 = vpack.c.bf16 %v257_v63, %v257_v63  ;;  %v260_v34 = vmul.f32 0.16666667, %v211_v6  ;;  %v757_v35 = vunpack.c.l.b16 %v272_v8  ;;  %v760_v37 = vunpack.c.l.b16 %v275_v12 }
  0x52   :  { %4045 = vmatpush3.bf16.msra.mxu1 %v4169_v47  ;;  %v232_v30 = vadd.f32 %v231_v7, %v230_v59  ;;  %v763_v39 = vunpack.c.l.b16 %v278_v24  ;;  %v781_v41 = vsel %vm501_vm2, %v754_v28, %v751_v26  ;;  %v72_v42 = vrot.slane %v5047_v32, 4  ;;  %v4180_v47 = vld [vmem:[%s6135_s2 + $0xc8] ss:$12 sps:$4 sm:$0xff]  }
  0x53   :  { %1135 = vmatpush2.bf16.msra.mxu0 %v4181_v9  ;;  %4046 = vmatprep.subr.bf16.mxu1 %v4170_v53  ;;  %v766_v40 = vunpack.c.l.b16 %v281_v25  ;;  %v284_v16 = vpack.c.bf16 %v260_v34, %v260_v34  ;;  %v782_v44 = vsel %vm503_vm3, %v757_v35, %v781_v41  ;;  %v93_v45 = vsel %vm70_vm1, %v49_v18, 0.0 }
  0x54   :  { %1136 = vmatprep.subr.bf16.mxu0 %v4187_v52  ;;  %v263_v9 = vmul.f32 0.16666667, %v232_v30  ;;  %v783_v48 = vsel %vm505_vm4, %v760_v37, %v782_v44  ;;  %v73_v49 = vadd.f32 %v72_v42, %v5047_v32  ;;  %v94_v50 = vrot.slane %v93_v45, 4 }
  0x55   :  { %v769_v51 = vunpack.c.l.b16 %v284_v16  ;;  %v784_v52 = vsel %vm507_vm5, %v763_v39, %v783_v48  ;;  %v115_v53 = vrot.slane %v114_v10, 4  ;;  %v135_v57 = vsel %vm70_vm1, %v55_v27, 0.0 }
  0x56   :  { %4047 = vmatpush3.bf16.msra.mxu1 %v4174_v5  ;;  %v287_v18 = vpack.c.bf16 %v263_v9, %v263_v9  ;;  %v785_v54 = vsel %vm509_vm6, %v766_v40, %v784_v52  ;;  %v74_v55 = vrot.slane %v73_v49, 2  ;;  %v95_v56 = vadd.f32 %v94_v50, %v93_v45  ;;  %v4200_v40 = vld [vmem:[%s6135_s2 + $0xc0] ss:$12 sps:$4 sm:$0xff]  }
  0x57   :  { %1137 = vmatpush2.bf16.msra.mxu0 %v4185_v4  ;;  %4048 = vmatprep.subr.bf16.mxu1 %v4175_v22  ;;  %v786_v58 = vsel %vm511_vm7, %v769_v51, %v785_v54  ;;  %v116_v59 = vadd.f32 %v115_v53, %v114_v10  ;;  %v136_v60 = vrot.slane %v135_v57, 4  ;;  %v156_v62 = vsel %vm70_vm1, %v58_v29, 0.0  ;;  %v4202_v22 = vld [vmem:[%s6135_s2 + $0xc4] ss:$12 sps:$4 sm:$0xff]  }
  0x58   :  { %1138 = vmatprep.subr.bf16.mxu0 %v4191_v17  ;;  %v772_v32 = vunpack.c.l.b16 %v287_v18  ;;  %v75_v27 = vadd.f32 %v74_v55, %v73_v49  ;;  %v96_v61 = vrot.slane %v95_v56, 2  ;;  %v177_v63 = vsel %vm70_vm1, %v61_v31, 0.0 }
  0x59   :  { %v117_v3 = vrot.slane %v116_v59, 2  ;;  %v137_v4 = vadd.f32 %v136_v60, %v135_v57  ;;  %v157_v5 = vrot.slane %v156_v62, 4  ;;  %v178_v12 = vrot.slane %v177_v63, 4 }
  0x5a   :  { %4049 = vmatpush3.bf16.msra.mxu1 %v4179_v38  ;;  %v787_v1 = vsel %vm513_vm9, %v772_v32, %v786_v58  ;;  %v76_v7 = vrot.slane %v75_v27, 1  ;;  %v97_v8 = vadd.f32 %v96_v61, %v95_v56  ;;  %v198_v31 = vsel %vm70_vm1, %v64_v33, 0.0 }
  0x5b   :  { %1139 = vmatpush2.bf16.msra.mxu0 %v4189_v43  ;;  %4050 = vmatprep.subr.bf16.mxu1 %v4180_v47  ;;  %v796_v6 = vpack.c.b16 %v787_v1, %v787_v1  ;;  %v118_v29 = vadd.f32 %v117_v3, %v116_v59  ;;  %v138_v17 = vrot.slane %v137_v4, 2  ;;  %v158_v15 = vadd.f32 %v157_v5, %v156_v62 }
  0x5c   :  { %1140 = vmatprep.subr.bf16.mxu0 %v4195_v46  ;;  %v77_v24 = vadd.f32 %v76_v7, %v75_v27  ;;  %v98_v25 = vrot.slane %v97_v8, 1  ;;  %v179_v26 = vadd.f32 %v178_v12, %v177_v63  ;;  %v199_v28 = vrot.slane %v198_v31, 4 }
  0x5d   :  { %1228 = vmatprep.mubr.bf16.mxu1 %v796_v6  ;;  %v119_v30 = vrot.slane %v118_v29, 1  ;;  %v139_v34 = vadd.f32 %v138_v17, %v137_v4  ;;  %v159_v35 = vrot.slane %v158_v15, 2  ;;  %1146 = vmatprep.mubr.bf16.mxu0 %v796_v6  ;;  %v220_v39 = vrot.slane %v219_v20, 4 }
  0x5e   :  { %4051 = vmatpush3.bf16.msra.mxu1 %v4184_v23  ;;  %v99_v33 = vadd.f32 %v98_v25, %v97_v8  ;;  %v180_v37 = vrot.slane %v179_v26, 2  ;;  %v200_v38 = vadd.f32 %v199_v28, %v198_v31  ;;  %v241_v9 = vmul.f32 0.16666667, %v77_v24  ;;  %v4188_v31 = vld [vmem:[%s6135_s2 + $0x1b8] ss:$12 sps:$4 sm:$0x3f]  }
  0x5f   :  { %1141 = vmatpush2.bf16.msra.mxu0 %v4193_v11  ;;  %4082 = vmatprep.subr.bf16.mxu1 %v4659_v0  ;;  %v120_v41 = vadd.f32 %v119_v30, %v118_v29  ;;  %v140_v42 = vrot.slane %v139_v34, 1  ;;  %v160_v43 = vadd.f32 %v159_v35, %v158_v15  ;;  %v221_v21 = vadd.f32 %v220_v39, %v219_v20  ;;  %v4192_v30 = vld [vmem:[%s6135_s2 + $0x1a0] ss:$12 sps:$4 sm:$0xff]   ;;  %v4203_v20 = vld [vmem:[%s6138_s4 + $0x150] ss:$24 sps:$4 sm:$0xff]  }
  0x60   :  { %1142 = vmatprep.subr.bf16.mxu0 %v4199_v13  ;;  %v181_v16 = vadd.f32 %v180_v37, %v179_v26  ;;  %v201_v44 = vrot.slane %v200_v38, 2  ;;  %v244_v45 = vmul.f32 0.16666667, %v99_v33  ;;  %v265_v48 = vpack.c.bf16 %v241_v9, %v241_v9  ;;  %v4205_v35 = vld [vmem:[%s6138_s4 + $0x154] ss:$24 sps:$4 sm:$0xff]  }
  0x61   :  { %v141_v36 = vadd.f32 %v140_v42, %v139_v34  ;;  %v161_v46 = vrot.slane %v160_v43, 1  ;;  %v247_v47 = vmul.f32 0.16666667, %v120_v41  ;;  %v222_v10 = vrot.slane %v221_v21, 2  ;;  %v4196_v34 = vld [vmem:[%s6135_s2 + $0x188] ss:$12 sps:$4 sm:$0xff]  }
  0x62   :  { %v182_v49 = vrot.slane %v181_v16, 1  ;;  %v202_v50 = vadd.f32 %v201_v44, %v200_v38  ;;  %v268_v18 = vpack.c.bf16 %v244_v45, %v244_v45  ;;  %v750_v54 = vunpack.c.l.b16 %v265_v48  ;;  %v4208_v33 = vld [vmem:[%s6138_s4 + $0x124] ss:$24 sps:$4 sm:$0xff]   ;;  %v4206_v37 = vld [vmem:[%s6138_s4 + $0x120] ss:$24 sps:$4 sm:$0xff]  }
  0x63   :  { %1143 = vmatpush2.bf16.msra.mxu0 %v4197_v14  ;;  %v162_v51 = vadd.f32 %v161_v46, %v160_v43  ;;  %v250_v52 = vmul.f32 0.16666667, %v141_v36  ;;  %v271_v53 = vpack.c.bf16 %v247_v47, %v247_v47  ;;  %v223_v57 = vadd.f32 %v222_v10, %v221_v21  ;;  %v4209_v38 = vld [vmem:[%s6138_s4 + $0xf0] ss:$24 sps:$4 sm:$0xff]   ;;  %v4226_v41 = vld [vmem:[%s6138_s4 + $0x424] ss:$24 sps:$4 sm:$0xff]  }
  0x64   :  { %1144 = vmatprep.subr.bf16.mxu0 %v4202_v22  ;;  %v183_v55 = vadd.f32 %v182_v49, %v181_v16  ;;  %v203_v56 = vrot.slane %v202_v50, 1  ;;  %v753_v11 = vunpack.c.l.b16 %v268_v18  ;;  %v1112_v28 = vsel %vm70_vm1, %v4188_v31, 0  ;;  %v4218_v39 = vld [vmem:[%s6138_s4 + $0x450] ss:$24 sps:$4 sm:$0xff]   ;;  %v4224_v42 = vld [vmem:[%s6138_s4 + $0x420] ss:$24 sps:$4 sm:$0xff]  }
  0x65   :  { %v253_v23 = vmul.f32 0.16666667, %v162_v51  ;;  %v274_v32 = vpack.c.bf16 %v250_v52, %v250_v52  ;;  %v756_v58 = vunpack.c.l.b16 %v271_v53  ;;  %v224_v60 = vrot.slane %v223_v57, 1  ;;  %v4212_v43 = vld [vmem:[%s6138_s4 + $0xc0] ss:$24 sps:$4 sm:$0xff]  }
  0x66   :  { %v204_v59 = vadd.f32 %v203_v56, %v202_v50  ;;  %v256_v13 = vmul.f32 0.16666667, %v183_v55  ;;  %v774_v27 = vsel %vm501_vm2, %v753_v11, %v750_v54  ;;  %v4217_v9 = vld [vmem:[%s6138_s4 + $0x94] ss:$24 sps:$4 sm:$0xff]   ;;  %v4230_v44 = vld [vmem:[%s6138_s4 + $0x3f0] ss:$24 sps:$4 sm:$0xff]  }
  0x67   :  { %1145 = vmatpush2.bf16.msra.mxu0 %v4200_v40  ;;  %v277_v61 = vpack.c.bf16 %v253_v23, %v253_v23  ;;  %v759_v62 = vunpack.c.l.b16 %v274_v32  ;;  %v775_v63 = vsel %vm503_vm3, %v756_v58, %v774_v27  ;;  %v225_v1 = vadd.f32 %v224_v60, %v223_v57  ;;  %v4220_v40 = vld [vmem:[%s6138_s4 + $0x454] ss:$24 sps:$4 sm:$0xff]   ;;  %v4215_v21 = vld [vmem:[%s6138_s4 + $0x90] ss:$24 sps:$4 sm:$0xff]   ;;  %v4238_v45 = vld [vmem:[%s6138_s4 + $0x3c4] ss:$24 sps:$4 sm:$0xff]  }
  0x68   :  { %v259_v3 = vmul.f32 0.16666667, %v204_v59  ;;  %v280_v4 = vpack.c.bf16 %v256_v13, %v256_v13  ;;  %2216 = vmatprep.subr.bf16.mxu0 %v4220_v40  ;;  %v4232_v16 = vld [vmem:[%s6138_s4 + $0x3f4] ss:$24 sps:$4 sm:$0xff]   ;;  %v4223_v36 = vld [vmem:[%s6138_s4 + $0x64] ss:$24 sps:$4 sm:$0xff]  }
  0x69   :  { %v762_v5 = vunpack.c.l.b16 %v277_v61  ;;  %v776_v6 = vsel %vm505_vm4, %v759_v62, %v775_v63  ;;  %v262_v7 = vmul.f32 0.16666667, %v225_v1  ;;  %v4236_v46 = vld [vmem:[%s6138_s4 + $0x3c0] ss:$24 sps:$4 sm:$0xff]   ;;  %v4229_v48 = vld [vmem:[%s6138_s4 + $0x34] ss:$24 sps:$4 sm:$0xff]  }
  0x6a   :  { %v283_v8 = vpack.c.bf16 %v259_v3, %v259_v3  ;;  %v765_v12 = vunpack.c.l.b16 %v280_v4  ;;  %v4221_v47 = vld [vmem:[%s6138_s4 + $0x60] ss:$24 sps:$4 sm:$0xff]   ;;  %v4227_v49 = vld [vmem:[%s6138_s4 + $0x30] ss:$24 sps:$4 sm:$0xff]   ;;  %v4235_v50 = vld [vmem:[%s6138_s4 + $0x4] ss:$24 sps:$4 sm:$0xff]  }
  0x6b   :  { %v777_v14 = vsel %vm507_vm5, %v762_v5, %v776_v6  ;;  %v286_v29 = vpack.c.bf16 %v262_v7, %v262_v7  ;;  %v4233_v10 = vld [vmem:[%s6138_s4] ss:$24 sps:$4 sm:$0xff]   ;;  %v4241_v18 = vld [vmem:[%s6138_s4 + $0x2d4] ss:$24 sps:$4 sm:$0xff]   ;;  %v4239_v51 = vld [vmem:[%s6138_s4 + $0x2d0] ss:$24 sps:$4 sm:$0xff]  }
  0x6c   :  { %v768_v17 = vunpack.c.l.b16 %v283_v8  ;;  %v778_v15 = vsel %vm509_vm6, %v765_v12, %v777_v14  ;;  %v4244_v52 = vld [vmem:[%s6138_s4 + $0x394] ss:$24 sps:$4 sm:$0xff]   ;;  %v4242_v53 = vld [vmem:[%s6138_s4 + $0x390] ss:$24 sps:$4 sm:$0xff]   ;;  %v4247_v54 = vld [vmem:[%s6138_s4 + $0x2a4] ss:$24 sps:$4 sm:$0xff]  }
  0x6d   :  { %v771_v22 = vunpack.c.l.b16 %v286_v29  ;;  %v4245_v55 = vld [vmem:[%s6138_s4 + $0x2a0] ss:$24 sps:$4 sm:$0xff]   ;;  %v4250_v56 = vld [vmem:[%s6138_s4 + $0x364] ss:$24 sps:$4 sm:$0xff]   ;;  %v4251_v11 = vld [vmem:[%s6138_s4 + $0x270] ss:$24 sps:$4 sm:$0xff]  }
  0x6e   :  { %v779_v24 = vsel %vm511_vm7, %v768_v17, %v778_v15  ;;  %v4248_v57 = vld [vmem:[%s6138_s4 + $0x360] ss:$24 sps:$4 sm:$0xff]   ;;  %v4253_v23 = vld [vmem:[%s6138_s4 + $0x274] ss:$24 sps:$4 sm:$0xff]   ;;  %v4254_v58 = vld [vmem:[%s6138_s4 + $0x330] ss:$24 sps:$4 sm:$0xff]  }
  0x6f   :  { %v780_v25 = vsel %vm513_vm9, %v771_v22, %v779_v24  ;;  %v4256_v32 = vld [vmem:[%s6138_s4 + $0x334] ss:$24 sps:$4 sm:$0xff]   ;;  %v4259_v59 = vld [vmem:[%s6138_s4 + $0x244] ss:$24 sps:$4 sm:$0xff]   ;;  %v4257_v60 = vld [vmem:[%s6138_s4 + $0x240] ss:$24 sps:$4 sm:$0xff]  }
  0x70   :  { %v795_v26 = vpack.c.b16 %v780_v25, %v780_v25  ;;  %v4262_v13 = vld [vmem:[%s6138_s4 + $0x304] ss:$24 sps:$4 sm:$0xff]   ;;  %v4260_v27 = vld [vmem:[%s6138_s4 + $0x300] ss:$24 sps:$4 sm:$0xff]   ;;  %v4265_v61 = vld [vmem:[%s6138_s4 + $0x214] ss:$24 sps:$4 sm:$0xff]  }
  0x71   :  { %v4263_v62 = vld [vmem:[%s6138_s4 + $0x210] ss:$24 sps:$4 sm:$0xff]   ;;  %v4268_v63 = vld [vmem:[%s6138_s4 + $0x15c] ss:$24 sps:$4 sm:$0xff]   ;;  %v4269_v3 = vld [vmem:[%s6138_s4 + $0x1e0] ss:$24 sps:$4 sm:$0xff]  }
  0x72   :  { %1229 = vmatmul.mubr.bf16.vlgmr.msra.gmra.mxu1 %v795_v26  ;;  %1147 = vmatmul.mubr.bf16.vlgmr.msra.gmra.mxu0 %v795_v26  ;;  %v4271_v1 = vld [vmem:[%s6138_s4 + $0x1e4] ss:$24 sps:$4 sm:$0xff]   ;;  %v4277_v4 = vld [vmem:[%s6138_s4 + $0x1b4] ss:$24 sps:$4 sm:$0xff]   ;;  %v4275_v5 = vld [vmem:[%s6138_s4 + $0x1b0] ss:$24 sps:$4 sm:$0xff]  }
  0x73   :  { %4083 = vmatpush3.bf16.msra.mxu1 %v1112_v28  ;;  %4088 = vmatprep.mubr.msk.bf16.mxu1 %vm4661_vm0, %v4659_v0  ;;  %v4283_v6 = vld [vmem:[%s6138_s4 + $0x184] ss:$24 sps:$4 sm:$0xff]   ;;  %v4281_v7 = vld [vmem:[%s6138_s4 + $0x180] ss:$24 sps:$4 sm:$0xff]  }
  0x74   :  { %4084 = vmatprep.subr.bf16.mxu1 %v4659_v0  ;;  %2248 = vmatprep.mubr.bf16.mxu0 %v4660_v2  ;;  %v4289_v8 = vld [vmem:[%s6138_s4 + $0x45c] ss:$24 sps:$4 sm:$0xff]  }
  0x75   :  { %2217 = vmatpush1.bf16.msra.mxu0 %v4218_v39 }
  0x76   :  { %2218 = vmatprep.subr.bf16.mxu0 %v4226_v41 }
  0x77   :  { %4085 = vmatpush3.bf16.msra.mxu1 %v4192_v30 }
  0x78   :  { %4086 = vmatprep.subr.bf16.mxu1 %v4659_v0  ;;  %v4211_v0 = vld [vmem:[%s6138_s4 + $0xf4] ss:$24 sps:$4 sm:$0xff]  }
  0x79   :  { %2219 = vmatpush1.bf16.msra.mxu0 %v4224_v42 }
  0x7a   :  { %2220 = vmatprep.subr.bf16.mxu0 %v4232_v16  ;;  %v4287_v16 = vld [vmem:[%s6138_s4 + $0x458] ss:$24 sps:$4 sm:$0xff]  }
  0x7b   :  { %4087 = vmatpush3.bf16.msra.mxu1 %v4196_v34 }
  0x7c   :  { %2175 = vmatprep.subr.bf16.mxu1 %v4205_v35 }
  0x7d   :  { %2221 = vmatpush1.bf16.msra.mxu0 %v4230_v44 }
  0x7e   :  { %4089 = vmatmul.mubr.msk.bf16.vlgmr.msra.gmra.mxu1 %vm1101_vm10, %v4976_v19  ;;  %v4214_v19 = vld [vmem:[%s6138_s4 + $0xc4] ss:$24 sps:$4 sm:$0xff]   ;;  %2222 = vmatprep.subr.bf16.mxu0 %v4238_v45 }
  0x7f   :  { %2176 = vmatpush1.bf16.msra.mxu1 %v4203_v20 }
  0x80   :  { %2177 = vmatprep.subr.bf16.mxu1 %v4208_v33 }
  0x81   :  { %2223 = vmatpush1.bf16.msra.mxu0 %v4236_v46 }
  0x82   :  { %2224 = vmatprep.subr.bf16.mxu0 %v4244_v52 }
  0x83   :  { %2178 = vmatpush1.bf16.msra.mxu1 %v4206_v37 }
  0x84   :  { %2179 = vmatprep.subr.bf16.mxu1 %v4211_v0 }
  0x85   :  { %2225 = vmatpush1.bf16.msra.mxu0 %v4242_v53  ;;  %v4307_v53 = vld [vmem:[%s6138_s4 + $0x3cc] ss:$24 sps:$4 sm:$0xff]  }
  0x86   :  { %2226 = vmatprep.subr.bf16.mxu0 %v4250_v56  ;;  %v4280_v56 = vld [vmem:[%s6138_s4 + $0xfc] ss:$24 sps:$4 sm:$0xff]  }
  0x87   :  { %2180 = vmatpush1.bf16.msra.mxu1 %v4209_v38 }
  0x88   :  { %2181 = vmatprep.subr.bf16.mxu1 %v4214_v19 }
  0x89   :  { %2227 = vmatpush1.bf16.msra.mxu0 %v4248_v57  ;;  %v4305_v57 = vld [vmem:[%s6138_s4 + $0x3c8] ss:$24 sps:$4 sm:$0xff]  }
  0x8a   :  { %2228 = vmatprep.subr.bf16.mxu0 %v4256_v32  ;;  %v4286_v32 = vld [vmem:[%s6138_s4 + $0xcc] ss:$24 sps:$4 sm:$0xff]  }
  0x8b   :  { %2182 = vmatpush1.bf16.msra.mxu1 %v4212_v43 }
  0x8c   :  { %2183 = vmatprep.subr.bf16.mxu1 %v4217_v9 }
  0x8d   :  { %2229 = vmatpush1.bf16.msra.mxu0 %v4254_v58  ;;  %v4311_v58 = vld [vmem:[%s6138_s4 + $0x398] ss:$24 sps:$4 sm:$0xff]  }
  0x8e   :  { %2230 = vmatprep.subr.bf16.mxu0 %v4262_v13  ;;  %v4292_v13 = vld [vmem:[%s6138_s4 + $0x9c] ss:$24 sps:$4 sm:$0xff]  }
  0x8f   :  { %2184 = vmatpush1.bf16.msra.mxu1 %v4215_v21  ;;  %v4295_v21 = vld [vmem:[%s6138_s4 + $0x42c] ss:$24 sps:$4 sm:$0xff]  }
  0x90   :  { %2185 = vmatprep.subr.bf16.mxu1 %v4223_v36  ;;  %v4293_v36 = vld [vmem:[%s6138_s4 + $0x428] ss:$24 sps:$4 sm:$0xff]  }
  0x91   :  { %2231 = vmatpush1.bf16.msra.mxu0 %v4260_v27  ;;  %v4317_v27 = vld [vmem:[%s6138_s4 + $0x368] ss:$24 sps:$4 sm:$0xff]  }
  0x92   :  { %2257 = vmatprep.subr.bf16.mxu0 %v4268_v63  ;;  %v4298_v63 = vld [vmem:[%s6138_s4 + $0x6c] ss:$24 sps:$4 sm:$0xff]  }
  0x93   :  { %2186 = vmatpush1.bf16.msra.mxu1 %v4221_v47  ;;  %v4301_v47 = vld [vmem:[%s6138_s4 + $0x3fc] ss:$24 sps:$4 sm:$0xff]  }
  0x94   :  { %2187 = vmatprep.subr.bf16.mxu1 %v4229_v48 }
  0x97   :  { %2188 = vmatpush1.bf16.msra.mxu1 %v4227_v49  ;;  %v4266_v49 = vld [vmem:[%s6138_s4 + $0x158] ss:$24 sps:$4 sm:$0xff]  }
  0x98   :  { %2189 = vmatprep.subr.bf16.mxu1 %v4235_v50 }
  0x9b   :  { %2190 = vmatpush1.bf16.msra.mxu1 %v4233_v10 }
  0x9c   :  { %2191 = vmatprep.subr.bf16.mxu1 %v4241_v18  ;;  %v4274_v18 = vld [vmem:[%s6138_s4 + $0x12c] ss:$24 sps:$4 sm:$0xff]  }
  0x9f   :  { %2192 = vmatpush2.bf16.msra.mxu1 %v4239_v51  ;;  %v4299_v51 = vld [vmem:[%s6138_s4 + $0x3f8] ss:$24 sps:$4 sm:$0xff]  }
  0xa0   :  { %2193 = vmatprep.subr.bf16.mxu1 %v4247_v54  ;;  %v4272_v54 = vld [vmem:[%s6138_s4 + $0x128] ss:$24 sps:$4 sm:$0xff]  }
  0xa3   :  { %2194 = vmatpush2.bf16.msra.mxu1 %v4245_v55 }
  0xa4   :  { %2195 = vmatprep.subr.bf16.mxu1 %v4253_v23  ;;  %v4278_v23 = vld [vmem:[%s6138_s4 + $0xf8] ss:$24 sps:$4 sm:$0xff]  }
  0xa7   :  { %2196 = vmatpush2.bf16.msra.mxu1 %v4251_v11  ;;  %v4313_v11 = vld [vmem:[%s6138_s4 + $0x39c] ss:$24 sps:$4 sm:$0xff]  }
  0xa8   :  { %2197 = vmatprep.subr.bf16.mxu1 %v4259_v59  ;;  %v4319_v59 = vld [vmem:[%s6138_s4 + $0x36c] ss:$24 sps:$4 sm:$0xff]  }
  0xab   :  { %2198 = vmatpush2.bf16.msra.mxu1 %v4257_v60  ;;  %v4284_v60 = vld [vmem:[%s6138_s4 + $0xc8] ss:$24 sps:$4 sm:$0xff]  }
  0xac   :  { %2199 = vmatprep.subr.bf16.mxu1 %v4265_v61  ;;  %v4325_v61 = vld [vmem:[%s6138_s4 + $0x33c] ss:$24 sps:$4 sm:$0xff]  }
  0xaf   :  { %2200 = vmatpush2.bf16.msra.mxu1 %v4263_v62  ;;  %v4290_v62 = vld [vmem:[%s6138_s4 + $0x98] ss:$24 sps:$4 sm:$0xff]  }
  0xb0   :  { %2201 = vmatprep.subr.bf16.mxu1 %v4271_v1  ;;  %v4323_v1 = vld [vmem:[%s6138_s4 + $0x338] ss:$24 sps:$4 sm:$0xff]  }
  0xb3   :  { %2202 = vmatpush2.bf16.msra.mxu1 %v4269_v3  ;;  %v4331_v3 = vld [vmem:[%s6138_s4 + $0x30c] ss:$24 sps:$4 sm:$0xff]  }
  0xb4   :  { %2203 = vmatprep.subr.bf16.mxu1 %v4277_v4  ;;  %v4296_v4 = vld [vmem:[%s6138_s4 + $0x68] ss:$24 sps:$4 sm:$0xff]  }
  0xb7   :  { %2204 = vmatpush2.bf16.msra.mxu1 %v4275_v5  ;;  %v4304_v5 = vld [vmem:[%s6138_s4 + $0x3c] ss:$24 sps:$4 sm:$0xff]  }
  0xb8   :  { %2205 = vmatprep.subr.bf16.mxu1 %v4283_v6  ;;  %v4329_v6 = vld [vmem:[%s6138_s4 + $0x308] ss:$24 sps:$4 sm:$0xff]  }
  0xbb   :  { %2206 = vmatpush2.bf16.msra.mxu1 %v4281_v7  ;;  %v4337_v7 = vld [vmem:[%s6138_s4 + $0x164] ss:$24 sps:$4 sm:$0xff]  }
  0xbc   :  { %2298 = vmatprep.subr.bf16.mxu1 %v4289_v8  ;;  %v4302_v8 = vld [vmem:[%s6138_s4 + $0x38] ss:$24 sps:$4 sm:$0xff]  }
  0xea   :  { %v679_v12 = vpop.f32.mrf.mxu0  ;;  %v720_v14 = vpop.f32.mrf.mxu1 }
  0xec   :  { %v681_v29 = vpop.f32.mrf.mxu0  ;;  %v4080_v17 = vpop.f32.mrf.mxu1 }
  0xed   :  { %v4308_v17 = vld [vmem:[%s6138_s4 + $0x8] ss:$24 sps:$4 sm:$0xff]  }
  0xee   :  { %v683_v15 = vpop.f32.mrf.mxu0  ;;  %v723_v31 = vpop.f32.mrf.mxu1 }
  0xef   :  { %v4316_v15 = vld [vmem:[%s6138_s4 + $0x2dc] ss:$24 sps:$4 sm:$0xff]   ;;  %v4341_v31 = vld [vmem:[%s6138_s4 + $0x130] ss:$24 sps:$4 sm:$0xff]  }
  0xf0   :  { %v684_v22 = vpop.f32.mrf.mxu0  ;;  %v4081_v24 = vpop.f32.mrf.mxu1 }
  0xf1   :  { %v4349_v22 = vld [vmem:[%s6138_s4 + $0x104] ss:$24 sps:$4 sm:$0xff]   ;;  %v4314_v24 = vld [vmem:[%s6138_s4 + $0x2d8] ss:$24 sps:$4 sm:$0xff]  }
 0x101   :  { %v1189_v25 = vpop.f32.mrf.mxu1 }
 0x103   :  { %v1191_v26 = vpop.f32.mrf.mxu1 }
 0x105   :  { %v1193_v28 = vpop.f32.mrf.mxu1 }
 0x106   :  { %v4355_v28 = vld [vmem:[%s6138_s4 + $0xd4] ss:$24 sps:$4 sm:$0xff]  }
 0x107   :  { %v1194_v30 = vpop.f32.mrf.mxu1 }
 0x108   :  { %v4320_v30 = vld [vmem:[%s6138_s4 + $0x2a8] ss:$24 sps:$4 sm:$0xff]  }
 0x132   :  { %v4052_v34 = vpop.f32.mrf.mxu1  ;;  %v1148_v35 = vpop.f32.mrf.mxu0 }
 0x133   :  { %v1149_v20 = vadd.f32 %v1148_v35, %v679_v12  ;;  %v4310_v12 = vld [vmem:[%s6138_s4 + $0xc] ss:$24 sps:$4 sm:$0xff]   ;;  %v4353_v35 = vld [vmem:[%s6138_s4 + $0xd0] ss:$24 sps:$4 sm:$0xff]  }
 0x134   :  { %v4053_v33 = vpop.f32.mrf.mxu1  ;;  %v1150_v37 = vpop.f32.mrf.mxu0 }
 0x135   :  { %v1151_v0 = vadd.f32 %v1150_v37, %v681_v29  ;;  %v5311_v39 = vadd.f32 %v1189_v25, %v1149_v20  ;;  %v4054_v43 = vadd.f32 %v4053_v33, %v4052_v34  ;;  %v4343_v29 = vld [vmem:[%s6138_s4 + $0x134] ss:$24 sps:$4 sm:$0xff]   ;;  %v4361_v20 = vld [vmem:[%s6138_s4 + $0xa4] ss:$24 sps:$4 sm:$0xff]   ;;  %v4326_v33 = vld [vmem:[%s6138_s4 + $0x278] ss:$24 sps:$4 sm:$0xff]  }
 0x136   :  { %v4055_v38 = vpop.f32.mrf.mxu1  ;;  %v1152_v40 = vpop.f32.mrf.mxu0  ;;  %v4322_v25 = vld [vmem:[%s6138_s4 + $0x2ac] ss:$24 sps:$4 sm:$0xff]   ;;  %v4328_v34 = vld [vmem:[%s6138_s4 + $0x27c] ss:$24 sps:$4 sm:$0xff]  }
 0x137   :  { %v5313_v19 = vadd.f32 %v1191_v26, %v1151_v0  ;;  %v5324_v44 = vpack.c.bf16 %v5311_v39, %v5311_v39  ;;  %v1231_v45 = vadd.f32 %v4054_v43, %v720_v14  ;;  %v4335_v14 = vld [vmem:[%s6138_s4 + $0x160] ss:$24 sps:$4 sm:$0xff]   ;;  %v4334_v37 = vld [vmem:[%s6138_s4 + $0x24c] ss:$24 sps:$4 sm:$0xff]  }
 0x138   :  { %v4056_v41 = vpop.f32.mrf.mxu1  ;;  %v1153_v42 = vpop.f32.mrf.mxu0  ;;  %v4347_v26 = vld [vmem:[%s6138_s4 + $0x100] ss:$24 sps:$4 sm:$0xff]   ;;  %v4367_v38 = vld [vmem:[%s6138_s4 + $0x74] ss:$24 sps:$4 sm:$0xff]   ;;  %v4373_v43 = vld [vmem:[%s6138_s4 + $0x44] ss:$24 sps:$4 sm:$0xff]  }
 0x139   :  { %v5317_v9 = vpack.c.bf16 %v5313_v19, %v5313_v19  ;;  %v4359_v0 = vld [vmem:[%s6138_s4 + $0xa0] ss:$24 sps:$4 sm:$0xff]   ;;  %v4340_v41 = vld [vmem:[%s6138_s4 + $0x21c] ss:$24 sps:$4 sm:$0xff]   ;;  %v4365_v42 = vld [vmem:[%s6138_s4 + $0x70] ss:$24 sps:$4 sm:$0xff]  }
 0x13a   :  { %v4332_v40 = vld [vmem:[%s6138_s4 + $0x248] ss:$24 sps:$4 sm:$0xff]  }
 0x13b   :  { %2207 = vmatprep.mubr.bf16.mxu1 %v5317_v9 }
 0x13c   :  { %2208 = vmatmul.mubr.bf16.vlgmr.msra.gmra.mxu1 %v5324_v44 }
 0x13d   :  { %2299 = vmatpush1.bf16.msra.mxu1 %v4287_v16  ;;  %2330 = vmatprep.mubr.bf16.mxu1 %v4660_v2  ;;  %v4346_v16 = vld [vmem:[%s6138_s4 + $0x1ec] ss:$24 sps:$4 sm:$0xff]  }
 0x13e   :  { %v1270_v46 = vpop.f32.mrf.mxu1  ;;  %2300 = vmatprep.subr.bf16.mxu1 %v4295_v21  ;;  %v4371_v21 = vld [vmem:[%s6138_s4 + $0x40] ss:$24 sps:$4 sm:$0xff]  }
 0x13f   :  { %v5338_v48 = vadd.f32 %v1270_v46, %v1231_v45  ;;  %v4379_v45 = vld [vmem:[%s6138_s4 + $0x14] ss:$24 sps:$4 sm:$0xff]  }
 0x140   :  { %v4090_v50 = vpop.f32.mrf.mxu1  ;;  %v4352_v46 = vld [vmem:[%s6138_s4 + $0x1bc] ss:$24 sps:$4 sm:$0xff]  }
 0x141   :  { %v5345_v10 = vpack.c.bf16 %v5338_v48, %v5338_v48  ;;  %2301 = vmatpush1.bf16.msra.mxu1 %v4293_v36  ;;  %v4344_v36 = vld [vmem:[%s6138_s4 + $0x1e8] ss:$24 sps:$4 sm:$0xff]   ;;  %v4350_v50 = vld [vmem:[%s6138_s4 + $0x1b8] ss:$24 sps:$4 sm:$0xff]  }
 0x142   :  { %v1273_v52 = vpop.f32.mrf.mxu1  ;;  %2302 = vmatprep.subr.bf16.mxu1 %v4301_v47  ;;  %v4377_v47 = vld [vmem:[%s6138_s4 + $0x10] ss:$24 sps:$4 sm:$0xff]  }
 0x143   :  { %2249 = vmatmul.mubr.bf16.vlgmr.msra.gmra.mxu0 %v5345_v10  ;;  %v4391_v52 = vld [vmem:[%s6138_s4 + $0x2b4] ss:$24 sps:$4 sm:$0xff]  }
 0x144   :  { %2258 = vmatpush1.bf16.msra.mxu0 %v4266_v49  ;;  %v4091_v55 = vpop.f32.mrf.mxu1  ;;  %2289 = vmatprep.mubr.bf16.mxu0 %v5317_v9  ;;  %v4385_v49 = vld [vmem:[%s6138_s4 + $0x2e4] ss:$24 sps:$4 sm:$0xff]  }
 0x145   :  { %2259 = vmatprep.subr.bf16.mxu0 %v4274_v18  ;;  %2303 = vmatpush1.bf16.msra.mxu1 %v4299_v51  ;;  %v4358_v18 = vld [vmem:[%s6138_s4 + $0x18c] ss:$24 sps:$4 sm:$0xff]   ;;  %v4383_v51 = vld [vmem:[%s6138_s4 + $0x2e0] ss:$24 sps:$4 sm:$0xff]   ;;  %v4389_v55 = vld [vmem:[%s6138_s4 + $0x2b0] ss:$24 sps:$4 sm:$0xff]  }
 0x146   :  { %2304 = vmatprep.subr.bf16.mxu1 %v4307_v53  ;;  %v4356_v53 = vld [vmem:[%s6138_s4 + $0x188] ss:$24 sps:$4 sm:$0xff]  }
 0x148   :  { %2260 = vmatpush1.bf16.msra.mxu0 %v4272_v54  ;;  %v4364_v54 = vld [vmem:[%s6138_s4 + $0x464] ss:$24 sps:$4 sm:$0xff]  }
 0x149   :  { %2261 = vmatprep.subr.bf16.mxu0 %v4280_v56  ;;  %2305 = vmatpush1.bf16.msra.mxu1 %v4305_v57  ;;  %v4397_v56 = vld [vmem:[%s6138_s4 + $0x284] ss:$24 sps:$4 sm:$0xff]   ;;  %v4362_v57 = vld [vmem:[%s6138_s4 + $0x460] ss:$24 sps:$4 sm:$0xff]  }
 0x14a   :  { %2306 = vmatprep.subr.bf16.mxu1 %v4313_v11  ;;  %v4370_v11 = vld [vmem:[%s6138_s4 + $0x434] ss:$24 sps:$4 sm:$0xff]  }
 0x14c   :  { %2262 = vmatpush1.bf16.msra.mxu0 %v4278_v23  ;;  %v4395_v23 = vld [vmem:[%s6138_s4 + $0x280] ss:$24 sps:$4 sm:$0xff]  }
 0x14d   :  { %2263 = vmatprep.subr.bf16.mxu0 %v4286_v32  ;;  %2307 = vmatpush1.bf16.msra.mxu1 %v4311_v58  ;;  %v4403_v32 = vld [vmem:[%s6138_s4 + $0x254] ss:$24 sps:$4 sm:$0xff]   ;;  %v4368_v58 = vld [vmem:[%s6138_s4 + $0x430] ss:$24 sps:$4 sm:$0xff]  }
 0x14e   :  { %2308 = vmatprep.subr.bf16.mxu1 %v4319_v59  ;;  %v4376_v59 = vld [vmem:[%s6138_s4 + $0x404] ss:$24 sps:$4 sm:$0xff]  }
 0x150   :  { %2264 = vmatpush1.bf16.msra.mxu0 %v4284_v60  ;;  %v4401_v60 = vld [vmem:[%s6138_s4 + $0x250] ss:$24 sps:$4 sm:$0xff]  }
 0x151   :  { %2265 = vmatprep.subr.bf16.mxu0 %v4292_v13  ;;  %2309 = vmatpush1.bf16.msra.mxu1 %v4317_v27  ;;  %v4409_v13 = vld [vmem:[%s6138_s4 + $0x224] ss:$24 sps:$4 sm:$0xff]   ;;  %v4374_v27 = vld [vmem:[%s6138_s4 + $0x400] ss:$24 sps:$4 sm:$0xff]  }
 0x152   :  { %2310 = vmatprep.subr.bf16.mxu1 %v4325_v61  ;;  %v4382_v61 = vld [vmem:[%s6138_s4 + $0x3d4] ss:$24 sps:$4 sm:$0xff]  }
 0x154   :  { %2266 = vmatpush1.bf16.msra.mxu0 %v4290_v62  ;;  %v4407_v62 = vld [vmem:[%s6138_s4 + $0x220] ss:$24 sps:$4 sm:$0xff]  }
 0x155   :  { %2267 = vmatprep.subr.bf16.mxu0 %v4298_v63  ;;  %2311 = vmatpush1.bf16.msra.mxu1 %v4323_v1  ;;  %v4412_v63 = vld [vmem:[%s6138_s4 + $0x1f4] ss:$24 sps:$4 sm:$0xff]   ;;  %v4380_v1 = vld [vmem:[%s6138_s4 + $0x3d0] ss:$24 sps:$4 sm:$0xff]  }
 0x156   :  { %2312 = vmatprep.subr.bf16.mxu1 %v4331_v3  ;;  %v4388_v3 = vld [vmem:[%s6138_s4 + $0x3a4] ss:$24 sps:$4 sm:$0xff]  }
 0x158   :  { %2268 = vmatpush1.bf16.msra.mxu0 %v4296_v4  ;;  %v4410_v4 = vld [vmem:[%s6138_s4 + $0x1f0] ss:$24 sps:$4 sm:$0xff]  }
 0x159   :  { %2269 = vmatprep.subr.bf16.mxu0 %v4304_v5  ;;  %2313 = vmatpush1.bf16.msra.mxu1 %v4329_v6  ;;  %v4415_v5 = vld [vmem:[%s6138_s4 + $0x1c4] ss:$24 sps:$4 sm:$0xff]   ;;  %v4386_v6 = vld [vmem:[%s6138_s4 + $0x3a0] ss:$24 sps:$4 sm:$0xff]  }
 0x15a   :  { %2339 = vmatprep.subr.bf16.mxu1 %v4337_v7  ;;  %v4394_v7 = vld [vmem:[%s6138_s4 + $0x374] ss:$24 sps:$4 sm:$0xff]  }
 0x15c   :  { %2270 = vmatpush1.bf16.msra.mxu0 %v4302_v8  ;;  %2331 = vmatmul.mubr.bf16.vlgmr.msra.gmra.mxu1 %v5345_v10  ;;  %v4413_v8 = vld [vmem:[%s6138_s4 + $0x1c0] ss:$24 sps:$4 sm:$0xff]  }
 0x15d   :  { %2271 = vmatprep.subr.bf16.mxu0 %v4310_v12  ;;  %2340 = vmatpush1.bf16.msra.mxu1 %v4335_v14  ;;  %v4418_v12 = vld [vmem:[%s6138_s4 + $0x194] ss:$24 sps:$4 sm:$0xff]   ;;  %v4392_v14 = vld [vmem:[%s6138_s4 + $0x370] ss:$24 sps:$4 sm:$0xff]  }
 0x15e   :  { %2371 = vmatprep.mubr.bf16.mxu1 %v5317_v9  ;;  %2341 = vmatprep.subr.bf16.mxu1 %v4343_v29  ;;  %v4338_v9 = vld [vmem:[%s6138_s4 + $0x218] ss:$24 sps:$4 sm:$0xff]   ;;  %v4400_v29 = vld [vmem:[%s6138_s4 + $0x344] ss:$24 sps:$4 sm:$0xff]  }
 0x160   :  { %2272 = vmatpush1.bf16.msra.mxu0 %v4308_v17  ;;  %v4416_v17 = vld [vmem:[%s6138_s4 + $0x190] ss:$24 sps:$4 sm:$0xff]  }
 0x161   :  { %2273 = vmatprep.subr.bf16.mxu0 %v4316_v15  ;;  %2342 = vmatpush1.bf16.msra.mxu1 %v4341_v31  ;;  %v4398_v15 = vld [vmem:[%s6138_s4 + $0x340] ss:$24 sps:$4 sm:$0xff]   ;;  %v4406_v31 = vld [vmem:[%s6138_s4 + $0x314] ss:$24 sps:$4 sm:$0xff]  }
 0x162   :  { %2343 = vmatprep.subr.bf16.mxu1 %v4349_v22  ;;  %v4404_v22 = vld [vmem:[%s6138_s4 + $0x310] ss:$24 sps:$4 sm:$0xff]  }
 0x164   :  { %2274 = vmatpush2.bf16.msra.mxu0 %v4314_v24  ;;  %v4419_v24 = vld [vmem:[%s6139_s6 + $0x150] ss:$24 sps:$4 sm:$0xff]  }
 0x165   :  { %2275 = vmatprep.subr.bf16.mxu0 %v4322_v25  ;;  %2344 = vmatpush1.bf16.msra.mxu1 %v4347_v26  ;;  %v4421_v25 = vld [vmem:[%s6139_s6 + $0x154] ss:$24 sps:$4 sm:$0xff]   ;;  %v4422_v26 = vld [vmem:[%s6139_s6 + $0x120] ss:$24 sps:$4 sm:$0xff]  }
 0x166   :  { %2345 = vmatprep.subr.bf16.mxu1 %v4355_v28  ;;  %v4425_v28 = vld [vmem:[%s6139_s6 + $0xf0] ss:$24 sps:$4 sm:$0xff]  }
 0x168   :  { %2276 = vmatpush2.bf16.msra.mxu0 %v4320_v30  ;;  %v4430_v30 = vld [vmem:[%s6139_s6 + $0xc4] ss:$24 sps:$4 sm:$0xff]  }
 0x169   :  { %2277 = vmatprep.subr.bf16.mxu0 %v4328_v34  ;;  %2346 = vmatpush1.bf16.msra.mxu1 %v4353_v35  ;;  %v4428_v34 = vld [vmem:[%s6139_s6 + $0xc0] ss:$24 sps:$4 sm:$0xff]   ;;  %v4433_v35 = vld [vmem:[%s6139_s6 + $0x94] ss:$24 sps:$4 sm:$0xff]  }
 0x16a   :  { %2347 = vmatprep.subr.bf16.mxu1 %v4361_v20  ;;  %v4431_v20 = vld [vmem:[%s6139_s6 + $0x90] ss:$24 sps:$4 sm:$0xff]  }
 0x16c   :  { %2278 = vmatpush2.bf16.msra.mxu0 %v4326_v33  ;;  %v4436_v33 = vld [vmem:[%s6139_s6 + $0x64] ss:$24 sps:$4 sm:$0xff]  }
 0x16d   :  { %2279 = vmatprep.subr.bf16.mxu0 %v4334_v37  ;;  %2348 = vmatpush1.bf16.msra.mxu1 %v4359_v0  ;;  %v4434_v37 = vld [vmem:[%s6139_s6 + $0x60] ss:$24 sps:$4 sm:$0xff]   ;;  %v4439_v0 = vld [vmem:[%s6139_s6 + $0x34] ss:$24 sps:$4 sm:$0xff]  }
 0x16e   :  { %2349 = vmatprep.subr.bf16.mxu1 %v4367_v38  ;;  %v4437_v38 = vld [vmem:[%s6139_s6 + $0x30] ss:$24 sps:$4 sm:$0xff]  }
 0x170   :  { %2280 = vmatpush2.bf16.msra.mxu0 %v4332_v40  ;;  %v4442_v40 = vld [vmem:[%s6139_s6 + $0x4] ss:$24 sps:$4 sm:$0xff]  }
 0x171   :  { %2281 = vmatprep.subr.bf16.mxu0 %v4340_v41  ;;  %2350 = vmatpush1.bf16.msra.mxu1 %v4365_v42  ;;  %v4440_v41 = vld [vmem:[%s6139_s6] ss:$24 sps:$4 sm:$0xff]   ;;  %v4443_v42 = vld [vmem:[%s6139_s6 + $0x2d0] ss:$24 sps:$4 sm:$0xff]  }
 0x172   :  { %2351 = vmatprep.subr.bf16.mxu1 %v4373_v43  ;;  %v4445_v43 = vld [vmem:[%s6139_s6 + $0x2d4] ss:$24 sps:$4 sm:$0xff]  }
 0x174   :  { %2282 = vmatpush2.bf16.msra.mxu0 %v4338_v9  ;;  %v4446_v9 = vld [vmem:[%s6139_s6 + $0x450] ss:$24 sps:$4 sm:$0xff]  }
 0x175   :  { %2283 = vmatprep.subr.bf16.mxu0 %v4346_v16  ;;  %2352 = vmatpush1.bf16.msra.mxu1 %v4371_v21  ;;  %v4448_v16 = vld [vmem:[%s6139_s6 + $0x454] ss:$24 sps:$4 sm:$0xff]   ;;  %v4451_v21 = vld [vmem:[%s6139_s6 + $0x2a4] ss:$24 sps:$4 sm:$0xff]  }
 0x176   :  { %2353 = vmatprep.subr.bf16.mxu1 %v4379_v45  ;;  %v4449_v45 = vld [vmem:[%s6139_s6 + $0x2a0] ss:$24 sps:$4 sm:$0xff]  }
 0x178   :  { %2284 = vmatpush2.bf16.msra.mxu0 %v4344_v36  ;;  %v4454_v36 = vld [vmem:[%s6139_s6 + $0x424] ss:$24 sps:$4 sm:$0xff]  }
 0x179   :  { %2285 = vmatprep.subr.bf16.mxu0 %v4352_v46  ;;  %2354 = vmatpush1.bf16.msra.mxu1 %v4377_v47  ;;  %v4452_v46 = vld [vmem:[%s6139_s6 + $0x420] ss:$24 sps:$4 sm:$0xff]   ;;  %v4457_v47 = vld [vmem:[%s6139_s6 + $0x274] ss:$24 sps:$4 sm:$0xff]  }
 0x17a   :  { %2355 = vmatprep.subr.bf16.mxu1 %v4385_v49  ;;  %v4455_v49 = vld [vmem:[%s6139_s6 + $0x270] ss:$24 sps:$4 sm:$0xff]  }
 0x17c   :  { %2286 = vmatpush2.bf16.msra.mxu0 %v4350_v50  ;;  %v4460_v50 = vld [vmem:[%s6139_s6 + $0x3f4] ss:$24 sps:$4 sm:$0xff]  }
 0x17d   :  { %2287 = vmatprep.subr.bf16.mxu0 %v4358_v18  ;;  %2356 = vmatpush2.bf16.msra.mxu1 %v4383_v51  ;;  %v4458_v18 = vld [vmem:[%s6139_s6 + $0x3f0] ss:$24 sps:$4 sm:$0xff]   ;;  %v4463_v51 = vld [vmem:[%s6139_s6 + $0x244] ss:$24 sps:$4 sm:$0xff]  }
 0x17e   :  { %2357 = vmatprep.subr.bf16.mxu1 %v4391_v52  ;;  %v4461_v52 = vld [vmem:[%s6139_s6 + $0x240] ss:$24 sps:$4 sm:$0xff]  }
 0x180   :  { %2288 = vmatpush2.bf16.msra.mxu0 %v4356_v53  ;;  %v4464_v53 = vld [vmem:[%s6139_s6 + $0x3c0] ss:$24 sps:$4 sm:$0xff]  }
 0x181   :  { %2380 = vmatprep.subr.bf16.mxu0 %v4364_v54  ;;  %2358 = vmatpush2.bf16.msra.mxu1 %v4389_v55  ;;  %v4466_v54 = vld [vmem:[%s6139_s6 + $0x3c4] ss:$24 sps:$4 sm:$0xff]   ;;  %v4469_v55 = vld [vmem:[%s6139_s6 + $0x214] ss:$24 sps:$4 sm:$0xff]  }
 0x182   :  { %2359 = vmatprep.subr.bf16.mxu1 %v4397_v56  ;;  %v4467_v56 = vld [vmem:[%s6139_s6 + $0x210] ss:$24 sps:$4 sm:$0xff]  }
 0x183   :  { %2290 = vmatmul.mubr.bf16.vlgmr.msra.gmra.mxu0 %v5324_v44 }
 0x184   :  { %2381 = vmatpush1.bf16.msra.mxu0 %v4362_v57  ;;  %2412 = vmatprep.mubr.bf16.mxu0 %v4660_v2  ;;  %v4472_v57 = vld [vmem:[%s6139_s6 + $0x394] ss:$24 sps:$4 sm:$0xff]  }
 0x185   :  { %2382 = vmatprep.subr.bf16.mxu0 %v4370_v11  ;;  %2360 = vmatpush2.bf16.msra.mxu1 %v4395_v23  ;;  %v4470_v11 = vld [vmem:[%s6139_s6 + $0x390] ss:$24 sps:$4 sm:$0xff]   ;;  %v4475_v23 = vld [vmem:[%s6139_s6 + $0x1e4] ss:$24 sps:$4 sm:$0xff]  }
 0x186   :  { %2361 = vmatprep.subr.bf16.mxu1 %v4403_v32  ;;  %v4478_v32 = vld [vmem:[%s6139_s6 + $0x364] ss:$24 sps:$4 sm:$0xff]  }
 0x188   :  { %2383 = vmatpush1.bf16.msra.mxu0 %v4368_v58  ;;  %v4473_v58 = vld [vmem:[%s6139_s6 + $0x1e0] ss:$24 sps:$4 sm:$0xff]  }
 0x189   :  { %2384 = vmatprep.subr.bf16.mxu0 %v4376_v59  ;;  %2362 = vmatpush2.bf16.msra.mxu1 %v4401_v60  ;;  %v4476_v59 = vld [vmem:[%s6139_s6 + $0x360] ss:$24 sps:$4 sm:$0xff]   ;;  %v4481_v60 = vld [vmem:[%s6139_s6 + $0x1b4] ss:$24 sps:$4 sm:$0xff]  }
 0x18a   :  { %2363 = vmatprep.subr.bf16.mxu1 %v4409_v13  ;;  %v4484_v13 = vld [vmem:[%s6139_s6 + $0x334] ss:$24 sps:$4 sm:$0xff]  }
 0x18c   :  { %2385 = vmatpush1.bf16.msra.mxu0 %v4374_v27  ;;  %v4479_v27 = vld [vmem:[%s6139_s6 + $0x1b0] ss:$24 sps:$4 sm:$0xff]  }
 0x18d   :  { %2386 = vmatprep.subr.bf16.mxu0 %v4382_v61  ;;  %2364 = vmatpush2.bf16.msra.mxu1 %v4407_v62  ;;  %v4482_v61 = vld [vmem:[%s6139_s6 + $0x330] ss:$24 sps:$4 sm:$0xff]   ;;  %v4487_v62 = vld [vmem:[%s6139_s6 + $0x184] ss:$24 sps:$4 sm:$0xff]  }
 0x18e   :  { %2365 = vmatprep.subr.bf16.mxu1 %v4412_v63  ;;  %v4490_v63 = vld [vmem:[%s6139_s6 + $0x304] ss:$24 sps:$4 sm:$0xff]  }
 0x190   :  { %2387 = vmatpush1.bf16.msra.mxu0 %v4380_v1  ;;  %v4485_v1 = vld [vmem:[%s6139_s6 + $0x180] ss:$24 sps:$4 sm:$0xff]  }
 0x191   :  { %2388 = vmatprep.subr.bf16.mxu0 %v4388_v3  ;;  %2366 = vmatpush2.bf16.msra.mxu1 %v4410_v4  ;;  %v4488_v3 = vld [vmem:[%s6139_s6 + $0x300] ss:$24 sps:$4 sm:$0xff]   ;;  %v4493_v4 = vld [vmem:[%s6139_s6 + $0x45c] ss:$24 sps:$4 sm:$0xff]  }
 0x192   :  { %2367 = vmatprep.subr.bf16.mxu1 %v4415_v5  ;;  %v4496_v5 = vld [vmem:[%s6139_s6 + $0x15c] ss:$24 sps:$4 sm:$0xff]  }
 0x194   :  { %2389 = vmatpush1.bf16.msra.mxu0 %v4386_v6 }
 0x195   :  { %2390 = vmatprep.subr.bf16.mxu0 %v4394_v7  ;;  %2368 = vmatpush2.bf16.msra.mxu1 %v4413_v8 }
 0x196   :  { %2369 = vmatprep.subr.bf16.mxu1 %v4418_v12 }
 0x198   :  { %2391 = vmatpush1.bf16.msra.mxu0 %v4392_v14 }
 0x199   :  { %2392 = vmatprep.subr.bf16.mxu0 %v4400_v29  ;;  %2370 = vmatpush2.bf16.msra.mxu1 %v4416_v17  ;;  %v1425_v29 = vlaneseq }
 0x19a   :  { %3394 = vmatprep.subr.bf16.mxu1 %v4448_v16 }
 0x19c   :  { %2393 = vmatpush1.bf16.msra.mxu0 %v4398_v15  ;;  %2372 = vmatmul.mubr.bf16.vlgmr.msra.gmra.mxu1 %v5324_v44  ;;  %v4424_v44 = vld [vmem:[%s6139_s6 + $0x124] ss:$24 sps:$4 sm:$0xff]  }
 0x19d   :  { %2394 = vmatprep.subr.bf16.mxu0 %v4406_v31  ;;  %3426 = vmatprep.mubr.bf16.mxu1 %v4660_v2  ;;  %v5773_v31 = vshrl.u32 %v1425_v29, 7 }
 0x19e   :  { %3395 = vmatpush1.bf16.msra.mxu1 %v4446_v9 }
 0x19f   :  { %3396 = vmatprep.subr.bf16.mxu1 %v4454_v36  ;;  %v1435_v16 = vsub.s32 2, %v5773_v31 }
 0x1a0   :  { %2395 = vmatpush1.bf16.msra.mxu0 %v4404_v22 }
 0x1a1   :  { %3353 = vmatprep.subr.bf16.mxu0 %v4421_v25  ;;  %v1423_v25 = vld [vmem:[%s6140_s5] sm:$0x3f] }
 0x1a2   :  { %3397 = vmatpush1.bf16.msra.mxu1 %v4452_v46 }
 0x1a3   :  { %2413 = vmatmul.mubr.bf16.vlgmr.msra.gmra.mxu0 %v5345_v10  ;;  %v4427_v10 = vld [vmem:[%s6139_s6 + $0xf4] ss:$24 sps:$4 sm:$0xff]   ;;  %3398 = vmatprep.subr.bf16.mxu1 %v4460_v50 }
 0x1a4   :  { %3354 = vmatpush1.bf16.msra.mxu0 %v4419_v24  ;;  %v1427_v24 = vsub.s32 0, %v5773_v31 }
 0x1a5   :  { %3355 = vmatprep.subr.bf16.mxu0 %v4424_v44 }
 0x1a6   :  { %3399 = vmatpush1.bf16.msra.mxu1 %v4458_v18 }
 0x1a7   :  { %3400 = vmatprep.subr.bf16.mxu1 %v4466_v54 }
 0x1a8   :  { %3356 = vmatpush1.bf16.msra.mxu0 %v4422_v26  ;;  %v1428_v26 = vrot.slane %v1423_v25, %v1427_v24 }
 0x1a9   :  { %3357 = vmatprep.subr.bf16.mxu0 %v4427_v10 }
 0x1aa   :  { %3401 = vmatpush1.bf16.msra.mxu1 %v4464_v53 }
 0x1ab   :  { %3402 = vmatprep.subr.bf16.mxu1 %v4472_v57 }
 0x1ac   :  { %3358 = vmatpush1.bf16.msra.mxu0 %v4425_v28 }
 0x1ad   :  { %3359 = vmatprep.subr.bf16.mxu0 %v4430_v30 }
 0x1ae   :  { %3403 = vmatpush1.bf16.msra.mxu1 %v4470_v11 }
 0x1af   :  { %3404 = vmatprep.subr.bf16.mxu1 %v4478_v32 }
 0x1b0   :  { %3360 = vmatpush1.bf16.msra.mxu0 %v4428_v34 }
 0x1b1   :  { %3361 = vmatprep.subr.bf16.mxu0 %v4433_v35 }
 0x1b2   :  { %3405 = vmatpush1.bf16.msra.mxu1 %v4476_v59 }
 0x1b3   :  { %3406 = vmatprep.subr.bf16.mxu1 %v4484_v13  ;;  %v1443_v13 = vsub.s32 4, %v5773_v31 }
 0x1b4   :  { %3362 = vmatpush1.bf16.msra.mxu0 %v4431_v20 }
 0x1b5   :  { %3363 = vmatprep.subr.bf16.mxu0 %v4436_v33 }
 0x1b6   :  { %3407 = vmatpush1.bf16.msra.mxu1 %v4482_v61 }
 0x1b7   :  { %3408 = vmatprep.subr.bf16.mxu1 %v4490_v63  ;;  %v1444_v63 = vrot.slane %v1423_v25, %v1443_v13 }
 0x1b8   :  { %3364 = vmatpush1.bf16.msra.mxu0 %v4434_v37  ;;  %v1431_v37 = vsub.s32 1, %v5773_v31 }
 0x1b9   :  { %3365 = vmatprep.subr.bf16.mxu0 %v4439_v0 }
 0x1ba   :  { %3409 = vmatpush1.bf16.msra.mxu1 %v4488_v3  ;;  %v1432_v0 = vrot.slane %v1423_v25, %v1431_v37 }
 0x1bb   :  { %3435 = vmatprep.subr.bf16.mxu1 %v4496_v5 }
 0x1bc   :  { %3366 = vmatpush1.bf16.msra.mxu0 %v4437_v38 }
 0x1bd   :  { %3367 = vmatprep.subr.bf16.mxu0 %v4442_v40 }
 0x1c0   :  { %3368 = vmatpush1.bf16.msra.mxu0 %v4440_v41 }
 0x1c1   :  { %3369 = vmatprep.subr.bf16.mxu0 %v4445_v43 }
 0x1c4   :  { %3370 = vmatpush2.bf16.msra.mxu0 %v4443_v42 }
 0x1c5   :  { %3371 = vmatprep.subr.bf16.mxu0 %v4451_v21  ;;  %v1439_v21 = vsub.s32 3, %v5773_v31 }
 0x1c7   :  { %v1440_v36 = vrot.slane %v1423_v25, %v1439_v21 }
 0x1c8   :  { %3372 = vmatpush2.bf16.msra.mxu0 %v4449_v45  ;;  %v1436_v45 = vrot.slane %v1423_v25, %v1435_v16 }
 0x1c9   :  { %3373 = vmatprep.subr.bf16.mxu0 %v4457_v47 }
 0x1cc   :  { %3374 = vmatpush2.bf16.msra.mxu0 %v4455_v49 }
 0x1cd   :  { %3375 = vmatprep.subr.bf16.mxu0 %v4463_v51 }
 0x1d0   :  { %3376 = vmatpush2.bf16.msra.mxu0 %v4461_v52 }
 0x1d1   :  { %3377 = vmatprep.subr.bf16.mxu0 %v4469_v55 }
 0x1d4   :  { %3378 = vmatpush2.bf16.msra.mxu0 %v4467_v56 }
 0x1d5   :  { %3379 = vmatprep.subr.bf16.mxu0 %v4475_v23 }
 0x1d8   :  { %3380 = vmatpush2.bf16.msra.mxu0 %v4473_v58 }
 0x1d9   :  { %3381 = vmatprep.subr.bf16.mxu0 %v4481_v60 }
 0x1dc   :  { %3382 = vmatpush2.bf16.msra.mxu0 %v4479_v27 }
 0x1dd   :  { %3383 = vmatprep.subr.bf16.mxu0 %v4487_v62  ;;  %v1447_v62 = vsub.s32 5, %v5773_v31 }
 0x1df   :  { %v1448_v3 = vrot.slane %v1423_v25, %v1447_v62 }
 0x1e0   :  { %3384 = vmatpush2.bf16.msra.mxu0 %v4485_v1 }
 0x1e1   :  { %3476 = vmatprep.subr.bf16.mxu0 %v4493_v4 }
 0x1fc   :  { %v2209_v6 = vpop.f32.mrf.mxu1 }
 0x1fd   :  { %v2210_v44 = vadd.f32 %v2209_v6, %v1428_v26 }
 0x1fe   :  { %v2211_v7 = vpop.f32.mrf.mxu1 }
 0x1ff   :  { %v2212_v38 = vadd.f32 %v2211_v7, %v1432_v0 }
 0x200   :  { %v2213_v8 = vpop.f32.mrf.mxu1 }
 0x202   :  { %v2214_v12 = vpop.f32.mrf.mxu1 }
 0x203   :  { %v2250_v14 = vpop.f32.mrf.mxu0 }
 0x204   :  { %v2251_v10 = vadd.f32 %v2250_v14, %v2210_v44 }
 0x205   :  { %v2252_v17 = vpop.f32.mrf.mxu0 }
 0x206   :  { %v2421_v28 = vsub.f32 0.0, %v2251_v10  ;;  %v2253_v42 = vadd.f32 %v2252_v17, %v2212_v38  ;;  %v4491_v38 = vld [vmem:[%s6139_s6 + $0x458] ss:$24 sps:$4 sm:$0xff]  }
 0x207   :  { %v2254_v15 = vpop.f32.mrf.mxu0 }
 0x208   :  { %v2424_v35 = vmul.f32 1.442695, %v2421_v28  ;;  %v2422_v43 = vsub.f32 0.0, %v2253_v42 }
 0x209   :  { %v2255_v22 = vpop.f32.mrf.mxu0 }
 0x20a   :  { %4635 = vpow2.f32 %v2424_v35  ;;  %v2426_v9 = vmul.f32 1.442695, %v2422_v43  ;;  %v4497_v43 = vld [vmem:[%s6139_s6 + $0x428] ss:$24 sps:$4 sm:$0xff]  }
 0x217   :  { %v4636_v40 = vpop.eup %4635 }
 0x218   :  { %v2430_v41 = vadd.f32 1.0, %v4636_v40 }
 0x21a   :  { %4637 = vrcp.f32 %v2430_v41 }
 0x21b   :  { %4639 = vpow2.f32 %v2426_v9  ;;  %v4502_v9 = vld [vmem:[%s6139_s6 + $0x12c] ss:$24 sps:$4 sm:$0xff]  }
 0x21c   :  { %v2332_v30 = vpop.f32.mrf.mxu1 }
 0x21e   :  { %v2334_v34 = vpop.f32.mrf.mxu1 }
 0x220   :  { %v2336_v20 = vpop.f32.mrf.mxu1 }
 0x222   :  { %v2337_v33 = vpop.f32.mrf.mxu1 }
 0x227   :  { %v4638_v49 = vpop.eup %4637 }
 0x228   :  { %v2445_v55 = vsub.f32 1.0, %v4638_v49  ;;  %v4640_v58 = vpop.eup %4639 }
 0x229   :  { %v2431_v60 = vadd.f32 1.0, %v4640_v58  ;;  %v4524_v58 = vld [vmem:[%s6139_s6 + $0x68] ss:$24 sps:$4 sm:$0xff]  }
 0x22a   :  { %v2448_v32 = vmul.f32 %v2445_v55, %v5311_v39  ;;  %v4520_v55 = vld [vmem:[%s6139_s6 + $0x9c] ss:$24 sps:$4 sm:$0xff]  }
 0x243   :  { %v2291_v46 = vpop.f32.mrf.mxu0 }
 0x244   :  { %v2292_v47 = vadd.f32 %v2291_v46, %v1436_v45  ;;  %v4505_v45 = vld [vmem:[%s6139_s6 + $0x3fc] ss:$24 sps:$4 sm:$0xff]   ;;  %v4503_v46 = vld [vmem:[%s6139_s6 + $0x3f8] ss:$24 sps:$4 sm:$0xff]  }
 0x245   :  { %v2293_v50 = vpop.f32.mrf.mxu0 }
 0x246   :  { %v2333_v18 = vadd.f32 %v2332_v30, %v2292_v47  ;;  %v2294_v51 = vadd.f32 %v2293_v50, %v1440_v36  ;;  %v4500_v36 = vld [vmem:[%s6139_s6 + $0x128] ss:$24 sps:$4 sm:$0xff]   ;;  %v4508_v47 = vld [vmem:[%s6139_s6 + $0xfc] ss:$24 sps:$4 sm:$0xff]   ;;  %v4506_v50 = vld [vmem:[%s6139_s6 + $0xf8] ss:$24 sps:$4 sm:$0xff]  }
 0x247   :  { %v2295_v52 = vpop.f32.mrf.mxu0 }
 0x248   :  { %v2423_v53 = vsub.f32 0.0, %v2333_v18  ;;  %v2335_v54 = vadd.f32 %v2334_v34, %v2294_v51  ;;  %v4509_v18 = vld [vmem:[%s6139_s6 + $0x3c8] ss:$24 sps:$4 sm:$0xff]   ;;  %v4514_v51 = vld [vmem:[%s6139_s6 + $0xcc] ss:$24 sps:$4 sm:$0xff]  }
 0x249   :  { %v2296_v56 = vpop.f32.mrf.mxu0  ;;  %v4517_v52 = vld [vmem:[%s6139_s6 + $0x39c] ss:$24 sps:$4 sm:$0xff]  }
 0x24a   :  { %v2428_v57 = vmul.f32 1.442695, %v2423_v53  ;;  %v2439_v11 = vmax.f32 %v2335_v54, 0.0  ;;  %v4512_v53 = vld [vmem:[%s6139_s6 + $0xc8] ss:$24 sps:$4 sm:$0xff]  }
 0x24b   :  { %v4515_v54 = vld [vmem:[%s6139_s6 + $0x398] ss:$24 sps:$4 sm:$0xff]   ;;  %v4523_v56 = vld [vmem:[%s6139_s6 + $0x36c] ss:$24 sps:$4 sm:$0xff]  }
 0x24c   :  { %4641 = vpow2.f32 %v2428_v57  ;;  %v2442_v23 = vmul.f32 %v4638_v49, %v2439_v11  ;;  %v4511_v49 = vld [vmem:[%s6139_s6 + $0x3cc] ss:$24 sps:$4 sm:$0xff]   ;;  %v4518_v57 = vld [vmem:[%s6139_s6 + $0x98] ss:$24 sps:$4 sm:$0xff]   ;;  %v4521_v11 = vld [vmem:[%s6139_s6 + $0x368] ss:$24 sps:$4 sm:$0xff]  }
 0x24d   :  { %4643 = vrcp.f32 %v2431_v60  ;;  %v4527_v60 = vld [vmem:[%s6139_s6 + $0x338] ss:$24 sps:$4 sm:$0xff]  }
 0x24e   :  { %v5791_v59 = vadd.f32 %v2448_v32, %v2442_v23  ;;  %v4526_v23 = vld [vmem:[%s6139_s6 + $0x6c] ss:$24 sps:$4 sm:$0xff]   ;;  %v4529_v32 = vld [vmem:[%s6139_s6 + $0x33c] ss:$24 sps:$4 sm:$0xff]  }
 0x250   :  { %v5812_v40 = vpack.c.bf16 %v5791_v59, %v5791_v59 }
 0x259   :  { %v4642_v27 = vpop.eup %4641 }
 0x25a   :  { %v2432_v61 = vadd.f32 1.0, %v4642_v27  ;;  %v4644_v6 = vpop.eup %4643  ;;  %v4532_v27 = vld [vmem:[%s6139_s6 + $0x3c] ss:$24 sps:$4 sm:$0xff]  }
 0x25b   :  { %v2446_v29 = vsub.f32 1.0, %v4644_v6 }
 0x25c   :  { %4645 = vrcp.f32 %v2432_v61  ;;  %v2373_v1 = vpop.f32.mrf.mxu1  ;;  %v4535_v61 = vld [vmem:[%s6139_s6 + $0x30c] ss:$24 sps:$4 sm:$0xff]  }
 0x25d   :  { %v2374_v4 = vadd.f32 %v2373_v1, %v1444_v63  ;;  %v2449_v28 = vmul.f32 %v2446_v29, %v5313_v19  ;;  %v4499_v19 = vld [vmem:[%s6139_s6 + $0x42c] ss:$24 sps:$4 sm:$0xff]   ;;  %v4530_v63 = vld [vmem:[%s6139_s6 + $0x38] ss:$24 sps:$4 sm:$0xff]   ;;  %v4533_v1 = vld [vmem:[%s6139_s6 + $0x308] ss:$24 sps:$4 sm:$0xff]  }
 0x25e   :  { %v2375_v39 = vpop.f32.mrf.mxu1  ;;  %v4553_v29 = vld [vmem:[%s6139_s6 + $0x104] ss:$24 sps:$4 sm:$0xff]  }
 0x25f   :  { %v2376_v7 = vadd.f32 %v2375_v39, %v1448_v3  ;;  %v4538_v3 = vld [vmem:[%s6139_s6 + $0xc] ss:$24 sps:$4 sm:$0xff]  }
 0x260   :  { %v2377_v5 = vpop.f32.mrf.mxu1  ;;  %v4541_v39 = vld [vmem:[%s6139_s6 + $0x164] ss:$24 sps:$4 sm:$0xff]  }
 0x261   :  { %v4539_v5 = vld [vmem:[%s6139_s6 + $0x160] ss:$24 sps:$4 sm:$0xff]  }
 0x262   :  { %v2378_v8 = vpop.f32.mrf.mxu1 }
 0x263   :  { %v2414_v12 = vpop.f32.mrf.mxu0  ;;  %v4542_v8 = vld [vmem:[%s6139_s6 + $0x2d8] ss:$24 sps:$4 sm:$0xff]  }
 0x264   :  { %v2415_v14 = vadd.f32 %v2414_v12, %v2374_v4  ;;  %v4536_v4 = vld [vmem:[%s6139_s6 + $0x8] ss:$24 sps:$4 sm:$0xff]  }
 0x265   :  { %v2416_v17 = vpop.f32.mrf.mxu0  ;;  %v4545_v12 = vld [vmem:[%s6139_s6 + $0x130] ss:$24 sps:$4 sm:$0xff]  }
 0x266   :  { %v2440_v15 = vmax.f32 %v2415_v14, 0.0  ;;  %v2417_v22 = vadd.f32 %v2416_v17, %v2376_v7  ;;  %v4547_v7 = vld [vmem:[%s6139_s6 + $0x134] ss:$24 sps:$4 sm:$0xff]   ;;  %v4548_v17 = vld [vmem:[%s6139_s6 + $0x2a8] ss:$24 sps:$4 sm:$0xff]  }
 0x267   :  { %v2418_v26 = vpop.f32.mrf.mxu0  ;;  %v4550_v14 = vld [vmem:[%s6139_s6 + $0x2ac] ss:$24 sps:$4 sm:$0xff]  }
 0x268   :  { %v2443_v44 = vmul.f32 %v4644_v6, %v2440_v15  ;;  %v2441_v10 = vmax.f32 %v2417_v22, 0.0  ;;  %v4544_v6 = vld [vmem:[%s6139_s6 + $0x2dc] ss:$24 sps:$4 sm:$0xff]   ;;  %v4551_v15 = vld [vmem:[%s6139_s6 + $0x100] ss:$24 sps:$4 sm:$0xff]  }
 0x269   :  { %v4646_v30 = vpop.eup %4645  ;;  %v2419_v34 = vpop.f32.mrf.mxu0  ;;  %v4556_v22 = vld [vmem:[%s6139_s6 + $0x27c] ss:$24 sps:$4 sm:$0xff]  }
 0x26a   :  { %v2444_v25 = vmul.f32 %v4646_v30, %v2441_v10  ;;  %v2447_v35 = vsub.f32 1.0, %v4646_v30  ;;  %v5800_v20 = vadd.f32 %v2449_v28, %v2443_v44  ;;  %v4559_v26 = vld [vmem:[%s6139_s6 + $0xd4] ss:$24 sps:$4 sm:$0xff]   ;;  %v4554_v44 = vld [vmem:[%s6139_s6 + $0x278] ss:$24 sps:$4 sm:$0xff]  }
 0x26b   :  { %v4557_v10 = vld [vmem:[%s6139_s6 + $0xd0] ss:$24 sps:$4 sm:$0xff]   ;;  %v4562_v28 = vld [vmem:[%s6139_s6 + $0x24c] ss:$24 sps:$4 sm:$0xff]  }
 0x26c   :  { %v2450_v33 = vmul.f32 %v2447_v35, %v5338_v48  ;;  %v5805_v0 = vpack.c.bf16 %v5800_v20, %v5800_v20  ;;  %v4494_v48 = vld [vmem:[%s6139_s6 + $0x158] ss:$24 sps:$4 sm:$0xff]   ;;  %v4565_v30 = vld [vmem:[%s6139_s6 + $0xa4] ss:$24 sps:$4 sm:$0xff]   ;;  %v4560_v34 = vld [vmem:[%s6139_s6 + $0x248] ss:$24 sps:$4 sm:$0xff]  }
 0x26d   :  { %v4568_v35 = vld [vmem:[%s6139_s6 + $0x21c] ss:$24 sps:$4 sm:$0xff]  }
 0x26e   :  { %v5817_v41 = vadd.f32 %v2450_v33, %v2444_v25  ;;  %3385 = vmatprep.mubr.bf16.mxu0 %v5805_v0  ;;  %v4563_v25 = vld [vmem:[%s6139_s6 + $0xa0] ss:$24 sps:$4 sm:$0xff]   ;;  %v4571_v33 = vld [vmem:[%s6139_s6 + $0x74] ss:$24 sps:$4 sm:$0xff]  }
 0x26f   :  { %3386 = vmatmul.mubr.bf16.vlgmr.msra.gmra.mxu0 %v5812_v40 }
 0x270   :  { %3477 = vmatpush1.bf16.msra.mxu0 %v4491_v38  ;;  %v5826_v42 = vpack.c.bf16 %v5817_v41, %v5817_v41  ;;  %3508 = vmatprep.mubr.bf16.mxu0 %v4660_v2  ;;  %v4569_v38 = vld [vmem:[%s6139_s6 + $0x70] ss:$24 sps:$4 sm:$0xff]  }
 0x271   :  { %3478 = vmatprep.subr.bf16.mxu0 %v4499_v19  ;;  %v4574_v19 = vld [vmem:[%s6139_s6 + $0x1ec] ss:$24 sps:$4 sm:$0xff]  }
 0x272   :  { %3427 = vmatmul.mubr.bf16.vlgmr.msra.gmra.mxu1 %v5826_v42 }
 0x273   :  { %3436 = vmatpush1.bf16.msra.mxu1 %v4494_v48  ;;  %3467 = vmatprep.mubr.bf16.mxu1 %v5805_v0  ;;  %v4577_v48 = vld [vmem:[%s6139_s6 + $0x44] ss:$24 sps:$4 sm:$0xff]  }
 0x274   :  { %3437 = vmatprep.subr.bf16.mxu1 %v4502_v9  ;;  %3479 = vmatpush1.bf16.msra.mxu0 %v4497_v43  ;;  %v4572_v43 = vld [vmem:[%s6139_s6 + $0x1e8] ss:$24 sps:$4 sm:$0xff]  }
 0x275   :  { %3480 = vmatprep.subr.bf16.mxu0 %v4505_v45  ;;  %v4575_v9 = vld [vmem:[%s6139_s6 + $0x40] ss:$24 sps:$4 sm:$0xff]   ;;  %v4580_v45 = vld [vmem:[%s6139_s6 + $0x1bc] ss:$24 sps:$4 sm:$0xff]  }
 0x277   :  { %3438 = vmatpush1.bf16.msra.mxu1 %v4500_v36  ;;  %v4583_v36 = vld [vmem:[%s6139_s6 + $0x14] ss:$24 sps:$4 sm:$0xff]  }
 0x278   :  { %3439 = vmatprep.subr.bf16.mxu1 %v4508_v47  ;;  %3481 = vmatpush1.bf16.msra.mxu0 %v4503_v46  ;;  %v4578_v46 = vld [vmem:[%s6139_s6 + $0x1b8] ss:$24 sps:$4 sm:$0xff]  }
 0x279   :  { %3482 = vmatprep.subr.bf16.mxu0 %v4511_v49  ;;  %v4581_v47 = vld [vmem:[%s6139_s6 + $0x10] ss:$24 sps:$4 sm:$0xff]   ;;  %v4586_v49 = vld [vmem:[%s6139_s6 + $0x18c] ss:$24 sps:$4 sm:$0xff]  }
 0x27b   :  { %3440 = vmatpush1.bf16.msra.mxu1 %v4506_v50  ;;  %v4589_v50 = vld [vmem:[%s6139_s6 + $0x2e4] ss:$24 sps:$4 sm:$0xff]  }
 0x27c   :  { %3441 = vmatprep.subr.bf16.mxu1 %v4514_v51  ;;  %3483 = vmatpush1.bf16.msra.mxu0 %v4509_v18  ;;  %v4584_v18 = vld [vmem:[%s6139_s6 + $0x188] ss:$24 sps:$4 sm:$0xff]  }
 0x27d   :  { %3484 = vmatprep.subr.bf16.mxu0 %v4517_v52  ;;  %v4587_v51 = vld [vmem:[%s6139_s6 + $0x2e0] ss:$24 sps:$4 sm:$0xff]   ;;  %v4592_v52 = vld [vmem:[%s6139_s6 + $0x464] ss:$24 sps:$4 sm:$0xff]  }
 0x27f   :  { %3442 = vmatpush1.bf16.msra.mxu1 %v4512_v53  ;;  %v4595_v53 = vld [vmem:[%s6139_s6 + $0x2b4] ss:$24 sps:$4 sm:$0xff]  }
 0x280   :  { %3443 = vmatprep.subr.bf16.mxu1 %v4520_v55  ;;  %3485 = vmatpush1.bf16.msra.mxu0 %v4515_v54  ;;  %v4590_v54 = vld [vmem:[%s6139_s6 + $0x460] ss:$24 sps:$4 sm:$0xff]   ;;  %v4593_v55 = vld [vmem:[%s6139_s6 + $0x2b0] ss:$24 sps:$4 sm:$0xff]  }
 0x281   :  { %3486 = vmatprep.subr.bf16.mxu0 %v4523_v56  ;;  %v4598_v56 = vld [vmem:[%s6139_s6 + $0x434] ss:$24 sps:$4 sm:$0xff]  }
 0x283   :  { %3444 = vmatpush1.bf16.msra.mxu1 %v4518_v57  ;;  %v4601_v57 = vld [vmem:[%s6139_s6 + $0x284] ss:$24 sps:$4 sm:$0xff]  }
 0x284   :  { %3445 = vmatprep.subr.bf16.mxu1 %v4526_v23  ;;  %3487 = vmatpush1.bf16.msra.mxu0 %v4521_v11  ;;  %v4596_v11 = vld [vmem:[%s6139_s6 + $0x430] ss:$24 sps:$4 sm:$0xff]   ;;  %v4599_v23 = vld [vmem:[%s6139_s6 + $0x280] ss:$24 sps:$4 sm:$0xff]  }
 0x285   :  { %3488 = vmatprep.subr.bf16.mxu0 %v4529_v32  ;;  %v4604_v32 = vld [vmem:[%s6139_s6 + $0x404] ss:$24 sps:$4 sm:$0xff]  }
 0x287   :  { %3446 = vmatpush1.bf16.msra.mxu1 %v4524_v58  ;;  %v4607_v58 = vld [vmem:[%s6139_s6 + $0x254] ss:$24 sps:$4 sm:$0xff]  }
 0x288   :  { %3447 = vmatprep.subr.bf16.mxu1 %v4532_v27  ;;  %3489 = vmatpush1.bf16.msra.mxu0 %v4527_v60  ;;  %v4605_v60 = vld [vmem:[%s6139_s6 + $0x250] ss:$24 sps:$4 sm:$0xff]   ;;  %v4610_v27 = vld [vmem:[%s6139_s6 + $0x3d4] ss:$24 sps:$4 sm:$0xff]  }
 0x289   :  { %3490 = vmatprep.subr.bf16.mxu0 %v4535_v61  ;;  %v4613_v61 = vld [vmem:[%s6139_s6 + $0x224] ss:$24 sps:$4 sm:$0xff]  }
 0x28b   :  { %3448 = vmatpush1.bf16.msra.mxu1 %v4530_v63  ;;  %v4608_v63 = vld [vmem:[%s6139_s6 + $0x3d0] ss:$24 sps:$4 sm:$0xff]  }
 0x28c   :  { %3449 = vmatprep.subr.bf16.mxu1 %v4538_v3  ;;  %3491 = vmatpush1.bf16.msra.mxu0 %v4533_v1  ;;  %v4611_v1 = vld [vmem:[%s6139_s6 + $0x220] ss:$24 sps:$4 sm:$0xff]   ;;  %v4616_v3 = vld [vmem:[%s6139_s6 + $0x3a4] ss:$24 sps:$4 sm:$0xff]  }
 0x28d   :  { %3517 = vmatprep.subr.bf16.mxu0 %v4541_v39  ;;  %v4619_v39 = vld [vmem:[%s6139_s6 + $0x1f4] ss:$24 sps:$4 sm:$0xff]  }
 0x28f   :  { %3450 = vmatpush1.bf16.msra.mxu1 %v4536_v4  ;;  %3509 = vmatmul.mubr.bf16.vlgmr.msra.gmra.mxu0 %v5826_v42  ;;  %v4614_v4 = vld [vmem:[%s6139_s6 + $0x3a0] ss:$24 sps:$4 sm:$0xff]  }
 0x290   :  { %3451 = vmatprep.subr.bf16.mxu1 %v4544_v6  ;;  %3518 = vmatpush1.bf16.msra.mxu0 %v4539_v5  ;;  %v4617_v5 = vld [vmem:[%s6139_s6 + $0x1f0] ss:$24 sps:$4 sm:$0xff]   ;;  %v4622_v6 = vld [vmem:[%s6139_s6 + $0x374] ss:$24 sps:$4 sm:$0xff]  }
 0x291   :  { %3549 = vmatprep.mubr.bf16.mxu0 %v5805_v0  ;;  %3519 = vmatprep.subr.bf16.mxu0 %v4547_v7  ;;  %v4566_v0 = vld [vmem:[%s6139_s6 + $0x218] ss:$24 sps:$4 sm:$0xff]   ;;  %v4625_v7 = vld [vmem:[%s6139_s6 + $0x1c4] ss:$24 sps:$4 sm:$0xff]  }
 0x293   :  { %3452 = vmatpush2.bf16.msra.mxu1 %v4542_v8  ;;  %v4620_v8 = vld [vmem:[%s6139_s6 + $0x370] ss:$24 sps:$4 sm:$0xff]  }
 0x294   :  { %3453 = vmatprep.subr.bf16.mxu1 %v4550_v14  ;;  %3520 = vmatpush1.bf16.msra.mxu0 %v4545_v12  ;;  %v4623_v12 = vld [vmem:[%s6139_s6 + $0x1c0] ss:$24 sps:$4 sm:$0xff]   ;;  %v4628_v14 = vld [vmem:[%s6139_s6 + $0x344] ss:$24 sps:$4 sm:$0xff]  }
 0x295   :  { %3521 = vmatprep.subr.bf16.mxu0 %v4553_v29  ;;  %v4631_v29 = vld [vmem:[%s6139_s6 + $0x194] ss:$24 sps:$4 sm:$0xff]  }
 0x297   :  { %3454 = vmatpush2.bf16.msra.mxu1 %v4548_v17  ;;  %v4626_v17 = vld [vmem:[%s6139_s6 + $0x340] ss:$24 sps:$4 sm:$0xff]  }
 0x298   :  { %3455 = vmatprep.subr.bf16.mxu1 %v4556_v22  ;;  %3522 = vmatpush1.bf16.msra.mxu0 %v4551_v15  ;;  %v4629_v15 = vld [vmem:[%s6139_s6 + $0x190] ss:$24 sps:$4 sm:$0xff]   ;;  %v4634_v22 = vld [vmem:[%s6139_s6 + $0x314] ss:$24 sps:$4 sm:$0xff]  }
 0x299   :  { %3523 = vmatprep.subr.bf16.mxu0 %v4559_v26  ;;  %v4632_v26 = vld [vmem:[%s6139_s6 + $0x310] ss:$24 sps:$4 sm:$0xff]  }
 0x29b   :  { %3456 = vmatpush2.bf16.msra.mxu1 %v4554_v44 }
 0x29c   :  { %3457 = vmatprep.subr.bf16.mxu1 %v4562_v28  ;;  %3524 = vmatpush1.bf16.msra.mxu0 %v4557_v10 }
 0x29d   :  { %3525 = vmatprep.subr.bf16.mxu0 %v4565_v30 }
 0x29f   :  { %3458 = vmatpush2.bf16.msra.mxu1 %v4560_v34 }
 0x2a0   :  { %3459 = vmatprep.subr.bf16.mxu1 %v4568_v35  ;;  %3526 = vmatpush1.bf16.msra.mxu0 %v4563_v25 }
 0x2a1   :  { %3527 = vmatprep.subr.bf16.mxu0 %v4571_v33 }
 0x2a3   :  { %3460 = vmatpush2.bf16.msra.mxu1 %v4566_v0 }
 0x2a4   :  { %3461 = vmatprep.subr.bf16.mxu1 %v4574_v19  ;;  %3528 = vmatpush1.bf16.msra.mxu0 %v4569_v38 }
 0x2a5   :  { %3529 = vmatprep.subr.bf16.mxu0 %v4577_v48 }
 0x2a7   :  { %3462 = vmatpush2.bf16.msra.mxu1 %v4572_v43  ;;  %v2601_v43 = vld [vmem:[%s6141_s7] sm:$0x3f] }
 0x2a8   :  { %3463 = vmatprep.subr.bf16.mxu1 %v4580_v45  ;;  %3530 = vmatpush1.bf16.msra.mxu0 %v4575_v9 }
 0x2a9   :  { %3531 = vmatprep.subr.bf16.mxu0 %v4583_v36 }
 0x2ab   :  { %3464 = vmatpush2.bf16.msra.mxu1 %v4578_v46 }
 0x2ac   :  { %3465 = vmatprep.subr.bf16.mxu1 %v4586_v49  ;;  %3532 = vmatpush1.bf16.msra.mxu0 %v4581_v47 }
 0x2ad   :  { %3533 = vmatprep.subr.bf16.mxu0 %v4589_v50 }
 0x2af   :  { %3466 = vmatpush2.bf16.msra.mxu1 %v4584_v18 }
 0x2b0   :  { %3534 = vmatpush2.bf16.msra.mxu0 %v4587_v51  ;;  %3558 = vmatprep.subr.bf16.mxu1 %v4592_v52  ;;  %v2614_v51 = vrot.slane %v2601_v43, %v1435_v16 }
 0x2b1   :  { %3535 = vmatprep.subr.bf16.mxu0 %v4595_v53 }
 0x2b2   :  { %3468 = vmatmul.mubr.bf16.vlgmr.msra.gmra.mxu1 %v5812_v40 }
 0x2b3   :  { %3559 = vmatpush1.bf16.msra.mxu1 %v4590_v54  ;;  %3590 = vmatprep.mubr.bf16.mxu1 %v4660_v2  ;;  %v4602_v2 = vld [vmem:[%s6139_s6 + $0x400] ss:$24 sps:$4 sm:$0xff]  }
 0x2b4   :  { %3536 = vmatpush2.bf16.msra.mxu0 %v4593_v55  ;;  %3560 = vmatprep.subr.bf16.mxu1 %v4598_v56 }
 0x2b5   :  { %3537 = vmatprep.subr.bf16.mxu0 %v4601_v57 }
 0x2b7   :  { %3561 = vmatpush1.bf16.msra.mxu1 %v4596_v11 }
 0x2b8   :  { %3538 = vmatpush2.bf16.msra.mxu0 %v4599_v23  ;;  %3562 = vmatprep.subr.bf16.mxu1 %v4604_v32 }
 0x2b9   :  { %3539 = vmatprep.subr.bf16.mxu0 %v4607_v58 }
 0x2bb   :  { %3563 = vmatpush1.bf16.msra.mxu1 %v4602_v2  ;;  %v2618_v2 = vrot.slane %v2601_v43, %v1439_v21 }
 0x2bc   :  { %3540 = vmatpush2.bf16.msra.mxu0 %v4605_v60  ;;  %3564 = vmatprep.subr.bf16.mxu1 %v4610_v27 }
 0x2bd   :  { %3541 = vmatprep.subr.bf16.mxu0 %v4613_v61  ;;  %v2622_v61 = vrot.slane %v2601_v43, %v1443_v13 }
 0x2bf   :  { %3565 = vmatpush1.bf16.msra.mxu1 %v4608_v63 }
 0x2c0   :  { %3542 = vmatpush2.bf16.msra.mxu0 %v4611_v1  ;;  %3566 = vmatprep.subr.bf16.mxu1 %v4616_v3  ;;  %v2626_v1 = vrot.slane %v2601_v43, %v1447_v62 }
 0x2c1   :  { %3543 = vmatprep.subr.bf16.mxu0 %v4619_v39 }
 0x2c3   :  { %3567 = vmatpush1.bf16.msra.mxu1 %v4614_v4 }
 0x2c4   :  { %3544 = vmatpush2.bf16.msra.mxu0 %v4617_v5  ;;  %3568 = vmatprep.subr.bf16.mxu1 %v4622_v6 }
 0x2c5   :  { %3545 = vmatprep.subr.bf16.mxu0 %v4625_v7 }
 0x2c7   :  { %3569 = vmatpush1.bf16.msra.mxu1 %v4620_v8 }
 0x2c8   :  { %3546 = vmatpush2.bf16.msra.mxu0 %v4623_v12  ;;  %3570 = vmatprep.subr.bf16.mxu1 %v4628_v14 }
 0x2c9   :  { %3547 = vmatprep.subr.bf16.mxu0 %v4631_v29 }
 0x2cb   :  { %3571 = vmatpush1.bf16.msra.mxu1 %v4626_v17 }
 0x2cc   :  { %3548 = vmatpush2.bf16.msra.mxu0 %v4629_v15  ;;  %3572 = vmatprep.subr.bf16.mxu1 %v4634_v22 }
 0x2cf   :  { %3573 = vmatpush1.bf16.msra.mxu1 %v4632_v26  ;;  %3550 = vmatmul.mubr.bf16.vlgmr.msra.gmra.mxu0 %v5812_v40  ;;  %v2606_v40 = vrot.slane %v2601_v43, %v1427_v24 }
 0x2d2   :  { %3591 = vmatmul.mubr.bf16.vlgmr.msra.gmra.mxu1 %v5826_v42  ;;  %v2610_v42 = vrot.slane %v2601_v43, %v1431_v37 }
 0x32f   :  { %v3387_v44 = vpop.f32.mrf.mxu0 }
 0x330   :  { %v3388_v9 = vadd.f32 %v3387_v44, %v2606_v40 }
 0x331   :  { %v3389_v10 = vpop.f32.mrf.mxu0 }
 0x332   :  { %v3428_v28 = vpop.f32.mrf.mxu1  ;;  %v3390_v45 = vadd.f32 %v3389_v10, %v2610_v42 }
 0x333   :  { %v3391_v30 = vpop.f32.mrf.mxu0  ;;  %v3429_v36 = vadd.f32 %v3428_v28, %v3388_v9 }
 0x334   :  { %v3430_v34 = vpop.f32.mrf.mxu1 }
 0x335   :  { %v3392_v25 = vpop.f32.mrf.mxu0  ;;  %v3431_v46 = vadd.f32 %v3430_v34, %v3390_v45  ;;  %v3599_v47 = vsub.f32 0.0, %v3429_v36 }
 0x336   :  { %v3432_v35 = vpop.f32.mrf.mxu1 }
 0x337   :  { %v3600_v49 = vsub.f32 0.0, %v3431_v46  ;;  %v3602_v50 = vmul.f32 1.442695, %v3599_v47 }
 0x338   :  { %v3433_v33 = vpop.f32.mrf.mxu1 }
 0x339   :  { %v3604_v18 = vmul.f32 1.442695, %v3600_v49  ;;  %4647 = vpow2.f32 %v3602_v50 }
 0x33b   :  { %4649 = vpow2.f32 %v3604_v18 }
 0x346   :  { %v4648_v11 = vpop.eup %4647 }
 0x347   :  { %v3608_v32 = vadd.f32 1.0, %v4648_v11 }
 0x348   :  { %v4650_v23 = vpop.eup %4649 }
 0x349   :  { %v3609_v58 = vadd.f32 1.0, %v4650_v23 }
 0x34f   :  { %v3510_v0 = vpop.f32.mrf.mxu0 }
 0x351   :  { %v3512_v38 = vpop.f32.mrf.mxu0 }
 0x353   :  { %v3514_v19 = vpop.f32.mrf.mxu0 }
 0x355   :  { %v3515_v48 = vpop.f32.mrf.mxu0 }
 0x372   :  { %v3469_v52 = vpop.f32.mrf.mxu1 }
 0x373   :  { %v3470_v53 = vadd.f32 %v3469_v52, %v2614_v51 }
 0x374   :  { %v3471_v54 = vpop.f32.mrf.mxu1 }
 0x375   :  { %v3511_v24 = vadd.f32 %v3510_v0, %v3470_v53  ;;  %v3472_v27 = vadd.f32 %v3471_v54, %v2618_v2 }
 0x376   :  { %v3473_v55 = vpop.f32.mrf.mxu1 }
 0x377   :  { %v3601_v56 = vsub.f32 0.0, %v3511_v24  ;;  %v3513_v63 = vadd.f32 %v3512_v38, %v3472_v27 }
 0x378   :  { %v3474_v37 = vpop.f32.mrf.mxu1 }
 0x379   :  { %v3606_v57 = vmul.f32 1.442695, %v3601_v56  ;;  %v3617_v6 = vmax.f32 %v3513_v63, 0.0 }
 0x37b   :  { %4651 = vpow2.f32 %v3606_v57 }
 0x37c   :  { %4653 = vrcp.f32 %v3608_v32 }
 0x37d   :  { %4655 = vrcp.f32 %v3609_v58 }
 0x388   :  { %v4652_v60 = vpop.eup %4651 }
 0x389   :  { %v3610_v16 = vadd.f32 1.0, %v4652_v60  ;;  %v4654_v3 = vpop.eup %4653 }
 0x38a   :  { %v4656_v4 = vpop.eup %4655  ;;  %v3623_v21 = vsub.f32 1.0, %v4654_v3  ;;  %v3620_v22 = vmul.f32 %v4654_v3, %v3617_v6 }
 0x38b   :  { %4657 = vrcp.f32 %v3610_v16  ;;  %v3624_v29 = vsub.f32 1.0, %v4656_v4 }
 0x38c   :  { %v3626_v31 = vmul.f32 %v3623_v21, %v5791_v59 }
 0x38d   :  { %v3627_v28 = vmul.f32 %v3624_v29, %v5800_v20 }
 0x38e   :  { %v3629_v35 = vadd.f32 %v3626_v31, %v3620_v22 }
 0x38f   :  { %v3551_v39 = vpop.f32.mrf.mxu0 }
 0x390   :  { %v3552_v5 = vadd.f32 %v3551_v39, %v2622_v61 }
 0x391   :  { %v3553_v7 = vpop.f32.mrf.mxu0 }
 0x392   :  { %v3592_v8 = vpop.f32.mrf.mxu1  ;;  %v3554_v12 = vadd.f32 %v3553_v7, %v2626_v1 }
 0x393   :  { %v3593_v14 = vadd.f32 %v3592_v8, %v3552_v5  ;;  %v3555_v17 = vpop.f32.mrf.mxu0 }
 0x394   :  { %v3594_v15 = vpop.f32.mrf.mxu1 }
 0x395   :  { %v3618_v26 = vmax.f32 %v3593_v14, 0.0  ;;  %v3595_v13 = vadd.f32 %v3594_v15, %v3554_v12  ;;  %v3556_v44 = vpop.f32.mrf.mxu0 }
 0x396   :  { %v3596_v10 = vpop.f32.mrf.mxu1 }
 0x397   :  { %v3621_v62 = vmul.f32 %v4656_v4, %v3618_v26  ;;  %v3619_v30 = vmax.f32 %v3595_v13, 0.0 }
 0x398   :  { %v4658_v34 = vpop.eup %4657  ;;  %v3597_v25 = vpop.f32.mrf.mxu1 }
 0x399   :  { %v3630_v33 = vadd.f32 %v3627_v28, %v3621_v62  ;;  %v3622_v0 = vmul.f32 %v4658_v34, %v3619_v30  ;;  %v3625_v38 = vsub.f32 1.0, %v4658_v34 }
 0x39b   :  { %v4025_v19 = vpack.c.bf16 %v3630_v33, %v3629_v35  ;;  %v3628_v48 = vmul.f32 %v3625_v38, %v5817_v41 }
 0x39d   :  { %v3631_v43 = vadd.f32 %v3628_v48, %v3622_v0  ;;  %3645 = vst [vmem:[%s6142_s8] sm:$0xff] %v4025_v19 }
 0x39f   :  { %v4026_v40 = vpack.c.bf16 %v3631_v43, %v3631_v43 }
 0x3a1   :  { %3646 = vst [vmem:[%s6142_s8 + $0x8] sm:$0xf] %v4026_v40 }

// kernel: text_model_forward.5
= control target key start
LH: loop header
LB: loop body
LE: loop exit
PB: predicated region body
PF: predicated region fallthrough
CT: control target
= control target key end

     0   :  { %v4653_v0 = vmov 0.0   ;;  %v4654_v2 = vmov 0   ;;  %vm4655_vm0 = vmmov 0   ;;  %vm1079_vm1 = vcmask 1045504   ;;  %s6092_s3 = inlined_call_operand.vmem [shape: bf16[128,384], index: 3, kind: input, shape index: {}]   ;;  %s6093_s1 = inlined_call_operand.vmem [shape: bf16[8,8,128], index: 1, kind: input, shape index: {}]   ;;  %s6094_s2 = inlined_call_operand.vmem [shape: bf16[300,384], index: 2, kind: input, shape index: {}]   ;;  %s6095_s0 = inlined_call_operand.vmem [shape: bf16[8,8,300], index: 0, kind: input, shape index: {}]   ;;  %s6096_s4 = inlined_call_operand.vmem [shape: bf16[384,768], index: 4, kind: input, shape index: {}]   ;;  %s6097_s6 = inlined_call_operand.vmem [shape: bf16[384,768], index: 6, kind: input, shape index: {}]   ;;  %s6098_s5 = inlined_call_operand.vmem [shape: f32[1,768], index: 5, kind: input, shape index: {}]   ;;  %s6099_s7 = inlined_call_operand.vmem [shape: f32[1,768], index: 7, kind: input, shape index: {}]   ;;  %s6100_s8 = inlined_call_operand.vmem [shape: bf16[8,384], index: 8, kind: output, shape index: {}]  }
   0x1   :  { %4056 = vmatprep.subr.bf16.mxu1 %v4653_v0  ;;  %v4089_v1 = vld [vmem:[%s6092_s3 + $0xac] ss:$12 sps:$4 sm:$0xff]   ;;  %652 = vmatprep.mubr.bf16.mxu0 %v4654_v2  ;;  %v4091_v3 = vld [vmem:[%s6092_s3 + $0xb0] ss:$12 sps:$4 sm:$0xff]   ;;  %v4092_v4 = vld [vmem:[%s6092_s3 + $0xa8] ss:$12 sps:$4 sm:$0xff]  }
   0x2   :  { %4072 = vmatprep.mubr.msk.bf16.mxu1 %vm4655_vm0, %v4653_v0  ;;  %620 = vmatprep.subr.bf16.mxu0 %v4089_v1  ;;  %v4093_v5 = vld [vmem:[%s6092_s3 + $0x94] ss:$12 sps:$4 sm:$0xff]   ;;  %v4095_v6 = vld [vmem:[%s6092_s3 + $0x98] ss:$12 sps:$4 sm:$0xff]   ;;  %v4096_v7 = vld [vmem:[%s6092_s3 + $0x90] ss:$12 sps:$4 sm:$0xff]  }
   0x3   :  { %4057 = vmatpush3.bf16.msra.mxu1 %v4091_v3  ;;  %621 = vmatpush1.bf16.msra.mxu0 %v4092_v4  ;;  %v4097_v8 = vld [vmem:[%s6092_s3 + $0x7c] ss:$12 sps:$4 sm:$0xff]   ;;  %v4099_v9 = vld [vmem:[%s6092_s3 + $0x80] ss:$12 sps:$4 sm:$0xff]   ;;  %v4100_v10 = vld [vmem:[%s6092_s3 + $0x78] ss:$12 sps:$4 sm:$0xff]  }
   0x4   :  { %4058 = vmatprep.subr.bf16.mxu1 %v4653_v0  ;;  %622 = vmatprep.subr.bf16.mxu0 %v4093_v5  ;;  %v4101_v11 = vld [vmem:[%s6092_s3 + $0x64] ss:$12 sps:$4 sm:$0xff]   ;;  %v4103_v12 = vld [vmem:[%s6092_s3 + $0x68] ss:$12 sps:$4 sm:$0xff]   ;;  %v4104_v13 = vld [vmem:[%s6092_s3 + $0x60] ss:$12 sps:$4 sm:$0xff]  }
   0x5   :  { %v4105_v14 = vld [vmem:[%s6092_s3 + $0x4c] ss:$12 sps:$4 sm:$0xff]   ;;  %v4107_v15 = vld [vmem:[%s6092_s3 + $0x50] ss:$12 sps:$4 sm:$0xff]   ;;  %v4108_v16 = vld [vmem:[%s6092_s3 + $0x48] ss:$12 sps:$4 sm:$0xff]  }
   0x6   :  { %v4109_v17 = vld [vmem:[%s6092_s3 + $0x34] ss:$12 sps:$4 sm:$0xff]   ;;  %v4111_v18 = vld [vmem:[%s6092_s3 + $0x38] ss:$12 sps:$4 sm:$0xff]   ;;  %v4112_v19 = vld [vmem:[%s6092_s3 + $0x30] ss:$12 sps:$4 sm:$0xff]  }
   0x7   :  { %4059 = vmatpush3.bf16.msra.mxu1 %v4095_v6  ;;  %623 = vmatpush1.bf16.msra.mxu0 %v4096_v7  ;;  %v4003_v20 = vld [vmem:[%s6093_s1] sm:$0xff]   ;;  %v4018_v23 = vld [vmem:[%s6093_s1 + $0x8] sm:$0xff]   ;;  %v4019_v24 = vld [vmem:[%s6093_s1 + $0x10] sm:$0xff]   ;;  %vm476_vm2 = vcmask 1041409   ;;  %vm478_vm3 = vcmask 1042434   ;;  %vm480_vm4 = vcmask 1043459  }
   0x8   :  { %4060 = vmatprep.subr.bf16.mxu1 %v4653_v0  ;;  %624 = vmatprep.subr.bf16.mxu0 %v4097_v8  ;;  %v4004_v21 = vunpack.c.l.bf16 %v4003_v20  ;;  %v4005_v22 = vunpack.c.h.bf16 %v4003_v20  ;;  %v4020_v25 = vld [vmem:[%s6093_s1 + $0x18] sm:$0xff]   ;;  %v4008_v27 = vunpack.c.l.bf16 %v4018_v23  ;;  %v4009_v28 = vunpack.c.h.bf16 %v4018_v23  ;;  %v4115_v35 = vld [vmem:[%s6092_s3 + $0x20] ss:$12 sps:$4 sm:$0xff]   ;;  %v4117_v45 = vld [vmem:[%s6092_s3 + $0x4] ss:$12 sps:$4 sm:$0xff]  }
   0x9   :  { %v4113_v26 = vld [vmem:[%s6092_s3 + $0x1c] ss:$12 sps:$4 sm:$0xff]   ;;  %v4012_v29 = vunpack.c.l.bf16 %v4019_v24  ;;  %v4013_v30 = vunpack.c.h.bf16 %v4019_v24  ;;  %v4016_v31 = vunpack.c.l.bf16 %v4020_v25  ;;  %v4017_v32 = vunpack.c.h.bf16 %v4020_v25  ;;  %v4116_v40 = vld [vmem:[%s6092_s3 + $0x18] ss:$12 sps:$4 sm:$0xff]   ;;  %v4120_v60 = vld [vmem:[%s6092_s3] ss:$12 sps:$4 sm:$0xff]  }
   0xa   :  { %v288_v33 = vrot.slane %v4004_v21, 4  ;;  %v294_v34 = vrot.slane %v4005_v22, 4  ;;  %v300_v36 = vrot.slane %v4008_v27, 4  ;;  %v306_v37 = vrot.slane %v4009_v28, 4  ;;  %v4119_v55 = vld [vmem:[%s6092_s3 + $0x8] ss:$12 sps:$4 sm:$0xff]  }
   0xb   :  { %4061 = vmatpush3.bf16.msra.mxu1 %v4099_v9  ;;  %625 = vmatpush1.bf16.msra.mxu0 %v4100_v10  ;;  %v312_v38 = vrot.slane %v4012_v29, 4  ;;  %v318_v39 = vrot.slane %v4013_v30, 4  ;;  %v324_v43 = vrot.slane %v4016_v31, 4  ;;  %v330_v44 = vrot.slane %v4017_v32, 4  ;;  %v4125_v7 = vld [vmem:[%s6094_s2 + $0xac] ss:$12 sps:$4 sm:$0xff]  }
   0xc   :  { %4062 = vmatprep.subr.bf16.mxu1 %v4653_v0  ;;  %626 = vmatprep.subr.bf16.mxu0 %v4101_v11  ;;  %v289_v41 = vadd.f32 %v4004_v21, %v288_v33  ;;  %v295_v42 = vadd.f32 %v4005_v22, %v294_v34  ;;  %v301_v46 = vadd.f32 %v4008_v27, %v300_v36  ;;  %v4121_v50 = vld [vmem:[%s6094_s2 + $0x1b4] ss:$12 sps:$4 sm:$0x3f]   ;;  %vm482_vm5 = vcmask 1044484  }
   0xd   :  { %v307_v47 = vadd.f32 %v4009_v28, %v306_v37  ;;  %v313_v48 = vadd.f32 %v4012_v29, %v312_v38  ;;  %v319_v49 = vadd.f32 %v4013_v30, %v318_v39  ;;  %v325_v53 = vadd.f32 %v4016_v31, %v324_v43  ;;  %v4126_v28 = vld [vmem:[%s6094_s2 + $0x1b0] ss:$12 sps:$4 sm:$0x3f]  }
   0xe   :  { %v290_v51 = vrot.slane %v289_v41, 2  ;;  %v296_v52 = vrot.slane %v295_v42, 2  ;;  %v331_v54 = vadd.f32 %v4017_v32, %v330_v44  ;;  %v302_v56 = vrot.slane %v301_v46, 2 }
   0xf   :  { %4063 = vmatpush3.bf16.msra.mxu1 %v4103_v12  ;;  %627 = vmatpush1.bf16.msra.mxu0 %v4104_v13  ;;  %v308_v57 = vrot.slane %v307_v47, 2  ;;  %v314_v58 = vrot.slane %v313_v48, 2  ;;  %v320_v59 = vrot.slane %v319_v49, 2  ;;  %v326_v63 = vrot.slane %v325_v53, 2 }
  0x10   :  { %4064 = vmatprep.subr.bf16.mxu1 %v4653_v0  ;;  %628 = vmatprep.subr.bf16.mxu0 %v4105_v14  ;;  %v291_v61 = vadd.f32 %v290_v51, %v289_v41  ;;  %v297_v62 = vadd.f32 %v296_v52, %v295_v42  ;;  %v332_v1 = vrot.slane %v331_v54, 2  ;;  %v303_v3 = vadd.f32 %v302_v56, %v301_v46  ;;  %v31_v41 = vld [vmem:[%s6095_s0 + $0x8] ss:$12 sps:$4 sm:$0xff]   ;;  %v35_v46 = vld [vmem:[%s6095_s0 + $0x20] ss:$12 sps:$4 sm:$0xff]  }
  0x11   :  { %v309_v4 = vadd.f32 %v308_v57, %v307_v47  ;;  %v315_v5 = vadd.f32 %v314_v58, %v313_v48  ;;  %v321_v6 = vadd.f32 %v320_v59, %v319_v49  ;;  %v327_v10 = vadd.f32 %v326_v63, %v325_v53  ;;  %v39_v47 = vld [vmem:[%s6095_s0 + $0x38] ss:$12 sps:$4 sm:$0xff]   ;;  %v43_v52 = vld [vmem:[%s6095_s0 + $0x50] ss:$12 sps:$4 sm:$0xff]  }
  0x12   :  { %v292_v8 = vrot.slane %v291_v61, 1  ;;  %v298_v9 = vrot.slane %v297_v62, 1  ;;  %v333_v11 = vadd.f32 %v332_v1, %v331_v54  ;;  %v304_v12 = vrot.slane %v303_v3, 1 }
  0x13   :  { %4065 = vmatpush3.bf16.msra.mxu1 %v4107_v15  ;;  %629 = vmatpush1.bf16.msra.mxu0 %v4108_v16  ;;  %v310_v13 = vrot.slane %v309_v4, 1  ;;  %v316_v14 = vrot.slane %v315_v5, 1  ;;  %v322_v15 = vrot.slane %v321_v6, 1  ;;  %vm82_vm6 = vcmask 359424  }
  0x14   :  { %4066 = vmatprep.subr.bf16.mxu1 %v4653_v0  ;;  %630 = vmatprep.subr.bf16.mxu0 %v4109_v17  ;;  %v293_v16 = vadd.f32 %v292_v8, %v291_v61  ;;  %v299_v17 = vadd.f32 %v298_v9, %v297_v62  ;;  %v305_v20 = vadd.f32 %v304_v12, %v303_v3  ;;  %vm484_vm7 = vcmask 1045509   ;;  %v4123_v12 = vld [vmem:[%s6094_s2 + $0xa8] ss:$12 sps:$4 sm:$0xff]  }
  0x15   :  { %v311_v21 = vadd.f32 %v310_v13, %v309_v4  ;;  %v317_v22 = vadd.f32 %v316_v14, %v315_v5  ;;  %v323_v23 = vadd.f32 %v322_v15, %v321_v6  ;;  %vm486_vm8 = vcmask 1046534  }
  0x16   :  { %v337_v27 = vmul.f32 0.125, %v299_v17  ;;  %v338_v29 = vmul.f32 0.125, %v305_v20  ;;  %vm488_vm9 = vcmask 1047559   ;;  %v1081_v56 = vsel %vm1079_vm1, %v4126_v28, 0  ;;  %v4129_v17 = vld [vmem:[%s6094_s2 + $0x19c] ss:$12 sps:$4 sm:$0xff]  }
  0x17   :  { %4067 = vmatpush3.bf16.msra.mxu1 %v4111_v18  ;;  %631 = vmatpush1.bf16.msra.mxu0 %v4112_v19  ;;  %v328_v18 = vrot.slane %v327_v10, 1  ;;  %v334_v19 = vrot.slane %v333_v11, 1  ;;  %v339_v30 = vmul.f32 0.125, %v311_v21  ;;  %v340_v31 = vmul.f32 0.125, %v317_v22 }
  0x18   :  { %4068 = vmatprep.subr.bf16.mxu1 %v4653_v0  ;;  %632 = vmatprep.subr.bf16.mxu0 %v4113_v26  ;;  %v336_v26 = vmul.f32 0.125, %v293_v16  ;;  %v341_v32 = vmul.f32 0.125, %v323_v23  ;;  %v345_v36 = vpack.c.bf16 %v337_v27, %v337_v27  ;;  %v346_v37 = vpack.c.bf16 %v338_v29, %v338_v29  ;;  %v4130_v27 = vld [vmem:[%s6094_s2 + $0x90] ss:$12 sps:$4 sm:$0xff]  }
  0x19   :  { %v329_v24 = vadd.f32 %v328_v18, %v327_v10  ;;  %v335_v25 = vadd.f32 %v334_v19, %v333_v11  ;;  %v347_v38 = vpack.c.bf16 %v339_v30, %v339_v30  ;;  %v348_v39 = vpack.c.bf16 %v340_v31, %v340_v31  ;;  %v4132_v18 = vld [vmem:[%s6094_s2 + $0x94] ss:$12 sps:$4 sm:$0xff]  }
  0x1a   :  { %v470_v48 = vunpack.c.l.b16 %v346_v37  ;;  %v48_v58 = vunpack.c.l.bf16 %v31_v41  ;;  %v51_v59 = vunpack.c.h.bf16 %v31_v41  ;;  %v57_v62 = vunpack.c.h.bf16 %v35_v46  ;;  %v4138_v41 = vld [vmem:[%s6094_s2 + $0x7c] ss:$12 sps:$4 sm:$0xff]  }
  0x1b   :  { %4069 = vmatpush3.bf16.msra.mxu1 %v4115_v35  ;;  %633 = vmatpush1.bf16.msra.mxu0 %v4116_v40  ;;  %v342_v33 = vmul.f32 0.125, %v329_v24  ;;  %v343_v34 = vmul.f32 0.125, %v335_v25  ;;  %v344_v35 = vpack.c.bf16 %v336_v26, %v336_v26  ;;  %v349_v40 = vpack.c.bf16 %v341_v32, %v341_v32  ;;  %v4127_v26 = vld [vmem:[%s6094_s2 + $0x198] ss:$12 sps:$4 sm:$0xff]  }
  0x1c   :  { %4070 = vmatprep.subr.bf16.mxu1 %v4653_v0  ;;  %634 = vmatprep.subr.bf16.mxu0 %v4117_v45  ;;  %v469_v45 = vunpack.c.l.b16 %v345_v36  ;;  %v471_v49 = vunpack.c.l.b16 %v347_v38  ;;  %v60_v63 = vunpack.c.l.bf16 %v39_v47  ;;  %v63_v1 = vunpack.c.h.bf16 %v39_v47  ;;  %v4136_v47 = vld [vmem:[%s6094_s2 + $0x78] ss:$12 sps:$4 sm:$0xff]  }
  0x1d   :  { %v350_v42 = vpack.c.bf16 %v342_v33, %v342_v33  ;;  %v351_v43 = vpack.c.bf16 %v343_v34, %v343_v34  ;;  %v468_v44 = vunpack.c.l.b16 %v344_v35  ;;  %v473_v51 = vunpack.c.l.b16 %v349_v40  ;;  %v4135_v40 = vld [vmem:[%s6094_s2 + $0x184] ss:$12 sps:$4 sm:$0xff]  }
  0x1e   :  { %v66_v4 = vunpack.c.l.bf16 %v43_v52  ;;  %v69_v5 = vunpack.c.h.bf16 %v43_v52  ;;  %v83_v6 = vsel %vm82_vm6, %v48_v58, 0.0  ;;  %v102_v9 = vsel %vm82_vm6, %v51_v59, 0.0 }
  0x1f   :  { %4071 = vmatpush3.bf16.msra.mxu1 %v4119_v55  ;;  %635 = vmatpush1.bf16.msra.mxu0 %v4120_v60  ;;  %v474_v53 = vunpack.c.l.b16 %v350_v42  ;;  %v475_v54 = vunpack.c.l.b16 %v351_v43  ;;  %v477_v55 = vsel %vm476_vm2, %v469_v45, %v468_v44  ;;  %v54_v60 = vunpack.c.l.bf16 %v35_v46  ;;  %v4133_v46 = vld [vmem:[%s6094_s2 + $0x180] ss:$12 sps:$4 sm:$0xff]  }
  0x20   :  { %3707 = vmatprep.subr.msk.bf16.mxu1 %vm1079_vm1, %v4121_v50  ;;  %1089 = vmatprep.subr.bf16.mxu0 %v4125_v7  ;;  %v472_v50 = vunpack.c.l.b16 %v348_v39  ;;  %v479_v57 = vsel %vm478_vm3, %v470_v48, %v477_v55  ;;  %v84_v8 = vrot.slane %v83_v6, 4  ;;  %v103_v13 = vrot.slane %v102_v9, 4 }
  0x21   :  { %v481_v61 = vsel %vm480_vm4, %v471_v49, %v479_v57  ;;  %v121_v10 = vsel %vm82_vm6, %v54_v60, 0.0  ;;  %v140_v15 = vsel %vm82_vm6, %v57_v62, 0.0  ;;  %v159_v21 = vsel %vm82_vm6, %v60_v63, 0.0 }
  0x22   :  { %v483_v3 = vsel %vm482_vm5, %v472_v50, %v481_v61  ;;  %v122_v14 = vrot.slane %v121_v10, 4  ;;  %v85_v19 = vadd.f32 %v84_v8, %v83_v6  ;;  %v141_v20 = vrot.slane %v140_v15, 4  ;;  %v4142_v61 = vld [vmem:[%s6094_s2 + $0x64] ss:$12 sps:$4 sm:$0xff]  }
  0x23   :  { %v485_v7 = vsel %vm484_vm7, %v473_v51, %v483_v3  ;;  %v104_v23 = vadd.f32 %v103_v13, %v102_v9  ;;  %v160_v25 = vrot.slane %v159_v21, 4  ;;  %v178_v30 = vsel %vm82_vm6, %v63_v1, 0.0 }
  0x24   :  { %v487_v11 = vsel %vm486_vm8, %v474_v53, %v485_v7  ;;  %v123_v24 = vadd.f32 %v122_v14, %v121_v10  ;;  %v86_v28 = vrot.slane %v85_v19, 2  ;;  %v142_v29 = vadd.f32 %v141_v20, %v140_v15 }
  0x25   :  { %v489_v16 = vsel %vm488_vm9, %v475_v54, %v487_v11  ;;  %v197_v31 = vsel %vm82_vm6, %v66_v4, 0.0  ;;  %v105_v32 = vrot.slane %v104_v23, 2  ;;  %v161_v34 = vadd.f32 %v160_v25, %v159_v21  ;;  %v4140_v4 = vld [vmem:[%s6094_s2 + $0x60] ss:$12 sps:$4 sm:$0xff]  }
  0x26   :  { %v490_v22 = vpack.c.b16 %v489_v16, %v489_v16  ;;  %v124_v33 = vrot.slane %v123_v24, 2  ;;  %v179_v35 = vrot.slane %v178_v30, 4  ;;  %v87_v36 = vadd.f32 %v86_v28, %v85_v19 }
  0x27   :  { %v143_v37 = vrot.slane %v142_v29, 2  ;;  %v198_v38 = vrot.slane %v197_v31, 4  ;;  %v216_v39 = vsel %vm82_vm6, %v69_v5, 0.0  ;;  %v106_v42 = vadd.f32 %v105_v32, %v104_v23 }
  0x28   :  { %653 = vmatmul.mubr.bf16.vlgmr.msra.gmra.mxu0 %v490_v22  ;;  %4073 = vmatmul.mubr.bf16.vlgmr.msra.gmra.mxu1 %v490_v22  ;;  %v125_v43 = vadd.f32 %v124_v33, %v123_v24  ;;  %v162_v44 = vrot.slane %v161_v34, 2  ;;  %v180_v45 = vadd.f32 %v179_v35, %v178_v30  ;;  %v88_v48 = vrot.slane %v87_v36, 1  ;;  %v4877_v22 = vld [vmem:[%s6095_s0] sm:$0xff]  ;;  %v4145_v35 = vld [vmem:[%s6094_s2 + $0x48] ss:$12 sps:$4 sm:$0xff]  }
  0x29   :  { %1141 = vmatpush1.bf16.msra.mxu1 %v1081_v56  ;;  %1090 = vmatpush1.bf16.msra.mxu0 %v4123_v12  ;;  %v144_v49 = vadd.f32 %v143_v37, %v142_v29  ;;  %v199_v50 = vadd.f32 %v198_v38, %v197_v31  ;;  %v217_v51 = vrot.slane %v216_v39, 4  ;;  %v107_v52 = vrot.slane %v106_v42, 1  ;;  %v4139_v56 = vld [vmem:[%s6094_s2 + $0x170] ss:$12 sps:$4 sm:$0xff]  }
  0x2a   :  { %1142 = vmatprep.subr.bf16.mxu1 %v4129_v17  ;;  %1091 = vmatprep.subr.bf16.mxu0 %v4132_v18  ;;  %v126_v53 = vrot.slane %v125_v43, 1  ;;  %v163_v54 = vadd.f32 %v162_v44, %v161_v34  ;;  %v181_v55 = vrot.slane %v180_v45, 2  ;;  %v89_v57 = vadd.f32 %v88_v48, %v87_v36  ;;  %v4147_v17 = vld [vmem:[%s6094_s2 + $0x4c] ss:$12 sps:$4 sm:$0xff]   ;;  %v4910_v48 = vld [vmem:[%s6095_s0 + $0x30] sm:$0xff] }
  0x2b   :  { %1162 = vmatprep.mubr.bf16.mxu1 %v4654_v2  ;;  %v145_v58 = vrot.slane %v144_v49, 1  ;;  %v200_v59 = vrot.slane %v199_v50, 2  ;;  %v218_v60 = vadd.f32 %v217_v51, %v216_v39  ;;  %v108_v62 = vadd.f32 %v107_v52, %v106_v42  ;;  %v4882_v31 = vld [vmem:[%s6095_s0 + $0xc] sm:$0xff]  ;;  %v4890_v36 = vld [vmem:[%s6095_s0 + $0x18] sm:$0xff] }
  0x2c   :  { %v127_v63 = vadd.f32 %v126_v53, %v125_v43  ;;  %v164_v1 = vrot.slane %v163_v54, 1  ;;  %v182_v3 = vadd.f32 %v181_v55, %v180_v45  ;;  %v226_v8 = vmul.f32 0.125, %v89_v57  ;;  %v4917_v52 = vld [vmem:[%s6095_s0 + $0x3c] sm:$0xff] }
  0x2d   :  { %1143 = vmatpush1.bf16.msra.mxu1 %v4127_v26  ;;  %1092 = vmatpush1.bf16.msra.mxu0 %v4130_v27  ;;  %v146_v5 = vadd.f32 %v145_v58, %v144_v49  ;;  %v201_v6 = vadd.f32 %v200_v59, %v199_v50  ;;  %v219_v7 = vrot.slane %v218_v60, 2  ;;  %v229_v11 = vmul.f32 0.125, %v108_v62  ;;  %v4925_v58 = vld [vmem:[%s6095_s0 + $0x48] sm:$0xff]  ;;  %v4930_v59 = vld [vmem:[%s6095_s0 + $0x54] sm:$0xff] }
  0x2e   :  { %1144 = vmatprep.subr.bf16.mxu1 %v4135_v40  ;;  %1093 = vmatprep.subr.bf16.mxu0 %v4138_v41  ;;  %v165_v9 = vadd.f32 %v164_v1, %v163_v54  ;;  %v183_v10 = vrot.slane %v182_v3, 1  ;;  %v232_v12 = vmul.f32 0.125, %v127_v63  ;;  %v250_v16 = vpack.c.bf16 %v226_v8, %v226_v8  ;;  %v4152_v41 = vld [vmem:[%s6094_s2 + $0x34] ss:$12 sps:$4 sm:$0xff]   ;;  %v4157_v62 = vld [vmem:[%s6094_s2 + $0x1c] ss:$12 sps:$4 sm:$0xff]  }
  0x2f   :  { %v202_v13 = vrot.slane %v201_v6, 1  ;;  %v220_v14 = vadd.f32 %v219_v7, %v218_v60  ;;  %v235_v15 = vmul.f32 0.125, %v146_v5  ;;  %v253_v20 = vpack.c.bf16 %v229_v11, %v229_v11 }
  0x30   :  { %v184_v18 = vadd.f32 %v183_v10, %v182_v3  ;;  %v238_v19 = vmul.f32 0.125, %v165_v9  ;;  %v256_v21 = vpack.c.bf16 %v232_v12, %v232_v12  ;;  %v727_v26 = vunpack.c.l.b16 %v250_v16  ;;  %v4144_v9 = vld [vmem:[%s6094_s2 + $0x158] ss:$12 sps:$4 sm:$0xff]  }
  0x31   :  { %1145 = vmatpush1.bf16.msra.mxu1 %v4133_v46  ;;  %1094 = vmatpush1.bf16.msra.mxu0 %v4136_v47  ;;  %v203_v23 = vadd.f32 %v202_v13, %v201_v6  ;;  %v221_v24 = vrot.slane %v220_v14, 1  ;;  %v259_v25 = vpack.c.bf16 %v235_v15, %v235_v15  ;;  %v730_v29 = vunpack.c.l.b16 %v253_v20  ;;  %v4150_v46 = vld [vmem:[%s6094_s2 + $0x30] ss:$12 sps:$4 sm:$0xff]   ;;  %v4905_v47 = vld [vmem:[%s6095_s0 + $0x24] sm:$0xff] }
  0x32   :  { %4030 = vmatprep.subr.bf16.mxu1 %v4139_v56  ;;  %1095 = vmatprep.subr.bf16.mxu0 %v4142_v61  ;;  %v241_v27 = vmul.f32 0.125, %v184_v18  ;;  %v262_v28 = vpack.c.bf16 %v238_v19, %v238_v19  ;;  %v733_v30 = vunpack.c.l.b16 %v256_v21  ;;  %v46_v37 = vunpack.c.l.bf16 %v4877_v22  ;;  %v4143_v6 = vld [vmem:[%s6094_s2 + $0xb0] ss:$12 sps:$4 sm:$0xff]   ;;  %v4155_v10 = vld [vmem:[%s6094_s2 + $0x18] ss:$12 sps:$4 sm:$0xff]  }
  0x33   :  { %v222_v32 = vadd.f32 %v221_v24, %v220_v14  ;;  %v244_v33 = vmul.f32 0.125, %v203_v23  ;;  %v736_v34 = vunpack.c.l.b16 %v259_v25  ;;  %v763_v40 = vsel %vm476_vm2, %v730_v29, %v727_v26  ;;  %v4162_v16 = vld [vmem:[%s6094_s2 + $0x4] ss:$12 sps:$4 sm:$0xff]  }
  0x34   :  { %v265_v38 = vpack.c.bf16 %v241_v27, %v241_v27  ;;  %v739_v39 = vunpack.c.l.b16 %v262_v28  ;;  %v47_v42 = vunpack.c.h.bf16 %v4877_v22  ;;  %v764_v45 = vsel %vm478_vm3, %v733_v30, %v763_v40  ;;  %v4148_v25 = vld [vmem:[%s6094_s2 + $0x98] ss:$12 sps:$4 sm:$0xff]   ;;  %v4149_v30 = vld [vmem:[%s6094_s2 + $0x140] ss:$12 sps:$4 sm:$0xff]  }
  0x35   :  { %1096 = vmatpush1.bf16.msra.mxu0 %v4140_v4  ;;  %v247_v43 = vmul.f32 0.125, %v222_v32  ;;  %v268_v44 = vpack.c.bf16 %v244_v33, %v244_v33  ;;  %v49_v49 = vunpack.c.l.bf16 %v4882_v31  ;;  %v765_v51 = vsel %vm480_vm4, %v736_v34, %v764_v45  ;;  %v4160_v32 = vld [vmem:[%s6094_s2] ss:$12 sps:$4 sm:$0xff]  }
  0x36   :  { %1097 = vmatprep.subr.bf16.mxu0 %v4147_v17  ;;  %v742_v50 = vunpack.c.l.b16 %v265_v38  ;;  %v50_v53 = vunpack.c.h.bf16 %v4882_v31  ;;  %v52_v54 = vunpack.c.l.bf16 %v4890_v36  ;;  %v766_v57 = vsel %vm482_vm5, %v739_v39, %v765_v51 }
  0x37   :  { %v271_v55 = vpack.c.bf16 %v247_v43, %v247_v43  ;;  %v745_v56 = vunpack.c.l.b16 %v268_v44  ;;  %v53_v60 = vunpack.c.h.bf16 %v4890_v36  ;;  %v55_v63 = vunpack.c.l.bf16 %v4905_v47  ;;  %v4167_v43 = vld [vmem:[%s6094_s2 + $0x16c] ss:$12 sps:$4 sm:$0xff]  }
  0x38   :  { %v767_v61 = vsel %vm484_vm7, %v742_v50, %v766_v57  ;;  %v56_v1 = vunpack.c.h.bf16 %v4905_v47  ;;  %v58_v3 = vunpack.c.l.bf16 %v4910_v48  ;;  %v59_v7 = vunpack.c.h.bf16 %v4910_v48  ;;  %v4153_v57 = vld [vmem:[%s6094_s2 + $0x80] ss:$12 sps:$4 sm:$0xff]   ;;  %v4183_v48 = vld [vmem:[%s6094_s2 + $0x108] ss:$12 sps:$4 sm:$0xff]  }
  0x39   :  { %1098 = vmatpush1.bf16.msra.mxu0 %v4145_v35  ;;  %v748_v4 = vunpack.c.l.b16 %v271_v55  ;;  %v768_v5 = vsel %vm486_vm8, %v745_v56, %v767_v61  ;;  %v61_v8 = vunpack.c.l.bf16 %v4917_v52  ;;  %v62_v11 = vunpack.c.h.bf16 %v4917_v52  ;;  %v4174_v52 = vld [vmem:[%s6094_s2 + $0xc8] ss:$12 sps:$4 sm:$0xff]  }
  0x3a   :  { %1099 = vmatprep.subr.bf16.mxu0 %v4152_v41  ;;  %v64_v12 = vunpack.c.l.bf16 %v4925_v58  ;;  %v65_v13 = vunpack.c.h.bf16 %v4925_v58  ;;  %v67_v14 = vunpack.c.l.bf16 %v4930_v59  ;;  %v68_v17 = vunpack.c.h.bf16 %v4930_v59  ;;  %v4191_v59 = vld [vmem:[%s6094_s2 + $0xd8] ss:$12 sps:$4 sm:$0xff]  }
  0x3b   :  { %v769_v15 = vsel %vm488_vm9, %v748_v4, %v768_v5  ;;  %v76_v18 = vrot.slane %v47_v42, 4  ;;  %v96_v19 = vrot.slane %v50_v53, 4  ;;  %v115_v21 = vrot.slane %v53_v60, 4  ;;  %v4154_v4 = vld [vmem:[%s6094_s2 + $0x128] ss:$12 sps:$4 sm:$0xff]  }
  0x3c   :  { %v4961_v20 = vpack.c.b16 %v769_v15, %v769_v15  ;;  %v134_v23 = vrot.slane %v56_v1, 4  ;;  %v153_v24 = vrot.slane %v59_v7, 4  ;;  %v172_v28 = vrot.slane %v62_v11, 4  ;;  %v4165_v5 = vld [vmem:[%s6094_s2 + $0x168] ss:$12 sps:$4 sm:$0xff]  }
  0x3d   :  { %1100 = vmatpush1.bf16.msra.mxu0 %v4150_v46  ;;  %v77_v26 = vadd.f32 %v76_v18, %v47_v42  ;;  %v97_v27 = vadd.f32 %v96_v19, %v50_v53  ;;  %v191_v29 = vrot.slane %v65_v13, 4  ;;  %v116_v33 = vadd.f32 %v115_v21, %v53_v60 }
  0x3e   :  { %1101 = vmatprep.subr.bf16.mxu0 %v4157_v62  ;;  %3708 = vmatmul.mubr.msk.bf16.vlgmr.msra.gmra.mxu1 %vm82_vm6, %v4961_v20  ;;  %v135_v34 = vadd.f32 %v134_v23, %v56_v1  ;;  %v154_v35 = vadd.f32 %v153_v24, %v59_v7  ;;  %v210_v38 = vrot.slane %v68_v17, 4  ;;  %v173_v41 = vadd.f32 %v172_v28, %v62_v11  ;;  %v4172_v11 = vld [vmem:[%s6094_s2 + $0x154] ss:$12 sps:$4 sm:$0xff]  }
  0x3f   :  { %4031 = vmatpush3.bf16.msra.mxu1 %v4143_v6  ;;  %v78_v39 = vrot.slane %v77_v26, 2  ;;  %v98_v40 = vrot.slane %v97_v27, 2  ;;  %v192_v42 = vadd.f32 %v191_v29, %v65_v13  ;;  %v117_v44 = vrot.slane %v116_v33, 2  ;;  %v4158_v24 = vld [vmem:[%s6094_s2 + $0x68] ss:$12 sps:$4 sm:$0xff]  }
  0x40   :  { %4032 = vmatprep.subr.bf16.mxu1 %v4144_v9  ;;  %v136_v45 = vrot.slane %v135_v34, 2  ;;  %v155_v46 = vrot.slane %v154_v35, 2  ;;  %v211_v50 = vadd.f32 %v210_v38, %v68_v17  ;;  %v174_v55 = vrot.slane %v173_v41, 2  ;;  %v4159_v29 = vld [vmem:[%s6094_s2 + $0x110] ss:$12 sps:$4 sm:$0xff]  }
  0x41   :  { %1102 = vmatpush1.bf16.msra.mxu0 %v4155_v10  ;;  %v79_v51 = vadd.f32 %v78_v39, %v77_v26  ;;  %v99_v53 = vadd.f32 %v98_v40, %v97_v27  ;;  %v193_v56 = vrot.slane %v192_v42, 2  ;;  %v118_v60 = vadd.f32 %v117_v44, %v116_v33  ;;  %v4177_v38 = vld [vmem:[%s6094_s2 + $0x13c] ss:$12 sps:$4 sm:$0xff]  }
  0x42   :  { %1103 = vmatprep.subr.bf16.mxu0 %v4162_v16  ;;  %v137_v61 = vadd.f32 %v136_v45, %v135_v34  ;;  %v156_v62 = vadd.f32 %v155_v46, %v154_v35  ;;  %v212_v1 = vrot.slane %v211_v50, 2  ;;  %v175_v9 = vadd.f32 %v174_v55, %v173_v41 }
  0x43   :  { %4033 = vmatpush3.bf16.msra.mxu1 %v4148_v25  ;;  %v80_v6 = vrot.slane %v79_v51, 1  ;;  %v100_v7 = vrot.slane %v99_v53, 1  ;;  %v194_v10 = vadd.f32 %v193_v56, %v192_v42  ;;  %v119_v13 = vrot.slane %v118_v60, 1  ;;  %v4163_v56 = vld [vmem:[%s6094_s2 + $0x50] ss:$12 sps:$4 sm:$0xff]  }
  0x44   :  { %4034 = vmatprep.subr.bf16.mxu1 %v4149_v30  ;;  %v138_v15 = vrot.slane %v137_v61, 1  ;;  %v157_v16 = vrot.slane %v156_v62, 1  ;;  %v213_v17 = vadd.f32 %v212_v1, %v211_v50  ;;  %v176_v21 = vrot.slane %v175_v9, 1  ;;  %v4170_v30 = vld [vmem:[%s6094_s2 + $0x150] ss:$12 sps:$4 sm:$0xff]  }
  0x45   :  { %1104 = vmatpush1.bf16.msra.mxu0 %v4160_v32  ;;  %v81_v18 = vadd.f32 %v80_v6, %v79_v51  ;;  %v101_v19 = vadd.f32 %v100_v7, %v99_v53  ;;  %v195_v23 = vrot.slane %v194_v10, 1  ;;  %v120_v25 = vadd.f32 %v119_v13, %v118_v60 }
  0x46   :  { %1105 = vmatprep.subr.bf16.mxu0 %v4167_v43  ;;  %v139_v26 = vadd.f32 %v138_v15, %v137_v61  ;;  %v158_v27 = vadd.f32 %v157_v16, %v156_v62  ;;  %v214_v28 = vrot.slane %v213_v17, 1  ;;  %v177_v32 = vadd.f32 %v176_v21, %v175_v9 }
  0x47   :  { %4035 = vmatpush3.bf16.msra.mxu1 %v4153_v57  ;;  %v196_v33 = vadd.f32 %v195_v23, %v194_v10  ;;  %v225_v34 = vmul.f32 0.125, %v81_v18  ;;  %v228_v35 = vmul.f32 0.125, %v101_v19  ;;  %v231_v40 = vmul.f32 0.125, %v120_v25  ;;  %v4175_v57 = vld [vmem:[%s6094_s2 + $0x138] ss:$12 sps:$4 sm:$0xff]  }
  0x48   :  { %4036 = vmatprep.subr.bf16.mxu1 %v4154_v4  ;;  %v215_v39 = vadd.f32 %v214_v28, %v213_v17  ;;  %v234_v41 = vmul.f32 0.125, %v139_v26  ;;  %v237_v42 = vmul.f32 0.125, %v158_v27  ;;  %v240_v43 = vmul.f32 0.125, %v177_v32  ;;  %v4164_v4 = vld [vmem:[%s6094_s2 + $0xf8] ss:$12 sps:$4 sm:$0xff]  }
  0x49   :  { %1106 = vmatpush2.bf16.msra.mxu0 %v4165_v5  ;;  %v243_v44 = vmul.f32 0.125, %v196_v33  ;;  %v249_v45 = vpack.c.bf16 %v225_v34, %v225_v34  ;;  %v252_v46 = vpack.c.bf16 %v228_v35, %v228_v35  ;;  %v255_v51 = vpack.c.bf16 %v231_v40, %v231_v40  ;;  %v4181_v10 = vld [vmem:[%s6094_s2 + $0x124] ss:$12 sps:$4 sm:$0xff]   ;;  %v4179_v28 = vld [vmem:[%s6094_s2 + $0x120] ss:$12 sps:$4 sm:$0xff]  }
  0x4a   :  { %1107 = vmatprep.subr.bf16.mxu0 %v4172_v11  ;;  %v246_v50 = vmul.f32 0.125, %v215_v39  ;;  %v258_v53 = vpack.c.bf16 %v234_v41, %v234_v41  ;;  %v261_v55 = vpack.c.bf16 %v237_v42, %v237_v42  ;;  %v264_v60 = vpack.c.bf16 %v240_v43, %v240_v43  ;;  %v4168_v23 = vld [vmem:[%s6094_s2 + $0x38] ss:$12 sps:$4 sm:$0xff]   ;;  %v4173_v40 = vld [vmem:[%s6094_s2 + $0x20] ss:$12 sps:$4 sm:$0xff]  }
  0x4b   :  { %4037 = vmatpush3.bf16.msra.mxu1 %v4158_v24  ;;  %v267_v61 = vpack.c.bf16 %v243_v44, %v243_v44  ;;  %v726_v62 = vunpack.c.l.b16 %v249_v45  ;;  %v729_v1 = vunpack.c.l.b16 %v252_v46  ;;  %v732_v6 = vunpack.c.l.b16 %v255_v51  ;;  %v4185_v33 = vld [vmem:[%s6094_s2 + $0x10c] ss:$12 sps:$4 sm:$0xff]   ;;  %v4189_v45 = vld [vmem:[%s6094_s2 + $0xf4] ss:$12 sps:$4 sm:$0xff]  }
  0x4c   :  { %4038 = vmatprep.subr.bf16.mxu1 %v4159_v29  ;;  %v270_v5 = vpack.c.bf16 %v246_v50, %v246_v50  ;;  %v735_v7 = vunpack.c.l.b16 %v258_v53  ;;  %v738_v9 = vunpack.c.l.b16 %v261_v55  ;;  %v741_v11 = vunpack.c.l.b16 %v264_v60  ;;  %v4169_v29 = vld [vmem:[%s6094_s2 + $0xe0] ss:$12 sps:$4 sm:$0xff]  }
  0x4d   :  { %1108 = vmatpush2.bf16.msra.mxu0 %v4170_v30  ;;  %v744_v13 = vunpack.c.l.b16 %v267_v61  ;;  %v756_v15 = vsel %vm476_vm2, %v729_v1, %v726_v62  ;;  %v70_v16 = vrot.slane %v46_v37, 4  ;;  %v90_v19 = vrot.slane %v49_v49, 4  ;;  %v4178_v61 = vld [vmem:[%s6094_s2 + $0x8] ss:$12 sps:$4 sm:$0xff]  }
  0x4e   :  { %1109 = vmatprep.subr.bf16.mxu0 %v4177_v38  ;;  %v747_v17 = vunpack.c.l.b16 %v270_v5  ;;  %v757_v18 = vsel %vm478_vm3, %v732_v6, %v756_v15  ;;  %v109_v21 = vrot.slane %v52_v54, 4  ;;  %v128_v26 = vrot.slane %v55_v63, 4  ;;  %v4187_v6 = vld [vmem:[%s6094_s2 + $0xf0] ss:$12 sps:$4 sm:$0xff]  }
  0x4f   :  { %4039 = vmatpush3.bf16.msra.mxu1 %v4163_v56  ;;  %v758_v24 = vsel %vm480_vm4, %v735_v7, %v757_v18  ;;  %v71_v25 = vadd.f32 %v70_v16, %v46_v37  ;;  %v147_v27 = vrot.slane %v58_v3, 4  ;;  %v91_v22 = vadd.f32 %v90_v19, %v49_v49 }
  0x50   :  { %4040 = vmatprep.subr.bf16.mxu1 %v4164_v4  ;;  %v759_v30 = vsel %vm482_vm5, %v738_v9, %v758_v24  ;;  %v110_v37 = vadd.f32 %v109_v21, %v52_v54  ;;  %v166_v32 = vrot.slane %v61_v8, 4  ;;  %v129_v38 = vadd.f32 %v128_v26, %v55_v63 }
  0x51   :  { %1110 = vmatpush2.bf16.msra.mxu0 %v4175_v57  ;;  %v760_v34 = vsel %vm484_vm7, %v741_v11, %v759_v30  ;;  %v72_v35 = vrot.slane %v71_v25, 2  ;;  %v148_v31 = vadd.f32 %v147_v27, %v58_v3  ;;  %v92_v49 = vrot.slane %v91_v22, 2  ;;  %v4196_v30 = vld [vmem:[%s6094_s2 + $0xc4] ss:$12 sps:$4 sm:$0xff]  }
  0x52   :  { %1111 = vmatprep.subr.bf16.mxu0 %v4181_v10  ;;  %v761_v36 = vsel %vm486_vm8, %v744_v13, %v760_v34  ;;  %v111_v54 = vrot.slane %v110_v37, 2  ;;  %v167_v39 = vadd.f32 %v166_v32, %v61_v8  ;;  %v130_v47 = vrot.slane %v129_v38, 2  ;;  %v4193_v13 = vld [vmem:[%s6094_s2 + $0xdc] ss:$12 sps:$4 sm:$0xff]  }
  0x53   :  { %4041 = vmatpush3.bf16.msra.mxu1 %v4168_v23  ;;  %v762_v41 = vsel %vm488_vm9, %v747_v17, %v761_v36  ;;  %v73_v42 = vadd.f32 %v72_v35, %v71_v25  ;;  %v149_v63 = vrot.slane %v148_v31, 2  ;;  %v93_v8 = vadd.f32 %v92_v49, %v91_v22 }
  0x54   :  { %4042 = vmatprep.subr.bf16.mxu1 %v4169_v29  ;;  %v771_v3 = vpack.c.b16 %v762_v41, %v762_v41  ;;  %v112_v43 = vadd.f32 %v111_v54, %v110_v37  ;;  %v168_v44 = vrot.slane %v167_v39, 2  ;;  %v131_v50 = vadd.f32 %v130_v47, %v129_v38 }
  0x55   :  { %1112 = vmatpush2.bf16.msra.mxu0 %v4179_v28  ;;  %v74_v46 = vrot.slane %v73_v42, 1  ;;  %v150_v51 = vadd.f32 %v149_v63, %v148_v31  ;;  %v185_v53 = vrot.slane %v64_v12, 4  ;;  %v94_v55 = vrot.slane %v93_v8, 1 }
  0x56   :  { %1113 = vmatprep.subr.bf16.mxu0 %v4185_v33  ;;  %1203 = vmatprep.mubr.bf16.mxu1 %v771_v3  ;;  %v113_v56 = vrot.slane %v112_v43, 1  ;;  %v169_v57 = vadd.f32 %v168_v44, %v167_v39  ;;  %v204_v60 = vrot.slane %v67_v14, 4  ;;  %v132_v1 = vrot.slane %v131_v50, 1  ;;  %v4194_v39 = vld [vmem:[%s6094_s2 + $0xc0] ss:$12 sps:$4 sm:$0xff]  }
  0x57   :  { %1121 = vmatprep.mubr.bf16.mxu0 %v771_v3  ;;  %4043 = vmatpush3.bf16.msra.mxu1 %v4173_v40  ;;  %v75_v62 = vadd.f32 %v74_v46, %v73_v42  ;;  %v151_v4 = vrot.slane %v150_v51, 1  ;;  %v186_v5 = vadd.f32 %v185_v53, %v64_v12  ;;  %v95_v7 = vadd.f32 %v94_v55, %v93_v8  ;;  %v4182_v46 = vld [vmem:[%s6094_s2 + $0x1b8] ss:$12 sps:$4 sm:$0x3f]  }
  0x58   :  { %4044 = vmatprep.subr.bf16.mxu1 %v4174_v52  ;;  %v114_v9 = vadd.f32 %v113_v56, %v112_v43  ;;  %v170_v10 = vrot.slane %v169_v57, 1  ;;  %v205_v11 = vadd.f32 %v204_v60, %v67_v14  ;;  %v133_v15 = vadd.f32 %v132_v1, %v131_v50  ;;  %v4190_v60 = vld [vmem:[%s6094_s2 + $0x188] ss:$12 sps:$4 sm:$0xff]   ;;  %v4202_v1 = vld [vmem:[%s6096_s4 + $0x124] ss:$24 sps:$4 sm:$0xff]  }
  0x59   :  { %1114 = vmatpush2.bf16.msra.mxu0 %v4183_v48  ;;  %v152_v58 = vadd.f32 %v151_v4, %v150_v51  ;;  %v187_v12 = vrot.slane %v186_v5, 2  ;;  %v224_v16 = vmul.f32 0.125, %v75_v62  ;;  %v227_v19 = vmul.f32 0.125, %v95_v7  ;;  %v4197_v62 = vld [vmem:[%s6096_s4 + $0x150] ss:$24 sps:$4 sm:$0xff]  }
  0x5a   :  { %1115 = vmatprep.subr.bf16.mxu0 %v4189_v45  ;;  %v171_v17 = vadd.f32 %v170_v10, %v169_v57  ;;  %v206_v18 = vrot.slane %v205_v11, 2  ;;  %v230_v21 = vmul.f32 0.125, %v114_v9  ;;  %v233_v24 = vmul.f32 0.125, %v133_v15  ;;  %v4186_v57 = vld [vmem:[%s6094_s2 + $0x1a0] ss:$12 sps:$4 sm:$0xff]  }
  0x5b   :  { %4045 = vmatpush3.bf16.msra.mxu1 %v4178_v61  ;;  %v188_v23 = vadd.f32 %v187_v12, %v186_v5  ;;  %v236_v25 = vmul.f32 0.125, %v152_v58  ;;  %v248_v26 = vpack.c.bf16 %v224_v16, %v224_v16  ;;  %v251_v28 = vpack.c.bf16 %v227_v19, %v227_v19  ;;  %v4199_v61 = vld [vmem:[%s6096_s4 + $0x154] ss:$24 sps:$4 sm:$0xff]   ;;  %v4200_v4 = vld [vmem:[%s6096_s4 + $0x120] ss:$24 sps:$4 sm:$0xff]  }
  0x5c   :  { %v207_v14 = vadd.f32 %v206_v18, %v205_v11  ;;  %v239_v27 = vmul.f32 0.125, %v171_v17  ;;  %v254_v29 = vpack.c.bf16 %v230_v21, %v230_v21  ;;  %4076 = vmatprep.subr.bf16.mxu1 %v4653_v0  ;;  %v257_v37 = vpack.c.bf16 %v233_v24, %v233_v24  ;;  %v4203_v5 = vld [vmem:[%s6096_s4 + $0xf0] ss:$24 sps:$4 sm:$0xff]   ;;  %v4211_v7 = vld [vmem:[%s6096_s4 + $0x94] ss:$24 sps:$4 sm:$0xff]  }
  0x5d   :  { %1116 = vmatpush2.bf16.msra.mxu0 %v4187_v6  ;;  %v189_v22 = vrot.slane %v188_v23, 1  ;;  %v260_v32 = vpack.c.bf16 %v236_v25, %v236_v25  ;;  %v725_v33 = vunpack.c.l.b16 %v248_v26  ;;  %v728_v38 = vunpack.c.l.b16 %v251_v28  ;;  %v4206_v6 = vld [vmem:[%s6096_s4 + $0xc0] ss:$24 sps:$4 sm:$0xff]   ;;  %v4209_v9 = vld [vmem:[%s6096_s4 + $0x90] ss:$24 sps:$4 sm:$0xff]  }
  0x5e   :  { %1117 = vmatprep.subr.bf16.mxu0 %v4193_v13  ;;  %v208_v34 = vrot.slane %v207_v14, 1  ;;  %v263_v35 = vpack.c.bf16 %v239_v27, %v239_v27  ;;  %v731_v31 = vunpack.c.l.b16 %v254_v29  ;;  %v734_v49 = vunpack.c.l.b16 %v257_v37  ;;  %v4212_v10 = vld [vmem:[%s6096_s4 + $0x450] ss:$24 sps:$4 sm:$0xff]   ;;  %v4214_v11 = vld [vmem:[%s6096_s4 + $0x454] ss:$24 sps:$4 sm:$0xff]  }
  0x5f   :  { %v190_v36 = vadd.f32 %v189_v22, %v188_v23  ;;  %v737_v54 = vunpack.c.l.b16 %v260_v32  ;;  %v749_v42 = vsel %vm476_vm2, %v728_v38, %v725_v33  ;;  %v1087_v56 = vsel %vm1079_vm1, %v4182_v46, 0  ;;  %v4217_v13 = vld [vmem:[%s6096_s4 + $0x64] ss:$24 sps:$4 sm:$0xff]   ;;  %v4218_v58 = vld [vmem:[%s6096_s4 + $0x420] ss:$24 sps:$4 sm:$0xff]  }
  0x60   :  { %v209_v40 = vadd.f32 %v208_v34, %v207_v14  ;;  %v740_v41 = vunpack.c.l.b16 %v263_v35  ;;  %v750_v63 = vsel %vm478_vm3, %v731_v31, %v749_v42  ;;  %v4220_v15 = vld [vmem:[%s6096_s4 + $0x424] ss:$24 sps:$4 sm:$0xff]   ;;  %v4215_v12 = vld [vmem:[%s6096_s4 + $0x60] ss:$24 sps:$4 sm:$0xff]   ;;  %v4223_v16 = vld [vmem:[%s6096_s4 + $0x34] ss:$24 sps:$4 sm:$0xff]  }
  0x61   :  { %1118 = vmatpush2.bf16.msra.mxu0 %v4191_v59  ;;  %v242_v47 = vmul.f32 0.125, %v190_v36  ;;  %v751_v52 = vsel %vm480_vm4, %v734_v49, %v750_v63  ;;  %v4226_v17 = vld [vmem:[%s6096_s4 + $0x3f4] ss:$24 sps:$4 sm:$0xff]   ;;  %v4224_v18 = vld [vmem:[%s6096_s4 + $0x3f0] ss:$24 sps:$4 sm:$0xff]  }
  0x62   :  { %1119 = vmatprep.subr.bf16.mxu0 %v4196_v30  ;;  %v245_v48 = vmul.f32 0.125, %v209_v40  ;;  %v752_v8 = vsel %vm482_vm5, %v737_v54, %v751_v52  ;;  %v4221_v19 = vld [vmem:[%s6096_s4 + $0x30] ss:$24 sps:$4 sm:$0xff]   ;;  %v4232_v21 = vld [vmem:[%s6096_s4 + $0x3c4] ss:$24 sps:$4 sm:$0xff]  }
  0x63   :  { %v266_v3 = vpack.c.bf16 %v242_v47, %v242_v47  ;;  %v753_v44 = vsel %vm484_vm7, %v740_v41, %v752_v8  ;;  %v4229_v23 = vld [vmem:[%s6096_s4 + $0x4] ss:$24 sps:$4 sm:$0xff]   ;;  %v4230_v24 = vld [vmem:[%s6096_s4 + $0x3c0] ss:$24 sps:$4 sm:$0xff]   ;;  %v4235_v26 = vld [vmem:[%s6096_s4 + $0x2d4] ss:$24 sps:$4 sm:$0xff]  }
  0x64   :  { %v269_v43 = vpack.c.bf16 %v245_v48, %v245_v48  ;;  %v4227_v25 = vld [vmem:[%s6096_s4] ss:$24 sps:$4 sm:$0xff]   ;;  %v4233_v59 = vld [vmem:[%s6096_s4 + $0x2d0] ss:$24 sps:$4 sm:$0xff]   ;;  %v4238_v14 = vld [vmem:[%s6096_s4 + $0x394] ss:$24 sps:$4 sm:$0xff]  }
  0x65   :  { %1120 = vmatpush2.bf16.msra.mxu0 %v4194_v39  ;;  %v743_v45 = vunpack.c.l.b16 %v266_v3  ;;  %v4236_v27 = vld [vmem:[%s6096_s4 + $0x390] ss:$24 sps:$4 sm:$0xff]   ;;  %v4241_v28 = vld [vmem:[%s6096_s4 + $0x2a4] ss:$24 sps:$4 sm:$0xff]   ;;  %v4239_v29 = vld [vmem:[%s6096_s4 + $0x2a0] ss:$24 sps:$4 sm:$0xff]  }
  0x66   :  { %v746_v50 = vunpack.c.l.b16 %v269_v43  ;;  %2191 = vmatprep.subr.bf16.mxu0 %v4214_v11  ;;  %v4244_v30 = vld [vmem:[%s6096_s4 + $0x364] ss:$24 sps:$4 sm:$0xff]   ;;  %v4242_v22 = vld [vmem:[%s6096_s4 + $0x360] ss:$24 sps:$4 sm:$0xff]   ;;  %v4245_v37 = vld [vmem:[%s6096_s4 + $0x270] ss:$24 sps:$4 sm:$0xff]  }
  0x67   :  { %v754_v51 = vsel %vm486_vm8, %v743_v45, %v753_v44  ;;  %v4247_v32 = vld [vmem:[%s6096_s4 + $0x274] ss:$24 sps:$4 sm:$0xff]   ;;  %v4248_v34 = vld [vmem:[%s6096_s4 + $0x330] ss:$24 sps:$4 sm:$0xff]   ;;  %v4253_v35 = vld [vmem:[%s6096_s4 + $0x244] ss:$24 sps:$4 sm:$0xff]  }
  0x68   :  { %v755_v53 = vsel %vm488_vm9, %v746_v50, %v754_v51  ;;  %v4250_v33 = vld [vmem:[%s6096_s4 + $0x334] ss:$24 sps:$4 sm:$0xff]   ;;  %v4251_v38 = vld [vmem:[%s6096_s4 + $0x240] ss:$24 sps:$4 sm:$0xff]   ;;  %v4256_v31 = vld [vmem:[%s6096_s4 + $0x304] ss:$24 sps:$4 sm:$0xff]  }
  0x69   :  { %v770_v55 = vpack.c.b16 %v755_v53, %v755_v53  ;;  %v4254_v36 = vld [vmem:[%s6096_s4 + $0x300] ss:$24 sps:$4 sm:$0xff]   ;;  %v4259_v49 = vld [vmem:[%s6096_s4 + $0x214] ss:$24 sps:$4 sm:$0xff]   ;;  %v4257_v54 = vld [vmem:[%s6096_s4 + $0x210] ss:$24 sps:$4 sm:$0xff]  }
  0x6a   :  { %v4262_v39 = vld [vmem:[%s6096_s4 + $0x15c] ss:$24 sps:$4 sm:$0xff]   ;;  %v4263_v41 = vld [vmem:[%s6096_s4 + $0x1e0] ss:$24 sps:$4 sm:$0xff]   ;;  %v4269_v47 = vld [vmem:[%s6096_s4 + $0x1b0] ss:$24 sps:$4 sm:$0xff]  }
  0x6b   :  { %1204 = vmatmul.mubr.bf16.vlgmr.msra.gmra.mxu1 %v770_v55  ;;  %1122 = vmatmul.mubr.bf16.vlgmr.msra.gmra.mxu0 %v770_v55  ;;  %v4265_v40 = vld [vmem:[%s6096_s4 + $0x1e4] ss:$24 sps:$4 sm:$0xff]   ;;  %v4271_v42 = vld [vmem:[%s6096_s4 + $0x1b4] ss:$24 sps:$4 sm:$0xff]   ;;  %v4275_v48 = vld [vmem:[%s6096_s4 + $0x180] ss:$24 sps:$4 sm:$0xff]  }
  0x6c   :  { %4077 = vmatpush3.bf16.msra.mxu1 %v1087_v56  ;;  %4082 = vmatprep.mubr.msk.bf16.mxu1 %vm4655_vm0, %v4653_v0  ;;  %v4277_v63 = vld [vmem:[%s6096_s4 + $0x184] ss:$24 sps:$4 sm:$0xff]  }
  0x6d   :  { %4078 = vmatprep.subr.bf16.mxu1 %v4653_v0  ;;  %2223 = vmatprep.mubr.bf16.mxu0 %v4654_v2  ;;  %v4283_v52 = vld [vmem:[%s6096_s4 + $0x45c] ss:$24 sps:$4 sm:$0xff]  }
  0x6e   :  { %2192 = vmatpush1.bf16.msra.mxu0 %v4212_v10 }
  0x6f   :  { %2193 = vmatprep.subr.bf16.mxu0 %v4220_v15  ;;  %v4281_v15 = vld [vmem:[%s6096_s4 + $0x458] ss:$24 sps:$4 sm:$0xff]  }
  0x70   :  { %4079 = vmatpush3.bf16.msra.mxu1 %v4186_v57 }
  0x71   :  { %4080 = vmatprep.subr.bf16.mxu1 %v4653_v0  ;;  %v4205_v0 = vld [vmem:[%s6096_s4 + $0xf4] ss:$24 sps:$4 sm:$0xff]  }
  0x72   :  { %2194 = vmatpush1.bf16.msra.mxu0 %v4218_v58 }
  0x73   :  { %2195 = vmatprep.subr.bf16.mxu0 %v4226_v17  ;;  %v4287_v17 = vld [vmem:[%s6096_s4 + $0x428] ss:$24 sps:$4 sm:$0xff]  }
  0x74   :  { %4081 = vmatpush3.bf16.msra.mxu1 %v4190_v60 }
  0x75   :  { %2150 = vmatprep.subr.bf16.mxu1 %v4199_v61 }
  0x76   :  { %2196 = vmatpush1.bf16.msra.mxu0 %v4224_v18 }
  0x77   :  { %4083 = vmatmul.mubr.msk.bf16.vlgmr.msra.gmra.mxu1 %vm82_vm6, %v4961_v20  ;;  %v4208_v20 = vld [vmem:[%s6096_s4 + $0xc4] ss:$24 sps:$4 sm:$0xff]   ;;  %2197 = vmatprep.subr.bf16.mxu0 %v4232_v21 }
  0x78   :  { %2151 = vmatpush1.bf16.msra.mxu1 %v4197_v62 }
  0x79   :  { %2152 = vmatprep.subr.bf16.mxu1 %v4202_v1 }
  0x7a   :  { %2198 = vmatpush1.bf16.msra.mxu0 %v4230_v24 }
  0x7b   :  { %2199 = vmatprep.subr.bf16.mxu0 %v4238_v14 }
  0x7c   :  { %2153 = vmatpush1.bf16.msra.mxu1 %v4200_v4 }
  0x7d   :  { %2154 = vmatprep.subr.bf16.mxu1 %v4205_v0 }
  0x7e   :  { %2200 = vmatpush1.bf16.msra.mxu0 %v4236_v27  ;;  %v4301_v27 = vld [vmem:[%s6096_s4 + $0x3cc] ss:$24 sps:$4 sm:$0xff]  }
  0x7f   :  { %2201 = vmatprep.subr.bf16.mxu0 %v4244_v30  ;;  %v4274_v30 = vld [vmem:[%s6096_s4 + $0xfc] ss:$24 sps:$4 sm:$0xff]  }
  0x80   :  { %2155 = vmatpush1.bf16.msra.mxu1 %v4203_v5 }
  0x81   :  { %2156 = vmatprep.subr.bf16.mxu1 %v4208_v20 }
  0x82   :  { %2202 = vmatpush1.bf16.msra.mxu0 %v4242_v22  ;;  %v4299_v22 = vld [vmem:[%s6096_s4 + $0x3c8] ss:$24 sps:$4 sm:$0xff]  }
  0x83   :  { %2203 = vmatprep.subr.bf16.mxu0 %v4250_v33  ;;  %v4280_v33 = vld [vmem:[%s6096_s4 + $0xcc] ss:$24 sps:$4 sm:$0xff]  }
  0x84   :  { %2157 = vmatpush1.bf16.msra.mxu1 %v4206_v6 }
  0x85   :  { %2158 = vmatprep.subr.bf16.mxu1 %v4211_v7 }
  0x86   :  { %2204 = vmatpush1.bf16.msra.mxu0 %v4248_v34  ;;  %v4305_v34 = vld [vmem:[%s6096_s4 + $0x398] ss:$24 sps:$4 sm:$0xff]  }
  0x87   :  { %2205 = vmatprep.subr.bf16.mxu0 %v4256_v31  ;;  %v4286_v31 = vld [vmem:[%s6096_s4 + $0x9c] ss:$24 sps:$4 sm:$0xff]  }
  0x88   :  { %2159 = vmatpush1.bf16.msra.mxu1 %v4209_v9 }
  0x89   :  { %2160 = vmatprep.subr.bf16.mxu1 %v4217_v13 }
  0x8a   :  { %2206 = vmatpush1.bf16.msra.mxu0 %v4254_v36  ;;  %v4311_v36 = vld [vmem:[%s6096_s4 + $0x368] ss:$24 sps:$4 sm:$0xff]  }
  0x8b   :  { %2232 = vmatprep.subr.bf16.mxu0 %v4262_v39  ;;  %v4292_v39 = vld [vmem:[%s6096_s4 + $0x6c] ss:$24 sps:$4 sm:$0xff]  }
  0x8c   :  { %2161 = vmatpush1.bf16.msra.mxu1 %v4215_v12  ;;  %v4289_v12 = vld [vmem:[%s6096_s4 + $0x42c] ss:$24 sps:$4 sm:$0xff]  }
  0x8d   :  { %2162 = vmatprep.subr.bf16.mxu1 %v4223_v16 }
  0x90   :  { %2163 = vmatpush1.bf16.msra.mxu1 %v4221_v19  ;;  %v4295_v19 = vld [vmem:[%s6096_s4 + $0x3fc] ss:$24 sps:$4 sm:$0xff]  }
  0x91   :  { %2164 = vmatprep.subr.bf16.mxu1 %v4229_v23  ;;  %v4260_v23 = vld [vmem:[%s6096_s4 + $0x158] ss:$24 sps:$4 sm:$0xff]  }
  0x94   :  { %2165 = vmatpush1.bf16.msra.mxu1 %v4227_v25 }
  0x95   :  { %2166 = vmatprep.subr.bf16.mxu1 %v4235_v26  ;;  %v4268_v26 = vld [vmem:[%s6096_s4 + $0x12c] ss:$24 sps:$4 sm:$0xff]  }
  0x98   :  { %2167 = vmatpush2.bf16.msra.mxu1 %v4233_v59  ;;  %v4293_v59 = vld [vmem:[%s6096_s4 + $0x3f8] ss:$24 sps:$4 sm:$0xff]  }
  0x99   :  { %2168 = vmatprep.subr.bf16.mxu1 %v4241_v28  ;;  %v4266_v28 = vld [vmem:[%s6096_s4 + $0x128] ss:$24 sps:$4 sm:$0xff]  }
  0x9c   :  { %2169 = vmatpush2.bf16.msra.mxu1 %v4239_v29 }
  0x9d   :  { %2170 = vmatprep.subr.bf16.mxu1 %v4247_v32  ;;  %v4272_v32 = vld [vmem:[%s6096_s4 + $0xf8] ss:$24 sps:$4 sm:$0xff]  }
  0xa0   :  { %2171 = vmatpush2.bf16.msra.mxu1 %v4245_v37  ;;  %v4307_v37 = vld [vmem:[%s6096_s4 + $0x39c] ss:$24 sps:$4 sm:$0xff]  }
  0xa1   :  { %2172 = vmatprep.subr.bf16.mxu1 %v4253_v35  ;;  %v4313_v35 = vld [vmem:[%s6096_s4 + $0x36c] ss:$24 sps:$4 sm:$0xff]  }
  0xa4   :  { %2173 = vmatpush2.bf16.msra.mxu1 %v4251_v38  ;;  %v4278_v38 = vld [vmem:[%s6096_s4 + $0xc8] ss:$24 sps:$4 sm:$0xff]  }
  0xa5   :  { %2174 = vmatprep.subr.bf16.mxu1 %v4259_v49  ;;  %v4319_v49 = vld [vmem:[%s6096_s4 + $0x33c] ss:$24 sps:$4 sm:$0xff]  }
  0xa8   :  { %2175 = vmatpush2.bf16.msra.mxu1 %v4257_v54  ;;  %v4284_v54 = vld [vmem:[%s6096_s4 + $0x98] ss:$24 sps:$4 sm:$0xff]  }
  0xa9   :  { %2176 = vmatprep.subr.bf16.mxu1 %v4265_v40  ;;  %v4317_v40 = vld [vmem:[%s6096_s4 + $0x338] ss:$24 sps:$4 sm:$0xff]  }
  0xac   :  { %2177 = vmatpush2.bf16.msra.mxu1 %v4263_v41  ;;  %v4325_v41 = vld [vmem:[%s6096_s4 + $0x30c] ss:$24 sps:$4 sm:$0xff]  }
  0xad   :  { %2178 = vmatprep.subr.bf16.mxu1 %v4271_v42  ;;  %v4290_v42 = vld [vmem:[%s6096_s4 + $0x68] ss:$24 sps:$4 sm:$0xff]  }
  0xb0   :  { %2179 = vmatpush2.bf16.msra.mxu1 %v4269_v47  ;;  %v4298_v47 = vld [vmem:[%s6096_s4 + $0x3c] ss:$24 sps:$4 sm:$0xff]  }
  0xb1   :  { %2180 = vmatprep.subr.bf16.mxu1 %v4277_v63  ;;  %v4323_v63 = vld [vmem:[%s6096_s4 + $0x308] ss:$24 sps:$4 sm:$0xff]  }
  0xb4   :  { %2181 = vmatpush2.bf16.msra.mxu1 %v4275_v48  ;;  %v4331_v48 = vld [vmem:[%s6096_s4 + $0x164] ss:$24 sps:$4 sm:$0xff]  }
  0xb5   :  { %2273 = vmatprep.subr.bf16.mxu1 %v4283_v52  ;;  %v4296_v52 = vld [vmem:[%s6096_s4 + $0x38] ss:$24 sps:$4 sm:$0xff]  }
  0xe8   :  { %v654_v3 = vpop.f32.mrf.mxu0  ;;  %v695_v8 = vpop.f32.mrf.mxu1 }
  0xea   :  { %v656_v43 = vpop.f32.mrf.mxu0  ;;  %v4074_v44 = vpop.f32.mrf.mxu1 }
  0xeb   :  { %v4302_v44 = vld [vmem:[%s6096_s4 + $0x8] ss:$24 sps:$4 sm:$0xff]  }
  0xec   :  { %v658_v45 = vpop.f32.mrf.mxu0  ;;  %v698_v46 = vpop.f32.mrf.mxu1 }
  0xed   :  { %v4310_v45 = vld [vmem:[%s6096_s4 + $0x2dc] ss:$24 sps:$4 sm:$0xff]   ;;  %v4335_v46 = vld [vmem:[%s6096_s4 + $0x130] ss:$24 sps:$4 sm:$0xff]  }
  0xee   :  { %v659_v50 = vpop.f32.mrf.mxu0  ;;  %v4075_v51 = vpop.f32.mrf.mxu1 }
  0xef   :  { %v4343_v50 = vld [vmem:[%s6096_s4 + $0x104] ss:$24 sps:$4 sm:$0xff]   ;;  %v4308_v51 = vld [vmem:[%s6096_s4 + $0x2d8] ss:$24 sps:$4 sm:$0xff]  }
  0xfe   :  { %v1164_v53 = vpop.f32.mrf.mxu1 }
 0x100   :  { %v1166_v55 = vpop.f32.mrf.mxu1 }
 0x102   :  { %v1168_v56 = vpop.f32.mrf.mxu1 }
 0x103   :  { %v4349_v56 = vld [vmem:[%s6096_s4 + $0xd4] ss:$24 sps:$4 sm:$0xff]  }
 0x104   :  { %v1169_v57 = vpop.f32.mrf.mxu1 }
 0x105   :  { %v4314_v57 = vld [vmem:[%s6096_s4 + $0x2a8] ss:$24 sps:$4 sm:$0xff]  }
 0x12b   :  { %v4046_v60 = vpop.f32.mrf.mxu1  ;;  %v1123_v61 = vpop.f32.mrf.mxu0 }
 0x12c   :  { %v1124_v62 = vadd.f32 %v1123_v61, %v654_v3  ;;  %v4304_v3 = vld [vmem:[%s6096_s4 + $0xc] ss:$24 sps:$4 sm:$0xff]   ;;  %v4347_v61 = vld [vmem:[%s6096_s4 + $0xd0] ss:$24 sps:$4 sm:$0xff]  }
 0x12d   :  { %v4047_v1 = vpop.f32.mrf.mxu1  ;;  %v1125_v4 = vpop.f32.mrf.mxu0 }
 0x12e   :  { %v1126_v0 = vadd.f32 %v1125_v4, %v656_v43  ;;  %v5269_v6 = vadd.f32 %v1164_v53, %v1124_v62  ;;  %v4048_v11 = vadd.f32 %v4047_v1, %v4046_v60  ;;  %v4337_v43 = vld [vmem:[%s6096_s4 + $0x134] ss:$24 sps:$4 sm:$0xff]   ;;  %v4355_v62 = vld [vmem:[%s6096_s4 + $0xa4] ss:$24 sps:$4 sm:$0xff]   ;;  %v4320_v1 = vld [vmem:[%s6096_s4 + $0x278] ss:$24 sps:$4 sm:$0xff]  }
 0x12f   :  { %v4049_v5 = vpop.f32.mrf.mxu1  ;;  %v1127_v20 = vpop.f32.mrf.mxu0  ;;  %v4316_v53 = vld [vmem:[%s6096_s4 + $0x2ac] ss:$24 sps:$4 sm:$0xff]   ;;  %v4322_v60 = vld [vmem:[%s6096_s4 + $0x27c] ss:$24 sps:$4 sm:$0xff]  }
 0x130   :  { %v5271_v7 = vadd.f32 %v1166_v55, %v1126_v0  ;;  %v5282_v58 = vpack.c.bf16 %v5269_v6, %v5269_v6  ;;  %v1206_v16 = vadd.f32 %v4048_v11, %v695_v8  ;;  %v4329_v8 = vld [vmem:[%s6096_s4 + $0x160] ss:$24 sps:$4 sm:$0xff]   ;;  %v4328_v4 = vld [vmem:[%s6096_s4 + $0x24c] ss:$24 sps:$4 sm:$0xff]  }
 0x131   :  { %v4050_v9 = vpop.f32.mrf.mxu1  ;;  %v1128_v10 = vpop.f32.mrf.mxu0  ;;  %v4341_v55 = vld [vmem:[%s6096_s4 + $0x100] ss:$24 sps:$4 sm:$0xff]   ;;  %v4361_v5 = vld [vmem:[%s6096_s4 + $0x74] ss:$24 sps:$4 sm:$0xff]   ;;  %v4367_v11 = vld [vmem:[%s6096_s4 + $0x44] ss:$24 sps:$4 sm:$0xff]  }
 0x132   :  { %v5275_v13 = vpack.c.bf16 %v5271_v7, %v5271_v7  ;;  %v4353_v0 = vld [vmem:[%s6096_s4 + $0xa0] ss:$24 sps:$4 sm:$0xff]   ;;  %v4334_v9 = vld [vmem:[%s6096_s4 + $0x21c] ss:$24 sps:$4 sm:$0xff]   ;;  %v4359_v10 = vld [vmem:[%s6096_s4 + $0x70] ss:$24 sps:$4 sm:$0xff]  }
 0x133   :  { %v4326_v20 = vld [vmem:[%s6096_s4 + $0x248] ss:$24 sps:$4 sm:$0xff]  }
 0x134   :  { %2182 = vmatprep.mubr.bf16.mxu1 %v5275_v13 }
 0x135   :  { %2183 = vmatmul.mubr.bf16.vlgmr.msra.gmra.mxu1 %v5282_v58 }
 0x136   :  { %2274 = vmatpush1.bf16.msra.mxu1 %v4281_v15  ;;  %2305 = vmatprep.mubr.bf16.mxu1 %v4654_v2  ;;  %v4340_v15 = vld [vmem:[%s6096_s4 + $0x1ec] ss:$24 sps:$4 sm:$0xff]  }
 0x137   :  { %v1245_v18 = vpop.f32.mrf.mxu1  ;;  %2275 = vmatprep.subr.bf16.mxu1 %v4289_v12  ;;  %v4365_v12 = vld [vmem:[%s6096_s4 + $0x40] ss:$24 sps:$4 sm:$0xff]  }
 0x138   :  { %v5296_v21 = vadd.f32 %v1245_v18, %v1206_v16  ;;  %v4373_v16 = vld [vmem:[%s6096_s4 + $0x14] ss:$24 sps:$4 sm:$0xff]  }
 0x139   :  { %v4084_v24 = vpop.f32.mrf.mxu1  ;;  %v4346_v18 = vld [vmem:[%s6096_s4 + $0x1bc] ss:$24 sps:$4 sm:$0xff]  }
 0x13a   :  { %v5303_v25 = vpack.c.bf16 %v5296_v21, %v5296_v21  ;;  %2276 = vmatpush1.bf16.msra.mxu1 %v4287_v17  ;;  %v4338_v17 = vld [vmem:[%s6096_s4 + $0x1e8] ss:$24 sps:$4 sm:$0xff]   ;;  %v4344_v24 = vld [vmem:[%s6096_s4 + $0x1b8] ss:$24 sps:$4 sm:$0xff]  }
 0x13b   :  { %v1248_v14 = vpop.f32.mrf.mxu1  ;;  %2277 = vmatprep.subr.bf16.mxu1 %v4295_v19  ;;  %v4371_v19 = vld [vmem:[%s6096_s4 + $0x10] ss:$24 sps:$4 sm:$0xff]  }
 0x13c   :  { %2224 = vmatmul.mubr.bf16.vlgmr.msra.gmra.mxu0 %v5303_v25  ;;  %v4385_v14 = vld [vmem:[%s6096_s4 + $0x2b4] ss:$24 sps:$4 sm:$0xff]  }
 0x13d   :  { %2233 = vmatpush1.bf16.msra.mxu0 %v4260_v23  ;;  %v4085_v29 = vpop.f32.mrf.mxu1  ;;  %2264 = vmatprep.mubr.bf16.mxu0 %v5275_v13  ;;  %v4379_v23 = vld [vmem:[%s6096_s4 + $0x2e4] ss:$24 sps:$4 sm:$0xff]  }
 0x13e   :  { %2234 = vmatprep.subr.bf16.mxu0 %v4268_v26  ;;  %2278 = vmatpush1.bf16.msra.mxu1 %v4293_v59  ;;  %v4352_v26 = vld [vmem:[%s6096_s4 + $0x18c] ss:$24 sps:$4 sm:$0xff]   ;;  %v4377_v59 = vld [vmem:[%s6096_s4 + $0x2e0] ss:$24 sps:$4 sm:$0xff]   ;;  %v4383_v29 = vld [vmem:[%s6096_s4 + $0x2b0] ss:$24 sps:$4 sm:$0xff]  }
 0x13f   :  { %2279 = vmatprep.subr.bf16.mxu1 %v4301_v27  ;;  %v4350_v27 = vld [vmem:[%s6096_s4 + $0x188] ss:$24 sps:$4 sm:$0xff]  }
 0x141   :  { %2235 = vmatpush1.bf16.msra.mxu0 %v4266_v28  ;;  %v4358_v28 = vld [vmem:[%s6096_s4 + $0x464] ss:$24 sps:$4 sm:$0xff]  }
 0x142   :  { %2236 = vmatprep.subr.bf16.mxu0 %v4274_v30  ;;  %2280 = vmatpush1.bf16.msra.mxu1 %v4299_v22  ;;  %v4391_v30 = vld [vmem:[%s6096_s4 + $0x284] ss:$24 sps:$4 sm:$0xff]   ;;  %v4356_v22 = vld [vmem:[%s6096_s4 + $0x460] ss:$24 sps:$4 sm:$0xff]  }
 0x143   :  { %2281 = vmatprep.subr.bf16.mxu1 %v4307_v37  ;;  %v4364_v37 = vld [vmem:[%s6096_s4 + $0x434] ss:$24 sps:$4 sm:$0xff]  }
 0x145   :  { %2237 = vmatpush1.bf16.msra.mxu0 %v4272_v32  ;;  %v4389_v32 = vld [vmem:[%s6096_s4 + $0x280] ss:$24 sps:$4 sm:$0xff]  }
 0x146   :  { %2238 = vmatprep.subr.bf16.mxu0 %v4280_v33  ;;  %2282 = vmatpush1.bf16.msra.mxu1 %v4305_v34  ;;  %v4397_v33 = vld [vmem:[%s6096_s4 + $0x254] ss:$24 sps:$4 sm:$0xff]   ;;  %v4362_v34 = vld [vmem:[%s6096_s4 + $0x430] ss:$24 sps:$4 sm:$0xff]  }
 0x147   :  { %2283 = vmatprep.subr.bf16.mxu1 %v4313_v35  ;;  %v4370_v35 = vld [vmem:[%s6096_s4 + $0x404] ss:$24 sps:$4 sm:$0xff]  }
 0x149   :  { %2239 = vmatpush1.bf16.msra.mxu0 %v4278_v38  ;;  %v4395_v38 = vld [vmem:[%s6096_s4 + $0x250] ss:$24 sps:$4 sm:$0xff]  }
 0x14a   :  { %2240 = vmatprep.subr.bf16.mxu0 %v4286_v31  ;;  %2284 = vmatpush1.bf16.msra.mxu1 %v4311_v36  ;;  %v4403_v31 = vld [vmem:[%s6096_s4 + $0x224] ss:$24 sps:$4 sm:$0xff]   ;;  %v4368_v36 = vld [vmem:[%s6096_s4 + $0x400] ss:$24 sps:$4 sm:$0xff]  }
 0x14b   :  { %2285 = vmatprep.subr.bf16.mxu1 %v4319_v49  ;;  %v4376_v49 = vld [vmem:[%s6096_s4 + $0x3d4] ss:$24 sps:$4 sm:$0xff]  }
 0x14d   :  { %2241 = vmatpush1.bf16.msra.mxu0 %v4284_v54  ;;  %v4401_v54 = vld [vmem:[%s6096_s4 + $0x220] ss:$24 sps:$4 sm:$0xff]  }
 0x14e   :  { %2242 = vmatprep.subr.bf16.mxu0 %v4292_v39  ;;  %2286 = vmatpush1.bf16.msra.mxu1 %v4317_v40  ;;  %v4406_v39 = vld [vmem:[%s6096_s4 + $0x1f4] ss:$24 sps:$4 sm:$0xff]   ;;  %v4374_v40 = vld [vmem:[%s6096_s4 + $0x3d0] ss:$24 sps:$4 sm:$0xff]  }
 0x14f   :  { %2287 = vmatprep.subr.bf16.mxu1 %v4325_v41  ;;  %v4382_v41 = vld [vmem:[%s6096_s4 + $0x3a4] ss:$24 sps:$4 sm:$0xff]  }
 0x151   :  { %2243 = vmatpush1.bf16.msra.mxu0 %v4290_v42  ;;  %v4404_v42 = vld [vmem:[%s6096_s4 + $0x1f0] ss:$24 sps:$4 sm:$0xff]  }
 0x152   :  { %2244 = vmatprep.subr.bf16.mxu0 %v4298_v47  ;;  %2288 = vmatpush1.bf16.msra.mxu1 %v4323_v63  ;;  %v4409_v47 = vld [vmem:[%s6096_s4 + $0x1c4] ss:$24 sps:$4 sm:$0xff]   ;;  %v4380_v63 = vld [vmem:[%s6096_s4 + $0x3a0] ss:$24 sps:$4 sm:$0xff]  }
 0x153   :  { %2314 = vmatprep.subr.bf16.mxu1 %v4331_v48  ;;  %v4388_v48 = vld [vmem:[%s6096_s4 + $0x374] ss:$24 sps:$4 sm:$0xff]  }
 0x155   :  { %2245 = vmatpush1.bf16.msra.mxu0 %v4296_v52  ;;  %2306 = vmatmul.mubr.bf16.vlgmr.msra.gmra.mxu1 %v5303_v25  ;;  %v4407_v52 = vld [vmem:[%s6096_s4 + $0x1c0] ss:$24 sps:$4 sm:$0xff]  }
 0x156   :  { %2246 = vmatprep.subr.bf16.mxu0 %v4304_v3  ;;  %2315 = vmatpush1.bf16.msra.mxu1 %v4329_v8  ;;  %v4412_v3 = vld [vmem:[%s6096_s4 + $0x194] ss:$24 sps:$4 sm:$0xff]   ;;  %v4386_v8 = vld [vmem:[%s6096_s4 + $0x370] ss:$24 sps:$4 sm:$0xff]  }
 0x157   :  { %2346 = vmatprep.mubr.bf16.mxu1 %v5275_v13  ;;  %2316 = vmatprep.subr.bf16.mxu1 %v4337_v43  ;;  %v4332_v13 = vld [vmem:[%s6096_s4 + $0x218] ss:$24 sps:$4 sm:$0xff]   ;;  %v4394_v43 = vld [vmem:[%s6096_s4 + $0x344] ss:$24 sps:$4 sm:$0xff]  }
 0x159   :  { %2247 = vmatpush1.bf16.msra.mxu0 %v4302_v44  ;;  %v4410_v44 = vld [vmem:[%s6096_s4 + $0x190] ss:$24 sps:$4 sm:$0xff]  }
 0x15a   :  { %2248 = vmatprep.subr.bf16.mxu0 %v4310_v45  ;;  %2317 = vmatpush1.bf16.msra.mxu1 %v4335_v46  ;;  %v4392_v45 = vld [vmem:[%s6096_s4 + $0x340] ss:$24 sps:$4 sm:$0xff]   ;;  %v4400_v46 = vld [vmem:[%s6096_s4 + $0x314] ss:$24 sps:$4 sm:$0xff]  }
 0x15b   :  { %2318 = vmatprep.subr.bf16.mxu1 %v4343_v50  ;;  %v4398_v50 = vld [vmem:[%s6096_s4 + $0x310] ss:$24 sps:$4 sm:$0xff]  }
 0x15d   :  { %2249 = vmatpush2.bf16.msra.mxu0 %v4308_v51  ;;  %v4413_v51 = vld [vmem:[%s6097_s6 + $0x150] ss:$24 sps:$4 sm:$0xff]  }
 0x15e   :  { %2250 = vmatprep.subr.bf16.mxu0 %v4316_v53  ;;  %2319 = vmatpush1.bf16.msra.mxu1 %v4341_v55  ;;  %v4415_v53 = vld [vmem:[%s6097_s6 + $0x154] ss:$24 sps:$4 sm:$0xff]   ;;  %v4416_v55 = vld [vmem:[%s6097_s6 + $0x120] ss:$24 sps:$4 sm:$0xff]  }
 0x15f   :  { %2320 = vmatprep.subr.bf16.mxu1 %v4349_v56  ;;  %v4419_v56 = vld [vmem:[%s6097_s6 + $0xf0] ss:$24 sps:$4 sm:$0xff]  }
 0x161   :  { %2251 = vmatpush2.bf16.msra.mxu0 %v4314_v57  ;;  %v4424_v57 = vld [vmem:[%s6097_s6 + $0xc4] ss:$24 sps:$4 sm:$0xff]  }
 0x162   :  { %2252 = vmatprep.subr.bf16.mxu0 %v4322_v60  ;;  %2321 = vmatpush1.bf16.msra.mxu1 %v4347_v61  ;;  %v4422_v60 = vld [vmem:[%s6097_s6 + $0xc0] ss:$24 sps:$4 sm:$0xff]   ;;  %v4427_v61 = vld [vmem:[%s6097_s6 + $0x94] ss:$24 sps:$4 sm:$0xff]  }
 0x163   :  { %2322 = vmatprep.subr.bf16.mxu1 %v4355_v62  ;;  %v4425_v62 = vld [vmem:[%s6097_s6 + $0x90] ss:$24 sps:$4 sm:$0xff]  }
 0x165   :  { %2253 = vmatpush2.bf16.msra.mxu0 %v4320_v1  ;;  %v4430_v1 = vld [vmem:[%s6097_s6 + $0x64] ss:$24 sps:$4 sm:$0xff]  }
 0x166   :  { %2254 = vmatprep.subr.bf16.mxu0 %v4328_v4  ;;  %2323 = vmatpush1.bf16.msra.mxu1 %v4353_v0  ;;  %v4428_v4 = vld [vmem:[%s6097_s6 + $0x60] ss:$24 sps:$4 sm:$0xff]   ;;  %v4433_v0 = vld [vmem:[%s6097_s6 + $0x34] ss:$24 sps:$4 sm:$0xff]  }
 0x167   :  { %2324 = vmatprep.subr.bf16.mxu1 %v4361_v5  ;;  %v4431_v5 = vld [vmem:[%s6097_s6 + $0x30] ss:$24 sps:$4 sm:$0xff]  }
 0x169   :  { %2255 = vmatpush2.bf16.msra.mxu0 %v4326_v20  ;;  %v4436_v20 = vld [vmem:[%s6097_s6 + $0x4] ss:$24 sps:$4 sm:$0xff]  }
 0x16a   :  { %2256 = vmatprep.subr.bf16.mxu0 %v4334_v9  ;;  %2325 = vmatpush1.bf16.msra.mxu1 %v4359_v10  ;;  %v4434_v9 = vld [vmem:[%s6097_s6] ss:$24 sps:$4 sm:$0xff]   ;;  %v4437_v10 = vld [vmem:[%s6097_s6 + $0x2d0] ss:$24 sps:$4 sm:$0xff]  }
 0x16b   :  { %2326 = vmatprep.subr.bf16.mxu1 %v4367_v11  ;;  %v4439_v11 = vld [vmem:[%s6097_s6 + $0x2d4] ss:$24 sps:$4 sm:$0xff]  }
 0x16d   :  { %2257 = vmatpush2.bf16.msra.mxu0 %v4332_v13  ;;  %v4440_v13 = vld [vmem:[%s6097_s6 + $0x450] ss:$24 sps:$4 sm:$0xff]  }
 0x16e   :  { %2258 = vmatprep.subr.bf16.mxu0 %v4340_v15  ;;  %2327 = vmatpush1.bf16.msra.mxu1 %v4365_v12  ;;  %v4442_v15 = vld [vmem:[%s6097_s6 + $0x454] ss:$24 sps:$4 sm:$0xff]   ;;  %v4445_v12 = vld [vmem:[%s6097_s6 + $0x2a4] ss:$24 sps:$4 sm:$0xff]  }
 0x16f   :  { %2328 = vmatprep.subr.bf16.mxu1 %v4373_v16  ;;  %v4443_v16 = vld [vmem:[%s6097_s6 + $0x2a0] ss:$24 sps:$4 sm:$0xff]  }
 0x171   :  { %2259 = vmatpush2.bf16.msra.mxu0 %v4338_v17  ;;  %v4448_v17 = vld [vmem:[%s6097_s6 + $0x424] ss:$24 sps:$4 sm:$0xff]  }
 0x172   :  { %2260 = vmatprep.subr.bf16.mxu0 %v4346_v18  ;;  %2329 = vmatpush1.bf16.msra.mxu1 %v4371_v19  ;;  %v4446_v18 = vld [vmem:[%s6097_s6 + $0x420] ss:$24 sps:$4 sm:$0xff]   ;;  %v4451_v19 = vld [vmem:[%s6097_s6 + $0x274] ss:$24 sps:$4 sm:$0xff]  }
 0x173   :  { %2330 = vmatprep.subr.bf16.mxu1 %v4379_v23  ;;  %v4449_v23 = vld [vmem:[%s6097_s6 + $0x270] ss:$24 sps:$4 sm:$0xff]  }
 0x175   :  { %2261 = vmatpush2.bf16.msra.mxu0 %v4344_v24  ;;  %v4454_v24 = vld [vmem:[%s6097_s6 + $0x3f4] ss:$24 sps:$4 sm:$0xff]  }
 0x176   :  { %2262 = vmatprep.subr.bf16.mxu0 %v4352_v26  ;;  %2331 = vmatpush2.bf16.msra.mxu1 %v4377_v59  ;;  %v4452_v26 = vld [vmem:[%s6097_s6 + $0x3f0] ss:$24 sps:$4 sm:$0xff]   ;;  %v4457_v59 = vld [vmem:[%s6097_s6 + $0x244] ss:$24 sps:$4 sm:$0xff]  }
 0x177   :  { %2332 = vmatprep.subr.bf16.mxu1 %v4385_v14  ;;  %v4455_v14 = vld [vmem:[%s6097_s6 + $0x240] ss:$24 sps:$4 sm:$0xff]  }
 0x179   :  { %2263 = vmatpush2.bf16.msra.mxu0 %v4350_v27  ;;  %v4458_v27 = vld [vmem:[%s6097_s6 + $0x3c0] ss:$24 sps:$4 sm:$0xff]  }
 0x17a   :  { %2355 = vmatprep.subr.bf16.mxu0 %v4358_v28  ;;  %2333 = vmatpush2.bf16.msra.mxu1 %v4383_v29  ;;  %v4460_v28 = vld [vmem:[%s6097_s6 + $0x3c4] ss:$24 sps:$4 sm:$0xff]   ;;  %v4463_v29 = vld [vmem:[%s6097_s6 + $0x214] ss:$24 sps:$4 sm:$0xff]  }
 0x17b   :  { %2334 = vmatprep.subr.bf16.mxu1 %v4391_v30  ;;  %v4461_v30 = vld [vmem:[%s6097_s6 + $0x210] ss:$24 sps:$4 sm:$0xff]  }
 0x17c   :  { %2265 = vmatmul.mubr.bf16.vlgmr.msra.gmra.mxu0 %v5282_v58 }
 0x17d   :  { %2356 = vmatpush1.bf16.msra.mxu0 %v4356_v22  ;;  %2387 = vmatprep.mubr.bf16.mxu0 %v4654_v2  ;;  %v4466_v22 = vld [vmem:[%s6097_s6 + $0x394] ss:$24 sps:$4 sm:$0xff]  }
 0x17e   :  { %2357 = vmatprep.subr.bf16.mxu0 %v4364_v37  ;;  %2335 = vmatpush2.bf16.msra.mxu1 %v4389_v32  ;;  %v4464_v37 = vld [vmem:[%s6097_s6 + $0x390] ss:$24 sps:$4 sm:$0xff]   ;;  %v4469_v32 = vld [vmem:[%s6097_s6 + $0x1e4] ss:$24 sps:$4 sm:$0xff]  }
 0x17f   :  { %2336 = vmatprep.subr.bf16.mxu1 %v4397_v33  ;;  %v4472_v33 = vld [vmem:[%s6097_s6 + $0x364] ss:$24 sps:$4 sm:$0xff]  }
 0x181   :  { %2358 = vmatpush1.bf16.msra.mxu0 %v4362_v34  ;;  %v4467_v34 = vld [vmem:[%s6097_s6 + $0x1e0] ss:$24 sps:$4 sm:$0xff]  }
 0x182   :  { %2359 = vmatprep.subr.bf16.mxu0 %v4370_v35  ;;  %2337 = vmatpush2.bf16.msra.mxu1 %v4395_v38  ;;  %v4470_v35 = vld [vmem:[%s6097_s6 + $0x360] ss:$24 sps:$4 sm:$0xff]   ;;  %v4475_v38 = vld [vmem:[%s6097_s6 + $0x1b4] ss:$24 sps:$4 sm:$0xff]  }
 0x183   :  { %2338 = vmatprep.subr.bf16.mxu1 %v4403_v31  ;;  %v4478_v31 = vld [vmem:[%s6097_s6 + $0x334] ss:$24 sps:$4 sm:$0xff]  }
 0x185   :  { %2360 = vmatpush1.bf16.msra.mxu0 %v4368_v36  ;;  %v4473_v36 = vld [vmem:[%s6097_s6 + $0x1b0] ss:$24 sps:$4 sm:$0xff]  }
 0x186   :  { %2361 = vmatprep.subr.bf16.mxu0 %v4376_v49  ;;  %2339 = vmatpush2.bf16.msra.mxu1 %v4401_v54  ;;  %v4476_v49 = vld [vmem:[%s6097_s6 + $0x330] ss:$24 sps:$4 sm:$0xff]   ;;  %v4481_v54 = vld [vmem:[%s6097_s6 + $0x184] ss:$24 sps:$4 sm:$0xff]  }
 0x187   :  { %2340 = vmatprep.subr.bf16.mxu1 %v4406_v39  ;;  %v4484_v39 = vld [vmem:[%s6097_s6 + $0x304] ss:$24 sps:$4 sm:$0xff]  }
 0x189   :  { %2362 = vmatpush1.bf16.msra.mxu0 %v4374_v40  ;;  %v4479_v40 = vld [vmem:[%s6097_s6 + $0x180] ss:$24 sps:$4 sm:$0xff]  }
 0x18a   :  { %2363 = vmatprep.subr.bf16.mxu0 %v4382_v41  ;;  %2341 = vmatpush2.bf16.msra.mxu1 %v4404_v42  ;;  %v4482_v41 = vld [vmem:[%s6097_s6 + $0x300] ss:$24 sps:$4 sm:$0xff]   ;;  %v4487_v42 = vld [vmem:[%s6097_s6 + $0x45c] ss:$24 sps:$4 sm:$0xff]  }
 0x18b   :  { %2342 = vmatprep.subr.bf16.mxu1 %v4409_v47  ;;  %v4490_v47 = vld [vmem:[%s6097_s6 + $0x15c] ss:$24 sps:$4 sm:$0xff]  }
 0x18d   :  { %2364 = vmatpush1.bf16.msra.mxu0 %v4380_v63 }
 0x18e   :  { %2365 = vmatprep.subr.bf16.mxu0 %v4388_v48  ;;  %2343 = vmatpush2.bf16.msra.mxu1 %v4407_v52 }
 0x18f   :  { %2344 = vmatprep.subr.bf16.mxu1 %v4412_v3 }
 0x191   :  { %2366 = vmatpush1.bf16.msra.mxu0 %v4386_v8 }
 0x192   :  { %2367 = vmatprep.subr.bf16.mxu0 %v4394_v43  ;;  %2345 = vmatpush2.bf16.msra.mxu1 %v4410_v44  ;;  %v1400_v43 = vlaneseq }
 0x193   :  { %3369 = vmatprep.subr.bf16.mxu1 %v4442_v15 }
 0x195   :  { %2368 = vmatpush1.bf16.msra.mxu0 %v4392_v45  ;;  %2347 = vmatmul.mubr.bf16.vlgmr.msra.gmra.mxu1 %v5282_v58  ;;  %v4418_v58 = vld [vmem:[%s6097_s6 + $0x124] ss:$24 sps:$4 sm:$0xff]  }
 0x196   :  { %2369 = vmatprep.subr.bf16.mxu0 %v4400_v46  ;;  %3401 = vmatprep.mubr.bf16.mxu1 %v4654_v2  ;;  %v5731_v46 = vshrl.u32 %v1400_v43, 7 }
 0x197   :  { %3370 = vmatpush1.bf16.msra.mxu1 %v4440_v13 }
 0x198   :  { %3371 = vmatprep.subr.bf16.mxu1 %v4448_v17  ;;  %v1410_v15 = vsub.s32 2, %v5731_v46 }
 0x199   :  { %2370 = vmatpush1.bf16.msra.mxu0 %v4398_v50 }
 0x19a   :  { %3328 = vmatprep.subr.bf16.mxu0 %v4415_v53  ;;  %v1398_v53 = vld [vmem:[%s6098_s5] sm:$0x3f] }
 0x19b   :  { %3372 = vmatpush1.bf16.msra.mxu1 %v4446_v18 }
 0x19c   :  { %2388 = vmatmul.mubr.bf16.vlgmr.msra.gmra.mxu0 %v5303_v25  ;;  %v4421_v25 = vld [vmem:[%s6097_s6 + $0xf4] ss:$24 sps:$4 sm:$0xff]   ;;  %3373 = vmatprep.subr.bf16.mxu1 %v4454_v24 }
 0x19d   :  { %3329 = vmatpush1.bf16.msra.mxu0 %v4413_v51  ;;  %v1402_v51 = vsub.s32 0, %v5731_v46 }
 0x19e   :  { %3330 = vmatprep.subr.bf16.mxu0 %v4418_v58 }
 0x19f   :  { %3374 = vmatpush1.bf16.msra.mxu1 %v4452_v26 }
 0x1a0   :  { %3375 = vmatprep.subr.bf16.mxu1 %v4460_v28 }
 0x1a1   :  { %3331 = vmatpush1.bf16.msra.mxu0 %v4416_v55  ;;  %v1403_v55 = vrot.slane %v1398_v53, %v1402_v51 }
 0x1a2   :  { %3332 = vmatprep.subr.bf16.mxu0 %v4421_v25 }
 0x1a3   :  { %3376 = vmatpush1.bf16.msra.mxu1 %v4458_v27 }
 0x1a4   :  { %3377 = vmatprep.subr.bf16.mxu1 %v4466_v22 }
 0x1a5   :  { %3333 = vmatpush1.bf16.msra.mxu0 %v4419_v56 }
 0x1a6   :  { %3334 = vmatprep.subr.bf16.mxu0 %v4424_v57 }
 0x1a7   :  { %3378 = vmatpush1.bf16.msra.mxu1 %v4464_v37 }
 0x1a8   :  { %3379 = vmatprep.subr.bf16.mxu1 %v4472_v33 }
 0x1a9   :  { %3335 = vmatpush1.bf16.msra.mxu0 %v4422_v60 }
 0x1aa   :  { %3336 = vmatprep.subr.bf16.mxu0 %v4427_v61 }
 0x1ab   :  { %3380 = vmatpush1.bf16.msra.mxu1 %v4470_v35 }
 0x1ac   :  { %3381 = vmatprep.subr.bf16.mxu1 %v4478_v31  ;;  %v1418_v31 = vsub.s32 4, %v5731_v46 }
 0x1ad   :  { %3337 = vmatpush1.bf16.msra.mxu0 %v4425_v62 }
 0x1ae   :  { %3338 = vmatprep.subr.bf16.mxu0 %v4430_v1 }
 0x1af   :  { %3382 = vmatpush1.bf16.msra.mxu1 %v4476_v49 }
 0x1b0   :  { %3383 = vmatprep.subr.bf16.mxu1 %v4484_v39  ;;  %v1419_v39 = vrot.slane %v1398_v53, %v1418_v31 }
 0x1b1   :  { %3339 = vmatpush1.bf16.msra.mxu0 %v4428_v4  ;;  %v1406_v4 = vsub.s32 1, %v5731_v46 }
 0x1b2   :  { %3340 = vmatprep.subr.bf16.mxu0 %v4433_v0 }
 0x1b3   :  { %3384 = vmatpush1.bf16.msra.mxu1 %v4482_v41  ;;  %v1407_v0 = vrot.slane %v1398_v53, %v1406_v4 }
 0x1b4   :  { %3410 = vmatprep.subr.bf16.mxu1 %v4490_v47 }
 0x1b5   :  { %3341 = vmatpush1.bf16.msra.mxu0 %v4431_v5 }
 0x1b6   :  { %3342 = vmatprep.subr.bf16.mxu0 %v4436_v20 }
 0x1b9   :  { %3343 = vmatpush1.bf16.msra.mxu0 %v4434_v9 }
 0x1ba   :  { %3344 = vmatprep.subr.bf16.mxu0 %v4439_v11 }
 0x1bd   :  { %3345 = vmatpush2.bf16.msra.mxu0 %v4437_v10 }
 0x1be   :  { %3346 = vmatprep.subr.bf16.mxu0 %v4445_v12  ;;  %v1414_v12 = vsub.s32 3, %v5731_v46 }
 0x1c0   :  { %v1415_v17 = vrot.slane %v1398_v53, %v1414_v12 }
 0x1c1   :  { %3347 = vmatpush2.bf16.msra.mxu0 %v4443_v16  ;;  %v1411_v16 = vrot.slane %v1398_v53, %v1410_v15 }
 0x1c2   :  { %3348 = vmatprep.subr.bf16.mxu0 %v4451_v19 }
 0x1c5   :  { %3349 = vmatpush2.bf16.msra.mxu0 %v4449_v23 }
 0x1c6   :  { %3350 = vmatprep.subr.bf16.mxu0 %v4457_v59 }
 0x1c9   :  { %3351 = vmatpush2.bf16.msra.mxu0 %v4455_v14 }
 0x1ca   :  { %3352 = vmatprep.subr.bf16.mxu0 %v4463_v29 }
 0x1cd   :  { %3353 = vmatpush2.bf16.msra.mxu0 %v4461_v30 }
 0x1ce   :  { %3354 = vmatprep.subr.bf16.mxu0 %v4469_v32 }
 0x1d1   :  { %3355 = vmatpush2.bf16.msra.mxu0 %v4467_v34 }
 0x1d2   :  { %3356 = vmatprep.subr.bf16.mxu0 %v4475_v38 }
 0x1d5   :  { %3357 = vmatpush2.bf16.msra.mxu0 %v4473_v36 }
 0x1d6   :  { %3358 = vmatprep.subr.bf16.mxu0 %v4481_v54  ;;  %v1422_v54 = vsub.s32 5, %v5731_v46 }
 0x1d8   :  { %v1423_v41 = vrot.slane %v1398_v53, %v1422_v54 }
 0x1d9   :  { %3359 = vmatpush2.bf16.msra.mxu0 %v4479_v40 }
 0x1da   :  { %3451 = vmatprep.subr.bf16.mxu0 %v4487_v42 }
 0x1f5   :  { %v2184_v63 = vpop.f32.mrf.mxu1 }
 0x1f6   :  { %v2185_v58 = vadd.f32 %v2184_v63, %v1403_v55 }
 0x1f7   :  { %v2186_v48 = vpop.f32.mrf.mxu1 }
 0x1f8   :  { %v2187_v5 = vadd.f32 %v2186_v48, %v1407_v0 }
 0x1f9   :  { %v2188_v52 = vpop.f32.mrf.mxu1 }
 0x1fb   :  { %v2189_v3 = vpop.f32.mrf.mxu1 }
 0x1fc   :  { %v2225_v8 = vpop.f32.mrf.mxu0 }
 0x1fd   :  { %v2226_v25 = vadd.f32 %v2225_v8, %v2185_v58 }
 0x1fe   :  { %v2227_v44 = vpop.f32.mrf.mxu0 }
 0x1ff   :  { %v2396_v56 = vsub.f32 0.0, %v2226_v25  ;;  %v2228_v10 = vadd.f32 %v2227_v44, %v2187_v5  ;;  %v4485_v5 = vld [vmem:[%s6097_s6 + $0x458] ss:$24 sps:$4 sm:$0xff]  }
 0x200   :  { %v2229_v45 = vpop.f32.mrf.mxu0 }
 0x201   :  { %v2399_v61 = vmul.f32 1.442695, %v2396_v56  ;;  %v2397_v11 = vsub.f32 0.0, %v2228_v10 }
 0x202   :  { %v2230_v50 = vpop.f32.mrf.mxu0 }
 0x203   :  { %4629 = vpow2.f32 %v2399_v61  ;;  %v2401_v13 = vmul.f32 1.442695, %v2397_v11  ;;  %v4491_v11 = vld [vmem:[%s6097_s6 + $0x428] ss:$24 sps:$4 sm:$0xff]  }
 0x210   :  { %v4630_v20 = vpop.eup %4629 }
 0x211   :  { %v2405_v9 = vadd.f32 1.0, %v4630_v20 }
 0x213   :  { %4631 = vrcp.f32 %v2405_v9 }
 0x214   :  { %4633 = vpow2.f32 %v2401_v13  ;;  %v4496_v13 = vld [vmem:[%s6097_s6 + $0x12c] ss:$24 sps:$4 sm:$0xff]  }
 0x215   :  { %v2307_v57 = vpop.f32.mrf.mxu1 }
 0x217   :  { %v2309_v60 = vpop.f32.mrf.mxu1 }
 0x219   :  { %v2311_v62 = vpop.f32.mrf.mxu1 }
 0x21b   :  { %v2312_v1 = vpop.f32.mrf.mxu1 }
 0x220   :  { %v4632_v23 = vpop.eup %4631 }
 0x221   :  { %v2420_v29 = vsub.f32 1.0, %v4632_v23  ;;  %v4634_v34 = vpop.eup %4633 }
 0x222   :  { %v2406_v38 = vadd.f32 1.0, %v4634_v34  ;;  %v4518_v34 = vld [vmem:[%s6097_s6 + $0x68] ss:$24 sps:$4 sm:$0xff]  }
 0x223   :  { %v2423_v33 = vmul.f32 %v2420_v29, %v5269_v6  ;;  %v4514_v29 = vld [vmem:[%s6097_s6 + $0x9c] ss:$24 sps:$4 sm:$0xff]  }
 0x23c   :  { %v2266_v18 = vpop.f32.mrf.mxu0 }
 0x23d   :  { %v2267_v19 = vadd.f32 %v2266_v18, %v1411_v16  ;;  %v4499_v16 = vld [vmem:[%s6097_s6 + $0x3fc] ss:$24 sps:$4 sm:$0xff]   ;;  %v4497_v18 = vld [vmem:[%s6097_s6 + $0x3f8] ss:$24 sps:$4 sm:$0xff]  }
 0x23e   :  { %v2268_v24 = vpop.f32.mrf.mxu0 }
 0x23f   :  { %v2308_v26 = vadd.f32 %v2307_v57, %v2267_v19  ;;  %v2269_v59 = vadd.f32 %v2268_v24, %v1415_v17  ;;  %v4494_v17 = vld [vmem:[%s6097_s6 + $0x128] ss:$24 sps:$4 sm:$0xff]   ;;  %v4502_v19 = vld [vmem:[%s6097_s6 + $0xfc] ss:$24 sps:$4 sm:$0xff]   ;;  %v4500_v24 = vld [vmem:[%s6097_s6 + $0xf8] ss:$24 sps:$4 sm:$0xff]  }
 0x240   :  { %v2270_v14 = vpop.f32.mrf.mxu0 }
 0x241   :  { %v2398_v27 = vsub.f32 0.0, %v2308_v26  ;;  %v2310_v28 = vadd.f32 %v2309_v60, %v2269_v59  ;;  %v4503_v26 = vld [vmem:[%s6097_s6 + $0x3c8] ss:$24 sps:$4 sm:$0xff]   ;;  %v4508_v59 = vld [vmem:[%s6097_s6 + $0xcc] ss:$24 sps:$4 sm:$0xff]  }
 0x242   :  { %v2271_v30 = vpop.f32.mrf.mxu0  ;;  %v4511_v14 = vld [vmem:[%s6097_s6 + $0x39c] ss:$24 sps:$4 sm:$0xff]  }
 0x243   :  { %v2403_v22 = vmul.f32 1.442695, %v2398_v27  ;;  %v2414_v37 = vmax.f32 %v2310_v28, 0.0  ;;  %v4506_v27 = vld [vmem:[%s6097_s6 + $0xc8] ss:$24 sps:$4 sm:$0xff]  }
 0x244   :  { %v4509_v28 = vld [vmem:[%s6097_s6 + $0x398] ss:$24 sps:$4 sm:$0xff]   ;;  %v4517_v30 = vld [vmem:[%s6097_s6 + $0x36c] ss:$24 sps:$4 sm:$0xff]  }
 0x245   :  { %4635 = vpow2.f32 %v2403_v22  ;;  %v2417_v32 = vmul.f32 %v4632_v23, %v2414_v37  ;;  %v4505_v23 = vld [vmem:[%s6097_s6 + $0x3cc] ss:$24 sps:$4 sm:$0xff]   ;;  %v4512_v22 = vld [vmem:[%s6097_s6 + $0x98] ss:$24 sps:$4 sm:$0xff]   ;;  %v4515_v37 = vld [vmem:[%s6097_s6 + $0x368] ss:$24 sps:$4 sm:$0xff]  }
 0x246   :  { %4637 = vrcp.f32 %v2406_v38  ;;  %v4521_v38 = vld [vmem:[%s6097_s6 + $0x338] ss:$24 sps:$4 sm:$0xff]  }
 0x247   :  { %v5749_v35 = vadd.f32 %v2423_v33, %v2417_v32  ;;  %v4520_v32 = vld [vmem:[%s6097_s6 + $0x6c] ss:$24 sps:$4 sm:$0xff]   ;;  %v4523_v33 = vld [vmem:[%s6097_s6 + $0x33c] ss:$24 sps:$4 sm:$0xff]  }
 0x249   :  { %v5770_v20 = vpack.c.bf16 %v5749_v35, %v5749_v35 }
 0x252   :  { %v4636_v36 = vpop.eup %4635 }
 0x253   :  { %v2407_v49 = vadd.f32 1.0, %v4636_v36  ;;  %v4638_v63 = vpop.eup %4637  ;;  %v4526_v36 = vld [vmem:[%s6097_s6 + $0x3c] ss:$24 sps:$4 sm:$0xff]  }
 0x254   :  { %v2421_v43 = vsub.f32 1.0, %v4638_v63 }
 0x255   :  { %4639 = vrcp.f32 %v2407_v49  ;;  %v2348_v40 = vpop.f32.mrf.mxu1  ;;  %v4529_v49 = vld [vmem:[%s6097_s6 + $0x30c] ss:$24 sps:$4 sm:$0xff]  }
 0x256   :  { %v2349_v42 = vadd.f32 %v2348_v40, %v1419_v39  ;;  %v2424_v56 = vmul.f32 %v2421_v43, %v5271_v7  ;;  %v4493_v7 = vld [vmem:[%s6097_s6 + $0x42c] ss:$24 sps:$4 sm:$0xff]   ;;  %v4524_v39 = vld [vmem:[%s6097_s6 + $0x38] ss:$24 sps:$4 sm:$0xff]   ;;  %v4527_v40 = vld [vmem:[%s6097_s6 + $0x308] ss:$24 sps:$4 sm:$0xff]  }
 0x257   :  { %v2350_v6 = vpop.f32.mrf.mxu1  ;;  %v4547_v43 = vld [vmem:[%s6097_s6 + $0x104] ss:$24 sps:$4 sm:$0xff]  }
 0x258   :  { %v2351_v48 = vadd.f32 %v2350_v6, %v1423_v41  ;;  %v4532_v41 = vld [vmem:[%s6097_s6 + $0xc] ss:$24 sps:$4 sm:$0xff]  }
 0x259   :  { %v2352_v47 = vpop.f32.mrf.mxu1  ;;  %v4535_v6 = vld [vmem:[%s6097_s6 + $0x164] ss:$24 sps:$4 sm:$0xff]  }
 0x25a   :  { %v4533_v47 = vld [vmem:[%s6097_s6 + $0x160] ss:$24 sps:$4 sm:$0xff]  }
 0x25b   :  { %v2353_v52 = vpop.f32.mrf.mxu1 }
 0x25c   :  { %v2389_v3 = vpop.f32.mrf.mxu0  ;;  %v4536_v52 = vld [vmem:[%s6097_s6 + $0x2d8] ss:$24 sps:$4 sm:$0xff]  }
 0x25d   :  { %v2390_v8 = vadd.f32 %v2389_v3, %v2349_v42  ;;  %v4530_v42 = vld [vmem:[%s6097_s6 + $0x8] ss:$24 sps:$4 sm:$0xff]  }
 0x25e   :  { %v2391_v44 = vpop.f32.mrf.mxu0  ;;  %v4539_v3 = vld [vmem:[%s6097_s6 + $0x130] ss:$24 sps:$4 sm:$0xff]  }
 0x25f   :  { %v2415_v45 = vmax.f32 %v2390_v8, 0.0  ;;  %v2392_v50 = vadd.f32 %v2391_v44, %v2351_v48  ;;  %v4541_v48 = vld [vmem:[%s6097_s6 + $0x134] ss:$24 sps:$4 sm:$0xff]   ;;  %v4542_v44 = vld [vmem:[%s6097_s6 + $0x2a8] ss:$24 sps:$4 sm:$0xff]  }
 0x260   :  { %v2393_v55 = vpop.f32.mrf.mxu0  ;;  %v4544_v8 = vld [vmem:[%s6097_s6 + $0x2ac] ss:$24 sps:$4 sm:$0xff]  }
 0x261   :  { %v2418_v58 = vmul.f32 %v4638_v63, %v2415_v45  ;;  %v2416_v25 = vmax.f32 %v2392_v50, 0.0  ;;  %v4538_v63 = vld [vmem:[%s6097_s6 + $0x2dc] ss:$24 sps:$4 sm:$0xff]   ;;  %v4545_v45 = vld [vmem:[%s6097_s6 + $0x100] ss:$24 sps:$4 sm:$0xff]  }
 0x262   :  { %v4640_v57 = vpop.eup %4639  ;;  %v2394_v60 = vpop.f32.mrf.mxu0  ;;  %v4550_v50 = vld [vmem:[%s6097_s6 + $0x27c] ss:$24 sps:$4 sm:$0xff]  }
 0x263   :  { %v2419_v53 = vmul.f32 %v4640_v57, %v2416_v25  ;;  %v2422_v61 = vsub.f32 1.0, %v4640_v57  ;;  %v5758_v62 = vadd.f32 %v2424_v56, %v2418_v58  ;;  %v4553_v55 = vld [vmem:[%s6097_s6 + $0xd4] ss:$24 sps:$4 sm:$0xff]   ;;  %v4548_v58 = vld [vmem:[%s6097_s6 + $0x278] ss:$24 sps:$4 sm:$0xff]  }
 0x264   :  { %v4551_v25 = vld [vmem:[%s6097_s6 + $0xd0] ss:$24 sps:$4 sm:$0xff]   ;;  %v4556_v56 = vld [vmem:[%s6097_s6 + $0x24c] ss:$24 sps:$4 sm:$0xff]  }
 0x265   :  { %v2425_v1 = vmul.f32 %v2422_v61, %v5296_v21  ;;  %v5763_v0 = vpack.c.bf16 %v5758_v62, %v5758_v62  ;;  %v4488_v21 = vld [vmem:[%s6097_s6 + $0x158] ss:$24 sps:$4 sm:$0xff]   ;;  %v4559_v57 = vld [vmem:[%s6097_s6 + $0xa4] ss:$24 sps:$4 sm:$0xff]   ;;  %v4554_v60 = vld [vmem:[%s6097_s6 + $0x248] ss:$24 sps:$4 sm:$0xff]  }
 0x266   :  { %v4562_v61 = vld [vmem:[%s6097_s6 + $0x21c] ss:$24 sps:$4 sm:$0xff]  }
 0x267   :  { %v5775_v9 = vadd.f32 %v2425_v1, %v2419_v53  ;;  %3360 = vmatprep.mubr.bf16.mxu0 %v5763_v0  ;;  %v4557_v53 = vld [vmem:[%s6097_s6 + $0xa0] ss:$24 sps:$4 sm:$0xff]   ;;  %v4565_v1 = vld [vmem:[%s6097_s6 + $0x74] ss:$24 sps:$4 sm:$0xff]  }
 0x268   :  { %3361 = vmatmul.mubr.bf16.vlgmr.msra.gmra.mxu0 %v5770_v20 }
 0x269   :  { %3452 = vmatpush1.bf16.msra.mxu0 %v4485_v5  ;;  %v5784_v10 = vpack.c.bf16 %v5775_v9, %v5775_v9  ;;  %3483 = vmatprep.mubr.bf16.mxu0 %v4654_v2  ;;  %v4563_v5 = vld [vmem:[%s6097_s6 + $0x70] ss:$24 sps:$4 sm:$0xff]  }
 0x26a   :  { %3453 = vmatprep.subr.bf16.mxu0 %v4493_v7  ;;  %v4568_v7 = vld [vmem:[%s6097_s6 + $0x1ec] ss:$24 sps:$4 sm:$0xff]  }
 0x26b   :  { %3402 = vmatmul.mubr.bf16.vlgmr.msra.gmra.mxu1 %v5784_v10 }
 0x26c   :  { %3411 = vmatpush1.bf16.msra.mxu1 %v4488_v21  ;;  %3442 = vmatprep.mubr.bf16.mxu1 %v5763_v0  ;;  %v4571_v21 = vld [vmem:[%s6097_s6 + $0x44] ss:$24 sps:$4 sm:$0xff]  }
 0x26d   :  { %3412 = vmatprep.subr.bf16.mxu1 %v4496_v13  ;;  %3454 = vmatpush1.bf16.msra.mxu0 %v4491_v11  ;;  %v4566_v11 = vld [vmem:[%s6097_s6 + $0x1e8] ss:$24 sps:$4 sm:$0xff]  }
 0x26e   :  { %3455 = vmatprep.subr.bf16.mxu0 %v4499_v16  ;;  %v4569_v13 = vld [vmem:[%s6097_s6 + $0x40] ss:$24 sps:$4 sm:$0xff]   ;;  %v4574_v16 = vld [vmem:[%s6097_s6 + $0x1bc] ss:$24 sps:$4 sm:$0xff]  }
 0x270   :  { %3413 = vmatpush1.bf16.msra.mxu1 %v4494_v17  ;;  %v4577_v17 = vld [vmem:[%s6097_s6 + $0x14] ss:$24 sps:$4 sm:$0xff]  }
 0x271   :  { %3414 = vmatprep.subr.bf16.mxu1 %v4502_v19  ;;  %3456 = vmatpush1.bf16.msra.mxu0 %v4497_v18  ;;  %v4572_v18 = vld [vmem:[%s6097_s6 + $0x1b8] ss:$24 sps:$4 sm:$0xff]  }
 0x272   :  { %3457 = vmatprep.subr.bf16.mxu0 %v4505_v23  ;;  %v4575_v19 = vld [vmem:[%s6097_s6 + $0x10] ss:$24 sps:$4 sm:$0xff]   ;;  %v4580_v23 = vld [vmem:[%s6097_s6 + $0x18c] ss:$24 sps:$4 sm:$0xff]  }
 0x274   :  { %3415 = vmatpush1.bf16.msra.mxu1 %v4500_v24  ;;  %v4583_v24 = vld [vmem:[%s6097_s6 + $0x2e4] ss:$24 sps:$4 sm:$0xff]  }
 0x275   :  { %3416 = vmatprep.subr.bf16.mxu1 %v4508_v59  ;;  %3458 = vmatpush1.bf16.msra.mxu0 %v4503_v26  ;;  %v4578_v26 = vld [vmem:[%s6097_s6 + $0x188] ss:$24 sps:$4 sm:$0xff]  }
 0x276   :  { %3459 = vmatprep.subr.bf16.mxu0 %v4511_v14  ;;  %v4581_v59 = vld [vmem:[%s6097_s6 + $0x2e0] ss:$24 sps:$4 sm:$0xff]   ;;  %v4586_v14 = vld [vmem:[%s6097_s6 + $0x464] ss:$24 sps:$4 sm:$0xff]  }
 0x278   :  { %3417 = vmatpush1.bf16.msra.mxu1 %v4506_v27  ;;  %v4589_v27 = vld [vmem:[%s6097_s6 + $0x2b4] ss:$24 sps:$4 sm:$0xff]  }
 0x279   :  { %3418 = vmatprep.subr.bf16.mxu1 %v4514_v29  ;;  %3460 = vmatpush1.bf16.msra.mxu0 %v4509_v28  ;;  %v4584_v28 = vld [vmem:[%s6097_s6 + $0x460] ss:$24 sps:$4 sm:$0xff]   ;;  %v4587_v29 = vld [vmem:[%s6097_s6 + $0x2b0] ss:$24 sps:$4 sm:$0xff]  }
 0x27a   :  { %3461 = vmatprep.subr.bf16.mxu0 %v4517_v30  ;;  %v4592_v30 = vld [vmem:[%s6097_s6 + $0x434] ss:$24 sps:$4 sm:$0xff]  }
 0x27c   :  { %3419 = vmatpush1.bf16.msra.mxu1 %v4512_v22  ;;  %v4595_v22 = vld [vmem:[%s6097_s6 + $0x284] ss:$24 sps:$4 sm:$0xff]  }
 0x27d   :  { %3420 = vmatprep.subr.bf16.mxu1 %v4520_v32  ;;  %3462 = vmatpush1.bf16.msra.mxu0 %v4515_v37  ;;  %v4590_v37 = vld [vmem:[%s6097_s6 + $0x430] ss:$24 sps:$4 sm:$0xff]   ;;  %v4593_v32 = vld [vmem:[%s6097_s6 + $0x280] ss:$24 sps:$4 sm:$0xff]  }
 0x27e   :  { %3463 = vmatprep.subr.bf16.mxu0 %v4523_v33  ;;  %v4598_v33 = vld [vmem:[%s6097_s6 + $0x404] ss:$24 sps:$4 sm:$0xff]  }
 0x280   :  { %3421 = vmatpush1.bf16.msra.mxu1 %v4518_v34  ;;  %v4601_v34 = vld [vmem:[%s6097_s6 + $0x254] ss:$24 sps:$4 sm:$0xff]  }
 0x281   :  { %3422 = vmatprep.subr.bf16.mxu1 %v4526_v36  ;;  %3464 = vmatpush1.bf16.msra.mxu0 %v4521_v38  ;;  %v4599_v38 = vld [vmem:[%s6097_s6 + $0x250] ss:$24 sps:$4 sm:$0xff]   ;;  %v4604_v36 = vld [vmem:[%s6097_s6 + $0x3d4] ss:$24 sps:$4 sm:$0xff]  }
 0x282   :  { %3465 = vmatprep.subr.bf16.mxu0 %v4529_v49  ;;  %v4607_v49 = vld [vmem:[%s6097_s6 + $0x224] ss:$24 sps:$4 sm:$0xff]  }
 0x284   :  { %3423 = vmatpush1.bf16.msra.mxu1 %v4524_v39  ;;  %v4602_v39 = vld [vmem:[%s6097_s6 + $0x3d0] ss:$24 sps:$4 sm:$0xff]  }
 0x285   :  { %3424 = vmatprep.subr.bf16.mxu1 %v4532_v41  ;;  %3466 = vmatpush1.bf16.msra.mxu0 %v4527_v40  ;;  %v4605_v40 = vld [vmem:[%s6097_s6 + $0x220] ss:$24 sps:$4 sm:$0xff]   ;;  %v4610_v41 = vld [vmem:[%s6097_s6 + $0x3a4] ss:$24 sps:$4 sm:$0xff]  }
 0x286   :  { %3492 = vmatprep.subr.bf16.mxu0 %v4535_v6  ;;  %v4613_v6 = vld [vmem:[%s6097_s6 + $0x1f4] ss:$24 sps:$4 sm:$0xff]  }
 0x288   :  { %3425 = vmatpush1.bf16.msra.mxu1 %v4530_v42  ;;  %3484 = vmatmul.mubr.bf16.vlgmr.msra.gmra.mxu0 %v5784_v10  ;;  %v4608_v42 = vld [vmem:[%s6097_s6 + $0x3a0] ss:$24 sps:$4 sm:$0xff]  }
 0x289   :  { %3426 = vmatprep.subr.bf16.mxu1 %v4538_v63  ;;  %3493 = vmatpush1.bf16.msra.mxu0 %v4533_v47  ;;  %v4611_v47 = vld [vmem:[%s6097_s6 + $0x1f0] ss:$24 sps:$4 sm:$0xff]   ;;  %v4616_v63 = vld [vmem:[%s6097_s6 + $0x374] ss:$24 sps:$4 sm:$0xff]  }
 0x28a   :  { %3524 = vmatprep.mubr.bf16.mxu0 %v5763_v0  ;;  %3494 = vmatprep.subr.bf16.mxu0 %v4541_v48  ;;  %v4560_v0 = vld [vmem:[%s6097_s6 + $0x218] ss:$24 sps:$4 sm:$0xff]   ;;  %v4619_v48 = vld [vmem:[%s6097_s6 + $0x1c4] ss:$24 sps:$4 sm:$0xff]  }
 0x28c   :  { %3427 = vmatpush2.bf16.msra.mxu1 %v4536_v52  ;;  %v4614_v52 = vld [vmem:[%s6097_s6 + $0x370] ss:$24 sps:$4 sm:$0xff]  }
 0x28d   :  { %3428 = vmatprep.subr.bf16.mxu1 %v4544_v8  ;;  %3495 = vmatpush1.bf16.msra.mxu0 %v4539_v3  ;;  %v4617_v3 = vld [vmem:[%s6097_s6 + $0x1c0] ss:$24 sps:$4 sm:$0xff]   ;;  %v4622_v8 = vld [vmem:[%s6097_s6 + $0x344] ss:$24 sps:$4 sm:$0xff]  }
 0x28e   :  { %3496 = vmatprep.subr.bf16.mxu0 %v4547_v43  ;;  %v4625_v43 = vld [vmem:[%s6097_s6 + $0x194] ss:$24 sps:$4 sm:$0xff]  }
 0x290   :  { %3429 = vmatpush2.bf16.msra.mxu1 %v4542_v44  ;;  %v4620_v44 = vld [vmem:[%s6097_s6 + $0x340] ss:$24 sps:$4 sm:$0xff]  }
 0x291   :  { %3430 = vmatprep.subr.bf16.mxu1 %v4550_v50  ;;  %3497 = vmatpush1.bf16.msra.mxu0 %v4545_v45  ;;  %v4623_v45 = vld [vmem:[%s6097_s6 + $0x190] ss:$24 sps:$4 sm:$0xff]   ;;  %v4628_v50 = vld [vmem:[%s6097_s6 + $0x314] ss:$24 sps:$4 sm:$0xff]  }
 0x292   :  { %3498 = vmatprep.subr.bf16.mxu0 %v4553_v55  ;;  %v4626_v55 = vld [vmem:[%s6097_s6 + $0x310] ss:$24 sps:$4 sm:$0xff]  }
 0x294   :  { %3431 = vmatpush2.bf16.msra.mxu1 %v4548_v58 }
 0x295   :  { %3432 = vmatprep.subr.bf16.mxu1 %v4556_v56  ;;  %3499 = vmatpush1.bf16.msra.mxu0 %v4551_v25 }
 0x296   :  { %3500 = vmatprep.subr.bf16.mxu0 %v4559_v57 }
 0x298   :  { %3433 = vmatpush2.bf16.msra.mxu1 %v4554_v60 }
 0x299   :  { %3434 = vmatprep.subr.bf16.mxu1 %v4562_v61  ;;  %3501 = vmatpush1.bf16.msra.mxu0 %v4557_v53 }
 0x29a   :  { %3502 = vmatprep.subr.bf16.mxu0 %v4565_v1 }
 0x29c   :  { %3435 = vmatpush2.bf16.msra.mxu1 %v4560_v0 }
 0x29d   :  { %3436 = vmatprep.subr.bf16.mxu1 %v4568_v7  ;;  %3503 = vmatpush1.bf16.msra.mxu0 %v4563_v5 }
 0x29e   :  { %3504 = vmatprep.subr.bf16.mxu0 %v4571_v21 }
 0x2a0   :  { %3437 = vmatpush2.bf16.msra.mxu1 %v4566_v11  ;;  %v2576_v11 = vld [vmem:[%s6099_s7] sm:$0x3f] }
 0x2a1   :  { %3438 = vmatprep.subr.bf16.mxu1 %v4574_v16  ;;  %3505 = vmatpush1.bf16.msra.mxu0 %v4569_v13 }
 0x2a2   :  { %3506 = vmatprep.subr.bf16.mxu0 %v4577_v17 }
 0x2a4   :  { %3439 = vmatpush2.bf16.msra.mxu1 %v4572_v18 }
 0x2a5   :  { %3440 = vmatprep.subr.bf16.mxu1 %v4580_v23  ;;  %3507 = vmatpush1.bf16.msra.mxu0 %v4575_v19 }
 0x2a6   :  { %3508 = vmatprep.subr.bf16.mxu0 %v4583_v24 }
 0x2a8   :  { %3441 = vmatpush2.bf16.msra.mxu1 %v4578_v26 }
 0x2a9   :  { %3509 = vmatpush2.bf16.msra.mxu0 %v4581_v59  ;;  %3533 = vmatprep.subr.bf16.mxu1 %v4586_v14  ;;  %v2589_v59 = vrot.slane %v2576_v11, %v1410_v15 }
 0x2aa   :  { %3510 = vmatprep.subr.bf16.mxu0 %v4589_v27 }
 0x2ab   :  { %3443 = vmatmul.mubr.bf16.vlgmr.msra.gmra.mxu1 %v5770_v20 }
 0x2ac   :  { %3534 = vmatpush1.bf16.msra.mxu1 %v4584_v28  ;;  %3565 = vmatprep.mubr.bf16.mxu1 %v4654_v2  ;;  %v4596_v2 = vld [vmem:[%s6097_s6 + $0x400] ss:$24 sps:$4 sm:$0xff]  }
 0x2ad   :  { %3511 = vmatpush2.bf16.msra.mxu0 %v4587_v29  ;;  %3535 = vmatprep.subr.bf16.mxu1 %v4592_v30 }
 0x2ae   :  { %3512 = vmatprep.subr.bf16.mxu0 %v4595_v22 }
 0x2b0   :  { %3536 = vmatpush1.bf16.msra.mxu1 %v4590_v37 }
 0x2b1   :  { %3513 = vmatpush2.bf16.msra.mxu0 %v4593_v32  ;;  %3537 = vmatprep.subr.bf16.mxu1 %v4598_v33 }
 0x2b2   :  { %3514 = vmatprep.subr.bf16.mxu0 %v4601_v34 }
 0x2b4   :  { %3538 = vmatpush1.bf16.msra.mxu1 %v4596_v2  ;;  %v2593_v2 = vrot.slane %v2576_v11, %v1414_v12 }
 0x2b5   :  { %3515 = vmatpush2.bf16.msra.mxu0 %v4599_v38  ;;  %3539 = vmatprep.subr.bf16.mxu1 %v4604_v36 }
 0x2b6   :  { %3516 = vmatprep.subr.bf16.mxu0 %v4607_v49  ;;  %v2597_v49 = vrot.slane %v2576_v11, %v1418_v31 }
 0x2b8   :  { %3540 = vmatpush1.bf16.msra.mxu1 %v4602_v39 }
 0x2b9   :  { %3517 = vmatpush2.bf16.msra.mxu0 %v4605_v40  ;;  %3541 = vmatprep.subr.bf16.mxu1 %v4610_v41  ;;  %v2601_v40 = vrot.slane %v2576_v11, %v1422_v54 }
 0x2ba   :  { %3518 = vmatprep.subr.bf16.mxu0 %v4613_v6 }
 0x2bc   :  { %3542 = vmatpush1.bf16.msra.mxu1 %v4608_v42 }
 0x2bd   :  { %3519 = vmatpush2.bf16.msra.mxu0 %v4611_v47  ;;  %3543 = vmatprep.subr.bf16.mxu1 %v4616_v63 }
 0x2be   :  { %3520 = vmatprep.subr.bf16.mxu0 %v4619_v48 }
 0x2c0   :  { %3544 = vmatpush1.bf16.msra.mxu1 %v4614_v52 }
 0x2c1   :  { %3521 = vmatpush2.bf16.msra.mxu0 %v4617_v3  ;;  %3545 = vmatprep.subr.bf16.mxu1 %v4622_v8 }
 0x2c2   :  { %3522 = vmatprep.subr.bf16.mxu0 %v4625_v43 }
 0x2c4   :  { %3546 = vmatpush1.bf16.msra.mxu1 %v4620_v44 }
 0x2c5   :  { %3523 = vmatpush2.bf16.msra.mxu0 %v4623_v45  ;;  %3547 = vmatprep.subr.bf16.mxu1 %v4628_v50 }
 0x2c8   :  { %3548 = vmatpush1.bf16.msra.mxu1 %v4626_v55  ;;  %3525 = vmatmul.mubr.bf16.vlgmr.msra.gmra.mxu0 %v5770_v20  ;;  %v2581_v20 = vrot.slane %v2576_v11, %v1402_v51 }
 0x2cb   :  { %3566 = vmatmul.mubr.bf16.vlgmr.msra.gmra.mxu1 %v5784_v10  ;;  %v2585_v10 = vrot.slane %v2576_v11, %v1406_v4 }
 0x328   :  { %v3362_v58 = vpop.f32.mrf.mxu0 }
 0x329   :  { %v3363_v13 = vadd.f32 %v3362_v58, %v2581_v20 }
 0x32a   :  { %v3364_v25 = vpop.f32.mrf.mxu0 }
 0x32b   :  { %v3403_v56 = vpop.f32.mrf.mxu1  ;;  %v3365_v16 = vadd.f32 %v3364_v25, %v2585_v10 }
 0x32c   :  { %v3366_v57 = vpop.f32.mrf.mxu0  ;;  %v3404_v17 = vadd.f32 %v3403_v56, %v3363_v13 }
 0x32d   :  { %v3405_v60 = vpop.f32.mrf.mxu1 }
 0x32e   :  { %v3367_v53 = vpop.f32.mrf.mxu0  ;;  %v3406_v18 = vadd.f32 %v3405_v60, %v3365_v16  ;;  %v3574_v19 = vsub.f32 0.0, %v3404_v17 }
 0x32f   :  { %v3407_v61 = vpop.f32.mrf.mxu1 }
 0x330   :  { %v3575_v23 = vsub.f32 0.0, %v3406_v18  ;;  %v3577_v24 = vmul.f32 1.442695, %v3574_v19 }
 0x331   :  { %v3408_v1 = vpop.f32.mrf.mxu1 }
 0x332   :  { %v3579_v26 = vmul.f32 1.442695, %v3575_v23  ;;  %4641 = vpow2.f32 %v3577_v24 }
 0x334   :  { %4643 = vpow2.f32 %v3579_v26 }
 0x33f   :  { %v4642_v37 = vpop.eup %4641 }
 0x340   :  { %v3583_v33 = vadd.f32 1.0, %v4642_v37 }
 0x341   :  { %v4644_v32 = vpop.eup %4643 }
 0x342   :  { %v3584_v34 = vadd.f32 1.0, %v4644_v32 }
 0x348   :  { %v3485_v0 = vpop.f32.mrf.mxu0 }
 0x34a   :  { %v3487_v5 = vpop.f32.mrf.mxu0 }
 0x34c   :  { %v3489_v7 = vpop.f32.mrf.mxu0 }
 0x34e   :  { %v3490_v21 = vpop.f32.mrf.mxu0 }
 0x36b   :  { %v3444_v14 = vpop.f32.mrf.mxu1 }
 0x36c   :  { %v3445_v27 = vadd.f32 %v3444_v14, %v2589_v59 }
 0x36d   :  { %v3446_v28 = vpop.f32.mrf.mxu1 }
 0x36e   :  { %v3486_v51 = vadd.f32 %v3485_v0, %v3445_v27  ;;  %v3447_v36 = vadd.f32 %v3446_v28, %v2593_v2 }
 0x36f   :  { %v3448_v29 = vpop.f32.mrf.mxu1 }
 0x370   :  { %v3576_v30 = vsub.f32 0.0, %v3486_v51  ;;  %v3488_v39 = vadd.f32 %v3487_v5, %v3447_v36 }
 0x371   :  { %v3449_v4 = vpop.f32.mrf.mxu1 }
 0x372   :  { %v3581_v22 = vmul.f32 1.442695, %v3576_v30  ;;  %v3592_v63 = vmax.f32 %v3488_v39, 0.0 }
 0x374   :  { %4645 = vpow2.f32 %v3581_v22 }
 0x375   :  { %4647 = vrcp.f32 %v3583_v33 }
 0x376   :  { %4649 = vrcp.f32 %v3584_v34 }
 0x381   :  { %v4646_v38 = vpop.eup %4645 }
 0x382   :  { %v3585_v15 = vadd.f32 1.0, %v4646_v38  ;;  %v4648_v41 = vpop.eup %4647 }
 0x383   :  { %v4650_v42 = vpop.eup %4649  ;;  %v3598_v12 = vsub.f32 1.0, %v4648_v41  ;;  %v3595_v50 = vmul.f32 %v4648_v41, %v3592_v63 }
 0x384   :  { %4651 = vrcp.f32 %v3585_v15  ;;  %v3599_v43 = vsub.f32 1.0, %v4650_v42 }
 0x385   :  { %v3601_v46 = vmul.f32 %v3598_v12, %v5749_v35 }
 0x386   :  { %v3602_v56 = vmul.f32 %v3599_v43, %v5758_v62 }
 0x387   :  { %v3604_v61 = vadd.f32 %v3601_v46, %v3595_v50 }
 0x388   :  { %v3526_v6 = vpop.f32.mrf.mxu0 }
 0x389   :  { %v3527_v47 = vadd.f32 %v3526_v6, %v2597_v49 }
 0x38a   :  { %v3528_v48 = vpop.f32.mrf.mxu0 }
 0x38b   :  { %v3567_v52 = vpop.f32.mrf.mxu1  ;;  %v3529_v3 = vadd.f32 %v3528_v48, %v2601_v40 }
 0x38c   :  { %v3568_v8 = vadd.f32 %v3567_v52, %v3527_v47  ;;  %v3530_v44 = vpop.f32.mrf.mxu0 }
 0x38d   :  { %v3569_v45 = vpop.f32.mrf.mxu1 }
 0x38e   :  { %v3593_v55 = vmax.f32 %v3568_v8, 0.0  ;;  %v3570_v31 = vadd.f32 %v3569_v45, %v3529_v3  ;;  %v3531_v58 = vpop.f32.mrf.mxu0 }
 0x38f   :  { %v3571_v25 = vpop.f32.mrf.mxu1 }
 0x390   :  { %v3596_v54 = vmul.f32 %v4650_v42, %v3593_v55  ;;  %v3594_v57 = vmax.f32 %v3570_v31, 0.0 }
 0x391   :  { %v4652_v60 = vpop.eup %4651  ;;  %v3572_v53 = vpop.f32.mrf.mxu1 }
 0x392   :  { %v3605_v1 = vadd.f32 %v3602_v56, %v3596_v54  ;;  %v3597_v0 = vmul.f32 %v4652_v60, %v3594_v57  ;;  %v3600_v5 = vsub.f32 1.0, %v4652_v60 }
 0x394   :  { %v4000_v7 = vpack.c.bf16 %v3605_v1, %v3604_v61  ;;  %v3603_v21 = vmul.f32 %v3600_v5, %v5775_v9 }
 0x396   :  { %v3606_v11 = vadd.f32 %v3603_v21, %v3597_v0  ;;  %3620 = vst [vmem:[%s6100_s8] sm:$0xff] %v4000_v7 }
 0x398   :  { %v4001_v20 = vpack.c.bf16 %v3606_v11, %v3606_v11 }
 0x39a   :  { %3621 = vst [vmem:[%s6100_s8 + $0x8] sm:$0xf] %v4001_v20 }

</bundles_post_ra>
